<compile_context>
chip_gen: v5e
topology: v5e:2x2
jax: 0.10.0
libtpu: 0.0.40
codegen_flags: <defaults>
</compile_context>

<pallas_src>
import jax
import jax.numpy as jnp
from jax import lax
from jax.experimental import pallas as pl
from jax.experimental.pallas import tpu as pltpu

_F32 = jnp.float32
_BF16 = jnp.bfloat16


# ----------------------------------------------------------------------------
# Pallas kernel (G graphs per grid step, fused along the node/edge row axis)
# ----------------------------------------------------------------------------
def _encoder_linear_kernel(h_ref, u_ref, pos_s_ref, pos_a_ref,
                           dis_a_ref, dis_s_ref, mask_a_ref, mask_s_ref,
                           r_dst_a_ref, r_dst_s_ref, s_sel_ref, *rest):
    (ud_w1, ud_b1, ud_w2, ud_b2, ud_w3, ud_b3,          # u2h_enc_dis
     uu_w, uu_b,                                        # u2h_enc_u
     hd_w1, hd_b1, hd_w2, hd_b2, hd_w3, hd_b3,          # h2h_enc_dis
     hh_w, hh_b,                                        # h2h_enc_h
     cf_w1, cf_b1, cf_w2, cf_b2, cf_w3, cf_b3,          # h_updater_coef
     ct_w1, ct_b1, ct_w2, ct_b2, ct_w3, ct_b3,          # h_updater_const
     out_ref) = rest

    G, Ns, H = h_ref.shape
    Na = u_ref.shape[1]
    U = u_ref.shape[2]

    def dot(a, b):
        return jnp.dot(a, b, preferred_element_type=_F32)

    h2 = h_ref[...].reshape(G * Ns, H)
    u2 = u_ref[...].reshape(G * Na, U)
    pos_s2 = pos_s_ref[...].reshape(G * Ns, 2)
    pos_a2 = pos_a_ref[...].reshape(G * Na, 2)

    def edge_pre(src_pos, dis, r_dst_ref, w1_ref, b1_ref, n_dst, n_src):
        # First layer of the edge MLP on [src_pos, dst_pos, dis] without ever
        # materialising the (E, 5) edge tensor.
        w1 = w1_ref[...]                                           # (5, mh) f32
        mh = w1.shape[1]
        src_t = dot(src_pos, w1[0:2, :])                           # (G*n_src, mh)
        dst_t = dot(pos_s2, w1[2:4, :]) + b1_ref[...]              # (G*n_dst, mh)
        src_b = lax.broadcast_in_dim(src_t.reshape(G, n_src, mh),
                                     (G, n_dst, n_src, mh), (0, 2, 3))
        dis_b = lax.broadcast_in_dim(dis, (G, n_dst, n_src, mh), (0, 1, 2))
        pre = (src_b + dis_b * w1[4:5, :]).reshape(G * n_dst * n_src, mh)
        # destination term replicated over src with an exact 0/1 selector matmul
        return pre + dot(r_dst_ref[...], dst_t)                    # (E, mh) f32

    def mlp_tail(pre, w2, b2, w3, b3):
        # layers 2/3: bf16 operands, f32 accumulation (MXU-native)
        y = jnp.tanh(pre).astype(_BF16)
        y = jnp.tanh(dot(y, w2[...]) + b2[...]).astype(_BF16)
        return dot(y, w3[...]) + b3[...]

    # ---- a2s: gated action -> state messages, summed per destination --------
    gate = jax.nn.sigmoid(
        mlp_tail(edge_pre(pos_a2, dis_a_ref[...], r_dst_a_ref, ud_w1, ud_b1, Ns, Na),
                 ud_w2, ud_b2, ud_w3, ud_b3))                      # (G*Ns*Na, H)
    u_enc = dot(u2, uu_w[...]) + uu_b[...]                         # (G*Na, H)
    u_b = lax.broadcast_in_dim(u_enc.reshape(G, Na, H), (G, Ns, Na, H), (0, 2, 3))
    mask_a_b = lax.broadcast_in_dim(mask_a_ref[...], (G, Ns, Na, H), (0, 1, 2))
    sum_u = jnp.sum(gate.reshape(G, Ns, Na, H) * u_b * mask_a_b,
                    axis=2).reshape(G * Ns, H)

    # ---- s2s: edge-softmax attention messages --------------------------------
    logit = mlp_tail(edge_pre(pos_s2, dis_s_ref[...], r_dst_s_ref, hd_w1, hd_b1, Ns, Ns),
                     hd_w2, hd_b2, hd_w3, hd_b3).reshape(G, Ns, Ns, H)
    mask_s_b = lax.broadcast_in_dim(mask_s_ref[...], (G, Ns, Ns, H), (0, 1, 2))
    # per-destination-segment max (exact edge_softmax, no global-max underflow),
    # masked exp, guarded denominator -> no NaN even for isolated nodes.
    lm = jnp.where(mask_s_b > 0, logit, _F32(-1e30))
    mx = jnp.max(lm, axis=2, keepdims=True)                        # (G, Ns, 1, H)
    num = jnp.exp(lm - mx) * mask_s_b
    h_enc = dot(h2, hh_w[...]) + hh_b[...]                         # (G*Ns, H)
    h_b = lax.broadcast_in_dim(h_enc.reshape(G, Ns, H), (G, Ns, Ns, H), (0, 2, 3))
    den = jnp.maximum(jnp.sum(num, axis=2), _F32(1e-20)).reshape(G * Ns, H)
    wsum = jnp.sum(num * h_b, axis=2).reshape(G * Ns, H)
    sum_h = wsum * pl.reciprocal(den, approx=True)                 # EUP slot

    # ---- state update: einsum('boi,bi->bo', coef, inp) + const ---------------
    inp = jnp.concatenate([h2, sum_u, sum_h], axis=-1)             # (G*Ns, 3H) f32
    y = jnp.tanh(dot(pos_s2, cf_w1[...]) + cf_b1[...])
    y = jnp.tanh(dot(y, cf_w2[...]) + cf_b2[...])
    coef = dot(y.astype(_BF16), cf_w3[...]) + cf_b3[...]           # (G*Ns, H*3H) o-major
    cst = jnp.tanh(dot(pos_s2, ct_w1[...]) + ct_b1[...])
    cst = jnp.tanh(dot(cst, ct_w2[...]) + ct_b2[...])
    cst = dot(cst, ct_w3[...]) + ct_b3[...]                        # (G*Ns, H)

    # lane-axis tile of inp (bf16) + exact 0/1 selector turns the batched
    # matvec into a single MXU matmul with K = 3*H*H.
    inp_t = jnp.concatenate([inp.astype(_BF16)] * H, axis=-1)      # (G*Ns, H*3H)
    prod = coef.astype(_BF16) * inp_t
    out = dot(prod, s_sel_ref[...]) + cst                          # (G*Ns, H) f32

    # lane-dense store: pack the G graphs of this step across the lane axis
    out3 = out.reshape(G, Ns, H)
    packed = jnp.concatenate([out3[g] for g in range(G)], axis=-1)  # (Ns, G*H)
    out_ref[...] = packed.astype(out_ref.dtype)


# ----------------------------------------------------------------------------
# Wrapper: graph fusing, selector constants, lane-packed output
# ----------------------------------------------------------------------------
def _pick_graphs_per_step(batch, hidden):
    """Graphs fused per grid step: prefer a lane-dense (multiple-of-128) packed
    output block while keeping >= 2 grid steps (v7x has two TensorCores)."""
    divisors = [g for g in range(batch // 2, 0, -1) if batch % g == 0]
    if not divisors:
        return max(batch, 1)
    for g in divisors:
        if (g * hidden) % 128 == 0:
            return g
    return divisors[0]


def encoder_linear_forward(h, u, pos_s, pos_a, dis_a2s, dis_s2s,
                           mask_a2s, mask_s2s, params, graphs_per_step=None):
    """Batched forward: every graph input carries a leading batch axis B."""
    B, Ns, H = h.shape
    Na = u.shape[1]
    D = 3 * H
    G = graphs_per_step or _pick_graphs_per_step(B, H)
    assert B % G == 0, (B, G)
    steps = B // G

    # constant 0/1 selectors, computed once by XLA (resident across grid steps)
    r_dst_a = (jnp.arange(G * Ns * Na)[:, None] // Na
               == jnp.arange(G * Ns)[None, :]).astype(jnp.float32)
    r_dst_s = (jnp.arange(G * Ns * Ns)[:, None] // Ns
               == jnp.arange(G * Ns)[None, :]).astype(jnp.float32)
    s_sel = (jnp.arange(D * H)[:, None] // D
             == jnp.arange(H)[None, :]).astype(jnp.bfloat16)        # exact in bf16

    # bf16 operands (f32 accumulation) where the matmuls have real rows/width:
    # edge-MLP layers 2/3 (M = G*Ns*Na) and cf_w3 (N = 3*H*H).  uu_w / hh_w /
    # ct_* stay f32: M = G*Ns is tiny and this keeps numerics tight.
    params = list(params)
    for idx in (2, 4, 10, 12, 20):
        params[idx] = params[idx].astype(jnp.bfloat16)

    graph_args = [h, u, pos_s, pos_a,
                  dis_a2s, dis_s2s,
                  mask_a2s.astype(jnp.float32), mask_s2s.astype(jnp.float32)]
    const_args = [r_dst_a, r_dst_s, s_sel]
    args = graph_args + const_args + params

    def batched(x):   # G graphs per grid step along the leading axis
        return pl.BlockSpec((G,) + x.shape[1:],
                            lambda b: (b,) + (0,) * (x.ndim - 1))

    def shared(x):    # weights / selectors: same (only) block every grid step
        return pl.BlockSpec(x.shape, lambda b: (0,) * x.ndim)

    in_specs = ([batched(x) for x in graph_args]
                + [shared(x) for x in const_args + params])

    out = pl.pallas_call(
        _encoder_linear_kernel,
        out_shape=jax.ShapeDtypeStruct((steps, Ns, G * H), jnp.float32),
        grid=(steps,),
        in_specs=in_specs,
        out_specs=pl.BlockSpec((None, Ns, G * H), lambda b: (b, 0, 0)),
        compiler_params=pltpu.CompilerParams(
            dimension_semantics=("parallel",)),
    )(*args)

    # un-pack the lane-packed per-step output back to (B, Ns, H)
    return (out.reshape(steps, Ns, G, H)
               .transpose(0, 2, 1, 3)
               .reshape(B, Ns, H))


# ----------------------------------------------------------------------------
# Deterministic parameter init (PyTorch-Linear-style uniform)
# ----------------------------------------------------------------------------
def _init_linear(key, fan_in, fan_out):
    kw, kb = jax.random.split(key)
    bound = 1.0 / float(fan_in) ** 0.5
    w = jax.random.uniform(kw, (fan_in, fan_out), jnp.float32, -bound, bound)
    b = jax.random.uniform(kb, (1, fan_out), jnp.float32, -bound, bound)
    return w, b


def init_params(key, u_dim, hidden_dim, mlp_h=64):
    layer_dims = [
        (5, mlp_h), (mlp_h, mlp_h), (mlp_h, hidden_dim),                   # u2h_enc_dis
        (u_dim, hidden_dim),                                               # u2h_enc_u
        (5, mlp_h), (mlp_h, mlp_h), (mlp_h, hidden_dim),                   # h2h_enc_dis
        (hidden_dim, hidden_dim),                                          # h2h_enc_h
        (2, mlp_h), (mlp_h, mlp_h), (mlp_h, 3 * hidden_dim * hidden_dim),  # h_updater_coef
        (2, mlp_h), (mlp_h, mlp_h), (mlp_h, hidden_dim),                   # h_updater_const
    ]
    keys = jax.random.split(key, len(layer_dims))
    params = []
    for k, (fi, fo) in zip(keys, layer_dims):
        w, b = _init_linear(k, fi, fo)
        params += [w, b]
    return params


# ----------------------------------------------------------------------------
# Pure-JAX reference (mirrors the PyTorch/DGL forward, single graph, f32)
# ----------------------------------------------------------------------------
def reference_forward(h, u, pos_s, pos_a, dis_a2s, dis_s2s,
                      mask_a2s, mask_s2s, params):
    (ud_w1, ud_b1, ud_w2, ud_b2, ud_w3, ud_b3,
     uu_w, uu_b,
     hd_w1, hd_b1, hd_w2, hd_b2, hd_w3, hd_b3,
     hh_w, hh_b,
     cf_w1, cf_b1, cf_w2, cf_b2, cf_w3, cf_b3,
     ct_w1, ct_b1, ct_w2, ct_b2, ct_w3, ct_b3) = params
    Ns, H = h.shape
    Na = u.shape[0]

    def mlp3(x, w1, b1, w2, b2, w3, b3):
        y = jnp.tanh(x @ w1 + b1)
        y = jnp.tanh(y @ w2 + b2)
        return y @ w3 + b3

    e_a2s = jnp.concatenate([
        jnp.broadcast_to(pos_a[None, :, :], (Ns, Na, 2)),
        jnp.broadcast_to(pos_s[:, None, :], (Ns, Na, 2)),
        dis_a2s[:, :, None]], axis=-1)
    gate = jax.nn.sigmoid(mlp3(e_a2s, ud_w1, ud_b1, ud_w2, ud_b2, ud_w3, ud_b3))
    u_enc = u @ uu_w + uu_b
    sum_u = jnp.sum(gate * u_enc[None, :, :] * mask_a2s[:, :, None], axis=1)

    e_s2s = jnp.concatenate([
        jnp.broadcast_to(pos_s[None, :, :], (Ns, Ns, 2)),
        jnp.broadcast_to(pos_s[:, None, :], (Ns, Ns, 2)),
        dis_s2s[:, :, None]], axis=-1)
    logit = mlp3(e_s2s, hd_w1, hd_b1, hd_w2, hd_b2, hd_w3, hd_b3)
    m3 = mask_s2s[:, :, None]
    lm = jnp.where(m3 > 0, logit, -1e30)
    mx = jnp.max(lm, axis=1, keepdims=True)
    num = jnp.exp(lm - mx) * m3
    attn = num / jnp.sum(num, axis=1, keepdims=True)
    h_enc = h @ hh_w + hh_b
    sum_h = jnp.sum(attn * h_enc[None, :, :], axis=1)

    inp = jnp.concatenate([h, sum_u, sum_h], axis=-1)
    coef = mlp3(pos_s, cf_w1, cf_b1, cf_w2, cf_b2, cf_w3, cf_b3).reshape(Ns, H, 3 * H)
    const = mlp3(pos_s, ct_w1, ct_b1, ct_w2, ct_b2, ct_w3, ct_b3)
    return jnp.einsum('boi,bi->bo', coef, inp) + const


# ----------------------------------------------------------------------------
if __name__ == "__main__":
    key = jax.random.PRNGKey(0)
    u_dim, hidden_dim, mlp_h_dim = 8, 32, 64
    B, Ns, Na = 8, 8, 8   # graphs, state nodes, action nodes
    # -> G = 4 graphs per grid step (lane-dense (8,128) output), grid = (2,)

    ks = jax.random.split(key, 7)
    h = jax.random.normal(ks[0], (B, Ns, hidden_dim), jnp.float32)
    u = jax.random.normal(ks[1], (B, Na, u_dim), jnp.float32)
    pos_s = jax.random.uniform(ks[2], (B, Ns, 2), jnp.float32)
    pos_a = jax.random.uniform(ks[3], (B, Na, 2), jnp.float32)
    dis_a2s = jnp.linalg.norm(pos_s[:, :, None, :] - pos_a[:, None, :, :], axis=-1)
    dis_s2s = jnp.linalg.norm(pos_s[:, :, None, :] - pos_s[:, None, :, :], axis=-1)
    mask_a2s = (jax.random.uniform(ks[4], (B, Ns, Na)) < 0.7).astype(jnp.float32)
    mask_s2s = (jax.random.uniform(ks[5], (B, Ns, Ns)) < 0.7).astype(jnp.float32)
    # self-loops so every state node has at least one incoming s2s edge
    mask_s2s = jnp.maximum(mask_s2s, jnp.eye(Ns, dtype=jnp.float32)[None])

    params = init_params(ks[6], u_dim, hidden_dim, mlp_h_dim)

    out = encoder_linear_forward(h, u, pos_s, pos_a, dis_a2s, dis_s2s,
                                 mask_a2s, mask_s2s, params)
    jax.block_until_ready(out)

    ref = jax.vmap(reference_forward,
                   in_axes=(0, 0, 0, 0, 0, 0, 0, 0, None))(
        h, u, pos_s, pos_a, dis_a2s, dis_s2s, mask_a2s, mask_s2s, params)

    assert out.shape == (B, Ns, hidden_dim)
    max_err = float(jnp.max(jnp.abs(out - ref)))
    # tolerance covers bf16 operand rounding (f32 accumulation) amplified by the
    # 3*H-term per-output contraction in the state update
    assert jnp.allclose(out, ref, atol=5e-2, rtol=5e-2), max_err
    print("KERNEL_OK")
</pallas_src>

<mosaic_0001>
module attributes {stable_mosaic.version = 11 : i64} {
  func.func @_encoder_linear_kernel(%arg0: i32, %arg1: memref<4x8x32xf32, #tpu.memory_space<vmem>>, %arg2: memref<4x8x8xf32, #tpu.memory_space<vmem>>, %arg3: memref<4x8x2xf32, #tpu.memory_space<vmem>>, %arg4: memref<4x8x2xf32, #tpu.memory_space<vmem>>, %arg5: memref<4x8x8xf32, #tpu.memory_space<vmem>>, %arg6: memref<4x8x8xf32, #tpu.memory_space<vmem>>, %arg7: memref<4x8x8xf32, #tpu.memory_space<vmem>>, %arg8: memref<4x8x8xf32, #tpu.memory_space<vmem>>, %arg9: memref<256x32xf32, #tpu.memory_space<vmem>>, %arg10: memref<256x32xf32, #tpu.memory_space<vmem>>, %arg11: memref<3072x32xbf16, #tpu.memory_space<vmem>>, %arg12: memref<5x64xf32, #tpu.memory_space<vmem>>, %arg13: memref<1x64xf32, #tpu.memory_space<vmem>>, %arg14: memref<64x64xbf16, #tpu.memory_space<vmem>>, %arg15: memref<1x64xf32, #tpu.memory_space<vmem>>, %arg16: memref<64x32xbf16, #tpu.memory_space<vmem>>, %arg17: memref<1x32xf32, #tpu.memory_space<vmem>>, %arg18: memref<8x32xf32, #tpu.memory_space<vmem>>, %arg19: memref<1x32xf32, #tpu.memory_space<vmem>>, %arg20: memref<5x64xf32, #tpu.memory_space<vmem>>, %arg21: memref<1x64xf32, #tpu.memory_space<vmem>>, %arg22: memref<64x64xbf16, #tpu.memory_space<vmem>>, %arg23: memref<1x64xf32, #tpu.memory_space<vmem>>, %arg24: memref<64x32xbf16, #tpu.memory_space<vmem>>, %arg25: memref<1x32xf32, #tpu.memory_space<vmem>>, %arg26: memref<32x32xf32, #tpu.memory_space<vmem>>, %arg27: memref<1x32xf32, #tpu.memory_space<vmem>>, %arg28: memref<2x64xf32, #tpu.memory_space<vmem>>, %arg29: memref<1x64xf32, #tpu.memory_space<vmem>>, %arg30: memref<64x64xf32, #tpu.memory_space<vmem>>, %arg31: memref<1x64xf32, #tpu.memory_space<vmem>>, %arg32: memref<64x3072xbf16, #tpu.memory_space<vmem>>, %arg33: memref<1x3072xf32, #tpu.memory_space<vmem>>, %arg34: memref<2x64xf32, #tpu.memory_space<vmem>>, %arg35: memref<1x64xf32, #tpu.memory_space<vmem>>, %arg36: memref<64x64xf32, #tpu.memory_space<vmem>>, %arg37: memref<1x64xf32, #tpu.memory_space<vmem>>, %arg38: memref<64x32xf32, #tpu.memory_space<vmem>>, %arg39: memref<1x32xf32, #tpu.memory_space<vmem>>, %arg40: memref<1x8x128xf32, #tpu.memory_space<vmem>>) attributes {dimension_semantics = [#tpu.dimension_semantics<parallel>], iteration_bounds = array<i64: 2>, scalar_prefetch = 0 : i64, scratch_operands = 0 : i64, tpu.core_type = #tpu.core_type<tc>, window_params = [{transform_indices = @transform_0, window_bounds = array<i64: 4, 8, 32>}, {transform_indices = @transform_1, window_bounds = array<i64: 4, 8, 8>}, {transform_indices = @transform_2, window_bounds = array<i64: 4, 8, 2>}, {transform_indices = @transform_3, window_bounds = array<i64: 4, 8, 2>}, {transform_indices = @transform_4, window_bounds = array<i64: 4, 8, 8>}, {transform_indices = @transform_5, window_bounds = array<i64: 4, 8, 8>}, {transform_indices = @transform_6, window_bounds = array<i64: 4, 8, 8>}, {transform_indices = @transform_7, window_bounds = array<i64: 4, 8, 8>}, {pipeline_mode = #tpu.pipeline_mode<synchronous>, transform_indices = @transform_8, window_bounds = array<i64: 256, 32>}, {pipeline_mode = #tpu.pipeline_mode<synchronous>, transform_indices = @transform_9, window_bounds = array<i64: 256, 32>}, {pipeline_mode = #tpu.pipeline_mode<synchronous>, transform_indices = @transform_10, window_bounds = array<i64: 3072, 32>}, {pipeline_mode = #tpu.pipeline_mode<synchronous>, transform_indices = @transform_11, window_bounds = array<i64: 5, 64>}, {pipeline_mode = #tpu.pipeline_mode<synchronous>, transform_indices = @transform_12, window_bounds = array<i64: 1, 64>}, {pipeline_mode = #tpu.pipeline_mode<synchronous>, transform_indices = @transform_13, window_bounds = array<i64: 64, 64>}, {pipeline_mode = #tpu.pipeline_mode<synchronous>, transform_indices = @transform_14, window_bounds = array<i64: 1, 64>}, {pipeline_mode = #tpu.pipeline_mode<synchronous>, transform_indices = @transform_15, window_bounds = array<i64: 64, 32>}, {pipeline_mode = #tpu.pipeline_mode<synchronous>, transform_indices = @transform_16, window_bounds = array<i64: 1, 32>}, {pipeline_mode = #tpu.pipeline_mode<synchronous>, transform_indices = @transform_17, window_bounds = array<i64: 8, 32>}, {pipeline_mode = #tpu.pipeline_mode<synchronous>, transform_indices = @transform_18, window_bounds = array<i64: 1, 32>}, {pipeline_mode = #tpu.pipeline_mode<synchronous>, transform_indices = @transform_19, window_bounds = array<i64: 5, 64>}, {pipeline_mode = #tpu.pipeline_mode<synchronous>, transform_indices = @transform_20, window_bounds = array<i64: 1, 64>}, {pipeline_mode = #tpu.pipeline_mode<synchronous>, transform_indices = @transform_21, window_bounds = array<i64: 64, 64>}, {pipeline_mode = #tpu.pipeline_mode<synchronous>, transform_indices = @transform_22, window_bounds = array<i64: 1, 64>}, {pipeline_mode = #tpu.pipeline_mode<synchronous>, transform_indices = @transform_23, window_bounds = array<i64: 64, 32>}, {pipeline_mode = #tpu.pipeline_mode<synchronous>, transform_indices = @transform_24, window_bounds = array<i64: 1, 32>}, {pipeline_mode = #tpu.pipeline_mode<synchronous>, transform_indices = @transform_25, window_bounds = array<i64: 32, 32>}, {pipeline_mode = #tpu.pipeline_mode<synchronous>, transform_indices = @transform_26, window_bounds = array<i64: 1, 32>}, {pipeline_mode = #tpu.pipeline_mode<synchronous>, transform_indices = @transform_27, window_bounds = array<i64: 2, 64>}, {pipeline_mode = #tpu.pipeline_mode<synchronous>, transform_indices = @transform_28, window_bounds = array<i64: 1, 64>}, {pipeline_mode = #tpu.pipeline_mode<synchronous>, transform_indices = @transform_29, window_bounds = array<i64: 64, 64>}, {pipeline_mode = #tpu.pipeline_mode<synchronous>, transform_indices = @transform_30, window_bounds = array<i64: 1, 64>}, {pipeline_mode = #tpu.pipeline_mode<synchronous>, transform_indices = @transform_31, window_bounds = array<i64: 64, 3072>}, {pipeline_mode = #tpu.pipeline_mode<synchronous>, transform_indices = @transform_32, window_bounds = array<i64: 1, 3072>}, {pipeline_mode = #tpu.pipeline_mode<synchronous>, transform_indices = @transform_33, window_bounds = array<i64: 2, 64>}, {pipeline_mode = #tpu.pipeline_mode<synchronous>, transform_indices = @transform_34, window_bounds = array<i64: 1, 64>}, {pipeline_mode = #tpu.pipeline_mode<synchronous>, transform_indices = @transform_35, window_bounds = array<i64: 64, 64>}, {pipeline_mode = #tpu.pipeline_mode<synchronous>, transform_indices = @transform_36, window_bounds = array<i64: 1, 64>}, {pipeline_mode = #tpu.pipeline_mode<synchronous>, transform_indices = @transform_37, window_bounds = array<i64: 64, 32>}, {pipeline_mode = #tpu.pipeline_mode<synchronous>, transform_indices = @transform_38, window_bounds = array<i64: 1, 32>}, {transform_indices = @transform_39, window_bounds = array<i64: 1, 8, 128>}]} {
    %c0 = arith.constant 0 : index
    %c0_0 = arith.constant 0 : index
    %c0_1 = arith.constant 0 : index
    %0 = vector.load %arg1[%c0, %c0_0, %c0_1] : memref<4x8x32xf32, #tpu.memory_space<vmem>>, vector<4x8x32xf32>
    %1 = vector.shape_cast %0 : vector<4x8x32xf32> to vector<32x32xf32>
    %c0_2 = arith.constant 0 : index
    %c0_3 = arith.constant 0 : index
    %c0_4 = arith.constant 0 : index
    %2 = vector.load %arg2[%c0_2, %c0_3, %c0_4] : memref<4x8x8xf32, #tpu.memory_space<vmem>>, vector<4x8x8xf32>
    %3 = vector.shape_cast %2 : vector<4x8x8xf32> to vector<32x8xf32>
    %c0_5 = arith.constant 0 : index
    %c0_6 = arith.constant 0 : index
    %c0_7 = arith.constant 0 : index
    %4 = vector.load %arg3[%c0_5, %c0_6, %c0_7] : memref<4x8x2xf32, #tpu.memory_space<vmem>>, vector<4x8x2xf32>
    %5 = vector.shape_cast %4 : vector<4x8x2xf32> to vector<32x2xf32>
    %c0_8 = arith.constant 0 : index
    %c0_9 = arith.constant 0 : index
    %c0_10 = arith.constant 0 : index
    %6 = vector.load %arg4[%c0_8, %c0_9, %c0_10] : memref<4x8x2xf32, #tpu.memory_space<vmem>>, vector<4x8x2xf32>
    %7 = vector.shape_cast %6 : vector<4x8x2xf32> to vector<32x2xf32>
    %c0_11 = arith.constant 0 : index
    %c0_12 = arith.constant 0 : index
    %c0_13 = arith.constant 0 : index
    %8 = vector.load %arg5[%c0_11, %c0_12, %c0_13] : memref<4x8x8xf32, #tpu.memory_space<vmem>>, vector<4x8x8xf32>
    %c0_14 = arith.constant 0 : index
    %c0_15 = arith.constant 0 : index
    %9 = vector.load %arg12[%c0_14, %c0_15] : memref<5x64xf32, #tpu.memory_space<vmem>>, vector<5x64xf32>
    %10 = vector.extract_strided_slice %9 {offsets = [0, 0], sizes = [2, 64], strides = [1, 1]} : vector<5x64xf32> to vector<2x64xf32>
    %cst = arith.constant dense<0.000000e+00> : vector<32x64xf32>
    %11 = tpu.matmul %7, %10, %cst {dimension_numbers = #tpu.dot_dimension_numbers<[1], [0], [0], [1], [0, 0, 1, 1], [], []>} : vector<32x2xf32>, vector<2x64xf32>, vector<32x64xf32> -> vector<32x64xf32>
    %12 = vector.extract_strided_slice %9 {offsets = [2, 0], sizes = [2, 64], strides = [1, 1]} : vector<5x64xf32> to vector<2x64xf32>
    %cst_16 = arith.constant dense<0.000000e+00> : vector<32x64xf32>
    %13 = tpu.matmul %5, %12, %cst_16 {dimension_numbers = #tpu.dot_dimension_numbers<[1], [0], [0], [1], [0, 0, 1, 1], [], []>} : vector<32x2xf32>, vector<2x64xf32>, vector<32x64xf32> -> vector<32x64xf32>
    %c0_17 = arith.constant 0 : index
    %c0_18 = arith.constant 0 : index
    %14 = vector.load %arg13[%c0_17, %c0_18] : memref<1x64xf32, #tpu.memory_space<vmem>>, vector<1x64xf32>
    %15 = vector.broadcast %14 : vector<1x64xf32> to vector<32x64xf32>
    %16 = arith.addf %13, %15 : vector<32x64xf32>
    %17 = vector.shape_cast %11 : vector<32x64xf32> to vector<4x8x64xf32>
    %18 = vector.shape_cast %17 : vector<4x8x64xf32> to vector<4x1x8x64xf32>
    %19 = vector.broadcast %18 : vector<4x1x8x64xf32> to vector<4x8x8x64xf32>
    %20 = vector.shape_cast %8 : vector<4x8x8xf32> to vector<4x8x8x1xf32>
    %21 = vector.broadcast %20 : vector<4x8x8x1xf32> to vector<4x8x8x64xf32>
    %22 = vector.extract_strided_slice %9 {offsets = [4, 0], sizes = [1, 64], strides = [1, 1]} : vector<5x64xf32> to vector<1x64xf32>
    %23 = vector.shape_cast %22 : vector<1x64xf32> to vector<1x1x1x64xf32>
    %24 = vector.broadcast %23 : vector<1x1x1x64xf32> to vector<4x8x8x64xf32>
    %25 = arith.mulf %21, %24 : vector<4x8x8x64xf32>
    %26 = arith.addf %19, %25 : vector<4x8x8x64xf32>
    %27 = vector.shape_cast %26 : vector<4x8x8x64xf32> to vector<256x64xf32>
    %c0_19 = arith.constant 0 : index
    %c0_20 = arith.constant 0 : index
    %28 = vector.load %arg9[%c0_19, %c0_20] : memref<256x32xf32, #tpu.memory_space<vmem>>, vector<256x32xf32>
    %cst_21 = arith.constant dense<0.000000e+00> : vector<256x64xf32>
    %29 = tpu.matmul %28, %16, %cst_21 {dimension_numbers = #tpu.dot_dimension_numbers<[1], [0], [0], [1], [0, 0, 1, 1], [], []>} : vector<256x32xf32>, vector<32x64xf32>, vector<256x64xf32> -> vector<256x64xf32>
    %30 = arith.addf %27, %29 : vector<256x64xf32>
    %31 = math.tanh %30 : vector<256x64xf32>
    %32 = arith.truncf %31 : vector<256x64xf32> to vector<256x64xbf16>
    %c0_22 = arith.constant 0 : index
    %c0_23 = arith.constant 0 : index
    %33 = vector.load %arg14[%c0_22, %c0_23] : memref<64x64xbf16, #tpu.memory_space<vmem>>, vector<64x64xbf16>
    %cst_24 = arith.constant dense<0.000000e+00> : vector<256x64xf32>
    %34 = tpu.matmul %32, %33, %cst_24 {dimension_numbers = #tpu.dot_dimension_numbers<[1], [0], [0], [1], [0, 0, 1, 1], [], []>} : vector<256x64xbf16>, vector<64x64xbf16>, vector<256x64xf32> -> vector<256x64xf32>
    %c0_25 = arith.constant 0 : index
    %c0_26 = arith.constant 0 : index
    %35 = vector.load %arg15[%c0_25, %c0_26] : memref<1x64xf32, #tpu.memory_space<vmem>>, vector<1x64xf32>
    %36 = vector.broadcast %35 : vector<1x64xf32> to vector<256x64xf32>
    %37 = arith.addf %34, %36 : vector<256x64xf32>
    %38 = math.tanh %37 : vector<256x64xf32>
    %39 = arith.truncf %38 : vector<256x64xf32> to vector<256x64xbf16>
    %c0_27 = arith.constant 0 : index
    %c0_28 = arith.constant 0 : index
    %40 = vector.load %arg16[%c0_27, %c0_28] : memref<64x32xbf16, #tpu.memory_space<vmem>>, vector<64x32xbf16>
    %cst_29 = arith.constant dense<0.000000e+00> : vector<256x32xf32>
    %41 = tpu.matmul %39, %40, %cst_29 {dimension_numbers = #tpu.dot_dimension_numbers<[1], [0], [0], [1], [0, 0, 1, 1], [], []>} : vector<256x64xbf16>, vector<64x32xbf16>, vector<256x32xf32> -> vector<256x32xf32>
    %c0_30 = arith.constant 0 : index
    %c0_31 = arith.constant 0 : index
    %42 = vector.load %arg17[%c0_30, %c0_31] : memref<1x32xf32, #tpu.memory_space<vmem>>, vector<1x32xf32>
    %43 = vector.broadcast %42 : vector<1x32xf32> to vector<256x32xf32>
    %44 = arith.addf %41, %43 : vector<256x32xf32>
    %45 = arith.negf %44 : vector<256x32xf32>
    %46 = math.exp %45 : vector<256x32xf32>
    %cst_32 = arith.constant 1.000000e+00 : f32
    %47 = vector.broadcast %cst_32 : f32 to vector<256x32xf32>
    %48 = arith.addf %47, %46 : vector<256x32xf32>
    %49 = arith.divf %47, %48 : vector<256x32xf32>
    %c0_33 = arith.constant 0 : index
    %c0_34 = arith.constant 0 : index
    %50 = vector.load %arg18[%c0_33, %c0_34] : memref<8x32xf32, #tpu.memory_space<vmem>>, vector<8x32xf32>
    %cst_35 = arith.constant dense<0.000000e+00> : vector<32x32xf32>
    %51 = tpu.matmul %3, %50, %cst_35 {dimension_numbers = #tpu.dot_dimension_numbers<[1], [0], [0], [1], [0, 0, 1, 1], [], []>} : vector<32x8xf32>, vector<8x32xf32>, vector<32x32xf32> -> vector<32x32xf32>
    %c0_36 = arith.constant 0 : index
    %c0_37 = arith.constant 0 : index
    %52 = vector.load %arg19[%c0_36, %c0_37] : memref<1x32xf32, #tpu.memory_space<vmem>>, vector<1x32xf32>
    %53 = vector.broadcast %52 : vector<1x32xf32> to vector<32x32xf32>
    %54 = arith.addf %51, %53 : vector<32x32xf32>
    %55 = vector.shape_cast %54 : vector<32x32xf32> to vector<4x8x32xf32>
    %56 = vector.shape_cast %55 : vector<4x8x32xf32> to vector<4x1x8x32xf32>
    %57 = vector.broadcast %56 : vector<4x1x8x32xf32> to vector<4x8x8x32xf32>
    %c0_38 = arith.constant 0 : index
    %c0_39 = arith.constant 0 : index
    %c0_40 = arith.constant 0 : index
    %58 = vector.load %arg7[%c0_38, %c0_39, %c0_40] : memref<4x8x8xf32, #tpu.memory_space<vmem>>, vector<4x8x8xf32>
    %59 = vector.shape_cast %58 : vector<4x8x8xf32> to vector<4x8x8x1xf32>
    %60 = vector.broadcast %59 : vector<4x8x8x1xf32> to vector<4x8x8x32xf32>
    %61 = vector.shape_cast %49 : vector<256x32xf32> to vector<4x8x8x32xf32>
    %62 = arith.mulf %61, %57 : vector<4x8x8x32xf32>
    %63 = arith.mulf %62, %60 : vector<4x8x8x32xf32>
    %cst_41 = arith.constant dense<0.000000e+00> : vector<4x8x32xf32>
    %64 = vector.multi_reduction <add>, %63, %cst_41 [2] : vector<4x8x8x32xf32> to vector<4x8x32xf32>
    %65 = vector.shape_cast %64 : vector<4x8x32xf32> to vector<32x32xf32>
    %c0_42 = arith.constant 0 : index
    %c0_43 = arith.constant 0 : index
    %c0_44 = arith.constant 0 : index
    %66 = vector.load %arg6[%c0_42, %c0_43, %c0_44] : memref<4x8x8xf32, #tpu.memory_space<vmem>>, vector<4x8x8xf32>
    %c0_45 = arith.constant 0 : index
    %c0_46 = arith.constant 0 : index
    %67 = vector.load %arg20[%c0_45, %c0_46] : memref<5x64xf32, #tpu.memory_space<vmem>>, vector<5x64xf32>
    %68 = vector.extract_strided_slice %67 {offsets = [0, 0], sizes = [2, 64], strides = [1, 1]} : vector<5x64xf32> to vector<2x64xf32>
    %cst_47 = arith.constant dense<0.000000e+00> : vector<32x64xf32>
    %69 = tpu.matmul %5, %68, %cst_47 {dimension_numbers = #tpu.dot_dimension_numbers<[1], [0], [0], [1], [0, 0, 1, 1], [], []>} : vector<32x2xf32>, vector<2x64xf32>, vector<32x64xf32> -> vector<32x64xf32>
    %70 = vector.extract_strided_slice %67 {offsets = [2, 0], sizes = [2, 64], strides = [1, 1]} : vector<5x64xf32> to vector<2x64xf32>
    %cst_48 = arith.constant dense<0.000000e+00> : vector<32x64xf32>
    %71 = tpu.matmul %5, %70, %cst_48 {dimension_numbers = #tpu.dot_dimension_numbers<[1], [0], [0], [1], [0, 0, 1, 1], [], []>} : vector<32x2xf32>, vector<2x64xf32>, vector<32x64xf32> -> vector<32x64xf32>
    %c0_49 = arith.constant 0 : index
    %c0_50 = arith.constant 0 : index
    %72 = vector.load %arg21[%c0_49, %c0_50] : memref<1x64xf32, #tpu.memory_space<vmem>>, vector<1x64xf32>
    %73 = vector.broadcast %72 : vector<1x64xf32> to vector<32x64xf32>
    %74 = arith.addf %71, %73 : vector<32x64xf32>
    %75 = vector.shape_cast %69 : vector<32x64xf32> to vector<4x8x64xf32>
    %76 = vector.shape_cast %75 : vector<4x8x64xf32> to vector<4x1x8x64xf32>
    %77 = vector.broadcast %76 : vector<4x1x8x64xf32> to vector<4x8x8x64xf32>
    %78 = vector.shape_cast %66 : vector<4x8x8xf32> to vector<4x8x8x1xf32>
    %79 = vector.broadcast %78 : vector<4x8x8x1xf32> to vector<4x8x8x64xf32>
    %80 = vector.extract_strided_slice %67 {offsets = [4, 0], sizes = [1, 64], strides = [1, 1]} : vector<5x64xf32> to vector<1x64xf32>
    %81 = vector.shape_cast %80 : vector<1x64xf32> to vector<1x1x1x64xf32>
    %82 = vector.broadcast %81 : vector<1x1x1x64xf32> to vector<4x8x8x64xf32>
    %83 = arith.mulf %79, %82 : vector<4x8x8x64xf32>
    %84 = arith.addf %77, %83 : vector<4x8x8x64xf32>
    %85 = vector.shape_cast %84 : vector<4x8x8x64xf32> to vector<256x64xf32>
    %c0_51 = arith.constant 0 : index
    %c0_52 = arith.constant 0 : index
    %86 = vector.load %arg10[%c0_51, %c0_52] : memref<256x32xf32, #tpu.memory_space<vmem>>, vector<256x32xf32>
    %cst_53 = arith.constant dense<0.000000e+00> : vector<256x64xf32>
    %87 = tpu.matmul %86, %74, %cst_53 {dimension_numbers = #tpu.dot_dimension_numbers<[1], [0], [0], [1], [0, 0, 1, 1], [], []>} : vector<256x32xf32>, vector<32x64xf32>, vector<256x64xf32> -> vector<256x64xf32>
    %88 = arith.addf %85, %87 : vector<256x64xf32>
    %89 = math.tanh %88 : vector<256x64xf32>
    %90 = arith.truncf %89 : vector<256x64xf32> to vector<256x64xbf16>
    %c0_54 = arith.constant 0 : index
    %c0_55 = arith.constant 0 : index
    %91 = vector.load %arg22[%c0_54, %c0_55] : memref<64x64xbf16, #tpu.memory_space<vmem>>, vector<64x64xbf16>
    %cst_56 = arith.constant dense<0.000000e+00> : vector<256x64xf32>
    %92 = tpu.matmul %90, %91, %cst_56 {dimension_numbers = #tpu.dot_dimension_numbers<[1], [0], [0], [1], [0, 0, 1, 1], [], []>} : vector<256x64xbf16>, vector<64x64xbf16>, vector<256x64xf32> -> vector<256x64xf32>
    %c0_57 = arith.constant 0 : index
    %c0_58 = arith.constant 0 : index
    %93 = vector.load %arg23[%c0_57, %c0_58] : memref<1x64xf32, #tpu.memory_space<vmem>>, vector<1x64xf32>
    %94 = vector.broadcast %93 : vector<1x64xf32> to vector<256x64xf32>
    %95 = arith.addf %92, %94 : vector<256x64xf32>
    %96 = math.tanh %95 : vector<256x64xf32>
    %97 = arith.truncf %96 : vector<256x64xf32> to vector<256x64xbf16>
    %c0_59 = arith.constant 0 : index
    %c0_60 = arith.constant 0 : index
    %98 = vector.load %arg24[%c0_59, %c0_60] : memref<64x32xbf16, #tpu.memory_space<vmem>>, vector<64x32xbf16>
    %cst_61 = arith.constant dense<0.000000e+00> : vector<256x32xf32>
    %99 = tpu.matmul %97, %98, %cst_61 {dimension_numbers = #tpu.dot_dimension_numbers<[1], [0], [0], [1], [0, 0, 1, 1], [], []>} : vector<256x64xbf16>, vector<64x32xbf16>, vector<256x32xf32> -> vector<256x32xf32>
    %c0_62 = arith.constant 0 : index
    %c0_63 = arith.constant 0 : index
    %100 = vector.load %arg25[%c0_62, %c0_63] : memref<1x32xf32, #tpu.memory_space<vmem>>, vector<1x32xf32>
    %101 = vector.broadcast %100 : vector<1x32xf32> to vector<256x32xf32>
    %102 = arith.addf %99, %101 : vector<256x32xf32>
    %103 = vector.shape_cast %102 : vector<256x32xf32> to vector<4x8x8x32xf32>
    %c0_64 = arith.constant 0 : index
    %c0_65 = arith.constant 0 : index
    %c0_66 = arith.constant 0 : index
    %104 = vector.load %arg8[%c0_64, %c0_65, %c0_66] : memref<4x8x8xf32, #tpu.memory_space<vmem>>, vector<4x8x8xf32>
    %105 = vector.shape_cast %104 : vector<4x8x8xf32> to vector<4x8x8x1xf32>
    %106 = vector.broadcast %105 : vector<4x8x8x1xf32> to vector<4x8x8x32xf32>
    %cst_67 = arith.constant 0.000000e+00 : f32
    %107 = vector.broadcast %cst_67 : f32 to vector<4x8x8x32xf32>
    %108 = arith.cmpf ogt, %106, %107 : vector<4x8x8x32xf32>
    %cst_68 = arith.constant -1.000000e+30 : f32
    %109 = vector.broadcast %cst_68 : f32 to vector<4x8x8x32xf32>
    %110 = arith.select %108, %103, %109 : vector<4x8x8x32xi1>, vector<4x8x8x32xf32>
    %cst_69 = arith.constant dense<0xFF800000> : vector<4x8x32xf32>
    %111 = vector.multi_reduction <maximumf>, %110, %cst_69 [2] : vector<4x8x8x32xf32> to vector<4x8x32xf32>
    %112 = vector.shape_cast %111 : vector<4x8x32xf32> to vector<4x8x1x32xf32>
    %113 = vector.broadcast %112 : vector<4x8x1x32xf32> to vector<4x8x8x32xf32>
    %114 = arith.subf %110, %113 : vector<4x8x8x32xf32>
    %115 = math.exp %114 : vector<4x8x8x32xf32>
    %116 = arith.mulf %115, %106 : vector<4x8x8x32xf32>
    %c0_70 = arith.constant 0 : index
    %c0_71 = arith.constant 0 : index
    %117 = vector.load %arg26[%c0_70, %c0_71] : memref<32x32xf32, #tpu.memory_space<vmem>>, vector<32x32xf32>
    %cst_72 = arith.constant dense<0.000000e+00> : vector<32x32xf32>
    %118 = tpu.matmul %1, %117, %cst_72 {dimension_numbers = #tpu.dot_dimension_numbers<[1], [0], [0], [1], [0, 0, 1, 1], [], []>} : vector<32x32xf32>, vector<32x32xf32>, vector<32x32xf32> -> vector<32x32xf32>
    %c0_73 = arith.constant 0 : index
    %c0_74 = arith.constant 0 : index
    %119 = vector.load %arg27[%c0_73, %c0_74] : memref<1x32xf32, #tpu.memory_space<vmem>>, vector<1x32xf32>
    %120 = vector.broadcast %119 : vector<1x32xf32> to vector<32x32xf32>
    %121 = arith.addf %118, %120 : vector<32x32xf32>
    %122 = vector.shape_cast %121 : vector<32x32xf32> to vector<4x8x32xf32>
    %123 = vector.shape_cast %122 : vector<4x8x32xf32> to vector<4x1x8x32xf32>
    %124 = vector.broadcast %123 : vector<4x1x8x32xf32> to vector<4x8x8x32xf32>
    %cst_75 = arith.constant dense<0.000000e+00> : vector<4x8x32xf32>
    %125 = vector.multi_reduction <add>, %116, %cst_75 [2] : vector<4x8x8x32xf32> to vector<4x8x32xf32>
    %cst_76 = arith.constant 9.99999968E-21 : f32
    %126 = vector.broadcast %cst_76 : f32 to vector<4x8x32xf32>
    %127 = arith.maximumf %125, %126 : vector<4x8x32xf32>
    %128 = vector.shape_cast %127 : vector<4x8x32xf32> to vector<32x32xf32>
    %129 = arith.mulf %116, %124 : vector<4x8x8x32xf32>
    %cst_77 = arith.constant dense<0.000000e+00> : vector<4x8x32xf32>
    %130 = vector.multi_reduction <add>, %129, %cst_77 [2] : vector<4x8x8x32xf32> to vector<4x8x32xf32>
    %131 = vector.shape_cast %130 : vector<4x8x32xf32> to vector<32x32xf32>
    %132 = tpu.reciprocal %128 {approx = true} : vector<32x32xf32> -> vector<32x32xf32>
    %133 = arith.mulf %131, %132 : vector<32x32xf32>
    %134 = tpu.concatenate %1, %65, %133 in 1 : vector<32x32xf32>, vector<32x32xf32>, vector<32x32xf32> -> vector<32x96xf32>
    %c0_78 = arith.constant 0 : index
    %c0_79 = arith.constant 0 : index
    %135 = vector.load %arg28[%c0_78, %c0_79] : memref<2x64xf32, #tpu.memory_space<vmem>>, vector<2x64xf32>
    %cst_80 = arith.constant dense<0.000000e+00> : vector<32x64xf32>
    %136 = tpu.matmul %5, %135, %cst_80 {dimension_numbers = #tpu.dot_dimension_numbers<[1], [0], [0], [1], [0, 0, 1, 1], [], []>} : vector<32x2xf32>, vector<2x64xf32>, vector<32x64xf32> -> vector<32x64xf32>
    %c0_81 = arith.constant 0 : index
    %c0_82 = arith.constant 0 : index
    %137 = vector.load %arg29[%c0_81, %c0_82] : memref<1x64xf32, #tpu.memory_space<vmem>>, vector<1x64xf32>
    %138 = vector.broadcast %137 : vector<1x64xf32> to vector<32x64xf32>
    %139 = arith.addf %136, %138 : vector<32x64xf32>
    %140 = math.tanh %139 : vector<32x64xf32>
    %c0_83 = arith.constant 0 : index
    %c0_84 = arith.constant 0 : index
    %141 = vector.load %arg30[%c0_83, %c0_84] : memref<64x64xf32, #tpu.memory_space<vmem>>, vector<64x64xf32>
    %cst_85 = arith.constant dense<0.000000e+00> : vector<32x64xf32>
    %142 = tpu.matmul %140, %141, %cst_85 {dimension_numbers = #tpu.dot_dimension_numbers<[1], [0], [0], [1], [0, 0, 1, 1], [], []>} : vector<32x64xf32>, vector<64x64xf32>, vector<32x64xf32> -> vector<32x64xf32>
    %c0_86 = arith.constant 0 : index
    %c0_87 = arith.constant 0 : index
    %143 = vector.load %arg31[%c0_86, %c0_87] : memref<1x64xf32, #tpu.memory_space<vmem>>, vector<1x64xf32>
    %144 = vector.broadcast %143 : vector<1x64xf32> to vector<32x64xf32>
    %145 = arith.addf %142, %144 : vector<32x64xf32>
    %146 = math.tanh %145 : vector<32x64xf32>
    %147 = arith.truncf %146 : vector<32x64xf32> to vector<32x64xbf16>
    %c0_88 = arith.constant 0 : index
    %c0_89 = arith.constant 0 : index
    %148 = vector.load %arg32[%c0_88, %c0_89] : memref<64x3072xbf16, #tpu.memory_space<vmem>>, vector<64x3072xbf16>
    %cst_90 = arith.constant dense<0.000000e+00> : vector<32x3072xf32>
    %149 = tpu.matmul %147, %148, %cst_90 {dimension_numbers = #tpu.dot_dimension_numbers<[1], [0], [0], [1], [0, 0, 1, 1], [], []>} : vector<32x64xbf16>, vector<64x3072xbf16>, vector<32x3072xf32> -> vector<32x3072xf32>
    %c0_91 = arith.constant 0 : index
    %c0_92 = arith.constant 0 : index
    %150 = vector.load %arg33[%c0_91, %c0_92] : memref<1x3072xf32, #tpu.memory_space<vmem>>, vector<1x3072xf32>
    %151 = vector.broadcast %150 : vector<1x3072xf32> to vector<32x3072xf32>
    %152 = arith.addf %149, %151 : vector<32x3072xf32>
    %c0_93 = arith.constant 0 : index
    %c0_94 = arith.constant 0 : index
    %153 = vector.load %arg34[%c0_93, %c0_94] : memref<2x64xf32, #tpu.memory_space<vmem>>, vector<2x64xf32>
    %cst_95 = arith.constant dense<0.000000e+00> : vector<32x64xf32>
    %154 = tpu.matmul %5, %153, %cst_95 {dimension_numbers = #tpu.dot_dimension_numbers<[1], [0], [0], [1], [0, 0, 1, 1], [], []>} : vector<32x2xf32>, vector<2x64xf32>, vector<32x64xf32> -> vector<32x64xf32>
    %c0_96 = arith.constant 0 : index
    %c0_97 = arith.constant 0 : index
    %155 = vector.load %arg35[%c0_96, %c0_97] : memref<1x64xf32, #tpu.memory_space<vmem>>, vector<1x64xf32>
    %156 = vector.broadcast %155 : vector<1x64xf32> to vector<32x64xf32>
    %157 = arith.addf %154, %156 : vector<32x64xf32>
    %158 = math.tanh %157 : vector<32x64xf32>
    %c0_98 = arith.constant 0 : index
    %c0_99 = arith.constant 0 : index
    %159 = vector.load %arg36[%c0_98, %c0_99] : memref<64x64xf32, #tpu.memory_space<vmem>>, vector<64x64xf32>
    %cst_100 = arith.constant dense<0.000000e+00> : vector<32x64xf32>
    %160 = tpu.matmul %158, %159, %cst_100 {dimension_numbers = #tpu.dot_dimension_numbers<[1], [0], [0], [1], [0, 0, 1, 1], [], []>} : vector<32x64xf32>, vector<64x64xf32>, vector<32x64xf32> -> vector<32x64xf32>
    %c0_101 = arith.constant 0 : index
    %c0_102 = arith.constant 0 : index
    %161 = vector.load %arg37[%c0_101, %c0_102] : memref<1x64xf32, #tpu.memory_space<vmem>>, vector<1x64xf32>
    %162 = vector.broadcast %161 : vector<1x64xf32> to vector<32x64xf32>
    %163 = arith.addf %160, %162 : vector<32x64xf32>
    %164 = math.tanh %163 : vector<32x64xf32>
    %c0_103 = arith.constant 0 : index
    %c0_104 = arith.constant 0 : index
    %165 = vector.load %arg38[%c0_103, %c0_104] : memref<64x32xf32, #tpu.memory_space<vmem>>, vector<64x32xf32>
    %cst_105 = arith.constant dense<0.000000e+00> : vector<32x32xf32>
    %166 = tpu.matmul %164, %165, %cst_105 {dimension_numbers = #tpu.dot_dimension_numbers<[1], [0], [0], [1], [0, 0, 1, 1], [], []>} : vector<32x64xf32>, vector<64x32xf32>, vector<32x32xf32> -> vector<32x32xf32>
    %c0_106 = arith.constant 0 : index
    %c0_107 = arith.constant 0 : index
    %167 = vector.load %arg39[%c0_106, %c0_107] : memref<1x32xf32, #tpu.memory_space<vmem>>, vector<1x32xf32>
    %168 = vector.broadcast %167 : vector<1x32xf32> to vector<32x32xf32>
    %169 = arith.addf %166, %168 : vector<32x32xf32>
    %170 = arith.truncf %134 : vector<32x96xf32> to vector<32x96xbf16>
    %171 = tpu.concatenate %170, %170, %170, %170, %170, %170, %170, %170, %170, %170, %170, %170, %170, %170, %170, %170 in 1 : vector<32x96xbf16>, vector<32x96xbf16>, vector<32x96xbf16>, vector<32x96xbf16>, vector<32x96xbf16>, vector<32x96xbf16>, vector<32x96xbf16>, vector<32x96xbf16>, vector<32x96xbf16>, vector<32x96xbf16>, vector<32x96xbf16>, vector<32x96xbf16>, vector<32x96xbf16>, vector<32x96xbf16>, vector<32x96xbf16>, vector<32x96xbf16> -> vector<32x1536xbf16>
    %172 = tpu.concatenate %170, %170, %170, %170, %170, %170, %170, %170, %170, %170, %170, %170, %170, %170, %170, %170 in 1 : vector<32x96xbf16>, vector<32x96xbf16>, vector<32x96xbf16>, vector<32x96xbf16>, vector<32x96xbf16>, vector<32x96xbf16>, vector<32x96xbf16>, vector<32x96xbf16>, vector<32x96xbf16>, vector<32x96xbf16>, vector<32x96xbf16>, vector<32x96xbf16>, vector<32x96xbf16>, vector<32x96xbf16>, vector<32x96xbf16>, vector<32x96xbf16> -> vector<32x1536xbf16>
    %173 = tpu.concatenate %171, %172 in 1 : vector<32x1536xbf16>, vector<32x1536xbf16> -> vector<32x3072xbf16>
    %174 = arith.truncf %152 : vector<32x3072xf32> to vector<32x3072xbf16>
    %175 = arith.mulf %174, %173 : vector<32x3072xbf16>
    %c0_108 = arith.constant 0 : index
    %c0_109 = arith.constant 0 : index
    %176 = vector.load %arg11[%c0_108, %c0_109] : memref<3072x32xbf16, #tpu.memory_space<vmem>>, vector<3072x32xbf16>
    %cst_110 = arith.constant dense<0.000000e+00> : vector<32x32xf32>
    %177 = tpu.matmul %175, %176, %cst_110 {dimension_numbers = #tpu.dot_dimension_numbers<[1], [0], [0], [1], [0, 0, 1, 1], [], []>} : vector<32x3072xbf16>, vector<3072x32xbf16>, vector<32x32xf32> -> vector<32x32xf32>
    %178 = arith.addf %177, %169 : vector<32x32xf32>
    %179 = vector.shape_cast %178 : vector<32x32xf32> to vector<4x8x32xf32>
    %180 = vector.extract_strided_slice %179 {offsets = [0, 0, 0], sizes = [1, 8, 32], strides = [1, 1, 1]} : vector<4x8x32xf32> to vector<1x8x32xf32>
    %181 = vector.shape_cast %180 : vector<1x8x32xf32> to vector<8x32xf32>
    %182 = vector.extract_strided_slice %179 {offsets = [1, 0, 0], sizes = [1, 8, 32], strides = [1, 1, 1]} : vector<4x8x32xf32> to vector<1x8x32xf32>
    %183 = vector.shape_cast %182 : vector<1x8x32xf32> to vector<8x32xf32>
    %184 = vector.extract_strided_slice %179 {offsets = [2, 0, 0], sizes = [1, 8, 32], strides = [1, 1, 1]} : vector<4x8x32xf32> to vector<1x8x32xf32>
    %185 = vector.shape_cast %184 : vector<1x8x32xf32> to vector<8x32xf32>
    %186 = vector.extract_strided_slice %179 {offsets = [3, 0, 0], sizes = [1, 8, 32], strides = [1, 1, 1]} : vector<4x8x32xf32> to vector<1x8x32xf32>
    %187 = vector.shape_cast %186 : vector<1x8x32xf32> to vector<8x32xf32>
    %188 = tpu.concatenate %181, %183, %185, %187 in 1 : vector<8x32xf32>, vector<8x32xf32>, vector<8x32xf32>, vector<8x32xf32> -> vector<8x128xf32>
    %c0_111 = arith.constant 0 : index
    %c0_112 = arith.constant 0 : index
    %c0_113 = arith.constant 0 : index
    %189 = vector.load %arg40[%c0_111, %c0_112, %c0_113] : memref<1x8x128xf32, #tpu.memory_space<vmem>>, vector<1x8x128xf32>
    %190 = vector.shape_cast %189 : vector<1x8x128xf32> to vector<8x128xf32>
    %191 = vector.shape_cast %188 : vector<8x128xf32> to vector<1x8x128xf32>
    tpu.vector_store %arg40[%c0_111, %c0_112, %c0_113], %191 {strides = array<i32>} : memref<1x8x128xf32, #tpu.memory_space<vmem>>, vector<1x8x128xf32>,
    return
  }
  func.func @transform_0(%arg0: i32) -> (i32, i32, i32) {
    %c0_i32 = arith.constant 0 : i32
    %c0_i32_0 = arith.constant 0 : i32
    %c0_i32_1 = arith.constant 0 : i32
    return %arg0, %c0_i32, %c0_i32_0 : i32, i32, i32
  }
  func.func @transform_1(%arg0: i32) -> (i32, i32, i32) {
    %c0_i32 = arith.constant 0 : i32
    %c0_i32_0 = arith.constant 0 : i32
    %c0_i32_1 = arith.constant 0 : i32
    return %arg0, %c0_i32, %c0_i32_0 : i32, i32, i32
  }
  func.func @transform_2(%arg0: i32) -> (i32, i32, i32) {
    %c0_i32 = arith.constant 0 : i32
    %c0_i32_0 = arith.constant 0 : i32
    %c0_i32_1 = arith.constant 0 : i32
    return %arg0, %c0_i32, %c0_i32_0 : i32, i32, i32
  }
  func.func @transform_3(%arg0: i32) -> (i32, i32, i32) {
    %c0_i32 = arith.constant 0 : i32
    %c0_i32_0 = arith.constant 0 : i32
    %c0_i32_1 = arith.constant 0 : i32
    return %arg0, %c0_i32, %c0_i32_0 : i32, i32, i32
  }
  func.func @transform_4(%arg0: i32) -> (i32, i32, i32) {
    %c0_i32 = arith.constant 0 : i32
    %c0_i32_0 = arith.constant 0 : i32
    %c0_i32_1 = arith.constant 0 : i32
    return %arg0, %c0_i32, %c0_i32_0 : i32, i32, i32
  }
  func.func @transform_5(%arg0: i32) -> (i32, i32, i32) {
    %c0_i32 = arith.constant 0 : i32
    %c0_i32_0 = arith.constant 0 : i32
    %c0_i32_1 = arith.constant 0 : i32
    return %arg0, %c0_i32, %c0_i32_0 : i32, i32, i32
  }
  func.func @transform_6(%arg0: i32) -> (i32, i32, i32) {
    %c0_i32 = arith.constant 0 : i32
    %c0_i32_0 = arith.constant 0 : i32
    %c0_i32_1 = arith.constant 0 : i32
    return %arg0, %c0_i32, %c0_i32_0 : i32, i32, i32
  }
  func.func @transform_7(%arg0: i32) -> (i32, i32, i32) {
    %c0_i32 = arith.constant 0 : i32
    %c0_i32_0 = arith.constant 0 : i32
    %c0_i32_1 = arith.constant 0 : i32
    return %arg0, %c0_i32, %c0_i32_0 : i32, i32, i32
  }
  func.func @transform_8(%arg0: i32) -> (i32, i32) {
    %c0_i32 = arith.constant 0 : i32
    %c0_i32_0 = arith.constant 0 : i32
    %c0_i32_1 = arith.constant 0 : i32
    return %c0_i32, %c0_i32_0 : i32, i32
  }
  func.func @transform_9(%arg0: i32) -> (i32, i32) {
    %c0_i32 = arith.constant 0 : i32
    %c0_i32_0 = arith.constant 0 : i32
    %c0_i32_1 = arith.constant 0 : i32
    return %c0_i32, %c0_i32_0 : i32, i32
  }
  func.func @transform_10(%arg0: i32) -> (i32, i32) {
    %c0_i32 = arith.constant 0 : i32
    %c0_i32_0 = arith.constant 0 : i32
    %c0_i32_1 = arith.constant 0 : i32
    return %c0_i32, %c0_i32_0 : i32, i32
  }
  func.func @transform_11(%arg0: i32) -> (i32, i32) {
    %c0_i32 = arith.constant 0 : i32
    %c0_i32_0 = arith.constant 0 : i32
    %c0_i32_1 = arith.constant 0 : i32
    return %c0_i32, %c0_i32_0 : i32, i32
  }
  func.func @transform_12(%arg0: i32) -> (i32, i32) {
    %c0_i32 = arith.constant 0 : i32
    %c0_i32_0 = arith.constant 0 : i32
    %c0_i32_1 = arith.constant 0 : i32
    return %c0_i32, %c0_i32_0 : i32, i32
  }
  func.func @transform_13(%arg0: i32) -> (i32, i32) {
    %c0_i32 = arith.constant 0 : i32
    %c0_i32_0 = arith.constant 0 : i32
    %c0_i32_1 = arith.constant 0 : i32
    return %c0_i32, %c0_i32_0 : i32, i32
  }
  func.func @transform_14(%arg0: i32) -> (i32, i32) {
    %c0_i32 = arith.constant 0 : i32
    %c0_i32_0 = arith.constant 0 : i32
    %c0_i32_1 = arith.constant 0 : i32
    return %c0_i32, %c0_i32_0 : i32, i32
  }
  func.func @transform_15(%arg0: i32) -> (i32, i32) {
    %c0_i32 = arith.constant 0 : i32
    %c0_i32_0 = arith.constant 0 : i32
    %c0_i32_1 = arith.constant 0 : i32
    return %c0_i32, %c0_i32_0 : i32, i32
  }
  func.func @transform_16(%arg0: i32) -> (i32, i32) {
    %c0_i32 = arith.constant 0 : i32
    %c0_i32_0 = arith.constant 0 : i32
    %c0_i32_1 = arith.constant 0 : i32
    return %c0_i32, %c0_i32_0 : i32, i32
  }
  func.func @transform_17(%arg0: i32) -> (i32, i32) {
    %c0_i32 = arith.constant 0 : i32
    %c0_i32_0 = arith.constant 0 : i32
    %c0_i32_1 = arith.constant 0 : i32
    return %c0_i32, %c0_i32_0 : i32, i32
  }
  func.func @transform_18(%arg0: i32) -> (i32, i32) {
    %c0_i32 = arith.constant 0 : i32
    %c0_i32_0 = arith.constant 0 : i32
    %c0_i32_1 = arith.constant 0 : i32
    return %c0_i32, %c0_i32_0 : i32, i32
  }
  func.func @transform_19(%arg0: i32) -> (i32, i32) {
    %c0_i32 = arith.constant 0 : i32
    %c0_i32_0 = arith.constant 0 : i32
    %c0_i32_1 = arith.constant 0 : i32
    return %c0_i32, %c0_i32_0 : i32, i32
  }
  func.func @transform_20(%arg0: i32) -> (i32, i32) {
    %c0_i32 = arith.constant 0 : i32
    %c0_i32_0 = arith.constant 0 : i32
    %c0_i32_1 = arith.constant 0 : i32
    return %c0_i32, %c0_i32_0 : i32, i32
  }
  func.func @transform_21(%arg0: i32) -> (i32, i32) {
    %c0_i32 = arith.constant 0 : i32
    %c0_i32_0 = arith.constant 0 : i32
    %c0_i32_1 = arith.constant 0 : i32
    return %c0_i32, %c0_i32_0 : i32, i32
  }
  func.func @transform_22(%arg0: i32) -> (i32, i32) {
    %c0_i32 = arith.constant 0 : i32
    %c0_i32_0 = arith.constant 0 : i32
    %c0_i32_1 = arith.constant 0 : i32
    return %c0_i32, %c0_i32_0 : i32, i32
  }
  func.func @transform_23(%arg0: i32) -> (i32, i32) {
    %c0_i32 = arith.constant 0 : i32
    %c0_i32_0 = arith.constant 0 : i32
    %c0_i32_1 = arith.constant 0 : i32
    return %c0_i32, %c0_i32_0 : i32, i32
  }
  func.func @transform_24(%arg0: i32) -> (i32, i32) {
    %c0_i32 = arith.constant 0 : i32
    %c0_i32_0 = arith.constant 0 : i32
    %c0_i32_1 = arith.constant 0 : i32
    return %c0_i32, %c0_i32_0 : i32, i32
  }
  func.func @transform_25(%arg0: i32) -> (i32, i32) {
    %c0_i32 = arith.constant 0 : i32
    %c0_i32_0 = arith.constant 0 : i32
    %c0_i32_1 = arith.constant 0 : i32
    return %c0_i32, %c0_i32_0 : i32, i32
  }
  func.func @transform_26(%arg0: i32) -> (i32, i32) {
    %c0_i32 = arith.constant 0 : i32
    %c0_i32_0 = arith.constant 0 : i32
    %c0_i32_1 = arith.constant 0 : i32
    return %c0_i32, %c0_i32_0 : i32, i32
  }
  func.func @transform_27(%arg0: i32) -> (i32, i32) {
    %c0_i32 = arith.constant 0 : i32
    %c0_i32_0 = arith.constant 0 : i32
    %c0_i32_1 = arith.constant 0 : i32
    return %c0_i32, %c0_i32_0 : i32, i32
  }
  func.func @transform_28(%arg0: i32) -> (i32, i32) {
    %c0_i32 = arith.constant 0 : i32
    %c0_i32_0 = arith.constant 0 : i32
    %c0_i32_1 = arith.constant 0 : i32
    return %c0_i32, %c0_i32_0 : i32, i32
  }
  func.func @transform_29(%arg0: i32) -> (i32, i32) {
    %c0_i32 = arith.constant 0 : i32
    %c0_i32_0 = arith.constant 0 : i32
    %c0_i32_1 = arith.constant 0 : i32
    return %c0_i32, %c0_i32_0 : i32, i32
  }
  func.func @transform_30(%arg0: i32) -> (i32, i32) {
    %c0_i32 = arith.constant 0 : i32
    %c0_i32_0 = arith.constant 0 : i32
    %c0_i32_1 = arith.constant 0 : i32
    return %c0_i32, %c0_i32_0 : i32, i32
  }
  func.func @transform_31(%arg0: i32) -> (i32, i32) {
    %c0_i32 = arith.constant 0 : i32
    %c0_i32_0 = arith.constant 0 : i32
    %c0_i32_1 = arith.constant 0 : i32
    return %c0_i32, %c0_i32_0 : i32, i32
  }
  func.func @transform_32(%arg0: i32) -> (i32, i32) {
    %c0_i32 = arith.constant 0 : i32
    %c0_i32_0 = arith.constant 0 : i32
    %c0_i32_1 = arith.constant 0 : i32
    return %c0_i32, %c0_i32_0 : i32, i32
  }
  func.func @transform_33(%arg0: i32) -> (i32, i32) {
    %c0_i32 = arith.constant 0 : i32
    %c0_i32_0 = arith.constant 0 : i32
    %c0_i32_1 = arith.constant 0 : i32
    return %c0_i32, %c0_i32_0 : i32, i32
  }
  func.func @transform_34(%arg0: i32) -> (i32, i32) {
    %c0_i32 = arith.constant 0 : i32
    %c0_i32_0 = arith.constant 0 : i32
    %c0_i32_1 = arith.constant 0 : i32
    return %c0_i32, %c0_i32_0 : i32, i32
  }
  func.func @transform_35(%arg0: i32) -> (i32, i32) {
    %c0_i32 = arith.constant 0 : i32
    %c0_i32_0 = arith.constant 0 : i32
    %c0_i32_1 = arith.constant 0 : i32
    return %c0_i32, %c0_i32_0 : i32, i32
  }
  func.func @transform_36(%arg0: i32) -> (i32, i32) {
    %c0_i32 = arith.constant 0 : i32
    %c0_i32_0 = arith.constant 0 : i32
    %c0_i32_1 = arith.constant 0 : i32
    return %c0_i32, %c0_i32_0 : i32, i32
  }
  func.func @transform_37(%arg0: i32) -> (i32, i32) {
    %c0_i32 = arith.constant 0 : i32
    %c0_i32_0 = arith.constant 0 : i32
    %c0_i32_1 = arith.constant 0 : i32
    return %c0_i32, %c0_i32_0 : i32, i32
  }
  func.func @transform_38(%arg0: i32) -> (i32, i32) {
    %c0_i32 = arith.constant 0 : i32
    %c0_i32_0 = arith.constant 0 : i32
    %c0_i32_1 = arith.constant 0 : i32
    return %c0_i32, %c0_i32_0 : i32, i32
  }
  func.func @transform_39(%arg0: i32) -> (i32, i32, i32) {
    %c0_i32 = arith.constant 0 : i32
    %c0_i32_0 = arith.constant 0 : i32
    %c0_i32_1 = arith.constant 0 : i32
    return %arg0, %c0_i32, %c0_i32_0 : i32, i32, i32
  }
}

</mosaic_0001>

<bundles_post_ra>
// kernel: tpu_custom_call.1
= control target key start
LH: loop header
LB: loop body
LE: loop exit
PB: predicated region body
PF: predicated region fallthrough
CT: control target
= control target key end

     0   :  { %s12586_s6 = smov 1   ;;  %s12587_s10 = smov 2   ;;  %s17028_s0 = inlined_call_operand.smem [shape: u32[40], index: -1, kind: input, shape index: {}] }
   0x1   :  { %s12636_s5 = sld [smem:[%s17028_s0]]   ;;  %s12588_s14 = smov 3  }
   0x2   :  { %s12641_s9 = sld [smem:[%s17028_s0 + %s12586_s6]]   ;;  %s12589_s18 = smov 4  }
   0x3   :  { %s12646_s13 = sld [smem:[%s17028_s0 + %s12587_s10]]   ;;  %s12590_s22 = smov 5  }
   0x4   :  { %s12651_s17 = sld [smem:[%s17028_s0 + %s12588_s14]]   ;;  %s12591_s26 = smov 6  }
   0x5   :  { %s12656_s21 = sld [smem:[%s17028_s0 + %s12589_s18]]   ;;  %s12592_s30 = smov 7  }
   0x6   :  { %s12661_s25 = sld [smem:[%s17028_s0 + %s12590_s22]]   ;;  %s12593_s4 = smov 8  }
   0x7   :  { %17149 = sst [smem:[#allocation5_spill]] %s12636_s5  ;;  %s12594_s10 = smov 9  }
   0x8   :  { %17150 = sst [smem:[#allocation6_spill]] %s12641_s9  ;;  %s12595_s15 = smov 10  }
   0x9   :  { %s12666_s29 = sld [smem:[%s17028_s0 + %s12591_s26]]   ;;  %s12596_s20 = smov 11  }
   0xa   :  { %s12671_s3 = sld [smem:[%s17028_s0 + %s12592_s30]]   ;;  %s12597_s26 = smov 12  }
   0xb   :  { %s12676_s8 = sld [smem:[%s17028_s0 + %s12593_s4]]   ;;  %s12598_s1 = smov 13  }
   0xc   :  { %s12681_s14 = sld [smem:[%s17028_s0 + %s12594_s10]]   ;;  %s12599_s7 = smov 14  }
   0xd   :  { %s12686_s19 = sld [smem:[%s17028_s0 + %s12595_s15]]   ;;  %s12600_s15 = smov 15  }
   0xe   :  { %s12691_s24 = sld [smem:[%s17028_s0 + %s12596_s20]]   ;;  %s12601_s22 = smov 16  }
   0xf   :  { %s12696_s30 = sld [smem:[%s17028_s0 + %s12597_s26]]   ;;  %s12602_s28 = smov 17  }
  0x10   :  { %17151 = sst [smem:[#allocation7_spill]] %s12671_s3 }
  0x11   :  { %17152 = sst [smem:[#allocation8_spill]] %s12676_s8 }
  0x12   :  { %s12701_s6 = sld [smem:[%s17028_s0 + %s12598_s1]]  }
  0x13   :  { %17153 = sst [smem:[#allocation9_spill]] %s12686_s19 }
  0x14   :  { %s12706_s12 = sld [smem:[%s17028_s0 + %s12599_s7]]   ;;  %s12603_s7 = smov 18  }
  0x15   :  { %s12711_s20 = sld [smem:[%s17028_s0 + %s12600_s15]]   ;;  %s12604_s15 = smov 19  }
  0x16   :  { %s12716_s27 = sld [smem:[%s17028_s0 + %s12601_s22]]   ;;  %s12605_s22 = smov 20  }
  0x17   :  { %s12721_s4 = sld [smem:[%s17028_s0 + %s12602_s28]]   ;;  %s12606_s28 = smov 21  }
  0x18   :  { %17154 = sst [smem:[#allocation10_spill]] %s12701_s6 }
  0x19   :  { %s12726_s19 = sld [smem:[%s17028_s0 + %s12603_s7]]   ;;  %s12607_s7 = smov 22  }
  0x1a   :  { %17155 = sst [smem:[#allocation11_spill]] %s12706_s12 }
  0x1b   :  { %17156 = sst [smem:[#allocation12_spill]] %s12711_s20 }
  0x1c   :  { %17157 = sst [smem:[#allocation13_spill]] %s12716_s27 }
  0x1d   :  { %17158 = sst [smem:[#allocation14_spill]] %s12721_s4 }
  0x1e   :  { %s12731_s5 = sld [smem:[%s17028_s0 + %s12604_s15]]   ;;  %s12608_s15 = smov 23  }
  0x1f   :  { %17159 = sst [smem:[#allocation15_spill]] %s12726_s19 }
  0x20   :  { %s12736_s27 = sld [smem:[%s17028_s0 + %s12605_s22]]   ;;  %s12609_s22 = smov 24  }
  0x21   :  { %s12741_s12 = sld [smem:[%s17028_s0 + %s12606_s28]]   ;;  %s12610_s28 = smov 25  }
  0x22   :  { %s12746_s19 = sld [smem:[%s17028_s0 + %s12607_s7]]   ;;  %s12611_s7 = smov 26  }
  0x23   :  { %s12751_s20 = sld [smem:[%s17028_s0 + %s12608_s15]]   ;;  %s12612_s15 = smov 27  }
  0x24   :  { %17160 = sst [smem:[#allocation16_spill]] %s12731_s5 }
  0x25   :  { %s12756_s6 = sld [smem:[%s17028_s0 + %s12609_s22]]   ;;  %s12613_s22 = smov 28  }
  0x27   :  { %17161 = sst [smem:[#allocation17_spill]] %s12741_s12 }
  0x28   :  { %17162 = sst [smem:[#allocation18_spill]] %s12746_s19 }
  0x29   :  { %17163 = sst [smem:[#allocation19_spill]] %s12751_s20 }
  0x2a   :  { %s12761_s12 = sld [smem:[%s17028_s0 + %s12610_s28]]   ;;  %s12614_s28 = smov 29  }
  0x2b   :  { %17164 = sst [smem:[#allocation20_spill]] %s12756_s6 }
  0x2c   :  { %s12766_s19 = sld [smem:[%s17028_s0 + %s12611_s7]]   ;;  %s12615_s7 = smov 30  }
  0x2d   :  { %s12771_s20 = sld [smem:[%s17028_s0 + %s12612_s15]]   ;;  %s12616_s15 = smov 31  }
  0x2e   :  { %s12776_s6 = sld [smem:[%s17028_s0 + %s12613_s22]]   ;;  %s12617_s22 = smov 32  }
  0x30   :  { %17165 = sst [smem:[#allocation21_spill]] %s12761_s12 }
  0x31   :  { %s12781_s12 = sld [smem:[%s17028_s0 + %s12614_s28]]   ;;  %s12618_s28 = smov 33  }
  0x32   :  { %17166 = sst [smem:[#allocation22_spill]] %s12766_s19 }
  0x33   :  { %17167 = sst [smem:[#allocation23_spill]] %s12771_s20 }
  0x34   :  { %17168 = sst [smem:[#allocation24_spill]] %s12776_s6 }
  0x35   :  { %s12786_s19 = sld [smem:[%s17028_s0 + %s12615_s7]]   ;;  %s12619_s7 = smov 34  }
  0x36   :  { %s12791_s20 = sld [smem:[%s17028_s0 + %s12616_s15]]   ;;  %s12620_s15 = smov 35  }
  0x37   :  { %17169 = sst [smem:[#allocation25_spill]] %s12781_s12 }
  0x38   :  { %s12796_s6 = sld [smem:[%s17028_s0 + %s12617_s22]]   ;;  %s12621_s22 = smov 36  }
  0x39   :  { %s12801_s12 = sld [smem:[%s17028_s0 + %s12618_s28]]   ;;  %s12622_s28 = smov 37  }
  0x3b   :  { %17170 = sst [smem:[#allocation26_spill]] %s12786_s19 }
  0x3c   :  { %17171 = sst [smem:[#allocation27_spill]] %s12791_s20 }
  0x3d   :  { %s12806_s19 = sld [smem:[%s17028_s0 + %s12619_s7]]   ;;  %s12623_s7 = smov 38  }
  0x3e   :  { %17172 = sst [smem:[#allocation28_spill]] %s12796_s6 }
  0x3f   :  { %17173 = sst [smem:[#allocation29_spill]] %s12801_s12 }
  0x40   :  { %s12811_s20 = sld [smem:[%s17028_s0 + %s12620_s15]]   ;;  %s12624_s15 = smov 39  }
  0x41   :  { %s12816_s6 = sld [smem:[%s17028_s0 + %s12621_s22]]  }
  0x42   :  { %s12821_s12 = sld [smem:[%s17028_s0 + %s12622_s28]]  }
  0x43   :  { %17174 = sst [smem:[#allocation30_spill]] %s12806_s19 }
  0x44   :  { %s12826_s19 = sld [smem:[%s17028_s0 + %s12623_s7]]  }
  0x46   :  { %17175 = sst [smem:[#allocation31_spill]] %s12811_s20 }
  0x47   :  { %17176 = sst [smem:[#allocation32_spill]] %s12816_s6 }
  0x48   :  { %s12831_s20 = sld [smem:[%s17028_s0 + %s12624_s15]]  }
  0x49   :  { %84 = vsyncpa [#allocation3], 0 }
  0x4a   :  { %86 = vsyncpa [#allocation3 + $0x1], 0  ;;  %s12833_s22 = smov 0   ;;  %s12835_s23 = smov 0  }
  0x4b   :  { %s12837_s26 = smov 0   ;;  %s12839_s28 = smov 0  }
  0x4c LB: > { %s17177_s8 = sld [smem:[#allocation8_spill]]  ;;  %s12854_s0 = sadd.s32 4294967295, %s12584_s28   ;;  %s12576_s23 = sphi %s12835_s23, %s17534_s23   ;;  %s12572_s22 = sphi %s12833_s22, %s17533_s22   ;;  %s12584_s28 = sphi %s12839_s28, %s17536_s28   ;;  %s12580_s26 = sphi %s12837_s26, %s17535_s26  }
  0x4d   : > { %s17178_s5 = sld [smem:[#allocation16_spill]]  ;;  %s10031_s1 = sadd.s32 4294967294, %s12584_s28  }
  0x4e   : > { %s12858_s2 = sadd.s32 1, %s12584_s28   ;;  %s958_s7 = sadd.s32 1, %s12580_s26 }
  0x4f   : > { %s955_s10 = ssub.s32 %s12584_s28, %s12858_s2  ;;  %p968_p0 = scmp.ne.s32.totalorder %s12580_s26, %s12576_s23 }
  0x50   : > { %p956_p1 = scmp.eq.s32.totalorder %s955_s10, 0  ;;  %p969_p2 = scmp.eq.s32.totalorder %s12854_s0, 1 }
  0x51   : > { %p974_p3 = scmp.ne.s32.totalorder %s12576_s23, %s12572_s22  ;;  %p975_p4 = scmp.eq.s32.totalorder %s10031_s1, 1 }
  0x52   : > { %s12869_s11 = scalar_select %p956_p1, %s12580_s26, %s958_s7  }
  0x53   : > { %p12871_p5 = por %p969_p2, %p968_p0  ;;  %p12875_p6 = por %p975_p4, %p974_p3 }
  0x54   : > { %p10034_p7 = scmp.ge.s32.totalorder %s12584_s28, 1  ;;  %p1158_p8 = scmp.lt.s32.totalorder %s12584_s28, 3 }
  0x56   : > { %p1159_p9 = pnand %p10034_p7, %p1158_p8 }
  0x58   : > { %1162 = sbr.rel (%p1159_p9) target bundleno = 2304 (0x900), region = 176 }
  0x5d   : > { %v1454_v0 = vlaneseq  ;;  %s17181_s4 = sld [smem:[#allocation14_spill]]  ;;  %v12882_v1 = vld [vmem:[%s12691_s24] sm:$0x1f]  ;;  %vm17077_vm0 = vcmask 1041408   ;;  %s10036_s18 = sshll.u32 %s12854_s0, 2  ;;  %vm17076_vm1 = vcmask 15360  }
  0x5e   : > { %v1409_v2 = vrot.slane %v12882_v1, 2  ;;  %p1290_p10 = scmp.lt.s32.totalorder %s10036_s18, 7  ;;  %10052 = vmatpush.msk.msra.mxu0 %vm17077_vm0, %v12882_v1  ;;  %s17182_s9 = sld [smem:[#allocation6_spill]]  ;;  %vm3072_vm2 = vcmask 64512   ;;  %v3634_v24 = vld [vmem:[%s17178_s5] sm:$0x1f] }
  0x5f   : > { %v1455_v3 = vshrl.u32 %v1454_v0, 7  ;;  %v3671_v25 = vrot.slane %v3634_v24, 2  ;;  %s17183_s3 = sld [smem:[#allocation7_spill]]  ;;  %vm1774_vm3 = vcmask 261120   ;;  %vm2100_vm4 = vcmask 523264  }
  0x60   : > { %10057 = vmatpush.msk.msra.mxu1 %vm17077_vm0, %v1409_v2  ;;  %s17538_s18 = smov (!%p1290_p10, %s10036_s18), 7  ;;  %s17500_s6 = sld [smem:[#allocation32_spill]] }
  0x61   : > { %11921 = vset.pattern.permute.xlu2 %v1455_v3  ;;  %11920 = vset.pattern.permute.xlu1 %v1455_v3  ;;  %s12889_s1 = sshll.u32 %s17538_s18, 3 }
  0x62   : > { %11919 = vset.pattern.permute.xlu0 %v1455_v3  ;;  %s12894_s7 = scalar_lea.vmem %s12646_s13, %s12889_s1  ;;  %s12898_s10 = scalar_lea.vmem %s12656_s21, %s12889_s1 }
  0x63   : > { %v3067_v4 = vld [vmem:[%s17181_s4] sm:$0xff]  ;;  %v12907_v10 = vld [vmem:[%s12894_s7 + $0x8] sm:$0xff]  ;;  %v12912_v14 = vld [vmem:[%s12894_s7 + $0x10] sm:$0xff]  ;;  %s17187_s4 = sld [smem:[#allocation21_spill]] }
  0x64   : > { %3100 = vmatpush.msrb.mxu1 %v3067_v4  ;;  %v12901_v5 = vld [vmem:[%s12894_s7] sm:$0xff]  ;;  %v1355_v15 = vld [vmem:[%s12898_s10 + $0x8] sm:$0xff]  ;;  %v12918_v19 = vld [vmem:[%s12894_s7 + $0x18] sm:$0xff]  ;;  %s12924_s18 = scalar_lea.vmem %s17182_s9, %s12889_s1 }
  0x65   : > { %v1354_v6 = vld [vmem:[%s12898_s10] sm:$0xff]  ;;  %10058 = vmatmul.msk.f32.vlgmr.msra.gmra.mxu1 %vm17076_vm1, %v12901_v5  ;;  %v1509_v16 = vperm.slane %v1355_v15, 0  ;;  %v1530_v20 = vperm.slane %v1355_v15, 3  ;;  %v1523_v21 = vperm.slane %v1355_v15, 2  ;;  %v1516_v22 = vperm.slane %v1355_v15, 1  ;;  %v1343_v29 = vld [vmem:[%s12924_s18 + $0x8] sm:$0xff] }
  0x66   : > { %v1481_v7 = vperm.slane %v1354_v6, 4  ;;  %v1467_v8 = vperm.slane %v1354_v6, 2  ;;  %v1453_v9 = vperm.slane %v1354_v6, 0  ;;  %v1488_v11 = vperm.slane %v1354_v6, 5  ;;  %v1342_v23 = vld [vmem:[%s12924_s18] sm:$0xff]  ;;  %10194 = vmatpush.msk.msra.mxu1 %vm17077_vm0, %v3634_v24  ;;  %v1356_v30 = vld [vmem:[%s12898_s10 + $0x10] sm:$0xff] }
  0x67   : > { %v1474_v12 = vperm.slane %v1354_v6, 3  ;;  %v1460_v13 = vperm.slane %v1354_v6, 1  ;;  %v1502_v17 = vperm.slane %v1354_v6, 7  ;;  %v1495_v18 = vperm.slane %v1354_v6, 6  ;;  %v1344_v34 = vld [vmem:[%s12924_s18 + $0x10] sm:$0xff]  ;;  %v1345_v38 = vld [vmem:[%s12924_s18 + $0x18] sm:$0xff]  ;;  %s12945_s18 = scalar_lea.vmem %s12661_s25, %s12889_s1 }
  0x68   : > { %v1551_v26 = vperm.slane %v1355_v15, 6  ;;  %v1544_v27 = vperm.slane %v1355_v15, 5  ;;  %v1537_v28 = vperm.slane %v1355_v15, 4  ;;  %v1572_v31 = vperm.slane %v1356_v30, 1  ;;  %v1357_v42 = vld [vmem:[%s12898_s10 + $0x18] sm:$0xff]  ;;  %v3630_v49 = vld [vmem:[%s12945_s18] sm:$0xff]  ;;  %s12957_s10 = scalar_lea.vmem %s12651_s17, %s12889_s1 }
  0x69   : > { %1486 = vperm.xlu2 %11921, %v1481_v7   ;;  %1472 = vperm.xlu1 %11920, %v1467_v8   ;;  %v1565_v32 = vperm.slane %v1356_v30, 0  ;;  %v1558_v33 = vperm.slane %v1355_v15, 7  ;;  %v1593_v35 = vperm.slane %v1356_v30, 4  ;;  %v1586_v36 = vperm.slane %v1356_v30, 3  ;;  %v3631_v59 = vld [vmem:[%s12945_s18 + $0x8] sm:$0xff]  ;;  %v1350_v62 = vld [vmem:[%s12957_s10] sm:$0xff] }
  0x6a   : > { %1458 = vperm.xlu0 %11919, %v1453_v9   ;;  %v1579_v37 = vperm.slane %v1356_v30, 2  ;;  %v1614_v39 = vperm.slane %v1356_v30, 7  ;;  %v1607_v40 = vperm.slane %v1356_v30, 6  ;;  %v1600_v41 = vperm.slane %v1356_v30, 5  ;;  %10053 = vmatmul.msk.f32.vlgmr.msra.gmra.mxu0 %vm17076_vm1, %v1350_v62  ;;  %v1351_v3 = vld [vmem:[%s12957_s10 + $0x8] sm:$0xff]  ;;  %v1352_v8 = vld [vmem:[%s12957_s10 + $0x10] sm:$0xff] }
  0x6b   : > { %v1635_v43 = vperm.slane %v1357_v42, 2  ;;  %v1628_v44 = vperm.slane %v1357_v42, 1  ;;  %v1621_v45 = vperm.slane %v1357_v42, 0  ;;  %v1656_v46 = vperm.slane %v1357_v42, 5  ;;  %v11942_v24 = vld [vmem:[%s12696_s30] ss:$0 sm:$0xff] }
  0x6c   : > { %v1649_v47 = vperm.slane %v1357_v42, 4  ;;  %v1642_v48 = vperm.slane %v1357_v42, 3  ;;  %v3703_v50 = vperm.slane %v3630_v49, 0  ;;  %v1670_v51 = vperm.slane %v1357_v42, 7 }
  0x6d   : > { %10059 = vmatmul.msk.f32.gmra.mxu1 %vm17076_vm1, %v12907_v10  ;;  %v1663_v52 = vperm.slane %v1357_v42, 6  ;;  %v3724_v53 = vperm.slane %v3630_v49, 3  ;;  %v3717_v54 = vperm.slane %v3630_v49, 2  ;;  %v3710_v55 = vperm.slane %v3630_v49, 1 }
  0x6e   : > { %v3745_v56 = vperm.slane %v3630_v49, 6  ;;  %v3738_v57 = vperm.slane %v3630_v49, 5  ;;  %v3731_v58 = vperm.slane %v3630_v49, 4  ;;  %v3766_v60 = vperm.slane %v3631_v59, 1 }
  0x6f   : > { %v3759_v61 = vperm.slane %v3631_v59, 0  ;;  %v3752_v63 = vperm.slane %v3630_v49, 7  ;;  %v3787_v0 = vperm.slane %v3631_v59, 4  ;;  %v3780_v2 = vperm.slane %v3631_v59, 3 }
  0x70   : > { %v3773_v4 = vperm.slane %v3631_v59, 2  ;;  %v3801_v6 = vperm.slane %v3631_v59, 6  ;;  %v3794_v7 = vperm.slane %v3631_v59, 5 }
  0x71   : > { %1493 = vperm.xlu2 %11921, %v1488_v11   ;;  %1479 = vperm.xlu1 %11920, %v1474_v12  }
  0x72   : > { %1465 = vperm.xlu0 %11919, %v1460_v13   ;;  %10054 = vmatmul.msk.f32.gmra.mxu0 %vm17076_vm1, %v1351_v3  ;;  %v1353_v13 = vld [vmem:[%s12957_s10 + $0x18] sm:$0xff]  ;;  %v1748_v3 = vld [vmem:[%s17177_s8 + $0x30] sm:$0xff]  ;;  %s13027_s10 = scalar_lea.vmem %s12666_s29, %s12889_s1 }
  0x75   : > { %10060 = vmatmul.msk.f32.gmra.mxu1 %vm17076_vm1, %v12912_v14 }
  0x79   : > { %1514 = vperm.xlu2 %11921, %v1509_v16   ;;  %1507 = vperm.xlu1 %11920, %v1502_v17  }
  0x7a   : > { %1500 = vperm.xlu0 %11919, %v1495_v18   ;;  %10055 = vmatmul.msk.f32.gmra.mxu0 %vm17076_vm1, %v1352_v8 }
  0x7d   : > { %10061 = vmatmul.msk.f32.gmra.mxu1 %vm17076_vm1, %v12918_v19 }
  0x81   : > { %1535 = vperm.xlu2 %11921, %v1530_v20   ;;  %1528 = vperm.xlu1 %11920, %v1523_v21   ;;  %v3633_v20 = vld [vmem:[%s12945_s18 + $0x18] sm:$0xff] }
  0x82   : > { %1521 = vperm.xlu0 %11919, %v1516_v22   ;;  %10056 = vmatmul.msk.f32.gmra.mxu0 %vm17076_vm1, %v1353_v13  ;;  %v3871_v21 = vperm.slane %v3633_v20, 0  ;;  %v3878_v30 = vperm.slane %v3633_v20, 1 }
  0x85   : > { %10190 = vmatmul.msk.f32.vlgmr.msrb.gmra.mxu1 %vm3072_vm2, %v1342_v23 }
  0x86   : > { %10199 = vmatpush.msk.msrb.mxu1 %vm17077_vm0, %v3671_v25 }
  0x89   : > { %1556 = vperm.xlu2 %11921, %v1551_v26   ;;  %1549 = vperm.xlu1 %11920, %v1544_v27  }
  0x8a   : > { %1542 = vperm.xlu0 %11919, %v1537_v28   ;;  %v3892_v28 = vperm.slane %v3633_v20, 3 }
  0x8d   : > { %10191 = vmatmul.msk.f32.gmra.mxu1 %vm3072_vm2, %v1343_v29  ;;  %v3885_v29 = vperm.slane %v3633_v20, 2 }
  0x91   : > { %1577 = vperm.xlu2 %11921, %v1572_v31   ;;  %1570 = vperm.xlu1 %11920, %v1565_v32  }
  0x92   : > { %1563 = vperm.xlu0 %11919, %v1558_v33  }
  0x95   : > { %10192 = vmatmul.msk.f32.gmra.mxu1 %vm3072_vm2, %v1344_v34  ;;  %v1742_v34 = vld [vmem:[%s17177_s8] sm:$0xff] }
  0x99   : > { %1598 = vperm.xlu2 %11921, %v1593_v35   ;;  %1591 = vperm.xlu1 %11920, %v1586_v36   ;;  %v3913_v35 = vperm.slane %v3633_v20, 6  ;;  %v3906_v36 = vperm.slane %v3633_v20, 5 }
  0x9a   : > { %1584 = vperm.xlu0 %11919, %v1579_v37   ;;  %v3899_v37 = vperm.slane %v3633_v20, 4 }
  0x9d   : > { %10193 = vmatmul.msk.f32.gmra.mxu1 %vm3072_vm2, %v1345_v38 }
  0xa1   : > { %1619 = vperm.xlu2 %11921, %v1614_v39   ;;  %1612 = vperm.xlu1 %11920, %v1607_v40   ;;  %v1743_v39 = vld [vmem:[%s17177_s8 + $0x8] sm:$0xff] }
  0xa2   : > { %1605 = vperm.xlu0 %11919, %v1600_v41  }
  0xa5   : > { %10195 = vmatmul.msk.f32.vlgmr.msra.gmra.mxu1 %vm17076_vm1, %v12901_v5 }
  0xa9   : > { %1640 = vperm.xlu2 %11921, %v1635_v43   ;;  %1633 = vperm.xlu1 %11920, %v1628_v44   ;;  %v3920_v43 = vperm.slane %v3633_v20, 7  ;;  %v1751_v20 = vld [vmem:[%s17177_s8 + $0x48] sm:$0xff] }
  0xaa   : > { %1626 = vperm.xlu0 %11919, %v1621_v45   ;;  %v1744_v45 = vld [vmem:[%s17177_s8 + $0x10] sm:$0xff] }
  0xad   : > { %10196 = vmatmul.msk.f32.gmra.mxu1 %vm17076_vm1, %v12907_v10 }
  0xb1   : > { %1661 = vperm.xlu2 %11921, %v1656_v46   ;;  %1654 = vperm.xlu1 %11920, %v1649_v47  }
  0xb2   : > { %1647 = vperm.xlu0 %11919, %v1642_v48  }
  0xb5   : > { %10197 = vmatmul.msk.f32.gmra.mxu1 %vm17076_vm1, %v12912_v14 }
  0xb9   : > { %3708 = vperm.xlu2 %11921, %v3703_v50   ;;  %1675 = vperm.xlu1 %11920, %v1670_v51   ;;  %v1745_v51 = vld [vmem:[%s17177_s8 + $0x18] sm:$0xff] }
  0xba   : > { %1668 = vperm.xlu0 %11919, %v1663_v52  }
  0xbd   : > { %10198 = vmatmul.msk.f32.gmra.mxu1 %vm17076_vm1, %v12918_v19 }
  0xc1   : > { %3729 = vperm.xlu2 %11921, %v3724_v53   ;;  %3722 = vperm.xlu1 %11920, %v3717_v54  }
  0xc2   : > { %3715 = vperm.xlu0 %11919, %v3710_v55  }
  0xc5   : > { %10200 = vmatmul.msk.f32.vlgmr.msrb.gmra.mxu1 %vm17076_vm1, %v12901_v5  ;;  %v3808_v5 = vperm.slane %v3631_v59, 7 }
  0xc9   : > { %3750 = vperm.xlu2 %11921, %v3745_v56   ;;  %3743 = vperm.xlu1 %11920, %v3738_v57   ;;  %v1746_v56 = vld [vmem:[%s17177_s8 + $0x20] sm:$0xff] }
  0xca   : > { %3736 = vperm.xlu0 %11919, %v3731_v58  }
  0xcd   : > { %10201 = vmatmul.msk.f32.gmra.mxu1 %vm17076_vm1, %v12907_v10  ;;  %v3632_v10 = vld [vmem:[%s12945_s18 + $0x10] sm:$0xff]  ;;  %s12982_s18 = scalar_lea.vmem %s17183_s3, %s12889_s1  ;;  %s17186_s3 = sld [smem:[#allocation12_spill]] }
  0xce   : > { %v3829_v11 = vperm.slane %v3632_v10, 2  ;;  %v3822_v12 = vperm.slane %v3632_v10, 1  ;;  %v3850_v16 = vperm.slane %v3632_v10, 5  ;;  %v3843_v17 = vperm.slane %v3632_v10, 4  ;;  %v4707_v40 = vld [vmem:[%s12982_s18] sm:$0xff]  ;;  %v4708_v46 = vld [vmem:[%s12982_s18 + $0x8] sm:$0xff] }
  0xcf   : > { %v3836_v18 = vperm.slane %v3632_v10, 3  ;;  %v3864_v22 = vperm.slane %v3632_v10, 7  ;;  %v3857_v23 = vperm.slane %v3632_v10, 6  ;;  %v4718_v41 = vperm.slane %v4707_v40, 1 }
  0xd0   : > { %v4711_v42 = vperm.slane %v4707_v40, 0  ;;  %v4725_v47 = vperm.slane %v4707_v40, 2  ;;  %v4774_v48 = vperm.slane %v4708_v46, 1  ;;  %v4767_v49 = vperm.slane %v4708_v46, 0 }
  0xd1   : > { %3771 = vperm.xlu2 %11921, %v3766_v60   ;;  %3764 = vperm.xlu1 %11920, %v3759_v61   ;;  %v4788_v52 = vperm.slane %v4708_v46, 3  ;;  %v4732_v53 = vperm.slane %v4707_v40, 3  ;;  %v4781_v54 = vperm.slane %v4708_v46, 2  ;;  %v4746_v57 = vperm.slane %v4707_v40, 5  ;;  %v1747_v61 = vld [vmem:[%s17177_s8 + $0x28] sm:$0xff] }
  0xd2   : > { %3757 = vperm.xlu0 %11919, %v3752_v63   ;;  %v4795_v58 = vperm.slane %v4708_v46, 4  ;;  %v4739_v59 = vperm.slane %v4707_v40, 4  ;;  %v4809_v62 = vperm.slane %v4708_v46, 6  ;;  %v4753_v63 = vperm.slane %v4707_v40, 6 }
  0xd5   : > { %10202 = vmatmul.msk.f32.gmra.mxu1 %vm17076_vm1, %v12912_v14  ;;  %v3815_v14 = vperm.slane %v3632_v10, 0  ;;  %v4710_v10 = vld [vmem:[%s12982_s18 + $0x18] sm:$0xff] }
  0xd9   : > { %3792 = vperm.xlu2 %11921, %v3787_v0   ;;  %3785 = vperm.xlu1 %11920, %v3780_v2   ;;  %v4802_v0 = vperm.slane %v4708_v46, 5 }
  0xda   : > { %3778 = vperm.xlu0 %11919, %v3773_v4   ;;  %v4709_v4 = vld [vmem:[%s12982_s18 + $0x10] sm:$0xff]  ;;  %s17184_s18 = sld [smem:[#allocation10_spill]] }
  0xdb   : > { %v4830_v13 = vperm.slane %v4709_v4, 1 }
  0xdd   : > { %10203 = vmatmul.msk.f32.gmra.mxu1 %vm17076_vm1, %v12918_v19 }
  0xe1   : > { %3813 = vperm.xlu2 %11921, %v3808_v5   ;;  %3806 = vperm.xlu1 %11920, %v3801_v6   ;;  %v4823_v5 = vperm.slane %v4709_v4, 0  ;;  %v4816_v6 = vperm.slane %v4708_v46, 7 }
  0xe2   : > { %3799 = vperm.xlu0 %11919, %v3794_v7   ;;  %v1441_v9 = vpop.f32.mrf.mxu1  ;;  %v4760_v7 = vperm.slane %v4707_v40, 7 }
  0xe3   : > { %v1442_v33 = vadd.f32 %v11942_v24, %v1441_v9  ;;  %v1749_v9 = vld [vmem:[%s17177_s8 + $0x38] sm:$0xff] }
  0xe9   : > { %3834 = vperm.xlu2 %11921, %v3829_v11   ;;  %3827 = vperm.xlu1 %11920, %v3822_v12   ;;  %v4886_v11 = vperm.slane %v4710_v10, 1  ;;  %v4879_v12 = vperm.slane %v4710_v10, 0 }
  0xea   : > { %3820 = vperm.xlu0 %11919, %v3815_v14   ;;  %v1444_v15 = vpop.f32.mrf.mxu1 }
  0xeb   : > { %v1445_v31 = vadd.f32 %v11942_v24, %v1444_v15  ;;  %v1750_v15 = vld [vmem:[%s17177_s8 + $0x40] sm:$0xff] }
  0xf1   : > { %3855 = vperm.xlu2 %11921, %v3850_v16   ;;  %3848 = vperm.xlu1 %11920, %v3843_v17   ;;  %v4844_v16 = vperm.slane %v4709_v4, 3  ;;  %v4893_v17 = vperm.slane %v4710_v10, 2 }
  0xf2   : > { %3841 = vperm.xlu0 %11919, %v3836_v18   ;;  %v1447_v19 = vpop.f32.mrf.mxu1  ;;  %v4837_v18 = vperm.slane %v4709_v4, 2 }
  0xf3   : > { %v1448_v27 = vadd.f32 %v11942_v24, %v1447_v19 }
  0xf9   : > { %3876 = vperm.xlu2 %11921, %v3871_v21   ;;  %3869 = vperm.xlu1 %11920, %v3864_v22   ;;  %v4907_v21 = vperm.slane %v4710_v10, 4  ;;  %v4851_v22 = vperm.slane %v4709_v4, 4 }
  0xfa   : > { %3862 = vperm.xlu0 %11919, %v3857_v23   ;;  %v1450_v25 = vpop.f32.mrf.mxu1  ;;  %v4900_v23 = vperm.slane %v4710_v10, 3 }
  0xfb   : > { %v1451_v26 = vadd.f32 %v11942_v24, %v1450_v25  ;;  %v1752_v25 = vld [vmem:[%s17177_s8 + $0x50] sm:$0xff] }
  0xfd   : > { %1883 = vmatpush.msra.mxu2 %v1451_v26  ;;  %v4865_v26 = vperm.slane %v4709_v4, 6 }
  0xff   : > { %1884 = vmatpush.msra.mxu2 %v1448_v27  ;;  %v4914_v27 = vperm.slane %v4710_v10, 5 }
 0x101   : > { %3897 = vperm.xlu2 %11921, %v3892_v28   ;;  %3890 = vperm.xlu1 %11920, %v3885_v29   ;;  %v4858_v28 = vperm.slane %v4709_v4, 5  ;;  %v11944_v29 = vld [vmem:[%s12736_s27] ss:$0 sm:$0xff] }
 0x102   : > { %3883 = vperm.xlu0 %11919, %v3878_v30   ;;  %1885 = vmatpush.msra.mxu2 %v1445_v31  ;;  %v12976_v32 = vpop.f32.mrf.mxu1  ;;  %v1753_v31 = vld [vmem:[%s17177_s8 + $0x58] sm:$0xff] }
 0x104   : > { %1886 = vmatpush.msra.mxu2 %v1442_v33 }
 0x105   : > { %10062 = vmatmul.msk.f32.vlgmr.msra.gmra.mxu2 %vm1774_vm3, %v1742_v34 }
 0x109   : > { %3918 = vperm.xlu2 %11921, %v3913_v35   ;;  %3911 = vperm.xlu1 %11920, %v3906_v36   ;;  %v4928_v35 = vperm.slane %v4710_v10, 7  ;;  %v4872_v36 = vperm.slane %v4709_v4, 7  ;;  %v1757_v4 = vld [vmem:[%s17177_s8 + $0x78] sm:$0xff] }
 0x10a   : > { %3904 = vperm.xlu0 %11919, %v3899_v37   ;;  %v12984_v38 = vpop.f32.mrf.mxu1 }
 0x10d   : > { %10063 = vmatmul.msk.f32.gmra.mxu2 %vm1774_vm3, %v1743_v39  ;;  %v4921_v39 = vperm.slane %v4710_v10, 6  ;;  %v1459_v10 = vpop.permute.xlu0 %1458 }
 0x111   : > { %4723 = vperm.xlu2 %11921, %v4718_v41   ;;  %4716 = vperm.xlu1 %11920, %v4711_v42   ;;  %v1754_v41 = vld [vmem:[%s17177_s8 + $0x60] sm:$0xff] }
 0x112   : > { %3925 = vperm.xlu0 %11919, %v3920_v43   ;;  %v12989_v44 = vpop.f32.mrf.mxu1  ;;  %v3992_v42 = vld [vmem:[%s12681_s14] sm:$0xff]  ;;  %v13032_v43 = vld [vmem:[%s13027_s10 + $0x8] sm:$0xff] }
 0x113   : > { %v3174_v46 = vperm.slane %v13032_v43, 0 }
 0x115   : > { %10064 = vmatmul.msk.f32.gmra.mxu2 %vm1774_vm3, %v1744_v45  ;;  %v13035_v45 = vld [vmem:[%s13027_s10] sm:$0xff] }
 0x119   : > { %4730 = vperm.xlu2 %11921, %v4725_v47   ;;  %4779 = vperm.xlu1 %11920, %v4774_v48   ;;  %v3125_v47 = vperm.slane %v13035_v45, 1  ;;  %v3118_v48 = vperm.slane %v13035_v45, 0 }
 0x11a   : > { %4772 = vperm.xlu0 %11919, %v4767_v49   ;;  %v12994_v50 = vpop.f32.mrf.mxu1  ;;  %v1755_v49 = vld [vmem:[%s17177_s8 + $0x68] sm:$0xff] }
 0x11d   : > { %10065 = vmatmul.msk.f32.gmra.mxu2 %vm1774_vm3, %v1745_v51  ;;  %v3993_v51 = vld [vmem:[%s12681_s14 + $0x8] sm:$0xff] }
 0x121   : > { %4793 = vperm.xlu2 %11921, %v4788_v52   ;;  %4737 = vperm.xlu1 %11920, %v4732_v53   ;;  %v11533_v52 = vld [vmem:[%s17184_s18 + $0x18] sm:$0xff]  ;;  %v3188_v53 = vperm.slane %v13032_v43, 2 }
 0x122   : > { %4786 = vperm.xlu0 %11919, %v4781_v54   ;;  %v12998_v55 = vpop.f32.mrf.mxu1  ;;  %v3132_v54 = vperm.slane %v13035_v45, 2  ;;  %2153 = vmatpush.bf16.msra.mxu3 %v11533_v52  ;;  %v1761_v52 = vld [vmem:[%s17177_s8 + $0x98] sm:$0xff] }
 0x125   : > { %10066 = vmatmul.msk.f32.gmra.mxu2 %vm1774_vm3, %v1746_v56  ;;  %v3181_v56 = vperm.slane %v13032_v43, 1 }
 0x129   : > { %4751 = vperm.xlu2 %11921, %v4746_v57   ;;  %4800 = vperm.xlu1 %11920, %v4795_v58   ;;  %v11532_v57 = vld [vmem:[%s17184_s18 + $0x10] sm:$0xff] }
 0x12a   : > { %4744 = vperm.xlu0 %11919, %v4739_v59   ;;  %v13002_v60 = vpop.f32.mrf.mxu1  ;;  %v1756_v58 = vld [vmem:[%s17177_s8 + $0x70] sm:$0xff]  ;;  %2154 = vmatpush.bf16.msra.mxu3 %v11532_v57 }
 0x12b   : > { %v3994_v59 = vld [vmem:[%s12681_s14 + $0x10] sm:$0xff] }
 0x12d   : > { %10067 = vmatmul.msk.f32.gmra.mxu2 %vm1774_vm3, %v1747_v61  ;;  %v11531_v61 = vld [vmem:[%s17184_s18 + $0x8] sm:$0xff] }
 0x12e   : > { %2155 = vmatpush.bf16.msra.mxu3 %v11531_v61 }
 0x131   : > { %4814 = vperm.xlu2 %11921, %v4809_v62   ;;  %4758 = vperm.xlu1 %11920, %v4753_v63   ;;  %v3146_v62 = vperm.slane %v13035_v45, 4  ;;  %v3195_v63 = vperm.slane %v13032_v43, 3 }
 0x132   : > { %4807 = vperm.xlu0 %11919, %v4802_v0   ;;  %v13006_v2 = vpop.f32.mrf.mxu1  ;;  %v3139_v0 = vperm.slane %v13035_v45, 3 }
 0x135   : > { %10068 = vmatmul.msk.f32.gmra.mxu2 %vm1774_vm3, %v1748_v3  ;;  %v11530_v3 = vld [vmem:[%s17184_s18] sm:$0xff] }
 0x136   : > { %2156 = vmatpush.bf16.msra.mxu3 %v11530_v3 }
 0x139   : > { %4828 = vperm.xlu2 %11921, %v4823_v5   ;;  %4821 = vperm.xlu1 %11920, %v4816_v6   ;;  %v3995_v5 = vld [vmem:[%s12681_s14 + $0x18] sm:$0xff]  ;;  %v3209_v6 = vperm.slane %v13032_v43, 5 }
 0x13a   : > { %4765 = vperm.xlu0 %11919, %v4760_v7   ;;  %v13011_v8 = vpop.f32.mrf.mxu1  ;;  %v3153_v7 = vperm.slane %v13035_v45, 5 }
 0x13d   : > { %10069 = vmatmul.msk.f32.gmra.mxu2 %vm1774_vm3, %v1749_v9  ;;  %v3202_v9 = vperm.slane %v13032_v43, 4 }
 0x141   : > { %4891 = vperm.xlu2 %11921, %v4886_v11   ;;  %4884 = vperm.xlu1 %11920, %v4879_v12   ;;  %v13068_v11 = vperm.slane %v12882_v1, 4  ;;  %v1758_v12 = vld [vmem:[%s17177_s8 + $0x80] sm:$0xff] }
 0x142   : > { %4835 = vperm.xlu0 %11919, %v4830_v13   ;;  %v3691_v14 = vpop.f32.mrf.mxu1  ;;  %v3996_v13 = vld [vmem:[%s12681_s14 + $0x20] sm:$0xff] }
 0x143   : > { %v3692_v40 = vadd.f32 %v11944_v29, %v3691_v14  ;;  %v3167_v14 = vperm.slane %v13035_v45, 7 }
 0x145   : > { %10070 = vmatmul.msk.f32.gmra.mxu2 %vm1774_vm3, %v1750_v15  ;;  %v3216_v15 = vperm.slane %v13032_v43, 6 }
 0x149   : > { %4849 = vperm.xlu2 %11921, %v4844_v16   ;;  %4898 = vperm.xlu1 %11920, %v4893_v17   ;;  %v1678_v16 = vmul.f32 %v13068_v11, %v1459_v10  ;;  %v3160_v17 = vperm.slane %v13035_v45, 6 }
 0x14a   : > { %4842 = vperm.xlu0 %11919, %v4837_v18   ;;  %v3694_v19 = vpop.f32.mrf.mxu1  ;;  %v13078_v18 = vpop.f32.mrf.mxu0 }
 0x14b   : > { %v3695_v37 = vadd.f32 %v11944_v29, %v3694_v19  ;;  %v1466_v19 = vpop.permute.xlu0 %1465 }
 0x14d   : > { %10071 = vmatmul.msk.f32.gmra.mxu2 %vm1774_vm3, %v1751_v20  ;;  %v1710_v20 = vadd.f32 %v1678_v16, %v13078_v18 }
 0x151   : > { %4912 = vperm.xlu2 %11921, %v4907_v21   ;;  %4856 = vperm.xlu1 %11920, %v4851_v22   ;;  %v1759_v21 = vld [vmem:[%s17177_s8 + $0x88] sm:$0xff] }
 0x152   : > { %4905 = vperm.xlu0 %11919, %v4900_v23   ;;  %v3697_v24 = vpop.f32.mrf.mxu1  ;;  %v3997_v22 = vld [vmem:[%s12681_s14 + $0x28] sm:$0xff]  ;;  %v13084_v23 = vld [vmem:[%s13027_s10 + $0x10] sm:$0xff] }
 0x153   : > { %v3698_v33 = vadd.f32 %v11944_v29, %v3697_v24  ;;  %v1679_v24 = vmul.f32 %v13068_v11, %v1466_v19  ;;  %v3258_v10 = vperm.slane %v13084_v23, 4  ;;  %v1763_v19 = vld [vmem:[%s17177_s8 + $0xa8] sm:$0xff] }
 0x155   : > { %10072 = vmatmul.msk.f32.gmra.mxu2 %vm1774_vm3, %v1752_v25  ;;  %v13087_v25 = vpop.permute.xlu2 %1486 }
 0x159   : > { %4870 = vperm.xlu2 %11921, %v4865_v26   ;;  %4919 = vperm.xlu1 %11920, %v4914_v27   ;;  %v3237_v26 = vperm.slane %v13084_v23, 1  ;;  %v3230_v27 = vperm.slane %v13084_v23, 0 }
 0x15a   : > { %4863 = vperm.xlu0 %11919, %v4858_v28   ;;  %v3700_v30 = vpop.f32.mrf.mxu1 }
 0x15b   : > { %v3701_v34 = vadd.f32 %v11944_v29, %v3700_v30  ;;  %v3223_v29 = vperm.slane %v13032_v43, 7  ;;  %v1711_v30 = vadd.f32 %v1679_v24, %v13078_v18 }
 0x15d   : > { %10073 = vmatmul.msk.f32.gmra.mxu2 %vm1774_vm3, %v1753_v31  ;;  %4132 = vmatpush.msra.mxu1 %v3701_v34  ;;  %v1473_v31 = vpop.permute.xlu1 %1472  ;;  %v1494_v43 = vpop.permute.xlu2 %1493 }
 0x15f   : > { %4133 = vmatpush.msra.mxu1 %v3698_v33 }
 0x161   : > { %4933 = vperm.xlu2 %11921, %v4928_v35   ;;  %4877 = vperm.xlu1 %11920, %v4872_v36   ;;  %v1760_v35 = vld [vmem:[%s17177_s8 + $0x90] sm:$0xff] }
 0x162   : > { %4926 = vperm.xlu0 %11919, %v4921_v39   ;;  %4134 = vmatpush.msra.mxu1 %v3695_v37  ;;  %v3998_v36 = vld [vmem:[%s12681_s14 + $0x30] sm:$0xff]  ;;  %v13098_v37 = vld [vmem:[%s13027_s10 + $0x18] sm:$0xff]  ;;  %v13100_v39 = vpop.permute.xlu0 %1500  ;;  %s17185_s10 = sld [smem:[#allocation17_spill]] }
 0x163   : > { %v3307_v57 = vperm.slane %v13098_v37, 3  ;;  %v3300_v61 = vperm.slane %v13098_v37, 2 }
 0x164   : > { %4135 = vmatpush.msra.mxu1 %v3692_v40  ;;  %v3244_v40 = vperm.slane %v13084_v23, 2 }
 0x165   : > { %10074 = vmatmul.msk.f32.gmra.mxu2 %vm1774_vm3, %v1754_v41  ;;  %10204 = vmatmul.msk.f32.vlgmr.msra.gmra.mxu1 %vm1774_vm3, %v3992_v42  ;;  %v3293_v41 = vperm.slane %v13098_v37, 1  ;;  %v3286_v42 = vperm.slane %v13098_v37, 0  ;;  %v13121_v3 = vpop.permute.xlu2 %1514 }
 0x169   : > { %3179 = vperm.xlu2 %11921, %v3174_v46   ;;  %3130 = vperm.xlu1 %11920, %v3125_v47   ;;  %v1680_v46 = vmul.f32 %v13068_v11, %v1473_v31 }
 0x16a   : > { %3123 = vperm.xlu0 %11919, %v3118_v48  }
 0x16d   : > { %10075 = vmatmul.msk.f32.gmra.mxu2 %vm1774_vm3, %v1755_v49  ;;  %10205 = vmatmul.msk.f32.gmra.mxu1 %vm1774_vm3, %v3993_v51  ;;  %v1480_v49 = vpop.permute.xlu1 %1479 }
 0x171   : > { %3193 = vperm.xlu2 %11921, %v3188_v53   ;;  %3137 = vperm.xlu1 %11920, %v3132_v54   ;;  %v3999_v53 = vld [vmem:[%s12681_s14 + $0x38] sm:$0xff]  ;;  %v1681_v54 = vmul.f32 %v13068_v11, %v1480_v49 }
 0x172   : > { %3186 = vperm.xlu0 %11919, %v3181_v56   ;;  %v1712_v56 = vadd.f32 %v1680_v46, %v13078_v18  ;;  %v1765_v49 = vld [vmem:[%s17177_s8 + $0xb8] sm:$0xff] }
 0x175   : > { %10076 = vmatmul.msk.f32.gmra.mxu2 %vm1774_vm3, %v1756_v58  ;;  %10206 = vmatmul.msk.f32.gmra.mxu1 %vm1774_vm3, %v3994_v59  ;;  %v3251_v58 = vperm.slane %v13084_v23, 3 }
 0x179   : > { %3151 = vperm.xlu2 %11921, %v3146_v62   ;;  %3200 = vperm.xlu1 %11920, %v3195_v63   ;;  %v13118_v62 = vpop.permute.xlu0 %1521  ;;  %v1713_v63 = vadd.f32 %v1681_v54, %v13078_v18 }
 0x17a   : > { %3144 = vperm.xlu0 %11919, %v3139_v0  }
 0x17d   : > { %10077 = vmatmul.msk.f32.gmra.mxu2 %vm1774_vm3, %v1757_v4  ;;  %10207 = vmatmul.msk.f32.gmra.mxu1 %vm1774_vm3, %v3995_v5  ;;  %v1762_v5 = vld [vmem:[%s17177_s8 + $0xa0] sm:$0xff] }
 0x181   : > { %3214 = vperm.xlu2 %11921, %v3209_v6   ;;  %3158 = vperm.xlu1 %11920, %v3153_v7   ;;  %v4000_v6 = vld [vmem:[%s12681_s14 + $0x40] sm:$0xff]  ;;  %v3265_v7 = vperm.slane %v13084_v23, 5 }
 0x182   : > { %3207 = vperm.xlu0 %11919, %v3202_v9   ;;  %v3314_v9 = vperm.slane %v13098_v37, 4 }
 0x185   : > { %10078 = vmatmul.msk.f32.gmra.mxu2 %vm1774_vm3, %v1758_v12  ;;  %10208 = vmatmul.msk.f32.gmra.mxu1 %vm1774_vm3, %v3996_v13  ;;  %v1508_v12 = vpop.permute.xlu1 %1507 }
 0x188   : > { %v1888_v1 = vpop.f32.mrf.mxu2 }
 0x189   : > { %3172 = vperm.xlu2 %11921, %v3167_v14   ;;  %3221 = vperm.xlu1 %11920, %v3216_v15   ;;  %v1984_v28 = vadd.f32 %v1888_v1, %v1710_v20  ;;  %v1682_v14 = vmul.f32 %v13068_v11, %v13087_v25  ;;  %v4001_v20 = vld [vmem:[%s12681_s14 + $0x48] sm:$0xff]  ;;  %v3328_v25 = vperm.slane %v13098_v37, 6 }
 0x18a   : > { %3165 = vperm.xlu0 %11919, %v3160_v17   ;;  %v13132_v17 = vpop.permute.xlu0 %1542 }
 0x18b   : > { %11955 = vtanh.f32 %v1984_v28  ;;  %v1714_v24 = vadd.f32 %v1682_v14, %v13078_v18  ;;  %v3321_v28 = vperm.slane %v13098_v37, 5  ;;  %v13191_v14 = vpop.f32.mrf.mxu0 }
 0x18d   : > { %10079 = vmatmul.msk.f32.gmra.mxu2 %vm1774_vm3, %v1759_v21  ;;  %10209 = vmatmul.msk.f32.gmra.mxu1 %vm1774_vm3, %v3997_v22  ;;  %v1683_v21 = vmul.f32 %v13068_v11, %v1494_v43  ;;  %v13137_v22 = vpop.permute.xlu2 %1535  ;;  %v13147_v31 = vpop.permute.xlu1 %1528 }
 0x190   : > { %v1891_v33 = vpop.f32.mrf.mxu2 }
 0x191   : > { %v1985_v34 = vadd.f32 %v1891_v33, %v1711_v30  ;;  %3242 = vperm.xlu2 %11921, %v3237_v26   ;;  %3235 = vperm.xlu1 %11920, %v3230_v27   ;;  %v11956_v45 = vpop.eup %11955  ;;  %v3272_v26 = vperm.slane %v13084_v23, 6 }
 0x192   : > { %3228 = vperm.xlu0 %11919, %v3223_v29   ;;  %v1715_v29 = vadd.f32 %v1683_v21, %v13078_v18  ;;  %v1768_v21 = vld [vmem:[%s17177_s8 + $0xd0] sm:$0xff] }
 0x193   : > { %11957 = vtanh.f32 %v1985_v34  ;;  %v1764_v34 = vld [vmem:[%s17177_s8 + $0xb0] sm:$0xff] }
 0x195   : > { %10080 = vmatmul.msk.f32.gmra.mxu2 %vm1774_vm3, %v1760_v35  ;;  %10210 = vmatmul.msk.f32.gmra.mxu1 %vm1774_vm3, %v3998_v36  ;;  %v4002_v35 = vld [vmem:[%s12681_s14 + $0x50] sm:$0xff]  ;;  %v13151_v36 = vpop.permute.xlu0 %1563 }
 0x198   : > { %v1894_v47 = vpop.f32.mrf.mxu2 }
 0x199   : > { %v11958_v48 = vpop.eup %11957  ;;  %3249 = vperm.xlu2 %11921, %v3244_v40   ;;  %3298 = vperm.xlu1 %11920, %v3293_v41   ;;  %v1986_v59 = vadd.f32 %v1894_v47, %v1712_v56  ;;  %v13153_v40 = vpop.permute.xlu2 %1556  ;;  %v3335_v41 = vperm.slane %v13098_v37, 7 }
 0x19a   : > { %3291 = vperm.xlu0 %11919, %v3286_v42   ;;  %v2048_v51 = vpack.c.bf16 %v11958_v48, %v11956_v45  ;;  %v3279_v42 = vperm.slane %v13084_v23, 7  ;;  %v1684_v45 = vmul.f32 %v13068_v11, %v13100_v39 }
 0x19b   : > { %11959 = vtanh.f32 %v1986_v59  ;;  %v1766_v59 = vld [vmem:[%s17177_s8 + $0xc0] sm:$0xff] }
 0x19c   : > { %10110 = vmatmul.msk.bf16.vlgmr.msra.gmra.mxu3 %vm2100_vm4, %v2048_v51  ;;  %v4003_v51 = vld [vmem:[%s12681_s14 + $0x58] sm:$0xff]  ;;  %v1716_v37 = vadd.f32 %v1684_v45, %v13078_v18 }
 0x19d   : > { %10081 = vmatmul.msk.f32.gmra.mxu2 %vm1774_vm3, %v1761_v52  ;;  %10211 = vmatmul.msk.f32.gmra.mxu1 %vm1774_vm3, %v3999_v53  ;;  %v1685_v52 = vmul.f32 %v13068_v11, %v1508_v12  ;;  %v13164_v53 = vpop.permute.xlu1 %1549  ;;  %v13168_v23 = vpop.permute.xlu0 %1584  ;;  %v4005_v12 = vld [vmem:[%s12681_s14 + $0x68] sm:$0xff] }
 0x19f   : > { %v1717_v56 = vadd.f32 %v1685_v52, %v13078_v18  ;;  %v1686_v18 = vmul.f32 %v13068_v11, %v13121_v3 }
 0x1a0   : > { %v1897_v0 = vpop.f32.mrf.mxu2 }
 0x1a1   : > { %v1987_v4 = vadd.f32 %v1897_v0, %v1713_v63  ;;  %3312 = vperm.xlu2 %11921, %v3307_v57   ;;  %3256 = vperm.xlu1 %11920, %v3251_v58   ;;  %v11960_v13 = vpop.eup %11959  ;;  %v13172_v54 = vpop.permute.xlu2 %1577 }
 0x1a2   : > { %3305 = vperm.xlu0 %11919, %v3300_v61   ;;  %v4004_v61 = vld [vmem:[%s12681_s14 + $0x60] sm:$0xff] }
 0x1a3   : > { %11961 = vtanh.f32 %v1987_v4 }
 0x1a5   : > { %10082 = vmatmul.msk.f32.gmra.mxu2 %vm1774_vm3, %v1762_v5  ;;  %10212 = vmatmul.msk.f32.gmra.mxu1 %vm1774_vm3, %v4000_v6  ;;  %v13177_v63 = vpop.permute.xlu1 %1570  ;;  %v13181_v0 = vpop.permute.xlu0 %1605 }
 0x1a8   : > { %v1900_v15 = vpop.f32.mrf.mxu2 }
 0x1a9   : > { %v11962_v16 = vpop.eup %11961  ;;  %3270 = vperm.xlu2 %11921, %v3265_v7   ;;  %3319 = vperm.xlu1 %11920, %v3314_v9   ;;  %v1988_v27 = vadd.f32 %v1900_v15, %v1714_v24  ;;  %v13185_v7 = vpop.permute.xlu2 %1598  ;;  %v1718_v15 = vadd.f32 %v1686_v18, %v13191_v14  ;;  %v4006_v24 = vld [vmem:[%s12681_s14 + $0x70] sm:$0xff] }
 0x1aa   : > { %3263 = vperm.xlu0 %11919, %v3258_v10   ;;  %v2049_v1 = vpack.c.bf16 %v11962_v16, %v11960_v13  ;;  %v1767_v10 = vld [vmem:[%s17177_s8 + $0xc8] sm:$0xff]  ;;  %v1687_v13 = vmul.f32 %v13068_v11, %v13118_v62 }
 0x1ab   : > { %11963 = vtanh.f32 %v1988_v27 }
 0x1ac   : > { %10111 = vmatmul.msk.bf16.gmra.mxu3 %vm2100_vm4, %v2049_v1  ;;  %v1719_v1 = vadd.f32 %v1687_v13, %v13191_v14  ;;  %v1691_v13 = vmul.f32 %v13068_v11, %v13164_v53 }
 0x1ad   : > { %10083 = vmatmul.msk.f32.gmra.mxu2 %vm1774_vm3, %v1763_v19  ;;  %10213 = vmatmul.msk.f32.gmra.mxu1 %vm1774_vm3, %v4001_v20  ;;  %v13197_v16 = vpop.permute.xlu1 %1591  ;;  %v13200_v20 = vpop.permute.xlu0 %1626 }
 0x1ae   : > { %v1723_v53 = vadd.f32 %v1691_v13, %v13191_v14 }
 0x1b0   : > { %v1903_v30 = vpop.f32.mrf.mxu2 }
 0x1b1   : > { %v1989_v33 = vadd.f32 %v1903_v30, %v1715_v29  ;;  %3333 = vperm.xlu2 %11921, %v3328_v25   ;;  %3277 = vperm.xlu1 %11920, %v3272_v26   ;;  %v11964_v43 = vpop.eup %11963  ;;  %v13204_v25 = vpop.permute.xlu2 %1619  ;;  %v11541_v26 = vld [vmem:[%s17185_s10 + $0x18] sm:$0xff]  ;;  %v11540_v30 = vld [vmem:[%s17185_s10 + $0x10] sm:$0xff] }
 0x1b2   : > { %3326 = vperm.xlu0 %11919, %v3321_v28   ;;  %4401 = vmatpush.bf16.msrb.mxu2 %v11541_v26  ;;  %v1688_v28 = vmul.f32 %v13068_v11, %v13147_v31  ;;  %v11539_v31 = vld [vmem:[%s17185_s10 + $0x8] sm:$0xff] }
 0x1b3   : > { %11965 = vtanh.f32 %v1989_v33 }
 0x1b5   : > { %10084 = vmatmul.msk.f32.gmra.mxu2 %vm1774_vm3, %v1764_v34  ;;  %10214 = vmatmul.msk.f32.gmra.mxu1 %vm1774_vm3, %v4002_v35  ;;  %v13212_v34 = vpop.permute.xlu1 %1612  ;;  %v13218_v45 = vpop.permute.xlu0 %1647 }
 0x1b6   : > { %4402 = vmatpush.bf16.msrb.mxu2 %v11540_v30  ;;  %v1772_v30 = vld [vmem:[%s17177_s8 + $0xf0] sm:$0xff] }
 0x1b8   : > { %v1906_v46 = vpop.f32.mrf.mxu2 }
 0x1b9   : > { %v11966_v47 = vpop.eup %11965  ;;  %3340 = vperm.xlu1 %11920, %v3335_v41   ;;  %v1990_v39 = vadd.f32 %v1906_v46, %v1716_v37  ;;  %v1769_v41 = vld [vmem:[%s17177_s8 + $0xd8] sm:$0xff]  ;;  %v1720_v46 = vadd.f32 %v1688_v28, %v13191_v14 }
 0x1ba   : > { %3284 = vperm.xlu0 %11919, %v3279_v42   ;;  %v2050_v48 = vpack.c.bf16 %v11966_v47, %v11964_v43  ;;  %v4007_v42 = vld [vmem:[%s12681_s14 + $0x78] sm:$0xff]  ;;  %v1689_v43 = vmul.f32 %v13068_v11, %v13137_v22  ;;  %v13223_v47 = vpop.permute.xlu2 %1640  ;;  %4403 = vmatpush.bf16.msrb.mxu2 %v11539_v31 }
 0x1bb   : > { %11967 = vtanh.f32 %v1990_v39  ;;  %v1770_v39 = vld [vmem:[%s17177_s8 + $0xe0] sm:$0xff] }
 0x1bc   : > { %10112 = vmatmul.msk.bf16.gmra.mxu3 %vm2100_vm4, %v2050_v48 }
 0x1bd   : > { %10085 = vmatmul.msk.f32.gmra.mxu2 %vm1774_vm3, %v1765_v49  ;;  %10215 = vmatmul.msk.f32.gmra.mxu1 %vm1774_vm3, %v4003_v51  ;;  %v1721_v49 = vadd.f32 %v1689_v43, %v13191_v14  ;;  %v11538_v51 = vld [vmem:[%s17185_s10] sm:$0xff] }
 0x1be   : > { %4404 = vmatpush.bf16.msrb.mxu2 %v11538_v51 }
 0x1c0   : > { %v1909_v57 = vpop.f32.mrf.mxu2 }
 0x1c1   : > { %v1991_v58 = vadd.f32 %v1909_v57, %v1717_v56  ;;  %v11968_v4 = vpop.eup %11967  ;;  %v4008_v56 = vld [vmem:[%s12681_s14 + $0x80] sm:$0xff]  ;;  %v13231_v57 = vpop.permute.xlu1 %1633 }
 0x1c3   : > { %11969 = vtanh.f32 %v1991_v58  ;;  %v13233_v58 = vpop.permute.xlu0 %1668 }
 0x1c5   : > { %10086 = vmatmul.msk.f32.gmra.mxu2 %vm1774_vm3, %v1766_v59  ;;  %10216 = vmatmul.msk.f32.gmra.mxu1 %vm1774_vm3, %v4004_v61  ;;  %v13237_v59 = vpop.permute.xlu2 %1661 }
 0x1c8   : > { %v1912_v5 = vpop.f32.mrf.mxu2 }
 0x1c9   : > { %v11970_v6 = vpop.eup %11969  ;;  %v1992_v3 = vadd.f32 %v1912_v5, %v1718_v15  ;;  %v12499_v15 = vld [vmem:[%s17178_s5] sm:$0x1f]  ;;  %s17189_s5 = sld [smem:[#allocation19_spill]] }
 0x1ca   : > { %v2051_v9 = vpack.c.bf16 %v11970_v6, %v11968_v4  ;;  %v1690_v4 = vmul.f32 %v13068_v11, %v13132_v17 }
 0x1cb   : > { %11971 = vtanh.f32 %v1992_v3  ;;  %v13246_v3 = vperm.slane %v12499_v15, 4 }
 0x1cc   : > { %10113 = vmatmul.msk.bf16.gmra.mxu3 %vm2100_vm4, %v2051_v9 }
 0x1cd   : > { %10087 = vmatmul.msk.f32.gmra.mxu2 %vm1774_vm3, %v1767_v10  ;;  %10217 = vmatmul.msk.f32.gmra.mxu1 %vm1774_vm3, %v4005_v12  ;;  %v1771_v10 = vld [vmem:[%s17177_s8 + $0xe8] sm:$0xff]  ;;  %v3709_v26 = vpop.permute.xlu2 %3708 }
 0x1ce   : > { %v4009_v12 = vld [vmem:[%s12681_s14 + $0x88] sm:$0xff]  ;;  %v3928_v28 = vmul.f32 %v13246_v3, %v3709_v26 }
 0x1d0   : > { %v1915_v19 = vpop.f32.mrf.mxu2 }
 0x1d1   : > { %v1993_v62 = vadd.f32 %v1915_v19, %v1719_v1  ;;  %v11972_v27 = vpop.eup %11971  ;;  %v1722_v1 = vadd.f32 %v1690_v4, %v13191_v14  ;;  %v13250_v19 = vpop.permute.xlu1 %1654  ;;  %v1693_v4 = vmul.f32 %v13068_v11, %v13151_v36 }
 0x1d3   : > { %11973 = vtanh.f32 %v1993_v62  ;;  %v3716_v62 = vpop.permute.xlu0 %3715 }
 0x1d5   : > { %10088 = vmatmul.msk.f32.gmra.mxu2 %vm1774_vm3, %v1768_v21  ;;  %10218 = vmatmul.msk.f32.gmra.mxu1 %vm1774_vm3, %v4006_v24  ;;  %v3929_v21 = vmul.f32 %v13246_v3, %v3716_v62  ;;  %v4012_v62 = vld [vmem:[%s12681_s14 + $0xa0] sm:$0xff] }
 0x1d8   : > { %v1918_v29 = vpop.f32.mrf.mxu2 }
 0x1d9   : > { %v11974_v33 = vpop.eup %11973  ;;  %v1994_v48 = vadd.f32 %v1918_v29, %v1720_v46  ;;  %v13264_v46 = vpop.permute.xlu1 %1675 }
 0x1da   : > { %v2052_v35 = vpack.c.bf16 %v11974_v33, %v11972_v27  ;;  %v4010_v33 = vld [vmem:[%s12681_s14 + $0x90] sm:$0xff] }
 0x1db   : > { %11975 = vtanh.f32 %v1994_v48  ;;  %v1692_v48 = vmul.f32 %v13068_v11, %v13153_v40  ;;  %v11536_v40 = vld [vmem:[%s17186_s3 + $0x10] sm:$0xff] }
 0x1dc   : > { %10114 = vmatmul.msk.bf16.gmra.mxu3 %vm2100_vm4, %v2052_v35  ;;  %v3961_v35 = vadd.f32 %v3929_v21, %v12998_v55 }
 0x1dd   : > { %10089 = vmatmul.msk.f32.gmra.mxu2 %vm1774_vm3, %v1769_v41  ;;  %10219 = vmatmul.msk.f32.gmra.mxu1 %vm1774_vm3, %v4007_v42  ;;  %v11537_v41 = vld [vmem:[%s17186_s3 + $0x18] sm:$0xff]  ;;  %v3960_v42 = vadd.f32 %v3928_v28, %v12998_v55  ;;  %v1694_v28 = vmul.f32 %v13068_v11, %v13177_v63  ;;  %v11534_v63 = vld [vmem:[%s17186_s3] sm:$0xff] }
 0x1de   : > { %2374 = vmatpush.bf16.msrb.mxu0 %v11537_v41 }
 0x1e0   : > { %v1921_v22 = vpop.f32.mrf.mxu2 }
 0x1e1   : > { %v1995_v52 = vadd.f32 %v1921_v22, %v1721_v49  ;;  %v11976_v61 = vpop.eup %11975 }
 0x1e2   : > { %v4137_v37 = vpop.f32.mrf.mxu1  ;;  %2375 = vmatpush.bf16.msrb.mxu0 %v11536_v40 }
 0x1e3   : > { %11977 = vtanh.f32 %v1995_v52  ;;  %v4233_v49 = vadd.f32 %v4137_v37, %v3960_v42 }
 0x1e5   : > { %10090 = vmatmul.msk.f32.gmra.mxu2 %vm1774_vm3, %v1770_v39  ;;  %10220 = vmatmul.msk.f32.gmra.mxu1 %vm1774_vm3, %v4008_v56  ;;  %v1773_v56 = vld [vmem:[%s17177_s8 + $0xf8] sm:$0xff]  ;;  %s17220_s8 = sld [smem:[#allocation5_spill]] }
 0x1e8   : > { %v1924_v18 = vpop.f32.mrf.mxu2 }
 0x1e9   : > { %v11978_v5 = vpop.eup %11977  ;;  %v1996_v17 = vadd.f32 %v1924_v18, %v1722_v1  ;;  %v1724_v18 = vadd.f32 %v1692_v48, %v13191_v14  ;;  %v13291_v48 = vpop.f32.mrf.mxu0 }
 0x1ea   : > { %v4140_v6 = vpop.f32.mrf.mxu1  ;;  %v2053_v9 = vpack.c.bf16 %v11978_v5, %v11976_v61  ;;  %v4011_v61 = vld [vmem:[%s12681_s14 + $0x98] sm:$0xff]  ;;  %v3730_v5 = vpop.permute.xlu2 %3729 }
 0x1eb   : > { %11979 = vtanh.f32 %v1996_v17  ;;  %v4234_v43 = vadd.f32 %v4140_v6, %v3961_v35  ;;  %v1725_v6 = vadd.f32 %v1693_v4, %v13191_v14  ;;  %v3931_v36 = vmul.f32 %v13246_v3, %v3730_v5  ;;  %v11535_v14 = vld [vmem:[%s17186_s3 + $0x8] sm:$0xff]  ;;  %s17188_s3 = sld [smem:[#allocation11_spill]]  ;;  %s13744_s9 = scalar_lea.vmem %s17220_s8, %s12889_s1 }
 0x1ec   : > { %10115 = vmatmul.msk.bf16.gmra.mxu3 %vm2100_vm4, %v2053_v9  ;;  %2376 = vmatpush.bf16.msrb.mxu0 %v11535_v14  ;;  %v4015_v14 = vld [vmem:[%s12681_s14 + $0xb8] sm:$0xff]  ;;  %s17225_s8 = sld [smem:[#allocation23_spill]] }
 0x1ed   : > { %10091 = vmatmul.msk.f32.gmra.mxu2 %vm1774_vm3, %v1771_v10  ;;  %10221 = vmatmul.msk.f32.gmra.mxu1 %vm1774_vm3, %v4009_v12  ;;  %v3723_v12 = vpop.permute.xlu1 %3722  ;;  %v3963_v21 = vadd.f32 %v3931_v36, %v12998_v55  ;;  %s17243_s1 = sld [smem:[#allocation20_spill]] }
 0x1ee   : > { %v3930_v1 = vmul.f32 %v13246_v3, %v3723_v12 }
 0x1f0   : > { %v1927_v24 = vpop.f32.mrf.mxu2  ;;  %2377 = vmatpush.bf16.msrb.mxu0 %v11534_v63 }
 0x1f1   : > { %v1997_v27 = vadd.f32 %v1927_v24, %v1723_v53  ;;  %v11980_v31 = vpop.eup %11979  ;;  %v3962_v24 = vadd.f32 %v3930_v1, %v12998_v55 }
 0x1f2   : > { %v4143_v29 = vpop.f32.mrf.mxu1 }
 0x1f3   : > { %11981 = vtanh.f32 %v1997_v27 }
 0x1f4   : > { %11983 = vtanh.f32 %v4234_v43  ;;  %v4013_v43 = vld [vmem:[%s12681_s14 + $0xa8] sm:$0xff] }
 0x1f5   : > { %10092 = vmatmul.msk.f32.gmra.mxu2 %vm1774_vm3, %v1772_v30  ;;  %10222 = vmatmul.msk.f32.gmra.mxu1 %vm1774_vm3, %v4010_v33  ;;  %11985 = vtanh.f32 %v4233_v49  ;;  %v4235_v30 = vadd.f32 %v4143_v29, %v3962_v24  ;;  %v1726_v49 = vadd.f32 %v1694_v28, %v13291_v48  ;;  %v1697_v24 = vmul.f32 %v13068_v11, %v13197_v16 }
 0x1f8   : > { %v1930_v22 = vpop.f32.mrf.mxu2 }
 0x1f9   : > { %v11982_v51 = vpop.eup %11981  ;;  %v1998_v37 = vadd.f32 %v1930_v22, %v1724_v18  ;;  %v3744_v22 = vpop.permute.xlu1 %3743 }
 0x1fa   : > { %v4146_v52 = vpop.f32.mrf.mxu1  ;;  %v2054_v39 = vpack.c.bf16 %v11982_v51, %v11980_v31  ;;  %v11984_v9 = vpop.eup %11983  ;;  %v1695_v31 = vmul.f32 %v13068_v11, %v13172_v54  ;;  %v3933_v54 = vmul.f32 %v13246_v3, %v3744_v22 }
 0x1fb   : > { %v11986_v15 = vpop.eup %11985  ;;  %11987 = vtanh.f32 %v1998_v37  ;;  %v4236_v26 = vadd.f32 %v4146_v52, %v3963_v21  ;;  %v4014_v37 = vld [vmem:[%s12681_s14 + $0xb0] sm:$0xff] }
 0x1fc   : > { %10116 = vmatmul.msk.bf16.gmra.mxu3 %vm2100_vm4, %v2054_v39  ;;  %v4297_v53 = vpack.c.bf16 %v11984_v9, %v11986_v15  ;;  %v1727_v51 = vadd.f32 %v1695_v31, %v13291_v48  ;;  %v5354_v9 = vld [vmem:[%s17187_s4 + $0x18] sm:$0xff] }
 0x1fd   : > { %10093 = vmatmul.msk.f32.gmra.mxu2 %vm1774_vm3, %v1773_v56  ;;  %10223 = vmatmul.msk.f32.gmra.mxu1 %vm1774_vm3, %v4011_v61  ;;  %v3737_v56 = vpop.permute.xlu0 %3736 }
 0x1fe   : > { %v3932_v18 = vmul.f32 %v13246_v3, %v3737_v56  ;;  %5383 = vmatpush.msra.mxu0 %v5354_v9 }
 0x200   : > { %v1933_v10 = vpop.f32.mrf.mxu2  ;;  %v3964_v36 = vadd.f32 %v3932_v18, %v12998_v55 }
 0x201   : > { %v1999_v13 = vadd.f32 %v1933_v10, %v1725_v6  ;;  %v11988_v27 = vpop.eup %11987  ;;  %v3965_v6 = vadd.f32 %v3933_v54, %v12998_v55 }
 0x202   : > { %v4149_v17 = vpop.f32.mrf.mxu1 }
 0x203   : > { %11989 = vtanh.f32 %v1999_v13  ;;  %v1696_v13 = vmul.f32 %v13068_v11, %v13168_v23  ;;  %v4237_v15 = vadd.f32 %v4149_v17, %v3964_v36  ;;  %v4017_v36 = vld [vmem:[%s12681_s14 + $0xc8] sm:$0xff] }
 0x204   : > { %11991 = vtanh.f32 %v4236_v26 }
 0x205   : > { %10224 = vmatmul.msk.f32.gmra.mxu1 %vm1774_vm3, %v4012_v62  ;;  %10252 = vmatmul.msk.bf16.vlgmr.msrb.gmra.mxu2 %vm2100_vm4, %v4297_v53  ;;  %11993 = vtanh.f32 %v4235_v30  ;;  %v1728_v26 = vadd.f32 %v1696_v13, %v13291_v48  ;;  %v1729_v30 = vadd.f32 %v1697_v24, %v13291_v48 }
 0x208   : > { %v1936_v33 = vpop.f32.mrf.mxu2 }
 0x209   : > { %v11990_v35 = vpop.eup %11989  ;;  %v2000_v29 = vadd.f32 %v1936_v33, %v1726_v49 }
 0x20a   : > { %v4152_v41 = vpop.f32.mrf.mxu1  ;;  %v2055_v42 = vpack.c.bf16 %v11990_v35, %v11988_v27  ;;  %v11992_v52 = vpop.eup %11991 }
 0x20b   : > { %v11994_v4 = vpop.eup %11993  ;;  %11995 = vtanh.f32 %v2000_v29  ;;  %v4238_v10 = vadd.f32 %v4152_v41, %v3965_v6  ;;  %v3758_v27 = vpop.permute.xlu0 %3757  ;;  %v4016_v29 = vld [vmem:[%s12681_s14 + $0xc0] sm:$0xff] }
 0x20c   : > { %10117 = vmatmul.msk.bf16.gmra.mxu3 %vm2100_vm4, %v2055_v42  ;;  %v4298_v5 = vpack.c.bf16 %v11992_v52, %v11994_v4  ;;  %v3935_v23 = vmul.f32 %v13246_v3, %v3758_v27  ;;  %v3751_v41 = vpop.permute.xlu2 %3750  ;;  %v13317_v42 = vld [vmem:[%s17188_s3] ss:$0 sm:$0xff] }
 0x20d   : > { %10225 = vmatmul.msk.f32.gmra.mxu1 %vm1774_vm3, %v4013_v43  ;;  %v3934_v31 = vmul.f32 %v13246_v3, %v3751_v41 }
 0x20e   : > { %v3967_v49 = vadd.f32 %v3935_v23, %v12998_v55 }
 0x20f   : > { %v3966_v54 = vadd.f32 %v3934_v31, %v12998_v55  ;;  %v1700_v31 = vmul.f32 %v13068_v11, %v13212_v34 }
 0x210   : > { %v1939_v39 = vpop.f32.mrf.mxu2 }
 0x211   : > { %v2001_v61 = vadd.f32 %v1939_v39, %v1727_v51  ;;  %v11996_v12 = vpop.eup %11995 }
 0x212   : > { %v4155_v40 = vpop.f32.mrf.mxu1 }
 0x213   : > { %11997 = vtanh.f32 %v2001_v61  ;;  %v1698_v61 = vmul.f32 %v13068_v11, %v13185_v7  ;;  %v4239_v4 = vadd.f32 %v4155_v40, %v3966_v54 }
 0x214   : > { %11999 = vtanh.f32 %v4238_v10  ;;  %v1699_v10 = vmul.f32 %v13068_v11, %v13181_v0  ;;  %v3772_v7 = vpop.permute.xlu2 %3771  ;;  %v3765_v0 = vpop.permute.xlu1 %3764 }
 0x215   : > { %10226 = vmatmul.msk.f32.gmra.mxu1 %vm1774_vm3, %v4014_v37  ;;  %10253 = vmatmul.msk.bf16.gmra.mxu2 %vm2100_vm4, %v4298_v5  ;;  %12001 = vtanh.f32 %v4237_v15  ;;  %v1730_v55 = vadd.f32 %v1698_v61, %v13291_v48  ;;  %v3936_v23 = vmul.f32 %v13246_v3, %v3765_v0  ;;  %v1732_v61 = vadd.f32 %v1700_v31, %v13291_v48 }
 0x217   : > { %v3968_v41 = vadd.f32 %v3936_v23, %v13002_v60 }
 0x218   : > { %v1942_v1 = vpop.f32.mrf.mxu2 }
 0x219   : > { %v11998_v62 = vpop.eup %11997  ;;  %v2002_v17 = vadd.f32 %v1942_v1, %v1728_v26 }
 0x21a   : > { %v4158_v53 = vpop.f32.mrf.mxu1  ;;  %v2056_v21 = vpack.c.bf16 %v11998_v62, %v11996_v12  ;;  %v12000_v33 = vpop.eup %11999  ;;  %v3937_v12 = vmul.f32 %v13246_v3, %v3772_v7  ;;  %v1731_v62 = vadd.f32 %v1699_v10, %v13291_v48 }
 0x21b   : > { %v12002_v43 = vpop.eup %12001  ;;  %12003 = vtanh.f32 %v2002_v17  ;;  %v4240_v51 = vadd.f32 %v4158_v53, %v3967_v49 }
 0x21c   : > { %10118 = vmatmul.msk.bf16.gmra.mxu3 %vm2100_vm4, %v2056_v21  ;;  %v4299_v22 = vpack.c.bf16 %v12000_v33, %v12002_v43  ;;  %v3969_v27 = vadd.f32 %v3937_v12, %v13002_v60  ;;  %v3786_v34 = vpop.permute.xlu1 %3785 }
 0x21d   : > { %10227 = vmatmul.msk.f32.gmra.mxu1 %vm1774_vm3, %v4015_v14 }
 0x21f   : > { %v2158_v28 = vpop.f32.mrf.mxu3 }
 0x220   : > { %v1945_v35 = vpop.f32.mrf.mxu2  ;;  %v2159_v52 = vadd.f32 %v13317_v42, %v2158_v28  ;;  %v4018_v28 = vld [vmem:[%s12681_s14 + $0xd0] sm:$0xff] }
 0x221   : > { %v2003_v16 = vadd.f32 %v1945_v35, %v1729_v30  ;;  %v12004_v56 = vpop.eup %12003 }
 0x222   : > { %v4161_v63 = vpop.f32.mrf.mxu1 }
 0x223   : > { %12005 = vtanh.f32 %v2003_v16  ;;  %v4241_v49 = vadd.f32 %v4161_v63, %v3968_v41  ;;  %v1703_v41 = vmul.f32 %v13068_v11, %v13231_v57  ;;  %v3793_v57 = vpop.permute.xlu2 %3792 }
 0x224   : > { %12007 = vtanh.f32 %v4240_v51 }
 0x225   : > { %10228 = vmatmul.msk.f32.gmra.mxu1 %vm1774_vm3, %v4016_v29  ;;  %10254 = vmatmul.msk.bf16.gmra.mxu2 %vm2100_vm4, %v4299_v22  ;;  %12009 = vtanh.f32 %v2159_v52 }
 0x227   : > { %v2160_v39 = vpop.f32.mrf.mxu3 }
 0x228   : > { %v2161_v18 = vadd.f32 %v13317_v42, %v2160_v39  ;;  %v1948_v37 = vpop.f32.mrf.mxu2  ;;  %v4019_v39 = vld [vmem:[%s12681_s14 + $0xd8] sm:$0xff] }
 0x229   : > { %v12006_v5 = vpop.eup %12005  ;;  %v2004_v13 = vadd.f32 %v1948_v37, %v1730_v55 }
 0x22a   : > { %12011 = vtanh.f32 %v2161_v18  ;;  %v4164_v6 = vpop.f32.mrf.mxu1  ;;  %v2057_v9 = vpack.c.bf16 %v12006_v5, %v12004_v56  ;;  %v12008_v40 = vpop.eup %12007  ;;  %v1701_v56 = vmul.f32 %v13068_v11, %v13204_v25 }
 0x22b   : > { %12013 = vtanh.f32 %v4239_v4  ;;  %v12010_v15 = vpop.eup %12009  ;;  %v4242_v33 = vadd.f32 %v4164_v6, %v3969_v27  ;;  %v3939_v4 = vmul.f32 %v13246_v3, %v3786_v34  ;;  %v3779_v25 = vpop.permute.xlu0 %3778 }
 0x22c   : > { %10119 = vmatmul.msk.bf16.gmra.mxu3 %vm2100_vm4, %v2057_v9  ;;  %12015 = vtanh.f32 %v2004_v13  ;;  %v1733_v6 = vadd.f32 %v1701_v56, %v13291_v48  ;;  %v3938_v12 = vmul.f32 %v13246_v3, %v3779_v25 }
 0x22d   : > { %10229 = vmatmul.msk.f32.gmra.mxu1 %vm1774_vm3, %v4017_v36 }
 0x22f   : > { %v2163_v1 = vpop.f32.mrf.mxu3 }
 0x230   : > { %v12012_v53 = vpop.eup %12011  ;;  %v1951_v21 = vpop.f32.mrf.mxu2  ;;  %v2164_v35 = vadd.f32 %v13317_v42, %v2163_v1 }
 0x231   : > { %v2005_v14 = vadd.f32 %v1951_v21, %v1731_v62  ;;  %v2270_v24 = vpack.c.bf16 %v12012_v53, %v12010_v15  ;;  %v12014_v26 = vpop.eup %12013  ;;  %v4020_v15 = vld [vmem:[%s12681_s14 + $0xe0] sm:$0xff]  ;;  %v3970_v53 = vadd.f32 %v3938_v12, %v13002_v60 }
 0x232   : > { %v4167_v17 = vpop.f32.mrf.mxu1  ;;  %v4300_v30 = vpack.c.bf16 %v12008_v40, %v12014_v26  ;;  %v12016_v43 = vpop.eup %12015  ;;  %v3971_v40 = vadd.f32 %v3939_v4, %v13002_v60  ;;  %v4022_v4 = vld [vmem:[%s12681_s14 + $0xf0] sm:$0xff] }
 0x233   : > { %12017 = vtanh.f32 %v2005_v14  ;;  %10142 = vmatmul.msk.bf16.vlgmr.msrb.gmra.mxu0 %vm2100_vm4, %v2270_v24  ;;  %v1702_v14 = vmul.f32 %v13068_v11, %v13200_v20  ;;  %v4243_v24 = vadd.f32 %v4167_v17, %v3970_v53  ;;  %v3800_v20 = vpop.permute.xlu0 %3799 }
 0x234   : > { %12019 = vtanh.f32 %v4242_v33 }
 0x235   : > { %10230 = vmatmul.msk.f32.gmra.mxu1 %vm1774_vm3, %v4018_v28  ;;  %10255 = vmatmul.msk.bf16.gmra.mxu2 %vm2100_vm4, %v4300_v30  ;;  %12021 = vtanh.f32 %v2164_v35  ;;  %v13367_v28 = vpop.f32.mrf.mxu0  ;;  %v4021_v35 = vld [vmem:[%s12681_s14 + $0xe8] sm:$0xff] }
 0x237   : > { %v2165_v16 = vpop.f32.mrf.mxu3 }
 0x238   : > { %v2166_v29 = vadd.f32 %v13317_v42, %v2165_v16  ;;  %v1954_v22 = vpop.f32.mrf.mxu2  ;;  %v1734_v16 = vadd.f32 %v1702_v14, %v13367_v28 }
 0x239   : > { %v12018_v51 = vpop.eup %12017  ;;  %v2006_v18 = vadd.f32 %v1954_v22, %v1732_v61  ;;  %v1735_v22 = vadd.f32 %v1703_v41, %v13367_v28  ;;  %v3940_v61 = vmul.f32 %v13246_v3, %v3793_v57 }
 0x23a   : > { %12023 = vtanh.f32 %v2166_v29  ;;  %v4170_v52 = vpop.f32.mrf.mxu1  ;;  %v2058_v54 = vpack.c.bf16 %v12018_v51, %v12016_v43  ;;  %v12020_v63 = vpop.eup %12019  ;;  %v3941_v43 = vmul.f32 %v13246_v3, %v3800_v20 }
 0x23b   : > { %12025 = vtanh.f32 %v4241_v49  ;;  %v12022_v37 = vpop.eup %12021  ;;  %v4244_v62 = vadd.f32 %v4170_v52, %v3971_v40 }
 0x23c   : > { %10120 = vmatmul.msk.bf16.gmra.mxu3 %vm2100_vm4, %v2058_v54  ;;  %12027 = vtanh.f32 %v2006_v18  ;;  %v3973_v34 = vadd.f32 %v3941_v43, %v13002_v60 }
 0x23d   : > { %10231 = vmatmul.msk.f32.gmra.mxu1 %vm1774_vm3, %v4019_v39 }
 0x23f   : > { %v2168_v5 = vpop.f32.mrf.mxu3 }
 0x240   : > { %v12024_v9 = vpop.eup %12023  ;;  %v1957_v36 = vpop.f32.mrf.mxu2  ;;  %v2169_v48 = vadd.f32 %v13317_v42, %v2168_v5 }
 0x241   : > { %v2007_v10 = vadd.f32 %v1957_v36, %v1733_v6  ;;  %v2271_v55 = vpack.c.bf16 %v12024_v9, %v12022_v37  ;;  %v12026_v7 = vpop.eup %12025  ;;  %v5353_v6 = vld [vmem:[%s17187_s4 + $0x10] sm:$0xff]  ;;  %v3972_v9 = vadd.f32 %v3940_v61, %v13002_v60 }
 0x242   : > { %v4173_v13 = vpop.f32.mrf.mxu1  ;;  %v4301_v1 = vpack.c.bf16 %v12020_v63, %v12026_v7  ;;  %v12028_v0 = vpop.eup %12027  ;;  %5384 = vmatpush.msra.mxu0 %v5353_v6 }
 0x243   : > { %12029 = vtanh.f32 %v2007_v10  ;;  %10143 = vmatmul.msk.bf16.gmra.mxu0 %vm2100_vm4, %v2271_v55  ;;  %v1704_v10 = vmul.f32 %v13068_v11, %v13223_v47  ;;  %v4245_v55 = vadd.f32 %v4173_v13, %v3972_v9  ;;  %v3814_v47 = vpop.permute.xlu2 %3813 }
 0x244   : > { %12031 = vtanh.f32 %v4244_v62  ;;  %v4023_v62 = vld [vmem:[%s12681_s14 + $0xf8] sm:$0xff] }
 0x245   : > { %10232 = vmatmul.msk.f32.gmra.mxu1 %vm1774_vm3, %v4020_v15  ;;  %10256 = vmatmul.msk.bf16.gmra.mxu2 %vm2100_vm4, %v4301_v1  ;;  %12033 = vtanh.f32 %v2169_v48  ;;  %v1705_v48 = vmul.f32 %v13068_v11, %v13218_v45  ;;  %v1736_v53 = vadd.f32 %v1704_v10, %v13367_v28  ;;  %v3821_v10 = vpop.permute.xlu0 %3820 }
 0x247   : > { %v2170_v21 = vpop.f32.mrf.mxu3 }
 0x248   : > { %v2171_v26 = vadd.f32 %v13317_v42, %v2170_v21  ;;  %v1960_v27 = vpop.f32.mrf.mxu2  ;;  %v3943_v21 = vmul.f32 %v13246_v3, %v3814_v47 }
 0x249   : > { %v12030_v23 = vpop.eup %12029  ;;  %v2008_v31 = vadd.f32 %v1960_v27, %v1734_v16 }
 0x24a   : > { %12035 = vtanh.f32 %v2171_v26  ;;  %v4176_v30 = vpop.f32.mrf.mxu1  ;;  %v2059_v33 = vpack.c.bf16 %v12030_v23, %v12028_v0  ;;  %v12032_v17 = vpop.eup %12031  ;;  %v1737_v26 = vadd.f32 %v1705_v48, %v13367_v28  ;;  %v3975_v41 = vadd.f32 %v3943_v21, %v13002_v60  ;;  %v11543_v48 = vld [vmem:[%s17189_s5 + $0x8] sm:$0xff] }
 0x24b   : > { %12037 = vtanh.f32 %v4243_v24  ;;  %v12034_v49 = vpop.eup %12033  ;;  %v4246_v37 = vadd.f32 %v4176_v30, %v3973_v34  ;;  %v3807_v30 = vpop.permute.xlu1 %3806  ;;  %v1707_v34 = vmul.f32 %v13068_v11, %v13237_v59 }
 0x24c   : > { %10121 = vmatmul.msk.bf16.gmra.mxu3 %vm2100_vm4, %v2059_v33  ;;  %12039 = vtanh.f32 %v2008_v31  ;;  %v3942_v16 = vmul.f32 %v13246_v3, %v3807_v30 }
 0x24d   : > { %10233 = vmatmul.msk.f32.gmra.mxu1 %vm1774_vm3, %v4021_v35  ;;  %v1739_v9 = vadd.f32 %v1707_v34, %v13367_v28 }
 0x24f   : > { %v2173_v29 = vpop.f32.mrf.mxu3 }
 0x250   : > { %v12036_v51 = vpop.eup %12035  ;;  %v1963_v52 = vpop.f32.mrf.mxu2  ;;  %v2174_v5 = vadd.f32 %v13317_v42, %v2173_v29 }
 0x251   : > { %v2009_v54 = vadd.f32 %v1963_v52, %v1735_v22  ;;  %v2272_v39 = vpack.c.bf16 %v12036_v51, %v12034_v49  ;;  %v12038_v56 = vpop.eup %12037  ;;  %v3974_v49 = vadd.f32 %v3942_v16, %v13002_v60  ;;  %v1706_v51 = vmul.f32 %v13068_v11, %v13250_v19  ;;  %v11545_v60 = vld [vmem:[%s17189_s5 + $0x18] sm:$0xff] }
 0x252   : > { %v4179_v63 = vpop.f32.mrf.mxu1  ;;  %v4302_v18 = vpack.c.bf16 %v12032_v17, %v12038_v56  ;;  %v12040_v25 = vpop.eup %12039  ;;  %4622 = vmatpush.bf16.msrb.mxu3 %v11545_v60 }
 0x253   : > { %12041 = vtanh.f32 %v2009_v54  ;;  %10144 = vmatmul.msk.bf16.gmra.mxu0 %vm2100_vm4, %v2272_v39  ;;  %v4247_v52 = vadd.f32 %v4179_v63, %v3974_v49  ;;  %v3828_v19 = vpop.permute.xlu1 %3827 }
 0x254   : > { %12043 = vtanh.f32 %v4246_v37 }
 0x255   : > { %10234 = vmatmul.msk.f32.gmra.mxu1 %vm1774_vm3, %v4022_v4  ;;  %10257 = vmatmul.msk.bf16.gmra.mxu2 %vm2100_vm4, %v4302_v18  ;;  %12045 = vtanh.f32 %v2174_v5  ;;  %v1738_v4 = vadd.f32 %v1706_v51, %v13367_v28  ;;  %v3945_v18 = vmul.f32 %v13246_v3, %v3828_v19  ;;  %v3835_v51 = vpop.permute.xlu2 %3834 }
 0x257   : > { %v2175_v36 = vpop.f32.mrf.mxu3 }
 0x258   : > { %v2176_v7 = vadd.f32 %v13317_v42, %v2175_v36  ;;  %v1966_v40 = vpop.f32.mrf.mxu2  ;;  %v11544_v36 = vld [vmem:[%s17189_s5 + $0x10] sm:$0xff] }
 0x259   : > { %v12042_v12 = vpop.eup %12041  ;;  %v2010_v0 = vadd.f32 %v1966_v40, %v1736_v53  ;;  %4623 = vmatpush.bf16.msrb.mxu3 %v11544_v36 }
 0x25a   : > { %12047 = vtanh.f32 %v2176_v7  ;;  %v4182_v15 = vpop.f32.mrf.mxu1  ;;  %v2060_v1 = vpack.c.bf16 %v12042_v12, %v12040_v25  ;;  %v12044_v13 = vpop.eup %12043  ;;  %v3977_v12 = vadd.f32 %v3945_v18, %v13006_v2 }
 0x25b   : > { %12049 = vtanh.f32 %v4245_v55  ;;  %v12046_v14 = vpop.eup %12045  ;;  %v4248_v43 = vadd.f32 %v4182_v15, %v3975_v41  ;;  %v3944_v15 = vmul.f32 %v13246_v3, %v3821_v10 }
 0x25c   : > { %10122 = vmatmul.msk.bf16.gmra.mxu3 %vm2100_vm4, %v2060_v1  ;;  %12051 = vtanh.f32 %v2010_v0  ;;  %v11542_v0 = vld [vmem:[%s17189_s5] sm:$0xff]  ;;  %s17190_s5 = sld [smem:[#allocation18_spill]] }
 0x25d   : > { %10235 = vmatmul.msk.f32.gmra.mxu1 %vm1774_vm3, %v4023_v62  ;;  %4624 = vmatpush.bf16.msrb.mxu3 %v11543_v48  ;;  %v3856_v36 = vpop.permute.xlu2 %3855 }
 0x25f   : > { %v2178_v24 = vpop.f32.mrf.mxu3 }
 0x260   : > { %v12048_v27 = vpop.eup %12047  ;;  %v1969_v23 = vpop.f32.mrf.mxu2  ;;  %v2179_v31 = vadd.f32 %v13317_v42, %v2178_v24  ;;  %v1708_v24 = vmul.f32 %v13068_v11, %v13233_v58 }
 0x261   : > { %v2011_v45 = vadd.f32 %v1969_v23, %v1737_v26  ;;  %v2273_v33 = vpack.c.bf16 %v12048_v27, %v12046_v14  ;;  %v12050_v35 = vpop.eup %12049  ;;  %4625 = vmatpush.bf16.msrb.mxu3 %v11542_v0  ;;  %v3842_v58 = vpop.permute.xlu0 %3841 }
 0x262   : > { %v4185_v20 = vpop.f32.mrf.mxu1  ;;  %v4303_v17 = vpack.c.bf16 %v12044_v13, %v12050_v35  ;;  %v12052_v22 = vpop.eup %12051  ;;  %v3976_v13 = vadd.f32 %v3944_v15, %v13006_v2  ;;  %v1709_v35 = vmul.f32 %v13068_v11, %v13264_v46  ;;  %v1740_v41 = vadd.f32 %v1708_v24, %v13367_v28 }
 0x263   : > { %12053 = vtanh.f32 %v2011_v45  ;;  %10145 = vmatmul.msk.bf16.gmra.mxu0 %vm2100_vm4, %v2273_v33  ;;  %v3946_v46 = vmul.f32 %v13246_v3, %v3835_v51  ;;  %v3849_v15 = vpop.permute.xlu1 %3848 }
 0x264   : > { %12055 = vtanh.f32 %v4248_v43  ;;  %v4249_v26 = vadd.f32 %v4185_v20, %v3976_v13  ;;  %v3947_v20 = vmul.f32 %v13246_v3, %v3842_v58  ;;  %v1741_v49 = vadd.f32 %v1709_v35, %v13367_v28 }
 0x265   : > { %10258 = vmatmul.msk.bf16.gmra.mxu2 %vm2100_vm4, %v4303_v17  ;;  %12057 = vtanh.f32 %v2179_v31  ;;  %v3978_v34 = vadd.f32 %v3946_v46, %v13006_v2 }
 0x267   : > { %v2180_v29 = vpop.f32.mrf.mxu3 }
 0x268   : > { %v2181_v57 = vadd.f32 %v13317_v42, %v2180_v29  ;;  %v1972_v54 = vpop.f32.mrf.mxu2 }
 0x269   : > { %v12054_v39 = vpop.eup %12053  ;;  %v2012_v37 = vadd.f32 %v1972_v54, %v1738_v4  ;;  %v3979_v54 = vadd.f32 %v3947_v20, %v13006_v2 }
 0x26a   : > { %12059 = vtanh.f32 %v2181_v57  ;;  %v4188_v56 = vpop.f32.mrf.mxu1  ;;  %v2061_v61 = vpack.c.bf16 %v12054_v39, %v12052_v22  ;;  %v12056_v63 = vpop.eup %12055 }
 0x26b   : > { %12061 = vtanh.f32 %v4247_v52  ;;  %v12058_v5 = vpop.eup %12057  ;;  %v4250_v53 = vadd.f32 %v4188_v56, %v3977_v12  ;;  %v3870_v58 = vpop.permute.xlu1 %3869 }
 0x26c   : > { %10123 = vmatmul.msk.bf16.gmra.mxu3 %vm2100_vm4, %v2061_v61  ;;  %12063 = vtanh.f32 %v2012_v37  ;;  %v3951_v20 = vmul.f32 %v13246_v3, %v3870_v58 }
 0x26f   : > { %v2183_v6 = vpop.f32.mrf.mxu3 }
 0x270   : > { %v12060_v25 = vpop.eup %12059  ;;  %v1975_v59 = vpop.f32.mrf.mxu2  ;;  %v2184_v47 = vadd.f32 %v13317_v42, %v2183_v6 }
 0x271   : > { %v2013_v55 = vadd.f32 %v1975_v59, %v1739_v9  ;;  %v2274_v7 = vpack.c.bf16 %v12060_v25, %v12058_v5  ;;  %v12062_v40 = vpop.eup %12061  ;;  %v13439_v5 = vld [vmem:[%s17190_s5] ss:$0 sm:$0xff]  ;;  %v3949_v59 = vmul.f32 %v13246_v3, %v3856_v36 }
 0x272   : > { %v4191_v1 = vpop.f32.mrf.mxu1  ;;  %v4304_v62 = vpack.c.bf16 %v12056_v63, %v12062_v40  ;;  %v12064_v14 = vpop.eup %12063 }
 0x273   : > { %12065 = vtanh.f32 %v2013_v55  ;;  %10146 = vmatmul.msk.bf16.gmra.mxu0 %vm2100_vm4, %v2274_v7  ;;  %v4251_v19 = vadd.f32 %v4191_v1, %v3978_v34  ;;  %v3891_v36 = vpop.permute.xlu1 %3890 }
 0x274   : > { %12067 = vtanh.f32 %v4250_v53  ;;  %v3981_v53 = vadd.f32 %v3949_v59, %v13006_v2 }
 0x275   : > { %10259 = vmatmul.msk.bf16.gmra.mxu2 %vm2100_vm4, %v4304_v62  ;;  %12069 = vtanh.f32 %v2184_v47  ;;  %v3948_v47 = vmul.f32 %v13246_v3, %v3849_v15 }
 0x277   : > { %v2185_v21 = vpop.f32.mrf.mxu3  ;;  %v3980_v24 = vadd.f32 %v3948_v47, %v13006_v2 }
 0x278   : > { %v2186_v27 = vadd.f32 %v13317_v42, %v2185_v21  ;;  %v1978_v23 = vpop.f32.mrf.mxu2 }
 0x279   : > { %v12066_v30 = vpop.eup %12065  ;;  %v2014_v17 = vadd.f32 %v1978_v23, %v1740_v41 }
 0x27a   : > { %12071 = vtanh.f32 %v2186_v27  ;;  %v4194_v45 = vpop.f32.mrf.mxu1  ;;  %v2062_v33 = vpack.c.bf16 %v12066_v30, %v12064_v14  ;;  %v12068_v16 = vpop.eup %12067 }
 0x27b   : > { %12073 = vtanh.f32 %v4249_v26  ;;  %v12070_v43 = vpop.eup %12069  ;;  %v4252_v61 = vadd.f32 %v4194_v45, %v3979_v54 }
 0x27c   : > { %10124 = vmatmul.msk.bf16.gmra.mxu3 %vm2100_vm4, %v2062_v33  ;;  %12075 = vtanh.f32 %v2014_v17 }
 0x27f   : > { %v2188_v31 = vpop.f32.mrf.mxu3 }
 0x280   : > { %v12072_v29 = vpop.eup %12071  ;;  %v1981_v22 = vpop.f32.mrf.mxu2  ;;  %v2189_v28 = vadd.f32 %v13317_v42, %v2188_v31 }
 0x281   : > { %v2015_v52 = vadd.f32 %v1981_v22, %v1741_v49  ;;  %v2275_v57 = vpack.c.bf16 %v12072_v29, %v12070_v43  ;;  %v12074_v11 = vpop.eup %12073  ;;  %v3863_v22 = vpop.permute.xlu0 %3862 }
 0x282   : > { %v4197_v39 = vpop.f32.mrf.mxu1  ;;  %v4305_v56 = vpack.c.bf16 %v12068_v16, %v12074_v11  ;;  %v12076_v4 = vpop.eup %12075  ;;  %v3983_v11 = vadd.f32 %v3951_v20, %v13006_v2  ;;  %v3950_v46 = vmul.f32 %v13246_v3, %v3863_v22 }
 0x283   : > { %12077 = vtanh.f32 %v2015_v52  ;;  %10147 = vmatmul.msk.bf16.gmra.mxu0 %vm2100_vm4, %v2275_v57  ;;  %v4253_v23 = vadd.f32 %v4197_v39, %v3980_v24 }
 0x284   : > { %12079 = vtanh.f32 %v4252_v61 }
 0x285   : > { %10260 = vmatmul.msk.bf16.gmra.mxu2 %vm2100_vm4, %v4305_v56  ;;  %12081 = vtanh.f32 %v2189_v28  ;;  %v3982_v28 = vadd.f32 %v3950_v46, %v13006_v2 }
 0x287   : > { %v2190_v60 = vpop.f32.mrf.mxu3 }
 0x288   : > { %v2191_v63 = vadd.f32 %v13317_v42, %v2190_v60  ;;  %v4406_v18 = vpop.f32.mrf.mxu2 }
 0x289   : > { %v12078_v37 = vpop.eup %12077  ;;  %v4407_v10 = vadd.f32 %v13439_v5, %v4406_v18 }
 0x28a   : > { %12083 = vtanh.f32 %v2191_v63  ;;  %v4200_v6 = vpop.f32.mrf.mxu1  ;;  %v2063_v9 = vpack.c.bf16 %v12078_v37, %v12076_v4  ;;  %v12080_v25 = vpop.eup %12079 }
 0x28b   : > { %12085 = vtanh.f32 %v4251_v19  ;;  %v12082_v55 = vpop.eup %12081  ;;  %v4254_v0 = vadd.f32 %v4200_v6, %v3981_v53  ;;  %v3877_v37 = vpop.permute.xlu2 %3876 }
 0x28c   : > { %10125 = vmatmul.msk.bf16.gmra.mxu3 %vm2100_vm4, %v2063_v9  ;;  %12087 = vtanh.f32 %v4407_v10  ;;  %v3952_v53 = vmul.f32 %v13246_v3, %v3877_v37 }
 0x28f   : > { %v2193_v7 = vpop.f32.mrf.mxu3 }
 0x290   : > { %v12084_v40 = vpop.eup %12083  ;;  %v4408_v12 = vpop.f32.mrf.mxu2  ;;  %v2194_v14 = vadd.f32 %v13317_v42, %v2193_v7 }
 0x291   : > { %v4409_v1 = vadd.f32 %v13439_v5, %v4408_v12  ;;  %v2276_v62 = vpack.c.bf16 %v12084_v40, %v12082_v55  ;;  %v12086_v48 = vpop.eup %12085 }
 0x292   : > { %v4203_v13 = vpop.f32.mrf.mxu1  ;;  %v4306_v21 = vpack.c.bf16 %v12080_v25, %v12086_v48  ;;  %v12088_v27 = vpop.eup %12087 }
 0x293   : > { %12089 = vtanh.f32 %v4409_v1  ;;  %10148 = vmatmul.msk.bf16.gmra.mxu0 %vm2100_vm4, %v2276_v62  ;;  %v4255_v4 = vadd.f32 %v4203_v13, %v3982_v28  ;;  %v3884_v25 = vpop.permute.xlu0 %3883  ;;  %v3954_v28 = vmul.f32 %v13246_v3, %v3891_v36 }
 0x294   : > { %12091 = vtanh.f32 %v4254_v0  ;;  %v3953_v2 = vmul.f32 %v13246_v3, %v3884_v25 }
 0x295   : > { %10261 = vmatmul.msk.bf16.gmra.mxu2 %vm2100_vm4, %v4306_v21  ;;  %12093 = vtanh.f32 %v2194_v14  ;;  %v3898_v21 = vpop.permute.xlu2 %3897 }
 0x296   : > { %v3985_v47 = vadd.f32 %v3953_v2, %v13011_v8 }
 0x297   : > { %v2195_v26 = vpop.f32.mrf.mxu3 }
 0x298   : > { %v2196_v30 = vadd.f32 %v13317_v42, %v2195_v26  ;;  %v4411_v45 = vpop.f32.mrf.mxu2  ;;  %v3912_v26 = vpop.permute.xlu1 %3911 }
 0x299   : > { %v12090_v33 = vpop.eup %12089  ;;  %v4412_v17 = vadd.f32 %v13439_v5, %v4411_v45 }
 0x29a   : > { %v4518_v35 = vpack.c.bf16 %v12090_v33, %v12088_v27  ;;  %12095 = vtanh.f32 %v2196_v30  ;;  %v4206_v41 = vpop.f32.mrf.mxu1  ;;  %v12092_v16 = vpop.eup %12091  ;;  %v3984_v27 = vadd.f32 %v3952_v53, %v13011_v8 }
 0x29b   : > { %12097 = vtanh.f32 %v4253_v23  ;;  %v12094_v43 = vpop.eup %12093  ;;  %v4256_v56 = vadd.f32 %v4206_v41, %v3983_v11  ;;  %v13475_v23 = vpop.permute.xlu0 %3904 }
 0x29c   : > { %10284 = vmatmul.msk.bf16.vlgmr.msrb.gmra.mxu3 %vm2100_vm4, %v4518_v35  ;;  %12099 = vtanh.f32 %v4412_v17  ;;  %v5352_v35 = vld [vmem:[%s17187_s4 + $0x8] sm:$0xff] }
 0x29d   : > { %5385 = vmatpush.msra.mxu0 %v5352_v35 }
 0x29f   : > { %v2198_v31 = vpop.f32.mrf.mxu3 }
 0x2a0   : > { %v12096_v49 = vpop.eup %12095  ;;  %v4413_v29 = vpop.f32.mrf.mxu2  ;;  %v2199_v61 = vadd.f32 %v13317_v42, %v2198_v31 }
 0x2a1   : > { %v4414_v51 = vadd.f32 %v13439_v5, %v4413_v29  ;;  %v2277_v52 = vpack.c.bf16 %v12096_v49, %v12094_v43  ;;  %v12098_v57 = vpop.eup %12097  ;;  %v13482_v31 = vpop.permute.xlu2 %3918 }
 0x2a2   : > { %v4209_v54 = vpop.f32.mrf.mxu1  ;;  %v4307_v39 = vpack.c.bf16 %v12092_v16, %v12098_v57  ;;  %v12100_v60 = vpop.eup %12099 }
 0x2a3   : > { %12101 = vtanh.f32 %v4414_v51  ;;  %10149 = vmatmul.msk.bf16.gmra.mxu0 %vm2100_vm4, %v2277_v52  ;;  %v4257_v33 = vadd.f32 %v4209_v54, %v3984_v27  ;;  %v3955_v51 = vmul.f32 %v13246_v3, %v3898_v21  ;;  %v13488_v54 = vpop.permute.xlu1 %4716 }
 0x2a4   : > { %12103 = vtanh.f32 %v4256_v56 }
 0x2a5   : > { %10262 = vmatmul.msk.bf16.gmra.mxu2 %vm2100_vm4, %v4307_v39  ;;  %12105 = vtanh.f32 %v2199_v61 }
 0x2a7   : > { %v2200_v34 = vpop.f32.mrf.mxu3 }
 0x2a8   : > { %v2201_v19 = vadd.f32 %v13317_v42, %v2200_v34  ;;  %v4416_v63 = vpop.f32.mrf.mxu2  ;;  %v13492_v34 = vpop.permute.xlu0 %3925 }
 0x2a9   : > { %v12102_v18 = vpop.eup %12101  ;;  %v4417_v10 = vadd.f32 %v13439_v5, %v4416_v63  ;;  %v13498_v37 = vpop.permute.xlu2 %4723 }
 0x2aa   : > { %12107 = vtanh.f32 %v2201_v19  ;;  %v4212_v6 = vpop.f32.mrf.mxu1  ;;  %v4519_v9 = vpack.c.bf16 %v12102_v18, %v12100_v60  ;;  %v12104_v59 = vpop.eup %12103  ;;  %v3987_v60 = vadd.f32 %v3955_v51, %v13011_v8  ;;  %v3986_v18 = vadd.f32 %v3954_v28, %v13011_v8 }
 0x2ab   : > { %12109 = vtanh.f32 %v4255_v4  ;;  %v12106_v55 = vpop.eup %12105  ;;  %v4258_v14 = vadd.f32 %v4212_v6, %v3985_v47  ;;  %v3959_v28 = vmul.f32 %v13246_v3, %v13492_v34 }
 0x2ac   : > { %10285 = vmatmul.msk.bf16.gmra.mxu3 %vm2100_vm4, %v4519_v9  ;;  %12111 = vtanh.f32 %v4417_v10 }
 0x2af   : > { %v2203_v7 = vpop.f32.mrf.mxu3 }
 0x2b0   : > { %v12108_v40 = vpop.eup %12107  ;;  %v13466_v12 = vpop.f32.mrf.mxu0  ;;  %v2204_v24 = vadd.f32 %v13317_v42, %v2203_v7 }
 0x2b1   : > { %v4418_v15 = vpop.f32.mrf.mxu2  ;;  %v2278_v62 = vpack.c.bf16 %v12108_v40, %v12106_v55  ;;  %v12110_v48 = vpop.eup %12109 }
 0x2b2   : > { %v4419_v1 = vadd.f32 %v13439_v5, %v4418_v15  ;;  %v4215_v13 = vpop.f32.mrf.mxu1  ;;  %v4308_v0 = vpack.c.bf16 %v12104_v59, %v12110_v48  ;;  %v12112_v45 = vpop.eup %12111  ;;  %v3957_v48 = vmul.f32 %v13246_v3, %v3912_v26 }
 0x2b3   : > { %10150 = vmatmul.msk.bf16.gmra.mxu0 %vm2100_vm4, %v2278_v62  ;;  %v4259_v25 = vadd.f32 %v4215_v13, %v3986_v18  ;;  %v13504_v40 = vpop.permute.xlu1 %4779  ;;  %v13506_v15 = vpop.permute.xlu0 %4772 }
 0x2b4   : > { %12113 = vtanh.f32 %v4419_v1  ;;  %17191 = vst [vmem:[#allocation33_spill] sm:$0xff] %v13504_v40  ;;  %v3989_v35 = vadd.f32 %v3957_v48, %v13011_v8 }
 0x2b5   : > { %10263 = vmatmul.msk.bf16.gmra.mxu2 %vm2100_vm4, %v4308_v0  ;;  %12115 = vtanh.f32 %v4258_v14  ;;  %17192 = vst [vmem:[#allocation34_spill] sm:$0xff] %v13506_v15 }
 0x2b6   : > { %12117 = vtanh.f32 %v2204_v24  ;;  %v13513_v24 = vpop.permute.xlu2 %4730 }
 0x2b7   : > { %v2205_v30 = vpop.f32.mrf.mxu3 }
 0x2b8   : > { %v2206_v41 = vadd.f32 %v13317_v42, %v2205_v30  ;;  %v13479_v58 = vpop.f32.mrf.mxu0  ;;  %v3956_v30 = vmul.f32 %v13246_v3, %v13475_v23 }
 0x2b9   : > { %v4421_v16 = vpop.f32.mrf.mxu2 }
 0x2ba   : > { %v12114_v20 = vpop.eup %12113  ;;  %12119 = vtanh.f32 %v2206_v41  ;;  %v4218_v17 = vpop.f32.mrf.mxu1  ;;  %v4422_v29 = vadd.f32 %v13439_v5, %v4421_v16 }
 0x2bb   : > { %v4520_v43 = vpack.c.bf16 %v12114_v20, %v12112_v45  ;;  %12121 = vtanh.f32 %v4257_v33  ;;  %v12116_v49 = vpop.eup %12115  ;;  %v4260_v63 = vadd.f32 %v4218_v17, %v3987_v60  ;;  %v13520_v41 = vpop.permute.xlu1 %4737  ;;  %v3988_v17 = vadd.f32 %v3956_v30, %v13011_v8 }
 0x2bc   : > { %v12118_v22 = vpop.eup %12117  ;;  %12123 = vtanh.f32 %v4422_v29  ;;  %v13523_v20 = vpop.permute.xlu0 %4786 }
 0x2bd   : > { %10286 = vmatmul.msk.bf16.gmra.mxu3 %vm2100_vm4, %v4520_v43  ;;  %17193 = vst [vmem:[#allocation35_spill] sm:$0xff] %v13523_v20 }
 0x2bf   : > { %v2208_v52 = vpop.f32.mrf.mxu3 }
 0x2c0   : > { %v12120_v57 = vpop.eup %12119  ;;  %v13486_v11 = vpop.f32.mrf.mxu0  ;;  %v2209_v6 = vadd.f32 %v13317_v42, %v2208_v52 }
 0x2c1   : > { %v4423_v46 = vpop.f32.mrf.mxu2  ;;  %v2279_v56 = vpack.c.bf16 %v12120_v57, %v12118_v22  ;;  %v12122_v61 = vpop.eup %12121 }
 0x2c2   : > { %v4424_v39 = vadd.f32 %v13439_v5, %v4423_v46  ;;  %v4221_v4 = vpop.f32.mrf.mxu1  ;;  %v4309_v19 = vpack.c.bf16 %v12116_v49, %v12122_v61  ;;  %v12124_v36 = vpop.eup %12123 }
 0x2c3   : > { %10151 = vmatmul.msk.bf16.gmra.mxu0 %vm2100_vm4, %v2279_v56  ;;  %v4261_v29 = vadd.f32 %v4221_v4, %v3988_v17  ;;  %v13535_v60 = vpop.permute.xlu1 %4800 }
 0x2c4   : > { %12125 = vtanh.f32 %v4424_v39  ;;  %v13530_v39 = vpop.permute.xlu2 %4793  ;;  %17195 = vst [vmem:[#allocation37_spill] sm:$0xff] %v13535_v60 }
 0x2c5   : > { %10264 = vmatmul.msk.bf16.gmra.mxu2 %vm2100_vm4, %v4309_v19  ;;  %12127 = vtanh.f32 %v4260_v63  ;;  %17194 = vst [vmem:[#allocation36_spill] sm:$0xff] %v13530_v39 }
 0x2c7   : > { %v2210_v9 = vpop.f32.mrf.mxu3 }
 0x2c8   : > { %v2211_v59 = vadd.f32 %v13317_v42, %v2210_v9  ;;  %v13502_v2 = vpop.f32.mrf.mxu0  ;;  %v13540_v9 = vpop.permute.xlu0 %4744 }
 0x2c9   : > { %v4426_v10 = vpop.f32.mrf.mxu2 }
 0x2ca   : > { %v12126_v55 = vpop.eup %12125  ;;  %12129 = vtanh.f32 %v2211_v59  ;;  %v4224_v1 = vpop.f32.mrf.mxu1  ;;  %v4427_v53 = vadd.f32 %v13439_v5, %v4426_v10 }
 0x2cb   : > { %v4521_v7 = vpack.c.bf16 %v12126_v55, %v12124_v36  ;;  %12131 = vtanh.f32 %v2209_v6  ;;  %v12128_v62 = vpop.eup %12127  ;;  %v4262_v16 = vadd.f32 %v4224_v1, %v3989_v35  ;;  %v3991_v55 = vadd.f32 %v3959_v28, %v13011_v8  ;;  %v13558_v30 = vpop.permute.xlu1 %4758 }
 0x2cc   : > { %12133 = vtanh.f32 %v4259_v25  ;;  %v3958_v25 = vmul.f32 %v13246_v3, %v13482_v31  ;;  %v13547_v1 = vpop.permute.xlu2 %4751 }
 0x2cd   : > { %10287 = vmatmul.msk.bf16.gmra.mxu3 %vm2100_vm4, %v4521_v7  ;;  %12135 = vtanh.f32 %v4427_v53  ;;  %v13552_v53 = vld [vmem:[%s17188_s3] ss:$0 sm:$0xff]  ;;  %s17198_s3 = sld [smem:[#allocation13_spill]] }
 0x2ce   : > { %v3990_v48 = vadd.f32 %v3958_v25, %v13011_v8 }
 0x2cf   : > { %v2213_v47 = vpop.f32.mrf.mxu3 }
 0x2d0   : > { %v12130_v13 = vpop.eup %12129  ;;  %v13511_v21 = vpop.f32.mrf.mxu0  ;;  %v2214_v23 = vadd.f32 %v13317_v42, %v2213_v47 }
 0x2d1   : > { %v4428_v0 = vpop.f32.mrf.mxu2  ;;  %v12132_v14 = vpop.eup %12131 }
 0x2d2   : > { %v12134_v27 = vpop.eup %12133  ;;  %v4429_v45 = vadd.f32 %v13439_v5, %v4428_v0  ;;  %v2280_v33 = vpack.c.bf16 %v12130_v13, %v12132_v14  ;;  %v4227_v43 = vpop.f32.mrf.mxu1 }
 0x2d3   : > { %v4310_v26 = vpack.c.bf16 %v12128_v62, %v12134_v27  ;;  %v12136_v57 = vpop.eup %12135  ;;  %v4263_v47 = vadd.f32 %v4227_v43, %v3990_v48  ;;  %v13575_v28 = vld [vmem:[%s17198_s3] ss:$0 sm:$0xff] }
 0x2d4   : > { %12137 = vtanh.f32 %v4429_v45  ;;  %10152 = vmatmul.msk.bf16.gmra.mxu0 %vm2100_vm4, %v2280_v33  ;;  %v13560_v33 = vpop.permute.xlu0 %4807 }
 0x2d5   : > { %10265 = vmatmul.msk.bf16.gmra.mxu2 %vm2100_vm4, %v4310_v26  ;;  %12139 = vtanh.f32 %v4262_v16  ;;  %17196 = vst [vmem:[#allocation38_spill] sm:$0xff] %v13560_v33  ;;  %v13563_v26 = vpop.permute.xlu2 %4814 }
 0x2d6   : > { %17197 = vst [vmem:[#allocation39_spill] sm:$0xff] %v13563_v26 }
 0x2d7   : > { %v2215_v49 = vpop.f32.mrf.mxu3 }
 0x2d8   : > { %v2216_v22 = vadd.f32 %v13317_v42, %v2215_v49  ;;  %v13528_v51 = vpop.f32.mrf.mxu0 }
 0x2d9   : > { %v4431_v52 = vpop.f32.mrf.mxu2 }
 0x2da   : > { %v12138_v46 = vpop.eup %12137  ;;  %12141 = vtanh.f32 %v2216_v22  ;;  %v4432_v42 = vadd.f32 %v13439_v5, %v4431_v52  ;;  %v4230_v59 = vpop.f32.mrf.mxu1 }
 0x2db   : > { %12143 = vtanh.f32 %v2214_v23  ;;  %v4522_v56 = vpack.c.bf16 %v12138_v46, %v12136_v57  ;;  %v12140_v61 = vpop.eup %12139  ;;  %v4264_v62 = vadd.f32 %v4230_v59, %v3991_v55  ;;  %v13569_v46 = vpop.permute.xlu1 %4821 }
 0x2dc   : > { %12145 = vtanh.f32 %v4261_v29  ;;  %17199 = vst [vmem:[#allocation40_spill] sm:$0xff] %v13569_v46 }
 0x2dd   : > { %10288 = vmatmul.msk.bf16.gmra.mxu3 %vm2100_vm4, %v4522_v56  ;;  %12147 = vtanh.f32 %v4432_v42  ;;  %v5351_v42 = vld [vmem:[%s17187_s4] sm:$0xff]  ;;  %v13583_v59 = vpop.permute.xlu2 %4828  ;;  %s17214_s4 = sld [smem:[#allocation15_spill]] }
 0x2de   : > { %5386 = vmatpush.msra.mxu0 %v5351_v42  ;;  %17201 = vst [vmem:[#allocation42_spill] sm:$0xff] %v13583_v59 }
 0x2df   : > { %v2218_v4 = vpop.f32.mrf.mxu3 }
 0x2e0   : > { %v12142_v19 = vpop.eup %12141  ;;  %v13538_v63 = vpop.f32.mrf.mxu0  ;;  %v2219_v3 = vadd.f32 %v13552_v53, %v2218_v4 }
 0x2e1   : > { %v4433_v18 = vpop.f32.mrf.mxu2  ;;  %v12144_v6 = vpop.eup %12143 }
 0x2e2   : > { %v12146_v36 = vpop.eup %12145  ;;  %v4434_v34 = vadd.f32 %v13439_v5, %v4433_v18  ;;  %v2281_v10 = vpack.c.bf16 %v12142_v19, %v12144_v6 }
 0x2e3   : > { %v4311_v7 = vpack.c.bf16 %v12140_v61, %v12146_v36  ;;  %v12148_v27 = vpop.eup %12147  ;;  %v13572_v61 = vpop.permute.xlu0 %4765 }
 0x2e4   : > { %12149 = vtanh.f32 %v4434_v34  ;;  %10153 = vmatmul.msk.bf16.gmra.mxu0 %vm2100_vm4, %v2281_v10  ;;  %17200 = vst [vmem:[#allocation41_spill] sm:$0xff] %v13572_v61  ;;  %v2380_v34 = vadd.f32 %v13575_v28, %v13466_v12 }
 0x2e5   : > { %10266 = vmatmul.msk.bf16.gmra.mxu2 %vm2100_vm4, %v4311_v7  ;;  %12151 = vtanh.f32 %v4264_v62  ;;  %v13587_v7 = vpop.permute.xlu1 %4884 }
 0x2e6   : > { %17202 = vst [vmem:[#allocation43_spill] sm:$0xff] %v13587_v7  ;;  %v10158_v62 = vmul.f32 -1.442695, %v2380_v34  ;;  %v2387_v34 = vadd.f32 %v13575_v28, %v13502_v2 }
 0x2e7   : > { %v2220_v31 = vpop.f32.mrf.mxu3 }
 0x2e8   : > { %v2221_v13 = vadd.f32 %v13552_v53, %v2220_v31  ;;  %v13556_v0 = vpop.f32.mrf.mxu0 }
 0x2e9   : > { %v4436_v14 = vpop.f32.mrf.mxu2 }
 0x2ea   : > { %v12150_v45 = vpop.eup %12149  ;;  %12153 = vtanh.f32 %v2221_v13  ;;  %v4437_v23 = vadd.f32 %v13439_v5, %v4436_v14  ;;  %v2382_v13 = vadd.f32 %v13575_v28, %v13479_v58 }
 0x2eb   : > { %12155 = vtanh.f32 %v2219_v3  ;;  %v4523_v8 = vpack.c.bf16 %v12150_v45, %v12148_v27  ;;  %v12152_v35 = vpop.eup %12151  ;;  %v13591_v3 = vpop.permute.xlu0 %4835  ;;  %v2385_v45 = vadd.f32 %v13575_v28, %v13486_v11 }
 0x2ec   : > { %12157 = vtanh.f32 %v4263_v47  ;;  %17203 = vst [vmem:[#allocation44_spill] sm:$0xff] %v13591_v3 }
 0x2ed   : > { %10289 = vmatmul.msk.bf16.gmra.mxu3 %vm2100_vm4, %v4523_v8 }
 0x2ef   : > { %v2223_v16 = vpop.f32.mrf.mxu3 }
 0x2f0   : > { %v12154_v17 = vpop.eup %12153  ;;  %v13566_v43 = vpop.f32.mrf.mxu0  ;;  %v2224_v4 = vadd.f32 %v13552_v53, %v2223_v16 }
 0x2f1   : > { %v4438_v49 = vpop.f32.mrf.mxu2  ;;  %v12156_v29 = vpop.eup %12155 }
 0x2f2   : > { %v4439_v22 = vadd.f32 %v13439_v5, %v4438_v49  ;;  %v12158_v52 = vpop.eup %12157  ;;  %v2282_v57 = vpack.c.bf16 %v12154_v17, %v12156_v29  ;;  %v13600_v16 = vpop.permute.xlu2 %4891  ;;  %v10159_v17 = vmul.f32 -1.442695, %v2382_v13 }
 0x2f3   : > { %v4312_v56 = vpack.c.bf16 %v12152_v35, %v12158_v52  ;;  %17204 = vst [vmem:[#allocation45_spill] sm:$0xff] %v13600_v16  ;;  %v13603_v49 = vpop.permute.xlu1 %4898 }
 0x2f4   : > { %12159 = vtanh.f32 %v4439_v22  ;;  %10154 = vmatmul.msk.bf16.gmra.mxu0 %vm2100_vm4, %v2282_v57  ;;  %17205 = vst [vmem:[#allocation46_spill] sm:$0xff] %v13603_v49 }
 0x2f5   : > { %12161 = vtanh.f32 %v4437_v23  ;;  %10267 = vmatmul.msk.bf16.gmra.mxu2 %vm2100_vm4, %v4312_v56  ;;  %v10160_v23 = vmul.f32 -1.442695, %v2385_v45  ;;  %v2390_v45 = vadd.f32 %v13575_v28, %v13511_v21 }
 0x2f7   : > { %v2225_v19 = vpop.f32.mrf.mxu3 }
 0x2f8   : > { %v2226_v18 = vadd.f32 %v13552_v53, %v2225_v19  ;;  %v13581_v6 = vpop.f32.mrf.mxu0 }
 0x2f9   : > { %v4441_v36 = vpop.f32.mrf.mxu2 }
 0x2fa   : > { %v12160_v25 = vpop.eup %12159  ;;  %12163 = vtanh.f32 %v2226_v18  ;;  %v4442_v48 = vadd.f32 %v13439_v5, %v4441_v36  ;;  %v13613_v36 = vpop.permute.xlu2 %4849 }
 0x2fb   : > { %v12162_v10 = vpop.eup %12161  ;;  %12165 = vtanh.f32 %v2224_v4  ;;  %v13609_v4 = vpop.permute.xlu0 %4842  ;;  %17207 = vst [vmem:[#allocation48_spill] sm:$0xff] %v13613_v36 }
 0x2fc   : > { %v4524_v55 = vpack.c.bf16 %v12160_v25, %v12162_v10  ;;  %12167 = vpow2.f32 %v10158_v62  ;;  %17206 = vst [vmem:[#allocation47_spill] sm:$0xff] %v13609_v4 }
 0x2fd   : > { %12169 = vtanh.f32 %v4442_v48 }
 0x2fe   : > { %10290 = vmatmul.msk.bf16.gmra.mxu3 %vm2100_vm4, %v4524_v55 }
 0x2ff   : > { %v2228_v31 = vpop.f32.mrf.mxu3 }
 0x300   : > { %v12164_v47 = vpop.eup %12163  ;;  %v13595_v14 = vpop.f32.mrf.mxu0  ;;  %v2229_v29 = vadd.f32 %v13552_v53, %v2228_v31 }
 0x301   : > { %v4443_v12 = vpop.f32.mrf.mxu2  ;;  %v12166_v27 = vpop.eup %12165 }
 0x302   : > { %v4444_v8 = vadd.f32 %v13439_v5, %v4443_v12  ;;  %v2283_v35 = vpack.c.bf16 %v12164_v47, %v12166_v27  ;;  %v12168_v58 = vpop.eup %12167  ;;  %v13622_v12 = vpop.permute.xlu1 %4856 }
 0x303   : > { %v12170_v52 = vpop.eup %12169  ;;  %v13611_v18 = vadd.f32 1.0, %v12168_v58  ;;  %17208 = vst [vmem:[#allocation49_spill] sm:$0xff] %v13622_v12  ;;  %v1338_v12 = vld [vmem:[%s13744_s9] sm:$0xff] }
 0x304   : > { %12171 = vtanh.f32 %v4444_v8  ;;  %10155 = vmatmul.msk.bf16.gmra.mxu0 %vm2100_vm4, %v2283_v35  ;;  %v10161_v8 = vmul.f32 -1.442695, %v2387_v34  ;;  %v2392_v34 = vadd.f32 %v13575_v28, %v13528_v51 }
 0x305   : > { %12173 = vpow2.f32 %v10159_v17  ;;  %v13629_v17 = vpop.permute.xlu0 %4905  ;;  %vm2592_vm6 = vweird.f32 %v13611_v18 }
 0x306   : > { %12175 = vpow2.f32 %v10160_v23  ;;  %17209 = vst [vmem:[#allocation50_spill] sm:$0xff] %v13629_v17 }
 0x307   : > { %v2230_v22 = vpop.f32.mrf.mxu3 }
 0x308   : > { %v2231_v11 = vadd.f32 %v13552_v53, %v2230_v22  ;;  %v13607_v57 = vpop.f32.mrf.mxu0  ;;  %v13637_v22 = vpop.permute.xlu2 %4912 }
 0x309   : > { %v4446_v56 = vpop.f32.mrf.mxu2  ;;  %17210 = vst [vmem:[#allocation51_spill] sm:$0xff] %v13637_v22 }
 0x30a   : > { %v12172_v42 = vpop.eup %12171  ;;  %12177 = vtanh.f32 %v2231_v11  ;;  %v4447_v55 = vadd.f32 %v13439_v5, %v4446_v56 }
 0x30b   : > { %v4525_v19 = vpack.c.bf16 %v12172_v42, %v12170_v52  ;;  %12179 = vtanh.f32 %v2229_v29  ;;  %v12174_v25 = vpop.eup %12173  ;;  %v10162_v29 = vmul.f32 -1.442695, %v2390_v45 }
 0x30c   : > { %v12176_v10 = vpop.eup %12175  ;;  %12181 = vrcp.f32 %v13611_v18  ;;  %v13624_v27 = vadd.f32 1.0, %v12174_v25 }
 0x30d   : > { %v13631_v23 = vadd.f32 1.0, %v12176_v10  ;;  %12183 = vtanh.f32 %v4447_v55 }
 0x30e   : > { %10291 = vmatmul.msk.bf16.gmra.mxu3 %vm2100_vm4, %v4525_v19  ;;  %vm2607_vm9 = vweird.f32 %v13624_v27 }
 0x30f   : > { %v2233_v62 = vpop.f32.mrf.mxu3  ;;  %vm2622_vm12 = vweird.f32 %v13631_v23 }
 0x310   : > { %v12178_v48 = vpop.eup %12177  ;;  %v13620_v31 = vpop.f32.mrf.mxu0  ;;  %v2234_v21 = vadd.f32 %v13552_v53, %v2233_v62 }
 0x311   : > { %v4448_v47 = vpop.f32.mrf.mxu2  ;;  %v12180_v13 = vpop.eup %12179 }
 0x312   : > { %v4449_v2 = vadd.f32 %v13439_v5, %v4448_v47  ;;  %v2284_v35 = vpack.c.bf16 %v12178_v48, %v12180_v13  ;;  %v13634_v58 = vpop.eup %12181  ;;  %v13650_v48 = vpop.permute.xlu1 %4919 }
 0x313   : > { %v2588_v11 = vmul.f32 %v13634_v58, %v13611_v18  ;;  %v12184_v25 = vpop.eup %12183  ;;  %17211 = vst [vmem:[#allocation52_spill] sm:$0xff] %v13650_v48  ;;  %vm2593_vm5 = vweird.f32 %v13634_v58 }
 0x314   : > { %12185 = vtanh.f32 %v4449_v2  ;;  %10156 = vmatmul.msk.bf16.gmra.mxu0 %vm2100_vm4, %v2284_v35  ;;  %vm13693_vm7 = vmor %vm2592_vm6, %vm2593_vm5 }
 0x315   : > { %12187 = vrcp.f32 %v13624_v27  ;;  %v2589_v13 = vsub.f32 1.0, %v2588_v11  ;;  %v2395_v11 = vadd.f32 %v13575_v28, %v13538_v63 }
 0x316   : > { %12189 = vpow2.f32 %v10161_v8  ;;  %v10163_v8 = vmul.f32 -1.442695, %v2392_v34  ;;  %v13666_v34 = vpop.permute.xlu2 %4870 }
 0x317   : > { %12191 = vrcp.f32 %v13631_v23  ;;  %v2235_v52 = vpop.f32.mrf.mxu3  ;;  %17213 = vst [vmem:[#allocation54_spill] sm:$0xff] %v13666_v34  ;;  %v10164_v17 = vmul.f32 -1.442695, %v2395_v11 }
 0x318   : > { %v2236_v56 = vadd.f32 %v13552_v53, %v2235_v52  ;;  %v13644_v42 = vpop.f32.mrf.mxu0  ;;  %12193 = vpow2.f32 %v10162_v29  ;;  %v13654_v53 = vpop.permute.xlu0 %4863  ;;  %v2590_v52 = vmul.f32 %v13634_v58, %v2589_v13 }
 0x319   : > { %v4451_v19 = vpop.f32.mrf.mxu2  ;;  %17212 = vst [vmem:[#allocation53_spill] sm:$0xff] %v13654_v53 }
 0x31a   : > { %v12186_v10 = vpop.eup %12185  ;;  %12195 = vtanh.f32 %v2236_v56  ;;  %v4452_v63 = vadd.f32 %v13439_v5, %v4451_v19  ;;  %v2591_v22 = vadd.f32 %v13634_v58, %v2590_v52  ;;  %v13680_v49 = vpop.permute.xlu1 %4877  ;;  %v2596_v19 = vand.u32 2147483647, %v13611_v18 }
 0x31b   : > { %v13648_v55 = vpop.eup %12187  ;;  %12197 = vtanh.f32 %v2234_v21  ;;  %v4526_v62 = vpack.c.bf16 %v12186_v10, %v12184_v25  ;;  %17215 = vst [vmem:[#allocation55_spill] sm:$0xff] %v13680_v49 }
 0x31c   : > { %v12190_v47 = vpop.eup %12189  ;;  %v2603_v51 = vmul.f32 %v13648_v55, %v13624_v27  ;;  %12199 = vpow2.f32 %v10163_v8  ;;  %vm2597_vm8 = vcmp.eq.f32.partialorder %v2596_v19, 8.507059e+37  ;;  %vm2608_vm10 = vweird.f32 %v13648_v55 }
 0x31d   : > { %v13652_v45 = vpop.eup %12191  ;;  %v13659_v35 = vadd.f32 1.0, %v12190_v47  ;;  %vm13736_vm13 = vmor %vm2607_vm9, %vm2608_vm10 }
 0x31e   : > { %10292 = vmatmul.msk.bf16.gmra.mxu3 %vm2100_vm4, %v4526_v62  ;;  %v12194_v2 = vpop.eup %12193  ;;  %v2618_v21 = vmul.f32 %v13652_v45, %v13631_v23  ;;  %v2604_v13 = vsub.f32 1.0, %v2603_v51  ;;  %vm2623_vm11 = vweird.f32 %v13652_v45 }
 0x31f   : > { %v13668_v10 = vadd.f32 1.0, %v12194_v2  ;;  %12201 = vrcp.f32 %v13659_v35  ;;  %v2400_v2 = vadd.f32 %v13575_v28, %v13566_v43  ;;  %v2611_v43 = vand.u32 2147483647, %v13624_v27  ;;  %vm13751_vm14 = vmor %vm2622_vm12, %vm2623_vm11 }
 0x320   : > { %v12196_v29 = vpop.eup %12195  ;;  %v13670_v62 = vpop.f32.mrf.mxu0  ;;  %v2619_v8 = vsub.f32 1.0, %v2618_v21  ;;  %v2595_v21 = vsel %vm13693_vm7, %v13634_v58, %v2591_v22  ;;  %vm2637_vm5 = vweird.f32 %v13659_v35 }
 0x321   : > { %v4453_v56 = vpop.f32.mrf.mxu2  ;;  %v12198_v25 = vpop.eup %12197  ;;  %v10166_v11 = vmul.f32 -1.442695, %v2400_v2  ;;  %vm2612_vm15 = vcmp.eq.f32.partialorder %v2611_v43, 8.507059e+37  ;;  %vm2652_vm10 = vweird.f32 %v13668_v10 }
 0x322   : > { %v4454_v47 = vadd.f32 %v13439_v5, %v4453_v56  ;;  %v2285_v48 = vpack.c.bf16 %v12196_v29, %v12198_v25  ;;  %v2598_v29 = vand.u32 2147483648, %v13611_v18  ;;  %v13684_v56 = vld [vmem:[%s17214_s4] ss:$0 sm:$0xff]  ;;  %v12200_v51 = vpop.eup %12199  ;;  %v13689_v52 = vpop.permute.xlu0 %4926  ;;  %v2620_v18 = vmul.f32 %v13652_v45, %v2619_v8 }
 0x323   : > { %17216 = vst [vmem:[#allocation56_spill] sm:$0xff] %v13689_v52  ;;  %v2397_v52 = vadd.f32 %v13575_v28, %v13556_v0  ;;  %v13713_v58 = vadd.f32 1.0, %v12200_v51  ;;  %v2613_v8 = vand.u32 2147483648, %v13624_v27  ;;  %v13720_v2 = vpop.permute.xlu2 %4933 }
 0x324   : > { %10157 = vmatmul.msk.bf16.gmra.mxu0 %vm2100_vm4, %v2285_v48  ;;  %12203 = vtanh.f32 %v4454_v47  ;;  %v2605_v48 = vmul.f32 %v13648_v55, %v2604_v13  ;;  %v2599_v47 = vor.u32 1.1754944e-38, %v2598_v29  ;;  %v13710_v13 = vadd.f32 %v13684_v56, %v12976_v32  ;;  %17219 = vst [vmem:[#allocation57_spill] sm:$0xff] %v13720_v2 }
 0x325   : > { %12205 = vrcp.f32 %v13668_v10  ;;  %v13702_v25 = vpop.eup %12201  ;;  %v2621_v32 = vadd.f32 %v13652_v45, %v2620_v18 }
 0x326   : > { %12207 = vtanh.f32 %v4452_v63  ;;  %v2606_v63 = vadd.f32 %v13648_v55, %v2605_v48  ;;  %v2633_v29 = vmul.f32 %v13702_v25, %v13659_v35  ;;  %v2628_v48 = vand.u32 2147483648, %v13631_v23 }
 0x327   : > { %12209 = vpow2.f32 %v10164_v17  ;;  %v2600_v17 = vsel %vm2597_vm8, %v2599_v47, %v2595_v21  ;;  %v10165_v21 = vmul.f32 -1.442695, %v2397_v52  ;;  %v3131_v52 = vpop.permute.xlu1 %3130  ;;  %v2625_v7 = vsel %vm13751_vm14, %v13652_v45, %v2621_v32 }
 0x328   : > { %12211 = vpow2.f32 %v10166_v11  ;;  %v13726_v19 = vpop.f32.mrf.mxu0  ;;  %v3342_v18 = vmul.f32 %v13710_v13, %v2600_v17  ;;  %v2626_v11 = vand.u32 2147483647, %v13631_v23  ;;  %v2610_v17 = vsel %vm13736_vm13, %v13648_v55, %v2606_v63 }
 0x329   : > { %v13706_v49 = vpop.f32.mrf.mxu2  ;;  %12213 = vrcp.f32 %v13713_v58  ;;  %v2634_v53 = vsub.f32 1.0, %v2633_v29  ;;  %v2629_v63 = vor.u32 1.1754944e-38, %v2628_v48  ;;  %v2405_v45 = vadd.f32 %v13575_v28, %v13595_v14 }
 0x32a   : > { %v12204_v22 = vpop.eup %12203  ;;  %v3124_v55 = vpop.permute.xlu0 %3123  ;;  %12215 = vpow2.f32 %v10165_v21  ;;  %vm2627_vm2 = vcmp.eq.f32.partialorder %v2626_v11, 8.507059e+37  ;;  %vm2638_vm6 = vweird.f32 %v13702_v25  ;;  %vm2667_vm14 = vweird.f32 %v13713_v58 }
 0x32b   : > { %v13718_v0 = vpop.eup %12205  ;;  %v3374_v34 = vmul.f32 %v3342_v18, %v3124_v55  ;;  %v2635_v29 = vmul.f32 %v13702_v25, %v2634_v53  ;;  %v13780_v21 = vpop.permute.xlu2 %3179  ;;  %v6135_v53 = vld [vmem:[%s17225_s8] sm:$0x3]  ;;  %vm13810_vm8 = vmor %vm2637_vm5, %vm2638_vm6  ;;  %s17093_s8 = smov 32  }
 0x32c   : > { %v12208_v51 = vpop.eup %12207  ;;  %v2648_v23 = vmul.f32 %v13718_v0, %v13668_v10  ;;  %10304 = vmatpush.msk.msrb.mxu0 %vm17077_vm0, %v6135_v53  ;;  %vm2653_vm7 = vweird.f32 %v13718_v0 }
 0x32d   : > { %v12210_v47 = vpop.eup %12209  ;;  %v4527_v16 = vpack.c.bf16 %v12204_v22, %v12208_v51  ;;  %v2402_v22 = vadd.f32 %v13575_v28, %v13581_v6  ;;  %v2614_v51 = vor.u32 1.1754944e-38, %v2613_v8  ;;  %v2630_v6 = vsel %vm2627_vm2, %v2629_v63, %v2625_v7  ;;  %vm13828_vm11 = vmor %vm2652_vm10, %vm2653_vm7 }
 0x32e   : > { %v13763_v2 = vadd.f32 1.0, %v12210_v47  ;;  %v12212_v36 = vpop.eup %12211  ;;  %v2649_v8 = vsub.f32 1.0, %v2648_v23  ;;  %v13778_v7 = vadd.f32 %v13684_v56, %v12984_v38  ;;  %v3406_v14 = vsel %vm1774_vm3, %v3374_v34, 0.0 }
 0x32f   : > { %10293 = vmatmul.msk.bf16.gmra.mxu3 %vm2100_vm4, %v4527_v16  ;;  %v2615_v4 = vsel %vm2612_vm15, %v2614_v51, %v2610_v17  ;;  %v10167_v3 = vmul.f32 -1.442695, %v2402_v22  ;;  %v13768_v16 = vpop.eup %12213  ;;  %v13774_v48 = vadd.f32 1.0, %v12212_v36  ;;  %v3344_v47 = vmul.f32 %v13710_v13, %v2630_v6  ;;  %v3138_v27 = vpop.permute.xlu1 %3137 }
 0x330   : > { %v3343_v43 = vmul.f32 %v13710_v13, %v2615_v4  ;;  %12217 = vrcp.f32 %v13763_v2  ;;  %v13784_v18 = vpop.f32.mrf.mxu0  ;;  %v12216_v4 = vpop.eup %12215  ;;  %v2650_v36 = vmul.f32 %v13718_v0, %v2649_v8  ;;  %v2663_v11 = vmul.f32 %v13768_v16, %v13713_v58 }
 0x331   : > { %v4458_v32 = vpop.f32.mrf.mxu2  ;;  %12219 = vpow2.f32 %v10167_v3  ;;  %v10168_v38 = vmul.f32 -1.442695, %v2405_v45  ;;  %v2636_v34 = vadd.f32 %v13702_v25, %v2635_v29  ;;  %v4457_v17 = vadd.f32 %v13439_v5, %v13706_v49  ;;  %v1339_v3 = vld [vmem:[%s13744_s9 + $0x8] sm:$0xff] }
 0x332   : > { %v3375_v23 = vmul.f32 %v3343_v43, %v3131_v52  ;;  %v2641_v22 = vand.u32 2147483647, %v13659_v35  ;;  %v2643_v51 = vand.u32 2147483648, %v13659_v35  ;;  %12221 = vrcp.f32 %v13774_v48  ;;  %v13806_v8 = vpop.permute.xlu0 %3186 }
 0x333   : > { %v3376_v55 = vmul.f32 %v3344_v47, %v3138_v27  ;;  %v13802_v63 = vadd.f32 1.0, %v12216_v4  ;;  %v2651_v49 = vadd.f32 %v13718_v0, %v2650_v36  ;;  %v2664_v52 = vsub.f32 1.0, %v2663_v11  ;;  %v13841_v27 = vpop.permute.xlu2 %3193 }
 0x334   : > { %10300 = vmatmul.msk.f32.vlgmr.msra.gmra.mxu0 %vm1774_vm3, %v1338_v12  ;;  %v4459_v12 = vadd.f32 %v13439_v5, %v4458_v32  ;;  %v2407_v45 = vadd.f32 %v13575_v28, %v13607_v57  ;;  %v3407_v32 = vrot.slane %v3406_v14, 4  ;;  %v2640_v29 = vsel %vm13810_vm8, %v13702_v25, %v2636_v34 }
 0x335   : > { %v2658_v43 = vand.u32 2147483648, %v13668_v10  ;;  %vm2642_vm9 = vcmp.eq.f32.partialorder %v2641_v22, 8.507059e+37  ;;  %v2644_v47 = vor.u32 1.1754944e-38, %v2643_v51  ;;  %v3413_v53 = vsel %vm1774_vm3, %v3375_v23, 0.0 }
 0x336   : > { %12223 = vtanh.f32 %v4459_v12  ;;  %v13804_v6 = vpop.eup %12217  ;;  %v2656_v12 = vand.u32 2147483647, %v13668_v10  ;;  %v3420_v57 = vsel %vm1774_vm3, %v3376_v55, 0.0  ;;  %v2655_v10 = vsel %vm13828_vm11, %v13718_v0, %v2651_v49 }
 0x337   : > { %12225 = vpow2.f32 %v10168_v38  ;;  %v12220_v35 = vpop.eup %12219  ;;  %v2678_v4 = vmul.f32 %v13804_v6, %v13763_v2  ;;  %v2645_v11 = vsel %vm2642_vm9, %v2644_v47, %v2640_v29  ;;  %v2665_v38 = vmul.f32 %v13768_v16, %v2664_v52  ;;  %v1340_v52 = vld [vmem:[%s13744_s9 + $0x10] sm:$0xff]  ;;  %v13950_v33 = vpop.permute.xlu1 %3200 }
 0x338   : > { %12227 = vtanh.f32 %v4457_v17  ;;  %v13835_v36 = vpop.eup %12221  ;;  %v10169_v34 = vmul.f32 -1.442695, %v2407_v45  ;;  %v3408_v23 = vadd.f32 %v3407_v32, %v3406_v14  ;;  %v2659_v22 = vor.u32 1.1754944e-38, %v2658_v43  ;;  %v13847_v55 = vpop.f32.mrf.mxu0 }
 0x339   : > { %12229 = vrcp.f32 %v13802_v63  ;;  %v13843_v51 = vadd.f32 1.0, %v12220_v35  ;;  %v13851_v29 = vadd.f32 %v13684_v56, %v12989_v44  ;;  %v3414_v0 = vrot.slane %v3413_v53, 4  ;;  %v13859_v47 = vpop.f32.mrf.mxu2 }
 0x33a   : > { %v3421_v49 = vrot.slane %v3420_v57, 4  ;;  %vm2657_vm12 = vcmp.eq.f32.partialorder %v2656_v12, 8.507059e+37  ;;  %v3345_v14 = vmul.f32 %v13710_v13, %v2645_v11  ;;  %vm2668_vm13 = vweird.f32 %v13768_v16 }
 0x33b   : > { %v2660_v32 = vsel %vm2657_vm12, %v2659_v22, %v2655_v10  ;;  %v2679_v43 = vsub.f32 1.0, %v2678_v4  ;;  %v2708_v35 = vmul.f32 %v13835_v36, %v13774_v48  ;;  %12231 = vpow2.f32 %v10169_v34  ;;  %v3145_v4 = vpop.permute.xlu0 %3144  ;;  %vm13880_vm15 = vmor %vm2667_vm14, %vm2668_vm13 }
 0x33c   : > { %10301 = vmatmul.msk.f32.gmra.mxu0 %vm1774_vm3, %v1339_v3  ;;  %v12224_v17 = vpop.eup %12223  ;;  %v2410_v3 = vadd.f32 %v13575_v28, %v13620_v31  ;;  %v2666_v31 = vadd.f32 %v13768_v16, %v2665_v38  ;;  %v3409_v12 = vrot.slane %v3408_v23, 2  ;;  %v2673_v25 = vand.u32 2147483648, %v13713_v58 }
 0x33d   : > { %v12226_v5 = vpop.eup %12225  ;;  %12233 = vrcp.f32 %v13843_v51  ;;  %v13866_v10 = vadd.f32 %v3414_v0, %v3413_v53  ;;  %v2671_v38 = vand.u32 2147483647, %v13713_v58  ;;  %v13875_v22 = vmul.f32 %v3345_v14, %v3145_v4 }
 0x33e   : > { %v12228_v45 = vpop.eup %12227  ;;  %v10170_v11 = vmul.f32 -1.442695, %v2410_v3  ;;  %v13870_v34 = vadd.f32 1.0, %v12226_v5  ;;  %v2680_v3 = vmul.f32 %v13804_v6, %v2679_v43  ;;  %v2670_v58 = vsel %vm13880_vm15, %v13768_v16, %v2666_v31  ;;  %v1341_v43 = vld [vmem:[%s13744_s9 + $0x18] sm:$0xff] }
 0x33f   : > { %v4528_v44 = vpack.c.bf16 %v12224_v17, %v12228_v45  ;;  %v13861_v56 = vpop.eup %12229  ;;  %v13873_v17 = vadd.f32 %v3421_v49, %v3420_v57  ;;  %v3346_v45 = vmul.f32 %v13710_v13, %v2660_v32  ;;  %v2686_v57 = vand.u32 2147483647, %v13763_v2 }
 0x340   : > { %v2693_v5 = vmul.f32 %v13861_v56, %v13802_v63  ;;  %v2709_v0 = vsub.f32 1.0, %v2708_v35  ;;  %v2674_v49 = vor.u32 1.1754944e-38, %v2673_v25  ;;  %v2703_v14 = vand.u32 2147483648, %v13802_v63  ;;  %v13902_v4 = vpop.f32.mrf.mxu0 }
 0x341   : > { %10294 = vmatmul.msk.bf16.gmra.mxu3 %vm2100_vm4, %v4528_v44  ;;  %12235 = vpow2.f32 %v10170_v11  ;;  %v12232_v32 = vpop.eup %12231  ;;  %vm2672_vm2 = vcmp.eq.f32.partialorder %v2671_v38, 8.507059e+37  ;;  %vm2682_vm5 = vweird.f32 %v13763_v2  ;;  %v2412_v16 = vadd.f32 %v13575_v28, %v13644_v42  ;;  %v3152_v44 = vpop.permute.xlu2 %3151 }
 0x342   : > { %12237 = vrcp.f32 %v13870_v34  ;;  %v2675_v35 = vsel %vm2672_vm2, %v2674_v49, %v2670_v58  ;;  %v2681_v25 = vadd.f32 %v13804_v6, %v2680_v3  ;;  %vm2683_vm6 = vweird.f32 %v13804_v6 }
 0x343   : > { %v13898_v31 = vpop.eup %12233  ;;  %v3410_v11 = vadd.f32 %v3409_v12, %v3408_v23  ;;  %v13904_v38 = vmul.f32 %v3346_v45, %v3152_v44  ;;  %vm13906_vm7 = vcmp.eq.f32.partialorder %v2686_v57, 8.507059e+37  ;;  %v2694_v59 = vsub.f32 1.0, %v2693_v5  ;;  %vm13922_vm8 = vmor %vm2682_vm5, %vm2683_vm6  ;;  %v4463_v5 = vpop.f32.mrf.mxu2 }
 0x344   : > { %10302 = vmatmul.msk.f32.gmra.mxu0 %vm1774_vm3, %v1340_v52  ;;  %v2688_v52 = vand.u32 2147483648, %v13763_v2  ;;  %v2710_v42 = vmul.f32 %v13835_v36, %v2709_v0  ;;  %v2701_v26 = vand.u32 2147483647, %v13802_v63  ;;  %v13912_v58 = vor.u32 1.1754944e-38, %v2703_v14 }
 0x345   : > { %v13914_v3 = vadd.f32 1.0, %v12232_v32  ;;  %v13918_v23 = vmul.f32 %v13710_v13, %v2675_v35  ;;  %v2723_v45 = vmul.f32 %v13898_v31, %v13843_v51  ;;  %v10171_v57 = vmul.f32 -1.442695, %v2412_v16 }
 0x346   : > { %v2689_v46 = vor.u32 1.1754944e-38, %v2688_v52  ;;  %v3416_v0 = vrot.slane %v13866_v10, 2  ;;  %v2685_v52 = vsel %vm13922_vm8, %v13804_v6, %v2681_v25  ;;  %vm2697_vm9 = vweird.f32 %v13802_v63  ;;  %v13947_v25 = vld [vmem:[%s17190_s5] ss:$0 sm:$0xff] }
 0x347   : > { %v12236_v49 = vpop.eup %12235  ;;  %vm2712_vm10 = vweird.f32 %v13774_v48  ;;  %v2718_v2 = vand.u32 2147483648, %v13774_v48  ;;  %v3411_v14 = vrot.slane %v3410_v11, 1  ;;  %v2695_v16 = vmul.f32 %v13861_v56, %v2694_v59 }
 0x348   : > { %v13935_v32 = vpop.eup %12237  ;;  %vm2713_vm11 = vweird.f32 %v13835_v36  ;;  %v2415_v44 = vadd.f32 %v13575_v28, %v13670_v62  ;;  %v2716_v6 = vand.u32 2147483647, %v13774_v48  ;;  %12239 = vrcp.f32 %v13914_v3  ;;  %v13978_v48 = vpop.f32.mrf.mxu0 }
 0x349   : > { %v2417_v35 = vadd.f32 %v13575_v28, %v13726_v19  ;;  %v4464_v12 = vadd.f32 %v13947_v25, %v4463_v5  ;;  %v2724_v59 = vsub.f32 1.0, %v2723_v45  ;;  %12241 = vpow2.f32 %v10171_v57  ;;  %vm13966_vm14 = vmor %vm2712_vm10, %vm2713_vm11  ;;  %17240 = vst [vmem:[#allocation58_spill] sm:$0xff] %v13978_v48  ;;  %v12503_v19 = vld [vmem:[%s12894_s7 + $0x8] sm:$0xff] }
 0x34a   : > { %v3417_v62 = vadd.f32 %v3416_v0, %v13866_v10  ;;  %v2690_v60 = vsel %vm13906_vm7, %v2689_v46, %v2685_v52  ;;  %vm2698_vm12 = vweird.f32 %v13861_v56  ;;  %vm13958_vm13 = vcmp.eq.f32.partialorder %v2701_v26, 8.507059e+37 }
 0x34b   : > { %v2738_v10 = vmul.f32 %v13935_v32, %v13870_v34  ;;  %v4462_v46 = vadd.f32 %v13947_v25, %v13859_v47  ;;  %v2696_v53 = vadd.f32 %v13861_v56, %v2695_v16  ;;  %v2719_v57 = vor.u32 1.1754944e-38, %v2718_v2  ;;  %vm13995_vm2 = vmor %vm2697_vm9, %vm2698_vm12 }
 0x34c   : > { %10303 = vmatmul.msk.f32.gmra.mxu0 %vm1774_vm3, %v1341_v43  ;;  %v2711_v43 = vadd.f32 %v13835_v36, %v2710_v42  ;;  %v13952_v42 = vadd.f32 1.0, %v12236_v49  ;;  %v10172_v5 = vmul.f32 -1.442695, %v2415_v44  ;;  %v10173_v0 = vmul.f32 -1.442695, %v2417_v35  ;;  %v12502_v49 = vld [vmem:[%s12894_s7] sm:$0xff] }
 0x34d   : > { %12243 = vtanh.f32 %v4464_v12  ;;  %v3423_v52 = vrot.slane %v13873_v17, 2  ;;  %v3427_v47 = vsel %vm1774_vm3, %v13875_v22, 0.0  ;;  %vm2717_vm15 = vcmp.eq.f32.partialorder %v2716_v6, 8.507059e+37 }
 0x34e   : > { %v2715_v26 = vsel %vm13966_vm14, %v13835_v36, %v2711_v43  ;;  %v2725_v16 = vmul.f32 %v13898_v31, %v2724_v59  ;;  %12245 = vrcp.f32 %v13952_v42  ;;  %v3418_v36 = vrot.slane %v3417_v62, 1  ;;  %v13987_v2 = vpop.eup %12239 }
 0x34f   : > { %v2720_v43 = vsel %vm2717_vm15, %v2719_v57, %v2715_v26  ;;  %v2739_v44 = vsub.f32 1.0, %v2738_v10  ;;  %12247 = vtanh.f32 %v4462_v46  ;;  %v13989_v35 = vadd.f32 %v3411_v14, %v3410_v11  ;;  %v12242_v12 = vpop.eup %12241  ;;  %v14008_v14 = vpop.permute.xlu0 %3207 }
 0x350   : > { %v2731_v6 = vand.u32 2147483647, %v13843_v51  ;;  %v2733_v59 = vand.u32 2147483648, %v13843_v51  ;;  %12249 = vpow2.f32 %v10172_v5  ;;  %v3428_v45 = vrot.slane %v3427_v47, 4 }
 0x351   : > { %v14002_v10 = vmul.f32 %v13710_v13, %v2690_v60  ;;  %v2700_v11 = vsel %vm13995_vm2, %v13861_v56, %v2696_v53  ;;  %12251 = vpow2.f32 %v10173_v0  ;;  %v3424_v63 = vadd.f32 %v3423_v52, %v13873_v17  ;;  %v3159_v0 = vpop.permute.xlu1 %3158  ;;  %v14029_v52 = vld [vmem:[%s17243_s1] ss:$0 sm:$0xff] }
 0x352   : > { %v3350_v46 = vmul.f32 %v13778_v7, %v2720_v43  ;;  %v2726_v26 = vadd.f32 %v13898_v31, %v2725_v16  ;;  %vm2728_vm5 = vweird.f32 %v13898_v31  ;;  %v14013_v57 = vadd.f32 %v3418_v36, %v3417_v62 }
 0x353   : > { %v12244_v60 = vpop.eup %12243  ;;  %vm4935_vm6 = vcmp.gt.f32.partialorder %v13488_v54, 0.0  ;;  %vm2727_vm7 = vweird.f32 %v13843_v51  ;;  %v2740_v56 = vmul.f32 %v13935_v32, %v2739_v44  ;;  %v2753_v17 = vmul.f32 %v13987_v2, %v13914_v3 }
 0x354   : > { %10305 = vmatmul.msk.f32.vlgmr.msrb.gmra.mxu0 %vm17076_vm1, %v12502_v49  ;;  %v14020_v53 = vadd.f32 1.0, %v12242_v12  ;;  %v14022_v5 = vpop.eup %12245  ;;  %vm14024_vm8 = vcmp.eq.f32.partialorder %v2731_v6, 8.507059e+37  ;;  %v2734_v62 = vor.u32 1.1754944e-38, %v2733_v59  ;;  %v2705_v51 = vsel %vm13958_vm13, %v13912_v58, %v2700_v11  ;;  %vm14036_vm9 = vmor %vm2727_vm7, %vm2728_vm5  ;;  %v4627_v12 = vpop.f32.mrf.mxu3 }
 0x355   : > { %v3429_v16 = vadd.f32 %v3428_v45, %v3427_v47  ;;  %v12248_v36 = vpop.eup %12247  ;;  %v2746_v44 = vand.u32 2147483647, %v13870_v34  ;;  %v14042_v22 = vmul.f32 %v13918_v23, %v3159_v0  ;;  %v3425_v6 = vrot.slane %v3424_v63, 1 }
 0x356   : > { %v3434_v59 = vsel %vm1774_vm3, %v13904_v38, 0.0  ;;  %v12250_v58 = vpop.eup %12249  ;;  %v3382_v47 = vmul.f32 %v3350_v46, %v13780_v21  ;;  %v2730_v45 = vsel %vm14036_vm9, %v13898_v31, %v2726_v26  ;;  %vm2743_vm10 = vweird.f32 %v13935_v32 }
 0x357   : > { %v4529_v11 = vpack.c.bf16 %v12244_v60, %v12248_v36  ;;  %v12252_v39 = vpop.eup %12251  ;;  %v2741_v23 = vadd.f32 %v13935_v32, %v2740_v56  ;;  %v2754_v0 = vsub.f32 1.0, %v2753_v17  ;;  %v2768_v38 = vmul.f32 %v14022_v5, %v13952_v42 }
 0x358   : > { %12253 = vrcp.f32 %v14020_v53  ;;  %v2748_v61 = vand.u32 2147483648, %v13870_v34  ;;  %v4628_v21 = vadd.f32 %v14029_v52, %v4627_v12  ;;  %v14061_v31 = vmul.f32 %v13710_v13, %v2705_v51 }
 0x359   : > { %10295 = vmatmul.msk.bf16.gmra.mxu3 %vm2100_vm4, %v4529_v11  ;;  %v3430_v46 = vrot.slane %v3429_v16, 2  ;;  %v2735_v26 = vsel %vm14024_vm8, %v2734_v62, %v2730_v45  ;;  %vm2742_vm11 = vweird.f32 %v13870_v34  ;;  %v14066_v60 = vadd.f32 1.0, %v12250_v58  ;;  %v3166_v58 = vpop.permute.xlu0 %3165  ;;  %v14095_v45 = vpop.permute.xlu2 %3214 }
 0x35a   : > { %v3435_v56 = vrot.slane %v3434_v59, 4  ;;  %v3462_v17 = vsel %vm1774_vm3, %v3382_v47, 0.0  ;;  %vm14071_vm12 = vmor %vm2742_vm11, %vm2743_vm10  ;;  %v14075_v43 = vadd.f32 1.0, %v12252_v39  ;;  %v14078_v51 = vadd.f32 %v3425_v6, %v3424_v63 }
 0x35b   : > { %v2745_v34 = vsel %vm14071_vm12, %v13935_v32, %v2741_v23  ;;  %vm14083_vm13 = vcmp.eq.f32.partialorder %v2746_v44, 8.507059e+37  ;;  %v2755_v62 = vmul.f32 %v13987_v2, %v2754_v0  ;;  %v2769_v12 = vsub.f32 1.0, %v2768_v38  ;;  %v12504_v23 = vld [vmem:[%s12894_s7 + $0x10] sm:$0xff] }
 0x35c   : > { %10306 = vmatmul.msk.f32.gmra.mxu0 %vm17076_vm1, %v12503_v19  ;;  %v2429_v19 = vpop.f32.mrf.mxu0  ;;  %v3351_v39 = vmul.f32 %v13778_v7, %v2735_v26  ;;  %v2749_v47 = vor.u32 1.1754944e-38, %v2748_v61  ;;  %v3431_v63 = vadd.f32 %v3430_v46, %v3429_v16  ;;  %v3463_v32 = vrot.slane %v3462_v17, 4  ;;  %v4629_v26 = vpop.f32.mrf.mxu3 }
 0x35d   : > { %v2430_v13 = vadd.f32 %v13575_v28, %v2429_v19  ;;  %v14091_v28 = vsel %vm4935_vm6, %v4628_v21, -1e+30  ;;  %12255 = vrcp.f32 %v14066_v60  ;;  %v14099_v44 = vmul.f32 %v14002_v10, %v3166_v58 }
 0x35e   : > { %v14093_v6 = vpop.eup %12253  ;;  %v3436_v11 = vadd.f32 %v3435_v56, %v3434_v59  ;;  %vm4936_vm14 = vcmp.gt.f32.partialorder %v13498_v37, 0.0  ;;  %v2750_v61 = vsel %vm14083_vm13, %v2749_v47, %v2745_v34  ;;  %v2761_v16 = vand.u32 2147483647, %v13914_v3 }
 0x35f   : > { %12257 = vrcp.f32 %v14075_v43  ;;  %v10178_v0 = vmul.f32 -1.442695, %v2430_v13  ;;  %v2756_v38 = vadd.f32 %v13987_v2, %v2755_v62  ;;  %vm2758_vm15 = vweird.f32 %v13987_v2 }
 0x360   : > { %v2770_v10 = vmul.f32 %v14022_v5, %v2769_v12  ;;  %v4999_v59 = vsel %vm1774_vm3, %v14091_v28, -inf  ;;  %v3383_v19 = vmul.f32 %v3351_v39, %v13806_v8  ;;  %v2763_v21 = vand.u32 2147483648, %v13914_v3 }
 0x361   : > { %v2783_v46 = vmul.f32 %v14093_v6, %v14020_v53  ;;  %v3432_v56 = vrot.slane %v3431_v63, 1  ;;  %v14117_v36 = vadd.f32 %v3463_v32, %v3462_v17  ;;  %v3352_v13 = vmul.f32 %v13778_v7, %v2750_v61 }
 0x362   : > { %vm2757_vm2 = vweird.f32 %v13914_v3  ;;  %v3437_v34 = vrot.slane %v3436_v11, 2  ;;  %vm14125_vm6 = vcmp.eq.f32.partialorder %v2761_v16, 8.507059e+37  ;;  %v5000_v62 = vrot.slane %v4999_v59, 4 }
 0x363   : > { %vm14121_vm5 = vmor %vm2757_vm2, %vm2758_vm15  ;;  %12259 = vpow2.f32 %v10178_v0  ;;  %v3441_v17 = vsel %vm1774_vm3, %v14042_v22, 0.0  ;;  %v14131_v12 = vpop.eup %12255  ;;  %v2771_v58 = vadd.f32 %v14022_v5, %v2770_v10  ;;  %vm2773_vm7 = vweird.f32 %v14022_v5 }
 0x364   : > { %10307 = vmatmul.msk.f32.gmra.mxu0 %vm17076_vm1, %v12504_v23  ;;  %v2760_v3 = vsel %vm14121_vm5, %v13987_v2, %v2756_v38  ;;  %v4630_v39 = vadd.f32 %v14029_v52, %v4629_v26  ;;  %v3469_v32 = vsel %vm1774_vm3, %v3383_v19, 0.0  ;;  %v2764_v23 = vor.u32 1.1754944e-38, %v2763_v21  ;;  %v12505_v38 = vld [vmem:[%s12894_s7 + $0x18] sm:$0xff] }
 0x365   : > { %v14139_v47 = vpop.eup %12257  ;;  %v2778_v61 = vand.u32 2147483648, %v13952_v42  ;;  %v2784_v22 = vsub.f32 1.0, %v2783_v46  ;;  %v3384_v16 = vmul.f32 %v3352_v13, %v13841_v27  ;;  %vm2772_vm8 = vweird.f32 %v13952_v42  ;;  %v3173_v27 = vpop.permute.xlu2 %3172 }
 0x366   : > { %v2776_v2 = vand.u32 2147483647, %v13952_v42  ;;  %v3438_v0 = vadd.f32 %v3437_v34, %v3436_v11  ;;  %v2765_v10 = vsel %vm14125_vm6, %v2764_v23, %v2760_v3  ;;  %vm14150_vm9 = vmor %vm2772_vm8, %vm2773_vm7  ;;  %v5001_v19 = vmax.f32 %v4999_v59, %v5000_v62 }
 0x367   : > { %v14154_v21 = vadd.f32 %v3432_v56, %v3431_v63  ;;  %v3442_v46 = vrot.slane %v3441_v17, 4  ;;  %v2775_v42 = vsel %vm14150_vm9, %v14022_v5, %v2771_v58  ;;  %v2798_v11 = vmul.f32 %v14131_v12, %v14066_v60 }
 0x368   : > { %v14163_v13 = vsel %vm4936_vm14, %v4630_v39, -1e+30  ;;  %v2813_v34 = vmul.f32 %v14139_v47, %v14075_v43  ;;  %v3470_v59 = vrot.slane %v3469_v32, 4  ;;  %v2779_v63 = vor.u32 1.1754944e-38, %v2778_v61 }
 0x369   : > { %v12260_v49 = vpop.eup %12259  ;;  %v2785_v56 = vmul.f32 %v14093_v6, %v2784_v22  ;;  %v3381_v8 = vmul.f32 %v14061_v31, %v3173_v27  ;;  %v14170_v62 = vsel %vm1774_vm3, %v3384_v16, 0.0  ;;  %vm2777_vm10 = vcmp.eq.f32.partialorder %v2776_v2, 8.507059e+37 }
 0x36a   : > { %v14172_v5 = vadd.f32 1.0, %v12260_v49  ;;  %v3439_v3 = vrot.slane %v3438_v0, 1  ;;  %v3353_v58 = vmul.f32 %v13778_v7, %v2765_v10  ;;  %v2780_v39 = vsel %vm2777_vm10, %v2779_v63, %v2775_v42 }
 0x36b   : > { %v5006_v23 = vsel %vm1774_vm3, %v14163_v13, -inf  ;;  %v5002_v61 = vrot.slane %v5001_v19, 2  ;;  %v2799_v26 = vsub.f32 1.0, %v2798_v11  ;;  %v2814_v22 = vsub.f32 1.0, %v2813_v34 }
 0x36c   : > { %10308 = vmatmul.msk.f32.gmra.mxu0 %vm17076_vm1, %v12505_v38  ;;  %v14177_v38 = vadd.f32 %v3442_v46, %v3441_v17  ;;  %12261 = vrcp.f32 %v14172_v5  ;;  %v2786_v31 = vadd.f32 %v14093_v6, %v2785_v56  ;;  %vm2788_vm11 = vweird.f32 %v14093_v6  ;;  %v4632_v56 = vpop.f32.mrf.mxu3 }
 0x36d   : > { %v2791_v16 = vand.u32 2147483647, %v14020_v53  ;;  %v2793_v2 = vand.u32 2147483648, %v14020_v53  ;;  %v14184_v10 = vadd.f32 %v3470_v59, %v3469_v32  ;;  %v3354_v27 = vmul.f32 %v13778_v7, %v2780_v39 }
 0x36e   : > { %v2806_v17 = vand.u32 2147483647, %v14066_v60  ;;  %v5007_v46 = vrot.slane %v5006_v23, 4  ;;  %vm2787_vm12 = vweird.f32 %v14020_v53  ;;  %v2808_v11 = vand.u32 2147483648, %v14066_v60 }
 0x36f   : > { %v14191_v34 = vadd.f32 %v3439_v3, %v3438_v0  ;;  %v14194_v49 = vmul.f32 %v3353_v58, %v13950_v33  ;;  %vm14196_vm13 = vmor %vm2787_vm12, %vm2788_vm11  ;;  %v2800_v32 = vmul.f32 %v14131_v12, %v2799_v26  ;;  %v2815_v59 = vmul.f32 %v14139_v47, %v2814_v22 }
 0x370   : > { %v3444_v39 = vrot.slane %v14177_v38, 2  ;;  %v2790_v53 = vsel %vm14196_vm13, %v14093_v6, %v2786_v31  ;;  %vm2792_vm14 = vcmp.eq.f32.partialorder %v2791_v16, 8.507059e+37  ;;  %v2794_v0 = vor.u32 1.1754944e-38, %v2793_v2  ;;  %v4466_v31 = vpop.f32.mrf.mxu2 }
 0x371   : > { %v14206_v3 = vmax.f32 %v5001_v19, %v5002_v61  ;;  %v14209_v58 = vmul.f32 %v3354_v27, %v14008_v14  ;;  %vm2802_vm15 = vweird.f32 %v14066_v60  ;;  %vm14212_vm2 = vcmp.eq.f32.partialorder %v2806_v17, 8.507059e+37 }
 0x372   : > { %v12262_v33 = vpop.eup %12261  ;;  %v14216_v22 = vmax.f32 %v5006_v23, %v5007_v46  ;;  %vm2803_vm5 = vweird.f32 %v14131_v12  ;;  %v2809_v63 = vor.u32 1.1754944e-38, %v2808_v11  ;;  %v4633_v6 = vadd.f32 %v14029_v52, %v4632_v56 }
 0x373   : > { %v2888_v19 = vmul.f32 %v12262_v33, %v14172_v5  ;;  %v2795_v61 = vsel %vm2792_vm14, %v2794_v0, %v2790_v53  ;;  %v2801_v14 = vadd.f32 %v14131_v12, %v2800_v32  ;;  %v2816_v16 = vadd.f32 %v14139_v47, %v2815_v59  ;;  %vm14230_vm8 = vmor %vm2802_vm15, %vm2803_vm5 }
 0x374   : > { %vm2818_vm6 = vweird.f32 %v14139_v47  ;;  %vm2817_vm7 = vweird.f32 %v14075_v43  ;;  %v2821_v23 = vand.u32 2147483647, %v14075_v43  ;;  %v3448_v27 = vsel %vm1774_vm3, %v14099_v44, 0.0 }
 0x375   : > { %v2889_v2 = vsub.f32 1.0, %v2888_v19  ;;  %v2823_v46 = vand.u32 2147483648, %v14075_v43  ;;  %v2898_v11 = vand.u32 2147483648, %v14172_v5  ;;  %v3449_v32 = vrot.slane %v3448_v27, 4  ;;  %vm14238_vm10 = vmor %vm2817_vm7, %vm2818_vm6 }
 0x376   : > { %v3455_v59 = vsel %vm1774_vm3, %v3381_v8, 0.0  ;;  %vm4937_vm9 = vcmp.gt.f32.partialorder %v13513_v24, 0.0  ;;  %vm2893_vm11 = vweird.f32 %v12262_v33  ;;  %v2896_v60 = vand.u32 2147483647, %v14172_v5 }
 0x377   : > { %v2890_v44 = vmul.f32 %v12262_v33, %v2889_v2  ;;  %v3456_v53 = vrot.slane %v3455_v59, 4  ;;  %v3355_v0 = vmul.f32 %v13778_v7, %v2795_v61  ;;  %v2805_v43 = vsel %vm14230_vm8, %v14131_v12, %v2801_v14 }
 0x378   : > { %v2820_v8 = vsel %vm14238_vm10, %v14139_v47, %v2816_v16  ;;  %v3450_v19 = vadd.f32 %v3449_v32, %v3448_v27  ;;  %vm2892_vm12 = vweird.f32 %v14172_v5  ;;  %v3465_v2 = vrot.slane %v14117_v36, 2 }
 0x379   : > { %v2891_v42 = vadd.f32 %v12262_v33, %v2890_v44  ;;  %v3457_v20 = vadd.f32 %v3456_v53, %v3455_v59  ;;  %v2824_v48 = vor.u32 1.1754944e-38, %v2823_v46  ;;  %vm2894_vm13 = vmor %vm2892_vm12, %vm2893_vm11  ;;  %v2899_v40 = vor.u32 1.1754944e-38, %v2898_v11  ;;  %v4468_v46 = vpop.f32.mrf.mxu2 }
 0x37a   : > { %v3451_v15 = vrot.slane %v3450_v19, 2  ;;  %v3472_v61 = vrot.slane %v14184_v10, 2  ;;  %v2810_v12 = vsel %vm14212_vm2, %v2809_v63, %v2805_v43  ;;  %vm2822_vm14 = vcmp.eq.f32.partialorder %v2821_v23, 8.507059e+37  ;;  %v3229_v43 = vpop.permute.xlu0 %3228 }
 0x37b   : > { %v2895_v14 = vsel %vm2894_vm13, %v12262_v33, %v2891_v42  ;;  %vm2897_vm15 = vcmp.eq.f32.partialorder %v2896_v60, 8.507059e+37  ;;  %v2825_v16 = vsel %vm2822_vm14, %v2824_v48, %v2820_v8  ;;  %v3445_v27 = vadd.f32 %v3444_v39, %v14177_v38 }
 0x37c   : > { %v2900_v47 = vsel %vm2897_vm15, %v2899_v40, %v2895_v14  ;;  %v3458_v5 = vrot.slane %v3457_v20, 2  ;;  %v3452_v32 = vadd.f32 %v3451_v15, %v3450_v19  ;;  %v3466_v11 = vadd.f32 %v3465_v2, %v14117_v36 }
 0x37d   : > { %v14257_v17 = vmul.f32 %v13851_v29, %v2900_v47  ;;  %v17266_v59 = vrot.slane %v14170_v62, 4  ;;  %v3356_v63 = vmul.f32 %v13778_v7, %v2810_v12  ;;  %v3387_v42 = vmul.f32 %v3355_v0, %v14095_v45 }
 0x37e   : > { %v3473_v40 = vadd.f32 %v3472_v61, %v14184_v10  ;;  %v3483_v48 = vsel %vm1774_vm3, %v14194_v49, 0.0  ;;  %v5004_v38 = vrot.slane %v14206_v3, 1  ;;  %v5009_v39 = vrot.slane %v14216_v22, 2  ;;  %v3222_v10 = vpop.permute.xlu1 %3221 }
 0x37f   : > { %v3478_v26 = vadd.f32 %v17266_v59, %v14170_v62  ;;  %v4467_v15 = vadd.f32 %v13947_v25, %v4466_v31  ;;  %v3459_v36 = vadd.f32 %v3458_v5, %v3457_v20  ;;  %v14273_v33 = vsel %vm4937_vm9, %v4633_v6, -1e+30  ;;  %v14280_v5 = vpop.f32.mrf.mxu3 }
 0x380   : > { %v4469_v62 = vadd.f32 %v13947_v25, %v4468_v46  ;;  %v3357_v45 = vmul.f32 %v13778_v7, %v2825_v16  ;;  %v3446_v23 = vrot.slane %v3445_v27, 1  ;;  %v3453_v56 = vrot.slane %v3452_v32, 1 }
 0x381   : > { %v3467_v44 = vrot.slane %v3466_v11, 1  ;;  %v3479_v49 = vrot.slane %v3478_v26, 2  ;;  %v3484_v60 = vrot.slane %v3483_v48, 4  ;;  %v3388_v53 = vmul.f32 %v3356_v63, %v3222_v10 }
 0x382   : > { %v3474_v0 = vrot.slane %v3473_v40, 1  ;;  %v3490_v31 = vsel %vm1774_vm3, %v14209_v58, 0.0  ;;  %v3497_v20 = vsel %vm1774_vm3, %v3387_v42, 0.0  ;;  %12263 = vtanh.f32 %v4467_v15 }
 0x383   : > { %v3460_v6 = vrot.slane %v3459_v36, 1  ;;  %v3480_v8 = vadd.f32 %v3479_v49, %v3478_v26  ;;  %v3485_v19 = vadd.f32 %v3484_v60, %v3483_v48  ;;  %12265 = vtanh.f32 %v4469_v62 }
 0x384   : > { %v3389_v7 = vmul.f32 %v3357_v45, %v3229_v43  ;;  %v3491_v2 = vrot.slane %v3490_v31, 4  ;;  %v3498_v61 = vrot.slane %v3497_v20, 4  ;;  %v3447_v12 = vadd.f32 %v3446_v23, %v3445_v27 }
 0x385   : > { %v3454_v14 = vadd.f32 %v3453_v56, %v3452_v32  ;;  %v3468_v47 = vadd.f32 %v3467_v44, %v3466_v11  ;;  %v3486_v16 = vrot.slane %v3485_v19, 2  ;;  %v3475_v46 = vadd.f32 %v3474_v0, %v3473_v40 }
 0x386   : > { %v3492_v59 = vadd.f32 %v3491_v2, %v3490_v31  ;;  %v3499_v58 = vadd.f32 %v3498_v61, %v3497_v20  ;;  %v3504_v63 = vsel %vm1774_vm3, %v3388_v53, 0.0  ;;  %v3461_v42 = vadd.f32 %v3460_v6, %v3459_v36 }
 0x387   : > { %v3481_v15 = vrot.slane %v3480_v8, 1  ;;  %v3487_v10 = vadd.f32 %v3486_v16, %v3485_v19  ;;  %v3505_v26 = vrot.slane %v3504_v63, 4  ;;  %v3511_v45 = vsel %vm1774_vm3, %v3389_v7, 0.0  ;;  %v14295_v16 = vpop.f32.mrf.mxu3 }
 0x388   : > { %v3493_v48 = vrot.slane %v3492_v59, 2  ;;  %v3500_v62 = vrot.slane %v3499_v58, 2  ;;  %vm6008_vm2 = vcmask 1041409   ;;  %v12264_v27 = vpop.eup %12263  ;;  %v3512_v23 = vrot.slane %v3511_v45, 4 }
 0x389   : > { %v3488_v32 = vrot.slane %v3487_v10, 1  ;;  %v3506_v11 = vadd.f32 %v3505_v26, %v3504_v63  ;;  %v6009_v40 = vsel %vm6008_vm2, %v14013_v57, %v13989_v35  ;;  %v12266_v56 = vpop.eup %12265  ;;  %vm6010_vm5 = vcmask 1042434   ;;  %v14306_v26 = vld [vmem:[%s17198_s3] ss:$0 sm:$0xff] }
 0x38a   : > { %v3494_v44 = vadd.f32 %v3493_v48, %v3492_v59  ;;  %v3501_v49 = vadd.f32 %v3500_v62, %v3499_v58  ;;  %vm6012_vm6 = vcmask 1043459   ;;  %v3482_v36 = vadd.f32 %v3481_v15, %v3480_v8 }
 0x38b   : > { %v3507_v60 = vrot.slane %v3506_v11, 2  ;;  %v3513_v53 = vadd.f32 %v3512_v23, %v3511_v45  ;;  %v6011_v0 = vsel %vm6010_vm5, %v14078_v51, %v6009_v40  ;;  %vm6014_vm7 = vcmask 1044484  }
 0x38c   : > { %v3495_v31 = vrot.slane %v3494_v44, 1  ;;  %v3502_v20 = vrot.slane %v3501_v49, 1  ;;  %v6013_v43 = vsel %vm6012_vm6, %v14154_v21, %v6011_v0  ;;  %vm6016_vm8 = vcmask 1045509  }
 0x38d   : > { %v3508_v6 = vadd.f32 %v3507_v60, %v3506_v11  ;;  %v3514_v19 = vrot.slane %v3513_v53, 2  ;;  %v6015_v35 = vsel %vm6014_vm7, %v14191_v34, %v6013_v43  ;;  %v3489_v57 = vadd.f32 %v3488_v32, %v3487_v10 }
 0x38e   : > { %v3496_v7 = vadd.f32 %v3495_v31, %v3494_v44  ;;  %v6017_v8 = vsel %vm6016_vm8, %v3447_v12, %v6015_v35  ;;  %vm17092_vm9 = vcmask 1046534   ;;  %vm17078_vm10 = vcmask 1047559  }
 0x38f   : > { %v3509_v2 = vrot.slane %v3508_v6, 1  ;;  %v3515_v51 = vadd.f32 %v3514_v19, %v3513_v53  ;;  %v6019_v61 = vsel %vm17092_vm9, %v3454_v14, %v6017_v8  ;;  %v3503_v21 = vadd.f32 %v3502_v20, %v3501_v49 }
 0x390   : > { %v6021_v59 = vsel %vm17078_vm10, %v3461_v42, %v6019_v61  ;;  %v6022_v58 = vsel %vm6008_vm2, %v3475_v46, %v3468_v47  ;;  %v4530_v34 = vpack.c.bf16 %v12266_v56, %v12264_v27  ;;  %v5013_v63 = vsel %vm1774_vm3, %v14273_v33, -inf  ;;  %v14310_v42 = vpop.f32.mrf.mxu0  ;;  %v4471_v47 = vpop.f32.mrf.mxu2 }
 0x391   : > { %v3510_v15 = vadd.f32 %v3509_v2, %v3508_v6  ;;  %v3516_v12 = vrot.slane %v3515_v51, 1  ;;  %v6023_v10 = vsel %vm6010_vm5, %v3482_v36, %v6022_v58  ;;  %v5010_v14 = vmax.f32 %v14216_v22, %v5009_v39 }
 0x392   : > { %v2420_v48 = vadd.f32 %v14306_v26, %v13784_v18  ;;  %v6024_v46 = vsel %vm6012_vm6, %v3489_v57, %v6023_v10  ;;  %10296 = vmatmul.msk.bf16.gmra.mxu3 %vm2100_vm4, %v4530_v34  ;;  %v5005_v62 = vmax.f32 %v14206_v3, %v5004_v38  ;;  %v5014_v22 = vrot.slane %v5013_v63, 4  ;;  %v14326_v38 = vpop.f32.mrf.mxu3 }
 0x393   : > { %v3517_v45 = vadd.f32 %v3516_v12, %v3515_v51  ;;  %v6025_v27 = vsel %vm6014_vm7, %v3496_v7, %v6024_v46  ;;  %v5011_v18 = vrot.slane %v5010_v14, 1  ;;  %v4635_v56 = vadd.f32 %v14029_v52, %v14280_v5 }
 0x394   : > { %v6026_v39 = vsel %vm6016_vm8, %v3503_v21, %v6025_v27  ;;  %v10174_v11 = vmul.f32 -1.442695, %v2420_v48  ;;  %v5223_v40 = vsub.f32 %v14091_v28, %v5005_v62  ;;  %v5015_v49 = vmax.f32 %v5013_v63, %v5014_v22 }
 0x395   : > { %v6027_v32 = vsel %vm17092_vm9, %v3510_v15, %v6026_v39  ;;  %vm4938_vm11 = vcmp.gt.f32.partialorder %v13520_v41, 0.0  ;;  %v5012_v3 = vmax.f32 %v5010_v14, %v5011_v18  ;;  %v4472_v57 = vadd.f32 %v13947_v25, %v4471_v47 }
 0x396   : > { %v6028_v23 = vsel %vm17078_vm10, %v3517_v45, %v6027_v32  ;;  %12267 = vpow2.f32 %v10174_v11  ;;  %v5255_v36 = vmul.f32 1.442695, %v5223_v40  ;;  %v14328_v60 = vsel %vm4938_vm11, %v4635_v56, -1e+30 }
 0x397   : > { %v11922_v44 = vpack.i.bf16 %v6028_v23, %v6021_v59  ;;  %v5016_v53 = vrot.slane %v5015_v49, 2  ;;  %v5224_v5 = vsub.f32 %v14163_v13, %v5012_v3  ;;  %v5020_v20 = vsel %vm1774_vm3, %v14328_v60, -inf }
 0x398   : > { %v2434_v0 = vpop.f32.mrf.mxu0  ;;  %v4473_v28 = vpop.f32.mrf.mxu2  ;;  %12269 = vpow2.f32 %v5255_v36  ;;  %v5021_v7 = vrot.slane %v5020_v20, 4  ;;  %v2422_v8 = vadd.f32 %v14306_v26, %v13847_v55  ;;  %v4638_v12 = vadd.f32 %v14029_v52, %v14295_v16 }
 0x399   : > { %11923 = vrot.lane.b32.xlu2 %v11922_v44, %s17093_s8  ;;  %v2435_v31 = vadd.f32 %v14306_v26, %v2434_v0  ;;  %v4474_v43 = vadd.f32 %v13947_v25, %v4473_v28  ;;  %v5017_v35 = vmax.f32 %v5015_v49, %v5016_v53  ;;  %v5257_v2 = vmul.f32 1.442695, %v5224_v5  ;;  %s17327_s8 = sld [smem:[#allocation22_spill]] }
 0x39a   : > { %v14340_v61 = vpop.f32.mrf.mxu3  ;;  %v5022_v59 = vmax.f32 %v5020_v20, %v5021_v7  ;;  %v10175_v58 = vmul.f32 -1.442695, %v2422_v8  ;;  %vm4939_vm12 = vcmp.gt.f32.partialorder %v13540_v9, 0.0  ;;  %vm4940_vm14 = vcmp.gt.f32.partialorder %v13547_v1, 0.0 }
 0x39b   : > { %v10180_v6 = vmul.f32 -1.442695, %v2435_v31  ;;  %v5018_v13 = vrot.slane %v5017_v35, 1  ;;  %v4640_v31 = vadd.f32 %v14029_v52, %v14326_v38 }
 0x39c   : > { %v12268_v19 = vpop.eup %12267  ;;  %v5023_v14 = vrot.slane %v5022_v59, 2 }
 0x39d   : > { %12271 = vpow2.f32 %v10180_v6  ;;  %v14338_v51 = vadd.f32 1.0, %v12268_v19  ;;  %v5019_v55 = vmax.f32 %v5017_v35, %v5018_v13  ;;  %v14379_v38 = vsel %vm4940_vm14, %v4640_v31, -1e+30 }
 0x39e   : > { %12273 = vtanh.f32 %v4474_v43  ;;  %v12270_v21 = vpop.eup %12269  ;;  %v5024_v22 = vmax.f32 %v5022_v59, %v5023_v14 }
 0x39f   : > { %12275 = vtanh.f32 %v4472_v57  ;;  %v14344_v15 = vmul.f32 %v12270_v21, %v13488_v54  ;;  %v5225_v45 = vsub.f32 %v14273_v33, %v5019_v55  ;;  %v14352_v54 = vsel %vm4939_vm12, %v4638_v12, -1e+30 }
 0x3a0   : > { %12277 = vpow2.f32 %v5257_v2  ;;  %v5027_v11 = vsel %vm1774_vm3, %v14352_v54, -inf  ;;  %v5025_v56 = vrot.slane %v5024_v22, 1  ;;  %v14366_v49 = vpop.f32.mrf.mxu0  ;;  %v2425_v57 = vadd.f32 %v14306_v26, %v13902_v4 }
 0x3a1   : > { %12279 = vrcp.f32 %v14338_v51  ;;  %v5400_v62 = vsel %vm1774_vm3, %v14344_v15, 0.0  ;;  %v5259_v40 = vmul.f32 1.442695, %v5225_v45  ;;  %v5028_v36 = vrot.slane %v5027_v11, 4 }
 0x3a2   : > { %12281 = vpow2.f32 %v10175_v58  ;;  %v14357_v16 = vpop.f32.mrf.mxu3  ;;  %v5401_v32 = vrot.slane %v5400_v62, 4  ;;  %v5026_v20 = vmax.f32 %v5024_v22, %v5025_v56  ;;  %v10176_v4 = vmul.f32 -1.442695, %v2425_v57  ;;  %v12507_v57 = vld [vmem:[%s17214_s4] ss:$0 sm:$0xff]  ;;  %s17359_s4 = sld [smem:[#allocation24_spill]] }
 0x3a3   : > { %v12272_v34 = vpop.eup %12271  ;;  %v5029_v19 = vmax.f32 %v5027_v11, %v5028_v36  ;;  %vm2832_vm14 = vweird.f32 %v14338_v51  ;;  %v2836_v22 = vand.u32 2147483647, %v14338_v51 }
 0x3a4   : > { %v12274_v63 = vpop.eup %12273  ;;  %v2577_v10 = vadd.f32 1.0, %v12272_v34  ;;  %v5402_v53 = vadd.f32 %v5401_v32, %v5400_v62  ;;  %v5226_v59 = vsub.f32 %v14328_v60, %v5026_v20  ;;  %v4476_v60 = vpop.f32.mrf.mxu2 }
 0x3a5   : > { %v12276_v48 = vpop.eup %12275 }
 0x3a6   : > { %12283 = vrcp.f32 %v2577_v10  ;;  %v4531_v47 = vpack.c.bf16 %v12274_v63, %v12276_v48  ;;  %v12278_v46 = vpop.eup %12277  ;;  %v2928_v5 = vand.u32 2147483648, %v2577_v10  ;;  %v2926_v6 = vand.u32 2147483647, %v2577_v10 }
 0x3a7   : > { %v14354_v27 = vpop.eup %12279  ;;  %v14360_v18 = vmul.f32 %v12278_v46, %v13498_v37  ;;  %12285 = vpow2.f32 %v5259_v40  ;;  %v5403_v35 = vrot.slane %v5402_v53, 2  ;;  %vm2922_vm15 = vweird.f32 %v2577_v10 }
 0x3a8   : > { %10297 = vmatmul.msk.bf16.gmra.mxu3 %vm2100_vm4, %v4531_v47  ;;  %v12282_v39 = vpop.eup %12281  ;;  %v2828_v33 = vmul.f32 %v14354_v27, %v14338_v51  ;;  %v2929_v21 = vor.u32 1.1754944e-38, %v2928_v5  ;;  %vm2927_vm12 = vcmp.eq.f32.partialorder %v2926_v6, 8.507059e+37  ;;  %v5030_v63 = vrot.slane %v5029_v19, 2  ;;  %v2439_v48 = vpop.f32.mrf.mxu0 }
 0x3a9   : > { %v14368_v3 = vadd.f32 1.0, %v12282_v39  ;;  %v5407_v37 = vsel %vm1774_vm3, %v14360_v18, 0.0  ;;  %v5404_v12 = vadd.f32 %v5403_v35, %v5402_v53  ;;  %v2440_v45 = vadd.f32 %v14306_v26, %v2439_v48 }
 0x3aa   : > { %v2829_v28 = vsub.f32 1.0, %v2828_v33  ;;  %v5408_v8 = vrot.slane %v5407_v37, 4  ;;  %v14381_v13 = vpop.f32.mrf.mxu3  ;;  %v2838_v39 = vand.u32 2147483648, %v14338_v51  ;;  %v5261_v32 = vmul.f32 1.442695, %v5226_v59 }
 0x3ab   : > { %12287 = vrcp.f32 %v14368_v3  ;;  %v10182_v33 = vmul.f32 -1.442695, %v2440_v45  ;;  %v5405_v56 = vrot.slane %v5404_v12, 1  ;;  %v17268_v45 = vld [vmem:[#allocation34_spill] sm:$0xff] }
 0x3ac   : > { %v12284_v23 = vpop.eup %12283  ;;  %v2830_v2 = vmul.f32 %v14354_v27, %v2829_v28  ;;  %v5409_v46 = vadd.f32 %v5408_v8, %v5407_v37  ;;  %12289 = vpow2.f32 %v10176_v4  ;;  %v2839_v37 = vor.u32 1.1754944e-38, %v2838_v39 }
 0x3ad   : > { %v2918_v44 = vmul.f32 %v12284_v23, %v2577_v10  ;;  %vm2923_vm13 = vweird.f32 %v12284_v23  ;;  %v12286_v34 = vpop.eup %12285  ;;  %v5034_v10 = vsel %vm1774_vm3, %v14379_v38, -inf  ;;  %12291 = vpow2.f32 %v10182_v33 }
 0x3ae   : > { %vm2924_vm11 = vmor %vm2922_vm15, %vm2923_vm13  ;;  %v2831_v62 = vadd.f32 %v14354_v27, %v2830_v2  ;;  %vm2833_vm13 = vweird.f32 %v14354_v27  ;;  %v14398_v11 = vmul.f32 %v12286_v34, %v13513_v24  ;;  %v5035_v40 = vrot.slane %v5034_v10, 4 }
 0x3af   : > { %v2919_v0 = vsub.f32 1.0, %v2918_v44  ;;  %vm2834_vm15 = vmor %vm2832_vm14, %vm2833_vm13  ;;  %v5410_v36 = vrot.slane %v5409_v46, 2  ;;  %12293 = vpow2.f32 %v5261_v32  ;;  %v5406_v31 = vadd.f32 %v5405_v56, %v5404_v12 }
 0x3b0   : > { %17267 = vst [vmem:[#allocation59_spill] sm:$0xff] %v14398_v11  ;;  %v2835_v53 = vsel %vm2834_vm15, %v14354_v27, %v2831_v62  ;;  %v5414_v24 = vsel %vm1774_vm3, %v14398_v11, 0.0  ;;  %v14407_v27 = vadd.f32 %v12507_v57, %v12994_v50  ;;  %v2851_v12 = vand.u32 2147483647, %v14368_v3 }
 0x3b1   : > { %v2920_v43 = vmul.f32 %v12284_v23, %v2919_v0  ;;  %v14389_v47 = vpop.eup %12287  ;;  %v5036_v0 = vmax.f32 %v5034_v10, %v5035_v40  ;;  %v2853_v4 = vand.u32 2147483648, %v14368_v3  ;;  %v3236_v10 = vpop.permute.xlu1 %3235  ;;  %vm4943_vm13 = vcmp.gt.f32.partialorder %v17268_v45, 0.0  ;;  %v17270_v40 = vld [vmem:[#allocation33_spill] sm:$0xff] }
 0x3b2   : > { %v2843_v44 = vmul.f32 %v14389_v47, %v14368_v3  ;;  %v4649_v28 = vpop.f32.mrf.mxu3  ;;  %v12290_v6 = vpop.eup %12289  ;;  %vm4944_vm14 = vcmp.gt.f32.partialorder %v17270_v40, 0.0  ;;  %vm2848_vm15 = vweird.f32 %v14389_v47  ;;  %vm14437_vm1 = vcmp.eq.f32.partialorder %v2851_v12, 8.507059e+37 }
 0x3b3   : > { %v2921_v7 = vadd.f32 %v12284_v23, %v2920_v43  ;;  %v5411_v43 = vadd.f32 %v5410_v36, %v5409_v46  ;;  %v12292_v35 = vpop.eup %12291  ;;  %v5037_v2 = vrot.slane %v5036_v0, 2  ;;  %v14416_v50 = vadd.f32 1.0, %v12290_v6  ;;  %v17273_v36 = vld [vmem:[#allocation58_spill] sm:$0xff] }
 0x3b4   : > { %v2844_v20 = vsub.f32 1.0, %v2843_v44  ;;  %v4643_v46 = vadd.f32 %v14029_v52, %v14340_v61  ;;  %v14431_v61 = vld [vmem:[%s17190_s5] ss:$0 sm:$0xff]  ;;  %v4648_v6 = vadd.f32 %v14029_v52, %v14381_v13  ;;  %s17441_s5 = smov 64  }
 0x3b5   : > { %v2925_v58 = vsel %vm2924_vm11, %v12284_v23, %v2921_v7  ;;  %v5031_v23 = vmax.f32 %v5029_v19, %v5030_v63  ;;  %vm2837_vm11 = vcmp.eq.f32.partialorder %v2836_v22, 8.507059e+37  ;;  %v5415_v19 = vrot.slane %v5414_v24, 4  ;;  %v12294_v59 = vpop.eup %12293 }
 0x3b6   : > { %v2930_v55 = vsel %vm2927_vm12, %v2929_v21, %v2925_v58  ;;  %v2840_v5 = vsel %vm2837_vm11, %v2839_v37, %v2835_v53  ;;  %v4478_v21 = vpop.f32.mrf.mxu2  ;;  %vm4941_vm12 = vcmp.gt.f32.partialorder %v13558_v30, 0.0  ;;  %v5624_v58 = vmax.f32 %v5406_v31, 1e-20 }
 0x3b7   : > { %v14387_v14 = vmul.f32 %v13851_v29, %v2930_v55  ;;  %v5032_v51 = vrot.slane %v5031_v23, 1  ;;  %v3358_v7 = vmul.f32 %v13851_v29, %v2840_v5  ;;  %v2845_v34 = vmul.f32 %v14389_v47, %v2844_v20 }
 0x3b8   : > { %v14412_v63 = vadd.f32 1.0, %v12292_v35  ;;  %v5412_v55 = vrot.slane %v5411_v43, 1  ;;  %v5416_v48 = vadd.f32 %v5415_v19, %v5414_v24  ;;  %v4479_v62 = vadd.f32 %v13947_v25, %v4478_v21  ;;  %v17277_v19 = vld [vmem:[#allocation41_spill] sm:$0xff] }
 0x3b9   : > { %v5033_v8 = vmax.f32 %v5031_v23, %v5032_v51  ;;  %v3390_v22 = vmul.f32 %v3358_v7, %v3236_v10  ;;  %v14424_v39 = vmul.f32 %v12294_v59, %v13520_v41  ;;  %v5038_v23 = vmax.f32 %v5036_v0, %v5037_v2 }
 0x3ba   : > { %12295 = vrcp.f32 %v14412_v63  ;;  %v2846_v33 = vadd.f32 %v14389_v47, %v2845_v34  ;;  %v4477_v25 = vadd.f32 %v14431_v61, %v4476_v60  ;;  %v14434_v56 = vadd.f32 %v5412_v55, %v5411_v43  ;;  %v17274_v60 = vld [vmem:[#allocation35_spill] sm:$0xff] }
 0x3bb   : > { %17269 = vst [vmem:[#allocation34_spill] sm:$0xff] %v14424_v39  ;;  %v5227_v32 = vsub.f32 %v14352_v54, %v5033_v8  ;;  %12297 = vrcp.f32 %v5624_v58  ;;  %vm2847_vm11 = vweird.f32 %v14368_v3  ;;  %v4652_v54 = vpop.f32.mrf.mxu3  ;;  %v5417_v44 = vrot.slane %v5416_v48, 2 }
 0x3bc   : > { %12299 = vrcp.f32 %v14416_v50  ;;  %v2427_v53 = vadd.f32 %v14306_v26, %v17273_v36  ;;  %v14446_v37 = vsel %vm4941_vm12, %v4643_v46, -1e+30  ;;  %vm4945_vm0 = vcmp.gt.f32.partialorder %v17274_v60, 0.0  ;;  %vm14456_vm10 = vmor %vm2847_vm11, %vm2848_vm15 }
 0x3bd   : > { %12301 = vtanh.f32 %v4479_v62  ;;  %v14450_v3 = vsel %vm1774_vm3, %v3390_v22, 0.0  ;;  %v5421_v24 = vsel %vm1774_vm3, %v14424_v39, 0.0  ;;  %v5263_v0 = vmul.f32 1.442695, %v5227_v32 }
 0x3be   : > { %v5039_v31 = vrot.slane %v5038_v23, 1  ;;  %v2850_v20 = vsel %vm14456_vm10, %v14389_v47, %v2846_v33  ;;  %v2854_v43 = vor.u32 1.1754944e-38, %v2853_v4  ;;  %12303 = vtanh.f32 %v4477_v25 }
 0x3bf   : > { %vm4942_vm12 = vcmp.gt.f32.partialorder %v17277_v19, 0.0  ;;  %v5625_v35 = vmax.f32 %v14434_v56, 1e-20  ;;  %v5041_v57 = vsel %vm1774_vm3, %v14446_v37, -inf  ;;  %v4650_v7 = vadd.f32 %v14029_v52, %v4649_v28  ;;  %v14494_v56 = vld [vmem:[%s17243_s1] ss:$0 sm:$0xff] }
 0x3c0   : > { %v12296_v5 = vpop.eup %12295  ;;  %v14473_v21 = vadd.f32 %v5417_v44, %v5416_v48  ;;  %v3519_v47 = vrot.slane %v14450_v3, 4  ;;  %v5422_v59 = vrot.slane %v5421_v24, 4  ;;  %v10177_v13 = vmul.f32 -1.442695, %v2427_v53 }
 0x3c1   : > { %v2948_v8 = vmul.f32 %v12296_v5, %v14412_v63  ;;  %v14471_v2 = vpop.eup %12297  ;;  %v2855_v34 = vsel %vm14437_vm1, %v2854_v43, %v2850_v20  ;;  %12305 = vpow2.f32 %v5263_v0  ;;  %v5040_v55 = vmax.f32 %v5038_v23, %v5039_v31 }
 0x3c2   : > { %17278 = vst [vmem:[#allocation33_spill] sm:$0xff] %v14471_v2  ;;  %v14476_v58 = vpop.eup %12299  ;;  %v5042_v4 = vrot.slane %v5041_v57, 4  ;;  %v14482_v10 = vsel %vm4943_vm13, %v4648_v6, -1e+30  ;;  %v4653_v48 = vadd.f32 %v14029_v52, %v4652_v54  ;;  %v2958_v46 = vand.u32 2147483648, %v14412_v63 }
 0x3c3   : > { %v2949_v12 = vsub.f32 1.0, %v2948_v8  ;;  %v12302_v28 = vpop.eup %12301  ;;  %v14488_v62 = vsel %vm4944_vm14, %v4650_v7, -1e+30  ;;  %vm2953_vm1 = vweird.f32 %v12296_v5  ;;  %v2956_v32 = vand.u32 2147483647, %v14412_v63  ;;  %v4654_v44 = vpop.f32.mrf.mxu3 }
 0x3c4   : > { %v12304_v23 = vpop.eup %12303  ;;  %v5423_v33 = vadd.f32 %v5422_v59, %v5421_v24  ;;  %v2858_v25 = vmul.f32 %v14476_v58, %v14416_v50  ;;  %12307 = vpow2.f32 %v10177_v13  ;;  %v4645_v52 = vadd.f32 %v14494_v56, %v14357_v16  ;;  %v14516_v8 = vpop.f32.mrf.mxu0 }
 0x3c5   : > { %v2950_v22 = vmul.f32 %v12296_v5, %v2949_v12  ;;  %v5055_v41 = vsel %vm1774_vm3, %v14482_v10, -inf  ;;  %vm2952_vm10 = vweird.f32 %v14412_v63  ;;  %v4532_v36 = vpack.c.bf16 %v12302_v28, %v12304_v23  ;;  %v17279_v12 = vld [vmem:[#allocation36_spill] sm:$0xff] }
 0x3c6   : > { %v5228_v53 = vsub.f32 %v14379_v38, %v5040_v55  ;;  %v5062_v24 = vsel %vm1774_vm3, %v14488_v62, -inf  ;;  %v14506_v51 = vsel %vm4945_vm0, %v4653_v48, -1e+30  ;;  %vm2954_vm13 = vmor %vm2952_vm10, %vm2953_vm1  ;;  %v2959_v16 = vor.u32 1.1754944e-38, %v2958_v46 }
 0x3c7   : > { %v2951_v54 = vadd.f32 %v12296_v5, %v2950_v22  ;;  %v12306_v0 = vpop.eup %12305  ;;  %v5419_v31 = vrot.slane %v14473_v21, 1  ;;  %v5043_v20 = vmax.f32 %v5041_v57, %v5042_v4  ;;  %vm2957_vm14 = vcmp.eq.f32.partialorder %v2956_v32, 8.507059e+37  ;;  %10298 = vmatmul.msk.bf16.gmra.mxu3 %vm2100_vm4, %v4532_v36  ;;  %v3243_v4 = vpop.permute.xlu2 %3242 }
 0x3c8   : > { %v3359_v38 = vmul.f32 %v13851_v29, %v2855_v34  ;;  %v14514_v63 = vsel %vm4942_vm12, %v4645_v52, -1e+30  ;;  %v5056_v6 = vrot.slane %v5055_v41, 4  ;;  %v2859_v59 = vsub.f32 1.0, %v2858_v25 }
 0x3c9   : > { %v2955_v43 = vsel %vm2954_vm13, %v12296_v5, %v2951_v54  ;;  %v5063_v13 = vrot.slane %v5062_v24, 4  ;;  %v5069_v55 = vsel %vm1774_vm3, %v14506_v51, -inf  ;;  %vm4946_vm0 = vcmp.gt.f32.partialorder %v17279_v12, 0.0 }
 0x3ca   : > { %v2960_v7 = vsel %vm2957_vm14, %v2959_v16, %v2955_v43  ;;  %v12308_v57 = vpop.eup %12307  ;;  %12309 = vrcp.f32 %v5625_v35  ;;  %v5424_v34 = vrot.slane %v5423_v33, 2  ;;  %v5265_v28 = vmul.f32 1.442695, %v5228_v53 }
 0x3cb   : > { %v14521_v5 = vmul.f32 %v14407_v27, %v2960_v7  ;;  %v14525_v48 = vmul.f32 %v12306_v0, %v13540_v9  ;;  %v5044_v46 = vrot.slane %v5043_v20, 2  ;;  %v5048_v22 = vsel %vm1774_vm3, %v14514_v63, -inf  ;;  %v17281_v7 = vld [vmem:[#allocation37_spill] sm:$0xff] }
 0x3cc   : > { %v4655_v32 = vadd.f32 %v14494_v56, %v4654_v44  ;;  %v3391_v23 = vmul.f32 %v3359_v38, %v3243_v4  ;;  %vm2862_vm15 = vweird.f32 %v14416_v50  ;;  %v2866_v25 = vand.u32 2147483647, %v14416_v50  ;;  %v4481_v38 = vpop.f32.mrf.mxu2 }
 0x3cd   : > { %17280 = vst [vmem:[#allocation58_spill] sm:$0xff] %v14525_v48  ;;  %v5057_v52 = vmax.f32 %v5055_v41, %v5056_v6  ;;  %v5070_v54 = vrot.slane %v5069_v55, 4  ;;  %v5420_v35 = vadd.f32 %v5419_v31, %v14473_v21  ;;  %v14536_v9 = vadd.f32 %v3519_v47, %v14450_v3  ;;  %v4657_v47 = vpop.f32.mrf.mxu3 }
 0x3ce   : > { %v2860_v36 = vmul.f32 %v14476_v58, %v2859_v59  ;;  %v5064_v53 = vmax.f32 %v5062_v24, %v5063_v13  ;;  %v5425_v16 = vadd.f32 %v5424_v34, %v5423_v33  ;;  %v2868_v44 = vand.u32 2147483648, %v14416_v50 }
 0x3cf   : > { %v14540_v0 = vadd.f32 1.0, %v12308_v57  ;;  %v5049_v43 = vrot.slane %v5048_v22, 4  ;;  %vm4947_vm11 = vcmp.gt.f32.partialorder %v17281_v7, 0.0  ;;  %v5428_v21 = vsel %vm1774_vm3, %v14525_v48, 0.0 }
 0x3d0   : > { %12311 = vpow2.f32 %v5265_v28  ;;  %v5045_v41 = vmax.f32 %v5043_v20, %v5044_v46  ;;  %v14547_v3 = vsel %vm4946_vm0, %v4655_v32, -1e+30  ;;  %v14549_v24 = vpop.eup %12309  ;;  %v3525_v33 = vsel %vm1774_vm3, %v3391_v23, 0.0  ;;  %v2444_v46 = vpop.f32.mrf.mxu0 }
 0x3d1   : > { %17282 = vst [vmem:[#allocation35_spill] sm:$0xff] %v14549_v24  ;;  %vm14552_vm12 = vcmp.eq.f32.partialorder %v2866_v25, 8.507059e+37  ;;  %v5058_v6 = vrot.slane %v5057_v52, 2  ;;  %v5071_v59 = vmax.f32 %v5069_v55, %v5070_v54  ;;  %v5626_v13 = vmax.f32 %v5420_v35, 1e-20 }
 0x3d2   : > { %v2861_v57 = vadd.f32 %v14476_v58, %v2860_v36  ;;  %vm2863_vm1 = vweird.f32 %v14476_v58  ;;  %v5065_v20 = vrot.slane %v5064_v53, 2  ;;  %v5429_v34 = vrot.slane %v5428_v21, 4 }
 0x3d3   : > { %12313 = vrcp.f32 %v14540_v0  ;;  %v5050_v28 = vmax.f32 %v5048_v22, %v5049_v43  ;;  %v5076_v4 = vsel %vm1774_vm3, %v14547_v3, -inf  ;;  %v5426_v32 = vrot.slane %v5425_v16, 1  ;;  %vm14567_vm10 = vmor %vm2862_vm15, %vm2863_vm1 }
 0x3d4   : > { %v3526_v23 = vrot.slane %v3525_v33, 4  ;;  %v5046_v25 = vrot.slane %v5045_v41, 1  ;;  %v2445_v24 = vadd.f32 %v14306_v26, %v2444_v46  ;;  %v2869_v55 = vor.u32 1.1754944e-38, %v2868_v44 }
 0x3d5   : > { %v5059_v54 = vmax.f32 %v5057_v52, %v5058_v6  ;;  %v5072_v35 = vrot.slane %v5071_v59, 2  ;;  %v4658_v36 = vadd.f32 %v14494_v56, %v4657_v47  ;;  %12315 = vrcp.f32 %v5626_v13  ;;  %v17287_v6 = vld [vmem:[#allocation38_spill] sm:$0xff] }
 0x3d6   : > { %v12312_v2 = vpop.eup %12311  ;;  %v5066_v43 = vmax.f32 %v5064_v53, %v5065_v20  ;;  %v5077_v48 = vrot.slane %v5076_v4, 4  ;;  %v10184_v39 = vmul.f32 -1.442695, %v2445_v24  ;;  %v5430_v11 = vadd.f32 %v5429_v34, %v5428_v21 }
 0x3d7   : > { %v2865_v52 = vsel %vm14567_vm10, %v14476_v58, %v2861_v57  ;;  %v5051_v44 = vrot.slane %v5050_v28, 2  ;;  %v2432_v47 = vadd.f32 %v14306_v26, %v14310_v42  ;;  %vm4948_vm13 = vcmp.gt.f32.partialorder %v17287_v6, 0.0  ;;  %v4483_v42 = vpop.f32.mrf.mxu2 }
 0x3d8   : > { %v14577_v13 = vadd.f32 %v5426_v32, %v5425_v16  ;;  %v14579_v50 = vadd.f32 %v3526_v23, %v3525_v33  ;;  %v5047_v46 = vmax.f32 %v5045_v41, %v5046_v25  ;;  %12317 = vpow2.f32 %v10184_v39  ;;  %v4659_v39 = vpop.f32.mrf.mxu3 }
 0x3d9   : > { %v14581_v53 = vpop.eup %12313  ;;  %v14584_v21 = vmul.f32 %v12312_v2, %v13547_v1  ;;  %v5060_v24 = vrot.slane %v5059_v54, 1  ;;  %v5073_v20 = vmax.f32 %v5071_v59, %v5072_v35  ;;  %v14588_v58 = vsel %vm4947_vm11, %v4658_v36, -1e+30 }
 0x3da   : > { %v2870_v16 = vsel %vm14552_vm12, %v2869_v55, %v2865_v52  ;;  %v5067_v57 = vrot.slane %v5066_v43, 1  ;;  %v5078_v33 = vmax.f32 %v5076_v4, %v5077_v48  ;;  %v4484_v41 = vadd.f32 %v14431_v61, %v4483_v42 }
 0x3db   : > { %v5431_v34 = vrot.slane %v5430_v11, 2  ;;  %v2883_v32 = vand.u32 2147483648, %v14540_v0  ;;  %v5052_v1 = vmax.f32 %v5050_v28, %v5051_v44  ;;  %v10179_v2 = vmul.f32 -1.442695, %v2432_v47  ;;  %v14594_v23 = vpop.eup %12315 }
 0x3dc   : > { %17288 = vst [vmem:[#allocation41_spill] sm:$0xff] %v14594_v23  ;;  %v2873_v59 = vmul.f32 %v14581_v53, %v14540_v0  ;;  %v5229_v25 = vsub.f32 %v14446_v37, %v5047_v46  ;;  %v4482_v31 = vadd.f32 %v14431_v61, %v4481_v38  ;;  %v5083_v48 = vsel %vm1774_vm3, %v14588_v58, -inf }
 0x3dd   : > { %v5435_v4 = vsel %vm1774_vm3, %v14584_v21, 0.0  ;;  %v5061_v55 = vmax.f32 %v5059_v54, %v5060_v24  ;;  %v5074_v35 = vrot.slane %v5073_v20, 1  ;;  %v4660_v28 = vadd.f32 %v14494_v56, %v4659_v39 }
 0x3de   : > { %v12318_v36 = vpop.eup %12317  ;;  %v5068_v22 = vmax.f32 %v5066_v43, %v5067_v57  ;;  %v5079_v52 = vrot.slane %v5078_v33, 2  ;;  %v2442_v44 = vadd.f32 %v14306_v26, %v14516_v8  ;;  %12319 = vtanh.f32 %v4484_v41 }
 0x3df   : > { %v5053_v37 = vrot.slane %v5052_v1, 1  ;;  %12321 = vpow2.f32 %v10179_v2  ;;  %v5084_v61 = vrot.slane %v5083_v48, 4  ;;  %v14607_v38 = vadd.f32 1.0, %v12318_v36 }
 0x3e0   : > { %v5432_v47 = vadd.f32 %v5431_v34, %v5430_v11  ;;  %v2874_v46 = vsub.f32 1.0, %v2873_v59  ;;  %v5267_v42 = vmul.f32 1.442695, %v5229_v25  ;;  %12323 = vtanh.f32 %v4482_v31 }
 0x3e1   : > { %v5231_v54 = vsub.f32 %v14482_v10, %v5061_v55  ;;  %v5075_v24 = vmax.f32 %v5073_v20, %v5074_v35  ;;  %12325 = vrcp.f32 %v14607_v38  ;;  %v14613_v43 = vsel %vm4948_vm13, %v4660_v28, -1e+30 }
 0x3e2   : > { %v5436_v8 = vrot.slane %v5435_v4, 4  ;;  %v5232_v57 = vsub.f32 %v14488_v62, %v5068_v22  ;;  %v5080_v41 = vmax.f32 %v5078_v33, %v5079_v52  ;;  %v10183_v39 = vmul.f32 -1.442695, %v2442_v44 }
 0x3e3   : > { %vm2877_vm14 = vweird.f32 %v14540_v0  ;;  %v2881_v11 = vand.u32 2147483647, %v14540_v0  ;;  %v5054_v34 = vmax.f32 %v5052_v1, %v5053_v37  ;;  %v5085_v2 = vmax.f32 %v5083_v48, %v5084_v61 }
 0x3e4   : > { %v12320_v59 = vpop.eup %12319  ;;  %v3360_v10 = vmul.f32 %v13851_v29, %v2870_v16  ;;  %v14619_v20 = vor.u32 1.1754944e-38, %v2883_v32  ;;  %12327 = vpow2.f32 %v5267_v42  ;;  %v5090_v25 = vsel %vm1774_vm3, %v14613_v43, -inf  ;;  %v3250_v16 = vpop.permute.xlu2 %3249  ;;  %v17291_v42 = vld [vmem:[#allocation39_spill] sm:$0xff] }
 0x3e5   : > { %v12322_v31 = vpop.eup %12321  ;;  %v5433_v55 = vrot.slane %v5432_v47, 1  ;;  %v2875_v62 = vmul.f32 %v14581_v53, %v2874_v46  ;;  %v5271_v33 = vmul.f32 1.442695, %v5231_v54  ;;  %v5233_v35 = vsub.f32 %v14506_v51, %v5075_v24 }
 0x3e6   : > { %v12324_v28 = vpop.eup %12323  ;;  %v5437_v36 = vadd.f32 %v5436_v8, %v5435_v4  ;;  %v5273_v1 = vmul.f32 1.442695, %v5232_v57  ;;  %v5081_v48 = vrot.slane %v5080_v41, 1  ;;  %12329 = vpow2.f32 %v10183_v39  ;;  %v14640_v8 = vpop.f32.mrf.mxu0 }
 0x3e7   : > { %v12326_v22 = vpop.eup %12325  ;;  %v5230_v32 = vsub.f32 %v14514_v63, %v5054_v34  ;;  %v5086_v52 = vrot.slane %v5085_v2, 2  ;;  %v5091_v44 = vrot.slane %v5090_v25, 4  ;;  %v4533_v37 = vpack.c.bf16 %v12320_v59, %v12324_v28 }
 0x3e8   : > { %v14626_v61 = vmul.f32 %v3360_v10, %v3250_v16  ;;  %vm2878_vm0 = vweird.f32 %v14581_v53  ;;  %vm14629_vm15 = vcmp.eq.f32.partialorder %v2881_v11, 8.507059e+37  ;;  %v14633_v51 = vadd.f32 1.0, %v12322_v31 }
 0x3e9   : > { %v2978_v4 = vmul.f32 %v12326_v22, %v14607_v38  ;;  %vm4949_vm11 = vcmp.gt.f32.partialorder %v17291_v42, 0.0  ;;  %v14637_v54 = vadd.f32 %v5433_v55, %v5432_v47  ;;  %v2876_v63 = vadd.f32 %v14581_v53, %v2875_v62  ;;  %10299 = vmatmul.msk.bf16.gmra.mxu3 %vm2100_vm4, %v4533_v37  ;;  %v4662_v47 = vpop.f32.mrf.mxu3  ;;  %vm14648_vm12 = vmor %vm2877_vm14, %vm2878_vm0  ;;  %v14667_v37 = vpop.permute.xlu1 %3298 }
 0x3ea   : > { %12331 = vpow2.f32 %v5271_v33  ;;  %v5275_v24 = vmul.f32 1.442695, %v5233_v35  ;;  %v12328_v57 = vpop.eup %12327  ;;  %v5438_v39 = vrot.slane %v5437_v36, 2  ;;  %v5082_v11 = vmax.f32 %v5080_v41, %v5081_v48 }
 0x3eb   : > { %12333 = vpow2.f32 %v5273_v1  ;;  %v2979_v34 = vsub.f32 1.0, %v2978_v4  ;;  %v5269_v59 = vmul.f32 1.442695, %v5230_v32  ;;  %v5087_v10 = vmax.f32 %v5085_v2, %v5086_v52 }
 0x3ec   : > { %v2988_v31 = vand.u32 2147483648, %v14607_v38  ;;  %v5092_v28 = vmax.f32 %v5090_v25, %v5091_v44  ;;  %v12330_v55 = vpop.eup %12329  ;;  %12335 = vrcp.f32 %v14633_v51  ;;  %vm2983_vm1 = vweird.f32 %v12326_v22 }
 0x3ed   : > { %v2980_v33 = vmul.f32 %v12326_v22, %v2979_v34  ;;  %v2986_v41 = vand.u32 2147483647, %v14607_v38  ;;  %v2880_v2 = vsel %vm14648_vm12, %v14581_v53, %v2876_v63  ;;  %v14658_v25 = vmul.f32 %v12328_v57, %v13558_v30 }
 0x3ee   : > { %v2437_v0 = vadd.f32 %v14306_v26, %v14366_v49  ;;  %12337 = vpow2.f32 %v5275_v24  ;;  %v5234_v35 = vsub.f32 %v14547_v3, %v5082_v11  ;;  %vm2982_vm10 = vweird.f32 %v14607_v38 }
 0x3ef   : > { %v2981_v1 = vadd.f32 %v12326_v22, %v2980_v33  ;;  %v4663_v48 = vadd.f32 %v14494_v56, %v4662_v47  ;;  %v14665_v32 = vadd.f32 1.0, %v12330_v55  ;;  %v5088_v52 = vrot.slane %v5087_v10, 1  ;;  %vm2984_vm13 = vmor %vm2982_vm10, %vm2983_vm1 }
 0x3f0   : > { %v12332_v16 = vpop.eup %12331  ;;  %v2989_v53 = vor.u32 1.1754944e-38, %v2988_v31  ;;  %v5093_v44 = vrot.slane %v5092_v28, 2  ;;  %v5439_v4 = vadd.f32 %v5438_v39, %v5437_v36  ;;  %12339 = vpow2.f32 %v5269_v59  ;;  %v2449_v31 = vpop.f32.mrf.mxu0 }
 0x3f1   : > { %v12334_v30 = vpop.eup %12333  ;;  %v2985_v49 = vsel %vm2984_vm13, %v12326_v22, %v2981_v1  ;;  %vm2987_vm14 = vcmp.eq.f32.partialorder %v2986_v41, 8.507059e+37  ;;  %v2885_v3 = vsel %vm14629_vm15, %v14619_v20, %v2880_v2  ;;  %v5442_v38 = vsel %vm1774_vm3, %v14658_v25, 0.0 }
 0x3f2   : > { %v10181_v63 = vmul.f32 -1.442695, %v2437_v0  ;;  %v2990_v24 = vsel %vm2987_vm14, %v2989_v53, %v2985_v49  ;;  %v14674_v57 = vpop.eup %12335  ;;  %v14677_v11 = vmul.f32 %v12332_v16, %v17268_v45  ;;  %v5277_v34 = vmul.f32 1.442695, %v5234_v35  ;;  %v14745_v49 = vld [vmem:[%s17198_s3] ss:$0 sm:$0xff] }
 0x3f3   : > { %v14680_v36 = vmul.f32 %v14407_v27, %v2990_v24  ;;  %v14684_v22 = vsel %vm4949_vm11, %v4663_v48, -1e+30  ;;  %v14687_v20 = vmul.f32 %v12334_v30, %v17270_v40  ;;  %12341 = vrcp.f32 %v14665_v32  ;;  %v17298_v30 = vld [vmem:[#allocation40_spill] sm:$0xff]  ;;  %s17334_s3 = sld [smem:[#allocation25_spill]] }
 0x3f4   : > { %17294 = vst [vmem:[#allocation36_spill] sm:$0xff] %v14677_v11  ;;  %v12338_v46 = vpop.eup %12337  ;;  %v5089_v39 = vmax.f32 %v5087_v10, %v5088_v52  ;;  %v5094_v59 = vmax.f32 %v5092_v28, %v5093_v44  ;;  %v5627_v45 = vmax.f32 %v14577_v13, 1e-20  ;;  %v5628_v47 = vmax.f32 %v14637_v54, 1e-20 }
 0x3f5   : > { %17295 = vst [vmem:[#allocation37_spill] sm:$0xff] %v14687_v20  ;;  %v5440_v55 = vrot.slane %v5439_v4, 1  ;;  %v5443_v62 = vrot.slane %v5442_v38, 4  ;;  %v2903_v33 = vmul.f32 %v14674_v57, %v14633_v51  ;;  %12343 = vpow2.f32 %v10181_v63 }
 0x3f6   : > { %v5097_v41 = vsel %vm1774_vm3, %v14684_v22, -inf  ;;  %v2450_v40 = vadd.f32 %v14306_v26, %v2449_v31  ;;  %v12340_v2 = vpop.eup %12339  ;;  %v14699_v10 = vsel %vm1774_vm3, %v14626_v61, 0.0  ;;  %v3361_v13 = vmul.f32 %v13851_v29, %v2885_v3 }
 0x3f7   : > { %v5456_v54 = vsel %vm1774_vm3, %v14677_v11, 0.0  ;;  %12345 = vpow2.f32 %v5277_v34  ;;  %v5463_v28 = vsel %vm1774_vm3, %v14687_v20, 0.0  ;;  %v14707_v0 = vmul.f32 %v12338_v46, %v17274_v60  ;;  %v3257_v60 = vpop.permute.xlu1 %3256 }
 0x3f8   : > { %v5235_v35 = vsub.f32 %v14588_v58, %v5089_v39  ;;  %v5095_v26 = vrot.slane %v5094_v59, 1  ;;  %12347 = vrcp.f32 %v5627_v45  ;;  %v14710_v1 = vadd.f32 %v5440_v55, %v5439_v4 }
 0x3f9   : > { %17296 = vst [vmem:[#allocation38_spill] sm:$0xff] %v14707_v0  ;;  %v5098_v61 = vrot.slane %v5097_v41, 4  ;;  %v10186_v48 = vmul.f32 -1.442695, %v2450_v40  ;;  %v14712_v16 = vpop.eup %12341  ;;  %12349 = vrcp.f32 %v5628_v47  ;;  %v5444_v52 = vadd.f32 %v5443_v62, %v5442_v38  ;;  %v4664_v47 = vpop.f32.mrf.mxu3 }
 0x3fa   : > { %v14715_v53 = vmul.f32 %v12340_v2, %v17277_v19  ;;  %v2904_v44 = vsub.f32 1.0, %v2903_v33  ;;  %vm4950_vm0 = vcmp.gt.f32.partialorder %v17298_v30, 0.0  ;;  %v5457_v58 = vrot.slane %v5456_v54, 4 }
 0x3fb   : > { %v5464_v3 = vrot.slane %v5463_v28, 4  ;;  %12351 = vpow2.f32 %v10186_v48  ;;  %v12344_v4 = vpop.eup %12343  ;;  %v14719_v63 = vmul.f32 %v3361_v13, %v3257_v60  ;;  %v5470_v24 = vsel %vm1774_vm3, %v14707_v0, 0.0 }
 0x3fc   : > { %17297 = vst [vmem:[#allocation39_spill] sm:$0xff] %v14715_v53  ;;  %v5279_v34 = vmul.f32 1.442695, %v5235_v35  ;;  %v5096_v38 = vmax.f32 %v5094_v59, %v5095_v26  ;;  %v5629_v19 = vmax.f32 %v14710_v1, 1e-20  ;;  %vm2907_vm15 = vweird.f32 %v14633_v51 }
 0x3fd   : > { %v12346_v46 = vpop.eup %12345  ;;  %v2911_v39 = vand.u32 2147483647, %v14633_v51  ;;  %v2963_v31 = vmul.f32 %v14712_v16, %v14665_v32  ;;  %v5099_v45 = vmax.f32 %v5097_v41, %v5098_v61  ;;  %v5445_v55 = vrot.slane %v5444_v52, 2 }
 0x3fe   : > { %v5449_v62 = vsel %vm1774_vm3, %v14715_v53, 0.0  ;;  %v2905_v33 = vmul.f32 %v14674_v57, %v2904_v44  ;;  %v2913_v59 = vand.u32 2147483648, %v14633_v51  ;;  %v14732_v40 = vpop.eup %12347  ;;  %v5458_v2 = vadd.f32 %v5457_v58, %v5456_v54  ;;  %v14749_v58 = vpop.permute.xlu0 %3291 }
 0x3ff   : > { %17299 = vst [vmem:[#allocation40_spill] sm:$0xff] %v14732_v40  ;;  %v5465_v13 = vadd.f32 %v5464_v3, %v5463_v28  ;;  %v14734_v35 = vadd.f32 1.0, %v12344_v4  ;;  %v5471_v26 = vrot.slane %v5470_v24, 4  ;;  %v14736_v1 = vpop.eup %12349  ;;  %v14739_v41 = vmul.f32 %v12346_v46, %v17279_v12 }
 0x400   : > { %17300 = vst [vmem:[#allocation60_spill] sm:$0xff] %v14736_v1  ;;  %12353 = vpow2.f32 %v5279_v34  ;;  %v5236_v61 = vsub.f32 %v14613_v43, %v5096_v38  ;;  %v4665_v48 = vadd.f32 %v14494_v56, %v4664_v47  ;;  %vm2908_vm11 = vweird.f32 %v14674_v57  ;;  %v2451_v1 = vpop.f32.mrf.mxu0 }
 0x401   : > { %17301 = vst [vmem:[#allocation61_spill] sm:$0xff] %v14739_v41  ;;  %v12352_v44 = vpop.eup %12351  ;;  %v2964_v60 = vsub.f32 1.0, %v2963_v31  ;;  %v2447_v54 = vadd.f32 %v14745_v49, %v14640_v8  ;;  %v5100_v28 = vrot.slane %v5099_v45, 2  ;;  %v14751_v3 = vadd.f32 %v5445_v55, %v5444_v52  ;;  %vm14776_vm1 = vmor %vm2907_vm15, %vm2908_vm11 }
 0x402   : > { %v5450_v12 = vrot.slane %v5449_v62, 4  ;;  %v2906_v4 = vadd.f32 %v14674_v57, %v2905_v33  ;;  %v14754_v43 = vadd.f32 1.0, %v12352_v44  ;;  %v5459_v34 = vrot.slane %v5458_v2, 2 }
 0x403   : > { %v5466_v38 = vrot.slane %v5465_v13, 2  ;;  %12355 = vrcp.f32 %v14734_v35  ;;  %v5472_v46 = vadd.f32 %v5471_v26, %v5470_v24  ;;  %v5477_v31 = vsel %vm1774_vm3, %v14739_v41, 0.0 }
 0x404   : > { %v5281_v47 = vmul.f32 1.442695, %v5236_v61  ;;  %12357 = vrcp.f32 %v14754_v43  ;;  %v14762_v8 = vsel %vm4950_vm0, %v4665_v48, -1e+30  ;;  %vm14764_vm12 = vcmp.eq.f32.partialorder %v2911_v39, 8.507059e+37 }
 0x405   : > { %v2965_v55 = vmul.f32 %v14712_v16, %v2964_v60  ;;  %v10185_v33 = vmul.f32 -1.442695, %v2447_v54  ;;  %v5101_v44 = vmax.f32 %v5099_v45, %v5100_v28  ;;  %12359 = vrcp.f32 %v5629_v19 }
 0x406   : > { %v12354_v24 = vpop.eup %12353  ;;  %v14770_v61 = vadd.f32 %v5450_v12, %v5449_v62  ;;  %v2914_v48 = vor.u32 1.1754944e-38, %v2913_v59  ;;  %v2910_v45 = vsel %vm14776_vm1, %v14674_v57, %v2906_v4  ;;  %v14783_v60 = vadd.f32 %v5459_v34, %v5458_v2 }
 0x407   : > { %v5478_v19 = vrot.slane %v5477_v31, 4  ;;  %v5104_v62 = vsel %vm1774_vm3, %v14762_v8, -inf  ;;  %v14787_v54 = vadd.f32 %v5466_v38, %v5465_v13  ;;  %v5473_v28 = vrot.slane %v5472_v46, 2 }
 0x408   : > { %vm2968_vm10 = vweird.f32 %v14712_v16  ;;  %12361 = vpow2.f32 %v5281_v47  ;;  %v2966_v59 = vadd.f32 %v14712_v16, %v2965_v55  ;;  %v14794_v12 = vmul.f32 %v12354_v24, %v17281_v7  ;;  %v14805_v55 = vpop.f32.mrf.mxu3  ;;  %v14809_v24 = vpop.permute.xlu0 %3305 }
 0x409   : > { %v14790_v51 = vpop.eup %12355  ;;  %12363 = vpow2.f32 %v10185_v33  ;;  %v5102_v57 = vrot.slane %v5101_v44, 1  ;;  %v2971_v34 = vand.u32 2147483647, %v14665_v32  ;;  %v2973_v13 = vand.u32 2147483648, %v14665_v32  ;;  %v2454_v53 = vpop.f32.mrf.mxu0 }
 0x40a   : > { %v12358_v2 = vpop.eup %12357  ;;  %v5105_v38 = vrot.slane %v5104_v62, 4  ;;  %v14801_v47 = vsel %vm14764_vm12, %v2914_v48, %v2910_v45  ;;  %v5479_v39 = vadd.f32 %v5478_v19, %v5477_v31  ;;  %vm2967_vm13 = vweird.f32 %v14665_v32 }
 0x40b   : > { %v3008_v7 = vmul.f32 %v12358_v2, %v14754_v43  ;;  %v14807_v33 = vpop.eup %12359  ;;  %v5461_v4 = vrot.slane %v14783_v60, 1  ;;  %v5468_v26 = vrot.slane %v14787_v54, 1  ;;  %v14815_v52 = vmul.f32 %v14790_v51, %v14734_v35  ;;  %vm14821_vm14 = vmor %vm2967_vm13, %vm2968_vm10 }
 0x40c   : > { %17306 = vst [vmem:[#allocation62_spill] sm:$0xff] %v14807_v33  ;;  %v14817_v48 = vadd.f32 %v5473_v28, %v5472_v46  ;;  %v2970_v31 = vsel %vm14821_vm14, %v14712_v16, %v2966_v59  ;;  %v5484_v45 = vsel %vm1774_vm3, %v14794_v12, 0.0  ;;  %v5103_v19 = vmax.f32 %v5101_v44, %v5102_v57 }
 0x40d   : > { %v3009_v33 = vsub.f32 1.0, %v3008_v7  ;;  %vm2972_vm0 = vcmp.eq.f32.partialorder %v2971_v34, 8.507059e+37  ;;  %v2974_v23 = vor.u32 1.1754944e-38, %v2973_v13  ;;  %v3018_v46 = vand.u32 2147483648, %v14754_v43 }
 0x40e   : > { %v12362_v40 = vpop.eup %12361  ;;  %v5106_v28 = vmax.f32 %v5104_v62, %v5105_v38  ;;  %v5480_v0 = vrot.slane %v5479_v39, 2  ;;  %vm3013_vm15 = vweird.f32 %v12358_v2  ;;  %v3016_v11 = vand.u32 2147483647, %v14754_v43 }
 0x40f   : > { %v12364_v41 = vpop.eup %12363  ;;  %v3010_v20 = vmul.f32 %v12358_v2, %v3009_v33  ;;  %v2975_v32 = vsel %vm2972_vm0, %v2974_v23, %v2970_v31  ;;  %v5485_v16 = vrot.slane %v5484_v45, 4  ;;  %v2452_v59 = vadd.f32 %v14745_v49, %v2451_v1 }
 0x410   : > { %v2455_v44 = vadd.f32 %v14745_v49, %v2454_v53  ;;  %v14835_v57 = vmul.f32 %v12362_v40, %v17287_v6  ;;  %v5237_v34 = vsub.f32 %v14684_v22, %v5103_v19  ;;  %vm3012_vm11 = vweird.f32 %v14754_v43  ;;  %v14849_v19 = vpop.f32.mrf.mxu3 }
 0x411   : > { %v3011_v13 = vadd.f32 %v12358_v2, %v3010_v20  ;;  %v14839_v62 = vadd.f32 1.0, %v12364_v41  ;;  %vm3014_vm12 = vmor %vm3012_vm11, %vm3013_vm15  ;;  %v3019_v38 = vor.u32 1.1754944e-38, %v3018_v46  ;;  %v5107_v7 = vrot.slane %v5106_v28, 2  ;;  %v3264_v46 = vpop.permute.xlu0 %3263 }
 0x412   : > { %v10188_v33 = vmul.f32 -1.442695, %v2455_v44  ;;  %v3398_v23 = vmul.f32 %v14521_v5, %v14749_v58  ;;  %v5481_v1 = vadd.f32 %v5480_v0, %v5479_v39  ;;  %vm3017_vm1 = vcmp.eq.f32.partialorder %v3016_v11, 8.507059e+37 }
 0x413   : > { %v3015_v31 = vsel %vm3014_vm12, %v12358_v2, %v3011_v13  ;;  %v5486_v53 = vadd.f32 %v5485_v16, %v5484_v45  ;;  %v10187_v40 = vmul.f32 -1.442695, %v2452_v59  ;;  %v3367_v22 = vmul.f32 %v14407_v27, %v2975_v32 }
 0x414   : > { %v3020_v6 = vsel %vm3017_vm1, %v3019_v38, %v3015_v31  ;;  %12365 = vpow2.f32 %v10188_v33  ;;  %v5491_v20 = vsel %vm1774_vm3, %v14835_v57, 0.0  ;;  %v5283_v41 = vmul.f32 1.442695, %v5237_v34 }
 0x415   : > { %v14847_v43 = vmul.f32 %v14407_v27, %v3020_v6  ;;  %v2934_v5 = vsub.f32 1.0, %v14815_v52  ;;  %v5475_v11 = vrot.slane %v14817_v48, 1  ;;  %12367 = vrcp.f32 %v14839_v62 }
 0x416   : > { %v5108_v0 = vmax.f32 %v5106_v28, %v5107_v7  ;;  %v17309_v58 = vrot.slane %v14751_v3, 1  ;;  %v14860_v39 = vmul.f32 %v14257_v17, %v3264_v46  ;;  %v5462_v45 = vadd.f32 %v5461_v4, %v14783_v60  ;;  %v17310_v17 = vld [vmem:[#allocation42_spill] sm:$0xff] }
 0x417   : > { %v5482_v32 = vrot.slane %v5481_v1, 1  ;;  %v3574_v16 = vsel %vm1774_vm3, %v3398_v23, 0.0  ;;  %v5487_v59 = vrot.slane %v5486_v53, 2  ;;  %v5492_v52 = vrot.slane %v5491_v20, 4 }
 0x418   : > { %v14857_v2 = vadd.f32 %v17309_v58, %v14751_v3  ;;  %12369 = vpow2.f32 %v10187_v40  ;;  %v14866_v44 = vmul.f32 %v13851_v29, %v14801_v47  ;;  %v5469_v28 = vadd.f32 %v5468_v26, %v14787_v54  ;;  %v14878_v47 = vpop.f32.mrf.mxu0 }
 0x419   : > { %v3399_v3 = vmul.f32 %v3367_v22, %v14667_v37  ;;  %12371 = vpow2.f32 %v5283_v41  ;;  %vm4951_vm10 = vcmp.gt.f32.partialorder %v17310_v17, 0.0  ;;  %v17311_v60 = vrot.slane %v14770_v61, 2 }
 0x41a   : > { %v12366_v34 = vpop.eup %12365  ;;  %v2935_v13 = vmul.f32 %v14790_v51, %v2934_v5  ;;  %v5476_v38 = vadd.f32 %v5475_v11, %v14817_v48  ;;  %v5109_v7 = vrot.slane %v5108_v0, 1  ;;  %v3575_v54 = vrot.slane %v3574_v16, 4 }
 0x41b   : > { %v14874_v4 = vadd.f32 %v17311_v60, %v14770_v61  ;;  %v5483_v37 = vadd.f32 %v5482_v32, %v5481_v1  ;;  %v14881_v33 = vadd.f32 1.0, %v12366_v34  ;;  %v14883_v23 = vpop.eup %12367  ;;  %v5632_v31 = vmax.f32 %v5462_v45, 1e-20  ;;  %v14899_v32 = vpop.f32.mrf.mxu3 }
 0x41c   : > { %vm2937_vm13 = vweird.f32 %v14734_v35  ;;  %v5488_v61 = vadd.f32 %v5487_v59, %v5486_v53  ;;  %v5493_v6 = vadd.f32 %v5492_v52, %v5491_v20  ;;  %v5633_v40 = vmax.f32 %v5469_v28, 1e-20 }
 0x41d   : > { %v2943_v22 = vand.u32 2147483648, %v14734_v35  ;;  %v3581_v48 = vsel %vm1774_vm3, %v3399_v3, 0.0  ;;  %12373 = vrcp.f32 %v14881_v33  ;;  %v14890_v46 = vadd.f32 %v14790_v51, %v2935_v13 }
 0x41e   : > { %v12370_v41 = vpop.eup %12369  ;;  %vm2938_vm14 = vweird.f32 %v14790_v51  ;;  %v5634_v1 = vmax.f32 %v5476_v38, 1e-20  ;;  %v5110_v5 = vmax.f32 %v5108_v0, %v5109_v7  ;;  %v14893_v58 = vadd.f32 %v3575_v54, %v3574_v16 }
 0x41f   : > { %v12372_v11 = vpop.eup %12371  ;;  %v5635_v53 = vmax.f32 %v5483_v37, 1e-20  ;;  %v2993_v20 = vmul.f32 %v14883_v23, %v14839_v62  ;;  %v4668_v45 = vadd.f32 %v14494_v56, %v14805_v55  ;;  %12375 = vrcp.f32 %v5632_v31  ;;  %vm14903_vm0 = vmor %vm2937_vm13, %vm2938_vm14 }
 0x420   : > { %17312 = vst [vmem:[#allocation63_spill] sm:$0xff] %v14893_v58  ;;  %v3582_v59 = vrot.slane %v3581_v48, 4  ;;  %v5489_v52 = vrot.slane %v5488_v61, 1  ;;  %v5494_v28 = vrot.slane %v5493_v6, 2  ;;  %12377 = vrcp.f32 %v5633_v40  ;;  %v14920_v38 = vpop.f32.mrf.mxu0  ;;  %v17317_v40 = vld [vmem:[#allocation44_spill] sm:$0xff] }
 0x421   : > { %v14908_v3 = vor.u32 1.1754944e-38, %v2943_v22  ;;  %v14910_v34 = vadd.f32 1.0, %v12370_v41  ;;  %12379 = vrcp.f32 %v5634_v1  ;;  %v14917_v60 = vmul.f32 %v12372_v11, %v17291_v42 }
 0x422   : > { %v5238_v13 = vsub.f32 %v14762_v8, %v5110_v5  ;;  %12381 = vrcp.f32 %v5635_v53  ;;  %v2994_v37 = vsub.f32 1.0, %v2993_v20  ;;  %v14925_v31 = vsel %vm4951_vm10, %v4668_v45, -1e+30 }
 0x423   : > { %17315 = vst [vmem:[#allocation64_spill] sm:$0xff] %v14917_v60  ;;  %v12374_v7 = vpop.eup %12373  ;;  %vm4952_vm15 = vcmp.gt.f32.partialorder %v17317_v40, 0.0  ;;  %v14928_v22 = vadd.f32 %v3582_v59, %v3581_v48  ;;  %v14930_v41 = vadd.f32 %v5489_v52, %v5488_v61  ;;  %v5495_v42 = vadd.f32 %v5494_v28, %v5493_v6  ;;  %v14958_v17 = vpop.f32.mrf.mxu3 }
 0x424   : > { %17316 = vst [vmem:[#allocation65_spill] sm:$0xff] %v14925_v31  ;;  %v3038_v8 = vmul.f32 %v12374_v7, %v14881_v33  ;;  %v3400_v1 = vmul.f32 %v14680_v36, %v14809_v24  ;;  %vm2997_vm11 = vweird.f32 %v14839_v62  ;;  %12383 = vrcp.f32 %v14910_v34 }
 0x425   : > { %17318 = vst [vmem:[#allocation66_spill] sm:$0xff] %v14928_v22  ;;  %v5454_v5 = vrot.slane %v14874_v4, 1  ;;  %v14938_v11 = vpop.eup %12375  ;;  %v5498_v48 = vsel %vm1774_vm3, %v14917_v60, 0.0  ;;  %v5285_v53 = vmul.f32 1.442695, %v5238_v13  ;;  %v5111_v61 = vsel %vm1774_vm3, %v14925_v31, -inf }
 0x426   : > { %17319 = vst [vmem:[#allocation67_spill] sm:$0xff] %v14938_v11  ;;  %v3039_v6 = vsub.f32 1.0, %v3038_v8  ;;  %v14944_v20 = vpop.eup %12377  ;;  %v2995_v36 = vmul.f32 %v14883_v23, %v2994_v37  ;;  %v3001_v24 = vand.u32 2147483647, %v14839_v62  ;;  %v3048_v45 = vand.u32 2147483648, %v14881_v33 }
 0x427   : > { %17320 = vst [vmem:[#allocation68_spill] sm:$0xff] %v14944_v20  ;;  %v3521_v59 = vrot.slane %v14536_v9, 2  ;;  %v14950_v52 = vpop.eup %12379  ;;  %v5496_v28 = vrot.slane %v5495_v42, 1  ;;  %vm3043_vm12 = vweird.f32 %v12374_v7  ;;  %v3046_v13 = vand.u32 2147483647, %v14881_v33 }
 0x428   : > { %17321 = vst [vmem:[#allocation69_spill] sm:$0xff] %v14950_v52  ;;  %v3040_v54 = vmul.f32 %v12374_v7, %v3039_v6  ;;  %v14953_v55 = vpop.eup %12381  ;;  %v3003_v8 = vand.u32 2147483648, %v14839_v62  ;;  %v5499_v26 = vrot.slane %v5498_v48, 4  ;;  %v5112_v16 = vrot.slane %v5111_v61, 4  ;;  %v14962_v6 = vpop.f32.mrf.mxu0 }
 0x429   : > { %17322 = vst [vmem:[#allocation70_spill] sm:$0xff] %v14953_v55  ;;  %v4670_v37 = vadd.f32 %v14494_v56, %v14849_v19  ;;  %v3588_v22 = vsel %vm1774_vm3, %v3400_v1, 0.0  ;;  %12385 = vpow2.f32 %v5285_v53  ;;  %vm3042_vm1 = vweird.f32 %v14881_v33 }
 0x42a   : > { %v3041_v58 = vadd.f32 %v12374_v7, %v3040_v54  ;;  %v14964_v52 = vpop.eup %12383  ;;  %v2996_v55 = vadd.f32 %v14883_v23, %v2995_v36  ;;  %vm2998_vm10 = vweird.f32 %v14883_v23  ;;  %vm3044_vm13 = vmor %vm3042_vm1, %vm3043_vm12  ;;  %v3049_v20 = vor.u32 1.1754944e-38, %v3048_v45  ;;  %v17324_v36 = vld [vmem:[#allocation47_spill] sm:$0xff] }
 0x42b   : > { %v3522_v56 = vadd.f32 %v3521_v59, %v14536_v9  ;;  %v5497_v19 = vadd.f32 %v5496_v28, %v5495_v42  ;;  %vm3047_vm14 = vcmp.eq.f32.partialorder %v3046_v13, 8.507059e+37  ;;  %v3528_v54 = vrot.slane %v14579_v50, 2  ;;  %vm14978_vm12 = vmor %vm2997_vm11, %vm2998_vm10  ;;  %v15002_v59 = vld [vmem:[%s17327_s8] ss:$0 sm:$0xff]  ;;  %v15004_v28 = vpop.f32.mrf.mxu3 }
 0x42c   : > { %v3045_v11 = vsel %vm3044_vm13, %v12374_v7, %v3041_v58  ;;  %v5500_v1 = vadd.f32 %v5499_v26, %v5498_v48  ;;  %v5113_v33 = vmax.f32 %v5111_v61, %v5112_v16  ;;  %v14973_v60 = vsel %vm4952_vm15, %v4670_v37, -1e+30  ;;  %v15010_v45 = vld [vmem:[%s17243_s1] ss:$0 sm:$0xff] }
 0x42d   : > { %v3050_v53 = vsel %vm3047_vm14, %v3049_v20, %v3045_v11  ;;  %17323 = vst [vmem:[#allocation71_spill] sm:$0xff] %v14973_v60  ;;  %vm4953_vm9 = vcmp.gt.f32.partialorder %v17324_v36, 0.0  ;;  %v3023_v9 = vmul.f32 %v14964_v52, %v14910_v34  ;;  %v2457_v58 = vadd.f32 %v14745_v49, %v14878_v47 }
 0x42e   : > { %v14985_v26 = vmul.f32 %v14407_v27, %v3050_v53  ;;  %v3539_v16 = vsel %vm1774_vm3, %v14719_v63, 0.0  ;;  %v5636_v7 = vmax.f32 %v14930_v41, 1e-20  ;;  %v3000_v62 = vsel %vm14978_vm12, %v14883_v23, %v2996_v55  ;;  %v3313_v63 = vpop.permute.xlu2 %3312 }
 0x42f   : > { %vm3002_vm15 = vcmp.eq.f32.partialorder %v3001_v24, 8.507059e+37  ;;  %v14996_v42 = vadd.f32 %v5454_v5, %v14874_v4  ;;  %v12386_v11 = vpop.eup %12385  ;;  %v3589_v48 = vrot.slane %v3588_v22, 4  ;;  %v3004_v61 = vor.u32 1.1754944e-38, %v3003_v8 }
 0x430   : > { %17328 = vst [vmem:[#allocation72_spill] sm:$0xff] %v14985_v26  ;;  %v5118_v20 = vsel %vm1774_vm3, %v14973_v60, -inf  ;;  %v3529_v49 = vadd.f32 %v3528_v54, %v14579_v50  ;;  %v5501_v47 = vrot.slane %v5500_v1, 2  ;;  %v5114_v41 = vrot.slane %v5113_v33, 2  ;;  %v5394_v8 = vpop.f32.mrf.mxu0  ;;  %v6180_v26 = vld [vmem:[%s17334_s3 + $0x20] sm:$0xff] }
 0x431   : > { %v3523_v23 = vrot.slane %v3522_v56, 1  ;;  %v3540_v55 = vrot.slane %v3539_v16, 4  ;;  %v5637_v4 = vmax.f32 %v5497_v19, 1e-20  ;;  %v3005_v5 = vsel %vm3002_vm15, %v3004_v61, %v3000_v62 }
 0x432   : > { %v3024_v24 = vsub.f32 1.0, %v3023_v9  ;;  %v10189_v13 = vmul.f32 -1.442695, %v2457_v58  ;;  %v15007_v37 = vmul.f32 %v12386_v11, %v17298_v30  ;;  %v5119_v53 = vrot.slane %v5118_v20, 4 }
 0x433   : > { %v4673_v50 = vadd.f32 %v15010_v45, %v14899_v32  ;;  %v15015_v54 = vadd.f32 %v15002_v59, %v5394_v8  ;;  %v17330_v40 = vand.u32 2147483647, %v14734_v35  ;;  %12387 = vrcp.f32 %v5636_v7  ;;  %v15027_v32 = vpop.permute.xlu1 %3319 }
 0x434   : > { %v3530_v30 = vrot.slane %v3529_v49, 1  ;;  %v17333_v58 = vrot.slane %v14699_v10, 4  ;;  %v15029_v11 = vadd.f32 %v3589_v48, %v3588_v22  ;;  %v5502_v61 = vadd.f32 %v5501_v47, %v5500_v1  ;;  %v6183_v1 = vld [vmem:[%s17334_s3 + $0x38] sm:$0xff]  ;;  %v15048_v47 = vpop.permute.xlu0 %3326 }
 0x435   : > { %17329 = vst [vmem:[#allocation73_spill] sm:$0xff] %v15015_v54  ;;  %vm15019_vm11 = vcmp.eq.f32.partialorder %v17330_v40, 8.507059e+37  ;;  %v5115_v35 = vmax.f32 %v5113_v33, %v5114_v41  ;;  %v3541_v40 = vadd.f32 %v3540_v55, %v3539_v16  ;;  %v3369_v8 = vmul.f32 %v14407_v27, %v3005_v5  ;;  %v6182_v33 = vld [vmem:[%s17334_s3 + $0x30] sm:$0xff]  ;;  %6208 = vmatpush.msra.mxu0 %v6183_v1  ;;  %v15051_v55 = vpop.f32.mrf.mxu3 }
 0x436   : > { %v3534_v62 = vadd.f32 %v17333_v58, %v14699_v10  ;;  %v3025_v7 = vmul.f32 %v14964_v52, %v3024_v24  ;;  %12389 = vpow2.f32 %v10189_v13  ;;  %v15033_v9 = vadd.f32 %v3523_v23, %v3522_v56  ;;  %17338 = vst [vmem:[#allocation77_spill] sm:$0xff] %v15048_v47  ;;  %v17339_v13 = vld [vmem:[#allocation54_spill] sm:$0xff] }
 0x437   : > { %12391 = vrcp.f32 %v5637_v4  ;;  %v5505_v60 = vsel %vm1774_vm3, %v15007_v37, 0.0  ;;  %v5120_v10 = vmax.f32 %v5118_v20, %v5119_v53  ;;  %v15039_v58 = vsel %vm4953_vm9, %v4673_v50, -1e+30  ;;  %v3271_v53 = vpop.permute.xlu2 %3270  ;;  %6209 = vmatpush.msra.mxu0 %v6182_v33 }
 0x438   : > { %17335 = vst [vmem:[#allocation74_spill] sm:$0xff] %v15033_v9  ;;  %v3031_v22 = vand.u32 2147483647, %v14910_v34  ;;  %v15044_v16 = vadd.f32 %v3530_v30, %v3529_v49  ;;  %v3535_v48 = vrot.slane %v3534_v62, 2  ;;  %v3546_v56 = vsel %vm1774_vm3, %v14860_v39, 0.0  ;;  %v17342_v9 = vld [vmem:[#allocation48_spill] sm:$0xff] }
 0x439   : > { %17336 = vst [vmem:[#allocation75_spill] sm:$0xff] %v15039_v58  ;;  %v5503_v41 = vrot.slane %v5502_v61, 1  ;;  %v3033_v23 = vand.u32 2147483648, %v14910_v34  ;;  %v5116_v20 = vrot.slane %v5115_v35, 1  ;;  %v3542_v4 = vrot.slane %v3541_v40, 2  ;;  %v15053_v5 = vpop.eup %12387 }
 0x43a   : > { %17337 = vst [vmem:[#allocation76_spill] sm:$0xff] %v15044_v16  ;;  %v5506_v24 = vrot.slane %v5505_v60, 4  ;;  %v3026_v49 = vadd.f32 %v14964_v52, %v3025_v7  ;;  %vm3028_vm9 = vweird.f32 %v14964_v52  ;;  %v5125_v39 = vsel %vm1774_vm3, %v15039_v58, -inf }
 0x43b   : > { %vm4957_vm1 = vcmp.gt.f32.partialorder %v17339_v13, 0.0  ;;  %v15060_v50 = vmul.f32 %v3369_v8, %v3313_v63  ;;  %v5121_v30 = vrot.slane %v5120_v10, 2  ;;  %v17341_v1 = vmax.f32 %v14857_v2, 1e-20  ;;  %v3278_v47 = vpop.permute.xlu1 %3277 }
 0x43c   : > { %v3547_v36 = vrot.slane %v3546_v56, 4  ;;  %v12390_v16 = vpop.eup %12389  ;;  %vm4954_vm10 = vcmp.gt.f32.partialorder %v17342_v9, 0.0  ;;  %vm3027_vm13 = vweird.f32 %v14910_v34  ;;  %vm15066_vm14 = vcmp.eq.f32.partialorder %v3031_v22, 8.507059e+37 }
 0x43d   : > { %17340 = vst [vmem:[#allocation54_spill] sm:$0xff] %v15060_v50  ;;  %12393 = vrcp.f32 %v17341_v1  ;;  %v15071_v63 = vmul.f32 %v14866_v44, %v3271_v53  ;;  %v3536_v8 = vadd.f32 %v3535_v48, %v3534_v62  ;;  %v15073_v33 = vpop.eup %12391  ;;  %vm15077_vm12 = vmor %vm3027_vm13, %vm3028_vm9  ;;  %v15081_v1 = vmax.f32 %v5115_v35, %v5116_v20  ;;  %v6181_v20 = vld [vmem:[%s17334_s3 + $0x28] sm:$0xff] }
 0x43e   : > { %v5126_v58 = vrot.slane %v5125_v39, 4  ;;  %v17348_v34 = vsel %vm14903_vm0, %v14790_v51, %v14890_v46  ;;  %v3543_v62 = vadd.f32 %v3542_v4, %v3541_v40  ;;  %v15091_v22 = vadd.f32 %v5503_v41, %v5502_v61  ;;  %6210 = vmatpush.msra.mxu0 %v6181_v20  ;;  %v3285_v41 = vpop.permute.xlu0 %3284  ;;  %v6179_v4 = vld [vmem:[%s17334_s3 + $0x18] sm:$0xff]  ;;  %v17357_v20 = vld [vmem:[#allocation59_spill] sm:$0xff] }
 0x43f   : > { %17347 = vst [vmem:[#allocation78_spill] sm:$0xff] %v15081_v1  ;;  %v2945_v44 = vsel %vm15019_vm11, %v14908_v3, %v17348_v34  ;;  %v5507_v48 = vadd.f32 %v5506_v24, %v5505_v60  ;;  %v3030_v53 = vsel %vm15077_vm12, %v14964_v52, %v3026_v49  ;;  %v3034_v35 = vor.u32 1.1754944e-38, %v3033_v23  ;;  %v17366_v1 = vld [vmem:[#allocation38_spill] sm:$0xff] }
 0x440   : > { %v5122_v0 = vmax.f32 %v5120_v10, %v5121_v30  ;;  %v15098_v50 = vadd.f32 1.0, %v12390_v16  ;;  %v15102_v51 = vadd.f32 %v15002_v59, %v14920_v38  ;;  %v3548_v46 = vadd.f32 %v3547_v36, %v3546_v56  ;;  %6211 = vmatpush.msra.mxu0 %v6180_v26  ;;  %v4682_v36 = vpop.f32.mrf.mxu3  ;;  %v15119_v56 = vpop.f32.mrf.mxu0 }
 0x441   : > { %v17349_v3 = vmax.f32 %v14996_v42, 1e-20  ;;  %v3365_v60 = vmul.f32 %v13851_v29, %v2945_v44  ;;  %v15108_v52 = vmul.f32 %v14387_v14, %v3278_v47  ;;  %v3537_v19 = vrot.slane %v3536_v8, 1  ;;  %17350 = vst [vmem:[#allocation79_spill] sm:$0xff] %v15119_v56 }
 0x442   : > { %v5127_v10 = vmax.f32 %v5125_v39, %v5126_v58  ;;  %v4675_v38 = vadd.f32 %v15010_v45, %v14958_v17  ;;  %v3544_v42 = vrot.slane %v3543_v62, 1  ;;  %v5508_v29 = vrot.slane %v5507_v48, 2  ;;  %6212 = vmatpush.msra.mxu0 %v6179_v4 }
 0x443   : > { %12395 = vrcp.f32 %v17349_v3  ;;  %v15110_v61 = vpop.eup %12393  ;;  %v3035_v14 = vsel %vm15066_vm14, %v3034_v35, %v3030_v53  ;;  %v4683_v47 = vadd.f32 %v15010_v45, %v4682_v36  ;;  %v5123_v23 = vrot.slane %v5122_v0, 1  ;;  %v17360_v36 = vld [vmem:[#allocation34_spill] sm:$0xff] }
 0x444   : > { %12397 = vrcp.f32 %v15098_v50  ;;  %v5656_v17 = vmul.f32 %v15102_v51, %v14344_v15  ;;  %v3549_v26 = vrot.slane %v3548_v46, 2  ;;  %v15127_v58 = vmul.f32 %v14847_v43, %v15027_v32 }
 0x445   : > { %v15132_v24 = vsel %vm4957_vm1, %v4683_v47, -1e+30  ;;  %v15134_v49 = vmul.f32 %v3365_v60, %v3285_v41  ;;  %v15136_v39 = vadd.f32 %v3537_v19, %v3536_v8  ;;  %v5128_v30 = vrot.slane %v5127_v10, 2  ;;  %v6178_v8 = vld [vmem:[%s17334_s3 + $0x10] sm:$0xff] }
 0x446   : > { %17351 = vst [vmem:[#allocation80_spill] sm:$0xff] %v15127_v58  ;;  %v15140_v7 = vsel %vm4954_vm10, %v4675_v38, -1e+30  ;;  %v5153_v15 = vsel %vm1774_vm3, %v15132_v24, -inf  ;;  %v15144_v43 = vadd.f32 %v3544_v42, %v3543_v62  ;;  %v5509_v2 = vadd.f32 %v5508_v29, %v5507_v48  ;;  %6213 = vmatpush.msra.mxu0 %v6178_v8  ;;  %v6177_v38 = vld [vmem:[%s17334_s3 + $0x8] sm:$0xff] }
 0x447   : > { %17352 = vst [vmem:[#allocation81_spill] sm:$0xff] %v15136_v39  ;;  %v15149_v34 = vmul.f32 %v14407_v27, %v3035_v14  ;;  %v5154_v44 = vrot.slane %v5153_v15, 4  ;;  %v5657_v53 = vmul.f32 %v15102_v51, %v14360_v18  ;;  %v15154_v35 = vmax.f32 %v5122_v0, %v5123_v23  ;;  %v17361_v18 = vld [vmem:[#allocation58_spill] sm:$0xff] }
 0x448   : > { %17353 = vst [vmem:[#allocation82_spill] sm:$0xff] %v15140_v7  ;;  %v5658_v3 = vmul.f32 %v15102_v51, %v17357_v20  ;;  %v5688_v62 = vsel %vm1774_vm3, %v5656_v17, 0.0  ;;  %v15159_v60 = vadd.f32 %v3549_v26, %v3548_v46  ;;  %v5132_v48 = vsel %vm1774_vm3, %v15140_v7, -inf  ;;  %6214 = vmatpush.msra.mxu0 %v6177_v38  ;;  %v6160_v20 = vpop.f32.mrf.mxu0 }
 0x449   : > { %17354 = vst [vmem:[#allocation83_spill] sm:$0xff] %v15144_v43  ;;  %v15146_v32 = vpop.eup %12395  ;;  %v5155_v19 = vmax.f32 %v5153_v15, %v5154_v44  ;;  %v5659_v42 = vmul.f32 %v15102_v51, %v17360_v36  ;;  %v5660_v0 = vmul.f32 %v15102_v51, %v17361_v18  ;;  %v15170_v14 = vmax.f32 %v5127_v10, %v5128_v30  ;;  %v15184_v15 = vld [vmem:[%s17359_s4] ss:$0 sm:$0xff]  ;;  %v17364_v18 = vld [vmem:[#allocation36_spill] sm:$0xff]  ;;  %v17365_v10 = vld [vmem:[#allocation37_spill] sm:$0xff]  ;;  %s17110_s4 = smov 64  }
 0x44a   : > { %17355 = vst [vmem:[#allocation84_spill] sm:$0xff] %v15149_v34  ;;  %v15168_v29 = vpop.eup %12397  ;;  %v15174_v46 = vadd.f32 %v15002_v59, %v14962_v6  ;;  %v5661_v47 = vmul.f32 %v15102_v51, %v14584_v21  ;;  %v5662_v41 = vmul.f32 %v15102_v51, %v14658_v25  ;;  %v5689_v26 = vrot.slane %v5688_v62, 4  ;;  %v17362_v6 = vld [vmem:[#allocation39_spill] sm:$0xff]  ;;  %v17363_v21 = vld [vmem:[#allocation49_spill] sm:$0xff] }
 0x44b   : > { %17356 = vst [vmem:[#allocation85_spill] sm:$0xff] %v15154_v35  ;;  %v5156_v17 = vrot.slane %v5155_v19, 2  ;;  %v5695_v4 = vsel %vm1774_vm3, %v5657_v53, 0.0  ;;  %v5133_v30 = vrot.slane %v5132_v48, 4  ;;  %v5663_v59 = vmul.f32 %v15102_v51, %v17362_v6 }
 0x44c   : > { %17358 = vst [vmem:[#allocation59_spill] sm:$0xff] %v15159_v60  ;;  %v5702_v8 = vsel %vm1774_vm3, %v5658_v3, 0.0  ;;  %vm4955_vm0 = vcmp.gt.f32.partialorder %v17363_v21, 0.0  ;;  %v3053_v25 = vmul.f32 %v15168_v29, %v15098_v50  ;;  %v5510_v38 = vrot.slane %v5509_v2, 1  ;;  %v6176_v21 = vld [vmem:[%s17334_s3] sm:$0xff]  ;;  %s17428_s3 = sld [smem:[#allocation27_spill]] }
 0x44d   : > { %v5157_v44 = vmax.f32 %v5155_v19, %v5156_v17  ;;  %v5709_v53 = vsel %vm1774_vm3, %v5659_v42, 0.0  ;;  %v5664_v40 = vmul.f32 %v15174_v46, %v17364_v18  ;;  %v5665_v51 = vmul.f32 %v15174_v46, %v17365_v10  ;;  %6215 = vmatpush.msra.mxu0 %v6176_v21 }
 0x44e   : > { %v5696_v6 = vrot.slane %v5695_v4, 4  ;;  %v5690_v23 = vadd.f32 %v5689_v26, %v5688_v62  ;;  %v5703_v16 = vrot.slane %v5702_v8, 4  ;;  %v5716_v56 = vsel %vm1774_vm3, %v5660_v0, 0.0 }
 0x44f   : > { %v5158_v3 = vrot.slane %v5157_v44, 1  ;;  %v15199_v9 = vmax.f32 %v5132_v48, %v5133_v30  ;;  %v4678_v19 = vadd.f32 %v15010_v45, %v15004_v28  ;;  %v6161_v42 = vadd.f32 %v15184_v15, %v6160_v20 }
 0x450   : > { %v5710_v17 = vrot.slane %v5709_v53, 4  ;;  %v3054_v36 = vsub.f32 1.0, %v3053_v25  ;;  %v15204_v18 = vadd.f32 %v5510_v38, %v5509_v2  ;;  %v5723_v10 = vsel %vm1774_vm3, %v5661_v47, 0.0 }
 0x451   : > { %v5159_v7 = vmax.f32 %v5157_v44, %v5158_v3  ;;  %v5666_v62 = vmul.f32 %v15174_v46, %v17366_v1  ;;  %v5697_v26 = vadd.f32 %v5696_v6, %v5695_v4  ;;  %v5717_v31 = vrot.slane %v5716_v56, 4 }
 0x452   : > { %v5730_v48 = vsel %vm1774_vm3, %v5662_v41, 0.0  ;;  %v5691_v30 = vrot.slane %v5690_v23, 2  ;;  %v5704_v28 = vadd.f32 %v5703_v16, %v5702_v8  ;;  %v5737_v20 = vsel %vm1774_vm3, %v5663_v59, 0.0 }
 0x453   : > { %v5245_v0 = vsub.f32 %v15132_v24, %v5159_v7  ;;  %12399 = vtanh.f32 %v6161_v42  ;;  %v5711_v25 = vadd.f32 %v5710_v17, %v5709_v53  ;;  %v5724_v44 = vrot.slane %v5723_v10, 4  ;;  %v17367_v17 = vld [vmem:[#allocation61_spill] sm:$0xff] }
 0x454   : > { %v5744_v2 = vsel %vm1774_vm3, %v5664_v40, 0.0  ;;  %v3055_v47 = vmul.f32 %v15168_v29, %v3054_v36  ;;  %v5731_v4 = vrot.slane %v5730_v48, 4  ;;  %v15217_v41 = vsel %vm4955_vm0, %v4678_v19, -1e+30 }
 0x455   : > { %v5299_v1 = vmul.f32 1.442695, %v5245_v0  ;;  %v5698_v24 = vrot.slane %v5697_v26, 2  ;;  %v5718_v7 = vadd.f32 %v5717_v31, %v5716_v56  ;;  %v5738_v16 = vrot.slane %v5737_v20, 4 }
 0x456   : > { %v5692_v8 = vadd.f32 %v5691_v30, %v5690_v23  ;;  %v5745_v53 = vrot.slane %v5744_v2, 4  ;;  %v5705_v6 = vrot.slane %v5704_v28, 2  ;;  %v5712_v40 = vrot.slane %v5711_v25, 2 }
 0x457   : > { %12401 = vpow2.f32 %v5299_v1  ;;  %v5725_v36 = vadd.f32 %v5724_v44, %v5723_v10  ;;  %v5751_v3 = vsel %vm1774_vm3, %v5665_v51, 0.0  ;;  %v15222_v42 = vadd.f32 %v15168_v29, %v3055_v47  ;;  %v17368_v10 = vld [vmem:[#allocation64_spill] sm:$0xff] }
 0x458   : > { %v5667_v19 = vmul.f32 %v15174_v46, %v17367_v17  ;;  %v5668_v31 = vmul.f32 %v15174_v46, %v14794_v12  ;;  %v5732_v56 = vadd.f32 %v5731_v4, %v5730_v48  ;;  %v5669_v23 = vmul.f32 %v15174_v46, %v14835_v57 }
 0x459   : > { %v12400_v0 = vpop.eup %12399  ;;  %v5699_v30 = vadd.f32 %v5698_v24, %v5697_v26  ;;  %v5719_v1 = vrot.slane %v5718_v7, 2  ;;  %v5739_v38 = vadd.f32 %v5738_v16, %v5737_v20  ;;  %v5670_v51 = vmul.f32 %v15174_v46, %v17368_v10 }
 0x45a   : > { %v5746_v44 = vadd.f32 %v5745_v53, %v5744_v2  ;;  %v5752_v47 = vrot.slane %v5751_v3, 4  ;;  %v5758_v59 = vsel %vm1774_vm3, %v5666_v62, 0.0  ;;  %v5693_v17 = vrot.slane %v5692_v8, 1  ;;  %10309 = vmatmul.msk.f32.vlgmr.msra.gmra.mxu0 %vm2100_vm4, %v12400_v0 }
 0x45b   : > { %v5706_v35 = vadd.f32 %v5705_v6, %v5704_v28  ;;  %v5713_v43 = vadd.f32 %v5712_v40, %v5711_v25  ;;  %v5726_v12 = vrot.slane %v5725_v36, 2  ;;  %v5733_v4 = vrot.slane %v5732_v56, 2 }
 0x45c   : > { %v5753_v39 = vadd.f32 %v5752_v47, %v5751_v3  ;;  %v5759_v57 = vrot.slane %v5758_v59, 4  ;;  %v5765_v26 = vsel %vm1774_vm3, %v5667_v19, 0.0  ;;  %v5700_v2 = vrot.slane %v5699_v30, 1 }
 0x45d   : > { %v12402_v48 = vpop.eup %12401  ;;  %v5720_v24 = vadd.f32 %v5719_v1, %v5718_v7  ;;  %v5740_v62 = vrot.slane %v5739_v38, 2  ;;  %v5747_v16 = vrot.slane %v5746_v44, 2  ;;  %v5766_v25 = vrot.slane %v5765_v26, 4 }
 0x45e   : > { %v15237_v20 = vmul.f32 %v12402_v48, %v17339_v13  ;;  %v5754_v53 = vrot.slane %v5753_v39, 2  ;;  %v5760_v28 = vadd.f32 %v5759_v57, %v5758_v59  ;;  %v5671_v6 = vmul.f32 %v15174_v46, %v15007_v37 }
 0x45f   : > { %v5707_v40 = vrot.slane %v5706_v35, 1  ;;  %v5714_v3 = vrot.slane %v5713_v43, 1  ;;  %v5727_v19 = vadd.f32 %v5726_v12, %v5725_v36  ;;  %v5734_v0 = vadd.f32 %v5733_v4, %v5732_v56 }
 0x460   : > { %17369 = vst [vmem:[#allocation34_spill] sm:$0xff] %v15237_v20  ;;  %v15241_v21 = vmul.f32 %v15015_v54, %v15237_v20  ;;  %v5761_v13 = vrot.slane %v5760_v28, 2  ;;  %v5767_v10 = vadd.f32 %v5766_v25, %v5765_v26  ;;  %v5694_v47 = vadd.f32 %v5693_v17, %v5692_v8 }
 0x461   : > { %v5741_v7 = vadd.f32 %v5740_v62, %v5739_v38  ;;  %v5772_v1 = vsel %vm1774_vm3, %v5668_v31, 0.0  ;;  %v5779_v59 = vsel %vm1774_vm3, %v5669_v23, 0.0  ;;  %v5701_v48 = vadd.f32 %v5700_v2, %v5699_v30 }
 0x462   : > { %17370 = vst [vmem:[#allocation58_spill] sm:$0xff] %v15241_v21  ;;  %v5721_v57 = vrot.slane %v5720_v24, 1  ;;  %v5748_v58 = vadd.f32 %v5747_v16, %v5746_v44  ;;  %v5755_v20 = vadd.f32 %v5754_v53, %v5753_v39  ;;  %v5762_v21 = vadd.f32 %v5761_v13, %v5760_v28 }
 0x463   : > { %v5768_v54 = vrot.slane %v5767_v10, 2  ;;  %v5773_v34 = vrot.slane %v5772_v1, 4  ;;  %v5780_v37 = vrot.slane %v5779_v59, 4  ;;  %v5708_v46 = vadd.f32 %v5707_v40, %v5706_v35 }
 0x464   : > { %v5715_v60 = vadd.f32 %v5714_v3, %v5713_v43  ;;  %v5728_v36 = vrot.slane %v5727_v19, 1  ;;  %v5735_v56 = vrot.slane %v5734_v0, 1  ;;  %v5742_v12 = vrot.slane %v5741_v7, 1 }
 0x465   : > { %v5769_v4 = vadd.f32 %v5768_v54, %v5767_v10  ;;  %v5774_v8 = vadd.f32 %v5773_v34, %v5772_v1  ;;  %v5781_v38 = vadd.f32 %v5780_v37, %v5779_v59  ;;  %v5749_v17 = vrot.slane %v5748_v58, 1 }
 0x466   : > { %v5756_v31 = vrot.slane %v5755_v20, 1  ;;  %v5786_v23 = vsel %vm1774_vm3, %v5670_v51, 0.0  ;;  %v5793_v30 = vsel %vm1774_vm3, %v5671_v6, 0.0  ;;  %v5722_v44 = vadd.f32 %v5721_v57, %v5720_v24  ;;  %v17374_v57 = vld [vmem:[#allocation35_spill] sm:$0xff] }
 0x467   : > { %v5763_v39 = vrot.slane %v5762_v21, 1  ;;  %v5775_v26 = vrot.slane %v5774_v8, 2  ;;  %v5782_v2 = vrot.slane %v5781_v38, 2  ;;  %v5729_v62 = vadd.f32 %v5728_v36, %v5727_v19  ;;  %v17375_v36 = vld [vmem:[#allocation41_spill] sm:$0xff] }
 0x468   : > { %v5770_v16 = vrot.slane %v5769_v4, 1  ;;  %v5787_v35 = vrot.slane %v5786_v23, 4  ;;  %v5794_v43 = vrot.slane %v5793_v30, 4  ;;  %v5736_v53 = vadd.f32 %v5735_v56, %v5734_v0 }
 0x469   : > { %v5743_v28 = vadd.f32 %v5742_v12, %v5741_v7  ;;  %v5776_v25 = vadd.f32 %v5775_v26, %v5774_v8  ;;  %v5783_v54 = vadd.f32 %v5782_v2, %v5781_v38  ;;  %v5750_v34 = vadd.f32 %v5749_v17, %v5748_v58  ;;  %v17377_v17 = vld [vmem:[#allocation60_spill] sm:$0xff]  ;;  %v17380_v26 = vld [vmem:[#allocation69_spill] sm:$0xff] }
 0x46a   : > { %v5757_v40 = vadd.f32 %v5756_v31, %v5755_v20  ;;  %v5788_v3 = vadd.f32 %v5787_v35, %v5786_v23  ;;  %v5795_v13 = vadd.f32 %v5794_v43, %v5793_v30  ;;  %vm3058_vm15 = vweird.f32 %v15168_v29  ;;  %v17373_v20 = vld [vmem:[#allocation33_spill] sm:$0xff]  ;;  %v17378_v23 = vld [vmem:[#allocation67_spill] sm:$0xff]  ;;  %v17379_v30 = vld [vmem:[#allocation68_spill] sm:$0xff] }
 0x46b   : > { %v5764_v51 = vadd.f32 %v5763_v39, %v5762_v21  ;;  %v5777_v6 = vrot.slane %v5776_v25, 1  ;;  %v5784_v24 = vrot.slane %v5783_v54, 1  ;;  %v17371_v10 = vmax.f32 %v15091_v22, 1e-20  ;;  %v17376_v22 = vld [vmem:[#allocation40_spill] sm:$0xff]  ;;  %v17381_v35 = vld [vmem:[#allocation62_spill] sm:$0xff] }
 0x46c   : > { %v5771_v19 = vadd.f32 %v5770_v16, %v5769_v4  ;;  %v5789_v1 = vrot.slane %v5788_v3, 2  ;;  %v5796_v59 = vrot.slane %v5795_v13, 2  ;;  %v17372_v0 = vmax.f32 %v15204_v18, 1e-20  ;;  %v6163_v4 = vpop.f32.mrf.mxu0  ;;  %v17382_v43 = vld [vmem:[#allocation70_spill] sm:$0xff] }
 0x46d   : > { %12403 = vrcp.f32 %v17371_v10  ;;  %vm3057_vm11 = vweird.f32 %v15098_v50  ;;  %v5778_v58 = vadd.f32 %v5777_v6, %v5776_v25  ;;  %v5944_v7 = vmul.f32 %v17373_v20, %v5694_v47 }
 0x46e   : > { %12405 = vrcp.f32 %v17372_v0  ;;  %v5945_v37 = vmul.f32 %v17374_v57, %v5701_v48  ;;  %v5946_v21 = vmul.f32 %v17375_v36, %v5708_v46  ;;  %v5785_v56 = vadd.f32 %v5784_v24, %v5783_v54  ;;  %v17383_v24 = vld [vmem:[#allocation53_spill] sm:$0xff]  ;;  %vm15285_vm1 = vmor %vm3057_vm11, %vm3058_vm15 }
 0x46f   : > { %v5790_v12 = vadd.f32 %v5789_v1, %v5788_v3  ;;  %v5797_v8 = vadd.f32 %v5796_v59, %v5795_v13  ;;  %v5947_v38 = vmul.f32 %v17376_v22, %v5715_v60  ;;  %v5948_v31 = vmul.f32 %v17377_v17, %v5722_v44 }
 0x470   : > { %v5952_v18 = vmul.f32 %v17378_v23, %v5750_v34  ;;  %v5953_v39 = vmul.f32 %v17379_v30, %v5757_v40  ;;  %v5954_v2 = vmul.f32 %v17380_v26, %v5764_v51  ;;  %v5949_v48 = vmul.f32 %v17381_v35, %v5729_v62  ;;  %v17394_v26 = vld [vmem:[#allocation63_spill] sm:$0xff] }
 0x471   : > { %v5791_v16 = vrot.slane %v5790_v12, 1  ;;  %v5798_v47 = vrot.slane %v5797_v8, 1  ;;  %v5955_v46 = vmul.f32 %v17382_v43, %v5771_v19  ;;  %v5956_v54 = vmul.f32 %v15053_v5, %v5778_v58  ;;  %v17397_v43 = vld [vmem:[#allocation54_spill] sm:$0xff] }
 0x472   : > { %v6087_v60 = vsel %vm6008_vm2, %v5945_v37, %v5944_v7  ;;  %v6094_v3 = vsel %vm6008_vm2, %v5953_v39, %v5952_v18  ;;  %v6164_v44 = vadd.f32 %v15184_v15, %v6163_v4  ;;  %vm4956_vm9 = vcmp.gt.f32.partialorder %v17383_v24, 0.0 }
 0x473   : > { %v12404_v25 = vpop.eup %12403  ;;  %v5792_v13 = vadd.f32 %v5791_v16, %v5790_v12  ;;  %v5799_v40 = vadd.f32 %v5798_v47, %v5797_v8  ;;  %v6088_v51 = vsel %vm6010_vm5, %v5946_v21, %v6087_v60  ;;  %v6095_v6 = vsel %vm6010_vm5, %v5954_v2, %v6094_v3  ;;  %v17396_v16 = vld [vmem:[#allocation66_spill] sm:$0xff] }
 0x474   : > { %v12406_v34 = vpop.eup %12405  ;;  %v5957_v62 = vmul.f32 %v15073_v33, %v5785_v56  ;;  %v6089_v10 = vsel %vm6012_vm6, %v5947_v38, %v6088_v51  ;;  %v6096_v5 = vsel %vm6012_vm6, %v5955_v46, %v6095_v6  ;;  %12407 = vtanh.f32 %v6164_v44  ;;  %v3334_v44 = vpop.permute.xlu2 %3333 }
 0x475   : > { %v5950_v19 = vmul.f32 %v15110_v61, %v5736_v53  ;;  %v5958_v1 = vmul.f32 %v12404_v25, %v5792_v13  ;;  %v6090_v59 = vsel %vm6014_vm7, %v5948_v31, %v6089_v10  ;;  %v6097_v0 = vsel %vm6014_vm7, %v5956_v54, %v6096_v5  ;;  %v17400_v10 = vld [vmem:[#allocation84_spill] sm:$0xff] }
 0x476   : > { %v5951_v58 = vmul.f32 %v15146_v32, %v5743_v28  ;;  %v5959_v20 = vmul.f32 %v12406_v34, %v5799_v40  ;;  %v6091_v7 = vsel %vm6016_vm8, %v5949_v48, %v6090_v59  ;;  %v6098_v57 = vsel %vm6016_vm8, %v5957_v62, %v6097_v0  ;;  %v17398_v34 = vld [vmem:[#allocation59_spill] sm:$0xff]  ;;  %v17399_v62 = vld [vmem:[#allocation77_spill] sm:$0xff]  ;;  %v17402_v0 = vld [vmem:[#allocation80_spill] sm:$0xff] }
 0x477   : > { %v17386_v61 = vrot.slane %v15199_v9, 2  ;;  %v5139_v32 = vsel %vm1774_vm3, %v15217_v41, -inf  ;;  %vm17387_vm10 = vcmask 1046534   ;;  %v3060_v36 = vsel %vm15285_vm1, %v15168_v29, %v15222_v42 }
 0x478   : > { %v6092_v28 = vsel %vm17387_vm10, %v5950_v19, %v6091_v7  ;;  %vm17388_vm13 = vmmov %vm17387_vm10  ;;  %v17389_v21 = vand.u32 2147483647, %v15098_v50  ;;  %vm17390_vm12 = vcmask 1047559   ;;  %v17392_v12 = vand.u32 2147483648, %v15098_v50  ;;  %v17401_v19 = vld [vmem:[#allocation72_spill] sm:$0xff] }
 0x479   : > { %v15292_v53 = vmax.f32 %v15199_v9, %v17386_v61  ;;  %v6099_v37 = vsel %vm17388_vm13, %v5958_v1, %v6098_v57  ;;  %v6093_v56 = vsel %vm17390_vm12, %v5951_v58, %v6092_v28  ;;  %vm17391_vm0 = vmmov %vm17390_vm12  ;;  %v17393_v22 = vrot.slane %v15170_v14, 1 }
 0x47a   : > { %vm3062_vm14 = vcmp.eq.f32.partialorder %v17389_v21, 8.507059e+37  ;;  %v6100_v9 = vsel %vm17391_vm0, %v5959_v20, %v6099_v37  ;;  %v3064_v8 = vor.u32 1.1754944e-38, %v17392_v12  ;;  %v4680_v4 = vadd.f32 %v15010_v45, %v15051_v55  ;;  %v12408_v29 = vpop.eup %12407  ;;  %vm17413_vm15 = vmmov %vm17387_vm10 }
 0x47b   : > { %v15311_v38 = vmax.f32 %v15170_v14, %v17393_v22  ;;  %v11927_v17 = vpack.i.bf16 %v6100_v9, %v6093_v56  ;;  %v5140_v42 = vrot.slane %v5139_v32, 4  ;;  %v3553_v31 = vsel %vm1774_vm3, %v15071_v63, 0.0  ;;  %10310 = vmatmul.msk.f32.gmra.mxu0 %vm2100_vm4, %v12408_v29  ;;  %vm17414_vm11 = vmmov %vm17391_vm0 }
 0x47c   : > { %v3560_v23 = vsel %vm1774_vm3, %v15108_v52, 0.0  ;;  %v3567_v50 = vsel %vm1774_vm3, %v15134_v49, 0.0  ;;  %v5137_v18 = vrot.slane %v15292_v53, 1  ;;  %v3065_v14 = vsel %vm3062_vm14, %v3064_v8, %v3060_v36  ;;  %vm17417_vm1 = vmmov %vm17391_vm0 }
 0x47d   : > { %11928 = vrot.lane.b32.xlu0 %v11927_v17, %s17110_s4  ;;  %v3554_v30 = vrot.slane %v3553_v31, 4  ;;  %v3561_v55 = vrot.slane %v3560_v23, 4  ;;  %v3568_v39 = vrot.slane %v3567_v50, 4  ;;  %v17395_v63 = vrot.slane %v17394_v26, 2  ;;  %s17418_s4 = smov 32  }
 0x47e   : > { %v3584_v52 = vrot.slane %v17396_v16, 2  ;;  %v3591_v47 = vrot.slane %v15029_v11, 2  ;;  %v15331_v49 = vsel %vm4956_vm9, %v4680_v4, -1e+30  ;;  %v3595_v46 = vsel %vm1774_vm3, %v17397_v43, 0.0  ;;  %vm17415_vm9 = vmmov %vm17387_vm10 }
 0x47f   : > { %v3578_v2 = vadd.f32 %v17395_v63, %v17394_v26  ;;  %v3555_v35 = vadd.f32 %v3554_v30, %v3553_v31  ;;  %v3562_v48 = vadd.f32 %v3561_v55, %v3560_v23  ;;  %v3373_v25 = vmul.f32 %v14407_v27, %v3065_v14  ;;  %v17403_v26 = vld [vmem:[#allocation74_spill] sm:$0xff]  ;;  %v17404_v63 = vld [vmem:[#allocation76_spill] sm:$0xff] }
 0x480   : > { %v3569_v54 = vadd.f32 %v3568_v39, %v3567_v50  ;;  %v3585_v60 = vadd.f32 %v3584_v52, %v17396_v16  ;;  %v3592_v3 = vadd.f32 %v3591_v47, %v15029_v11  ;;  %v3551_v13 = vrot.slane %v17398_v34, 1  ;;  %v3341_v11 = vpop.permute.xlu1 %3340 }
 0x481   : > { %v3556_v40 = vrot.slane %v3555_v35, 2  ;;  %v3563_v51 = vrot.slane %v3562_v48, 2  ;;  %v3596_v6 = vrot.slane %v3595_v46, 4  ;;  %v3403_v5 = vmul.f32 %v17400_v10, %v17399_v62 }
 0x482   : > { %v3404_v1 = vmul.f32 %v17401_v19, %v3334_v44  ;;  %v3579_v59 = vrot.slane %v3578_v2, 1  ;;  %v3602_v27 = vsel %vm1774_vm3, %v17402_v0, 0.0  ;;  %v3570_v58 = vrot.slane %v3569_v54, 2 }
 0x483   : > { %v3586_v20 = vrot.slane %v3585_v60, 1  ;;  %v3593_v7 = vrot.slane %v3592_v3, 1  ;;  %v3597_v57 = vadd.f32 %v3596_v6, %v3595_v46  ;;  %v15344_v33 = vmax.f32 %v5139_v32, %v5140_v42  ;;  %v17405_v46 = vld [vmem:[#allocation81_spill] sm:$0xff]  ;;  %v17406_v6 = vld [vmem:[#allocation83_spill] sm:$0xff] }
 0x484   : > { %v5146_v61 = vsel %vm1774_vm3, %v15331_v49, -inf  ;;  %v3557_v28 = vadd.f32 %v3556_v40, %v3555_v35  ;;  %v3603_v37 = vrot.slane %v3602_v27, 4  ;;  %v3405_v36 = vmul.f32 %v3373_v25, %v3341_v11 }
 0x485   : > { %v3552_v21 = vadd.f32 %v3551_v13, %v17398_v34  ;;  %v3564_v56 = vadd.f32 %v3563_v51, %v3562_v48  ;;  %v3598_v9 = vrot.slane %v3597_v57, 2  ;;  %v3580_v12 = vadd.f32 %v3579_v59, %v3578_v2 }
 0x486   : > { %v3604_v8 = vadd.f32 %v3603_v37, %v3602_v27  ;;  %v3609_v22 = vsel %vm1774_vm3, %v3403_v5, 0.0  ;;  %v3616_v4 = vsel %vm1774_vm3, %v3404_v1, 0.0  ;;  %v3571_v17 = vadd.f32 %v3570_v58, %v3569_v54 }
 0x487   : > { %v3587_v29 = vadd.f32 %v3586_v20, %v3585_v60  ;;  %v3594_v32 = vadd.f32 %v3593_v7, %v3592_v3  ;;  %v3599_v42 = vadd.f32 %v3598_v9, %v3597_v57  ;;  %v3558_v31 = vrot.slane %v3557_v28, 1  ;;  %v15358_v60 = vpop.f32.mrf.mxu3 }
 0x488   : > { %v3605_v23 = vrot.slane %v3604_v8, 2  ;;  %v3610_v50 = vrot.slane %v3609_v22, 4  ;;  %v3617_v14 = vrot.slane %v3616_v4, 4  ;;  %v3565_v30 = vrot.slane %v3564_v56, 1 }
 0x489   : > { %v3600_v55 = vrot.slane %v3599_v42, 1  ;;  %v3623_v39 = vsel %vm1774_vm3, %v3405_v36, 0.0  ;;  %v6029_v2 = vsel %vm6008_vm2, %v17404_v63, %v17403_v26  ;;  %v3572_v48 = vrot.slane %v3571_v17, 1  ;;  %v17408_v36 = vld [vmem:[#allocation71_spill] sm:$0xff] }
 0x48a   : > { %v3606_v16 = vadd.f32 %v3605_v23, %v3604_v8  ;;  %v3611_v52 = vadd.f32 %v3610_v50, %v3609_v22  ;;  %v3618_v47 = vadd.f32 %v3617_v14, %v3616_v4  ;;  %v3624_v35 = vrot.slane %v3623_v39, 4  ;;  %v17409_v22 = vld [vmem:[#allocation65_spill] sm:$0xff]  ;;  %v17410_v4 = vld [vmem:[#allocation78_spill] sm:$0xff] }
 0x48b   : > { %v3601_v43 = vadd.f32 %v3600_v55, %v3599_v42  ;;  %v6030_v25 = vsel %vm6010_vm5, %v17405_v46, %v6029_v2  ;;  %v6036_v54 = vsel %vm6008_vm2, %v3587_v29, %v3580_v12  ;;  %v5142_v40 = vrot.slane %v15344_v33, 2 }
 0x48c   : > { %v3607_v3 = vrot.slane %v3606_v16, 1  ;;  %v3612_v44 = vrot.slane %v3611_v52, 2  ;;  %v3619_v34 = vrot.slane %v3618_v47, 2  ;;  %v3625_v13 = vadd.f32 %v3624_v35, %v3623_v39 }
 0x48d   : > { %v3559_v51 = vadd.f32 %v3558_v31, %v3557_v28  ;;  %v6031_v62 = vsel %vm6012_vm6, %v17406_v6, %v6030_v25  ;;  %v6037_v10 = vsel %vm6010_vm5, %v3594_v32, %v6036_v54  ;;  %v5147_v0 = vrot.slane %v5146_v61, 4  ;;  %v17407_v28 = vld [vmem:[#allocation85_spill] sm:$0xff]  ;;  %v17419_v54 = vld [vmem:[#allocation43_spill] sm:$0xff]  ;;  %v6166_v6 = vpop.f32.mrf.mxu0 }
 0x48e   : > { %v3608_v5 = vadd.f32 %v3607_v3, %v3606_v16  ;;  %v3613_v19 = vadd.f32 %v3612_v44, %v3611_v52  ;;  %v3620_v1 = vadd.f32 %v3619_v34, %v3618_v47  ;;  %v3626_v59 = vrot.slane %v3625_v13, 2  ;;  %v17416_v52 = vld [vmem:[#allocation82_spill] sm:$0xff] }
 0x48f   : > { %v3566_v27 = vadd.f32 %v3565_v30, %v3564_v56  ;;  %v6032_v58 = vsel %vm6014_vm7, %v3552_v21, %v6031_v62  ;;  %v6038_v20 = vsel %vm6012_vm6, %v3601_v43, %v6037_v10  ;;  %v3573_v7 = vadd.f32 %v3572_v48, %v3571_v17  ;;  %v17412_v56 = vld [vmem:[#allocation75_spill] sm:$0xff]  ;;  %v4687_v2 = vpop.f32.mrf.mxu3 }
 0x490   : > { %v3614_v57 = vrot.slane %v3613_v19, 1  ;;  %v3621_v11 = vrot.slane %v3620_v1, 1  ;;  %v3627_v37 = vadd.f32 %v3626_v59, %v3625_v13  ;;  %v5240_v9 = vsub.f32 %v17408_v36, %v17407_v28  ;;  %v17420_v13 = vld [vmem:[#allocation42_spill] sm:$0xff]  ;;  %v17421_v59 = vld [vmem:[#allocation45_spill] sm:$0xff] }
 0x491   : > { %v6033_v12 = vsel %vm6016_vm8, %v3559_v51, %v6032_v58  ;;  %v6039_v8 = vsel %vm6014_vm7, %v3608_v5, %v6038_v20  ;;  %v17411_v29 = vsub.f32 %v17409_v22, %v17410_v4  ;;  %v5241_v21 = vsub.f32 %v17412_v56, %v15311_v38 }
 0x492   : > { %v3615_v42 = vadd.f32 %v3614_v57, %v3613_v19  ;;  %v3622_v31 = vadd.f32 %v3621_v11, %v3620_v1  ;;  %v5138_v17 = vmax.f32 %v15292_v53, %v5137_v18  ;;  %v5148_v23 = vmax.f32 %v5146_v61, %v5147_v0  ;;  %v17422_v0 = vld [vmem:[#allocation44_spill] sm:$0xff]  ;;  %v17423_v57 = vld [vmem:[#allocation47_spill] sm:$0xff] }
 0x493   : > { %v5287_v32 = vmul.f32 1.442695, %v17411_v29  ;;  %v3628_v50 = vrot.slane %v3627_v37, 1  ;;  %v6034_v14 = vsel %vm17413_vm15, %v3566_v27, %v6033_v12  ;;  %v5143_v30 = vmax.f32 %v15344_v33, %v5142_v40 }
 0x494   : > { %v6035_v55 = vsel %vm17414_vm11, %v3573_v7, %v6034_v14  ;;  %v6040_v39 = vsel %vm6016_vm8, %v3615_v42, %v6039_v8  ;;  %v5289_v26 = vmul.f32 1.442695, %v5240_v9  ;;  %v5291_v16 = vmul.f32 1.442695, %v5241_v21  ;;  %v17424_v9 = vld [vmem:[#allocation55_spill] sm:$0xff] }
 0x495   : > { %v3629_v63 = vadd.f32 %v3628_v50, %v3627_v37  ;;  %v6041_v38 = vsel %vm17415_vm9, %v3622_v31, %v6040_v39  ;;  %12409 = vpow2.f32 %v5287_v32  ;;  %v5242_v47 = vsub.f32 %v17416_v52, %v5138_v17  ;;  %v17425_v32 = vld [vmem:[#allocation48_spill] sm:$0xff] }
 0x496   : > { %v5149_v53 = vrot.slane %v5148_v23, 2  ;;  %v5144_v61 = vrot.slane %v5143_v30, 1  ;;  %12411 = vpow2.f32 %v5289_v26  ;;  %v4688_v33 = vadd.f32 %v15010_v45, %v4687_v2 }
 0x497   : > { %v6042_v18 = vsel %vm17417_vm1, %v3629_v63, %v6041_v38  ;;  %12413 = vpow2.f32 %v5291_v16  ;;  %v5293_v48 = vmul.f32 1.442695, %v5242_v47  ;;  %vm4959_vm10 = vcmp.gt.f32.partialorder %v17419_v54, 0.0  ;;  %v4689_v62 = vpop.f32.mrf.mxu3  ;;  %v6169_v63 = vpop.f32.mrf.mxu0 }
 0x498   : > { %v11932_v35 = vpack.i.bf16 %v6042_v18, %v6035_v55  ;;  %v5150_v43 = vmax.f32 %v5148_v23, %v5149_v53  ;;  %v5145_v25 = vmax.f32 %v5143_v30, %v5144_v61  ;;  %v15388_v3 = vsel %vm4959_vm10, %v4688_v33, -1e+30  ;;  %v17426_v53 = vld [vmem:[#allocation46_spill] sm:$0xff] }
 0x499   : > { %12415 = vpow2.f32 %v5293_v48  ;;  %v5167_v5 = vsel %vm1774_vm3, %v15388_v3, -inf  ;;  %v6167_v19 = vadd.f32 %v15184_v15, %v6166_v6  ;;  %v4690_v1 = vadd.f32 %v15010_v45, %v4689_v62 }
 0x49a   : > { %11933 = vrot.lane.b32.xlu1 %v11932_v35, %s17418_s4  ;;  %v5151_v34 = vrot.slane %v5150_v43, 1  ;;  %v5243_v51 = vsub.f32 %v15217_v41, %v5145_v25  ;;  %vm4960_vm13 = vcmp.gt.f32.partialorder %v17421_v59, 0.0  ;;  %v4685_v20 = vadd.f32 %v15010_v45, %v15358_v60 }
 0x49b   : > { %v12410_v46 = vpop.eup %12409  ;;  %12417 = vtanh.f32 %v6167_v19  ;;  %v15404_v41 = vsel %vm4960_vm13, %v4690_v1, -1e+30  ;;  %v5168_v28 = vrot.slane %v5167_v5, 4  ;;  %vm4958_vm14 = vcmp.gt.f32.partialorder %v17424_v9, 0.0 }
 0x49c   : > { %v12412_v44 = vpop.eup %12411  ;;  %v15391_v40 = vmul.f32 %v12410_v46, %v17420_v13  ;;  %v5152_v58 = vmax.f32 %v5150_v43, %v5151_v34  ;;  %v5295_v37 = vmul.f32 1.442695, %v5243_v51  ;;  %v5174_v12 = vsel %vm1774_vm3, %v15404_v41, -inf  ;;  %v17427_v43 = vld [vmem:[#allocation49_spill] sm:$0xff] }
 0x49d   : > { %v12414_v10 = vpop.eup %12413  ;;  %v15400_v27 = vmul.f32 %v12412_v44, %v17422_v0  ;;  %v15417_v4 = vsel %vm4958_vm14, %v4685_v20, -1e+30  ;;  %v5169_v21 = vmax.f32 %v5167_v5, %v5168_v28  ;;  %v5175_v31 = vrot.slane %v5174_v12, 4 }
 0x49e   : > { %v5512_v7 = vsel %vm1774_vm3, %v15391_v40, 0.0  ;;  %v15409_v11 = vmul.f32 %v12414_v10, %v17423_v57  ;;  %v5244_v22 = vsub.f32 %v15331_v49, %v5152_v58  ;;  %12419 = vpow2.f32 %v5295_v37 }
 0x49f   : > { %v12416_v36 = vpop.eup %12415  ;;  %v5513_v8 = vrot.slane %v5512_v7, 4  ;;  %v5519_v60 = vsel %vm1774_vm3, %v15400_v27, 0.0  ;;  %v5160_v23 = vsel %vm1774_vm3, %v15417_v4, -inf  ;;  %v5170_v55 = vrot.slane %v5169_v21, 2  ;;  %v4692_v38 = vpop.f32.mrf.mxu3 }
 0x4a0   : > { %v5526_v29 = vsel %vm1774_vm3, %v15409_v11, 0.0  ;;  %v15422_v56 = vmul.f32 %v12416_v36, %v17425_v32  ;;  %v5520_v17 = vrot.slane %v5519_v60, 4  ;;  %v5297_v49 = vmul.f32 1.442695, %v5244_v22  ;;  %v10605_v32 = vld [vmem:[%s17428_s3 + $0x2a0] sm:$0xf0] }
 0x4a1   : > { %v12418_v42 = vpop.eup %12417  ;;  %v5527_v50 = vrot.slane %v5526_v29, 4  ;;  %v5514_v14 = vadd.f32 %v5513_v8, %v5512_v7  ;;  %v5161_v39 = vrot.slane %v5160_v23, 4  ;;  %v5176_v26 = vmax.f32 %v5174_v12, %v5175_v31 }
 0x4a2   : > { %10311 = vmatmul.msk.f32.gmra.mxu0 %vm2100_vm4, %v12418_v42  ;;  %v5533_v30 = vsel %vm1774_vm3, %v15422_v56, 0.0  ;;  %v5521_v16 = vadd.f32 %v5520_v17, %v5519_v60  ;;  %v6170_v52 = vadd.f32 %v15184_v15, %v6169_v63  ;;  %v4693_v47 = vadd.f32 %v15010_v45, %v4692_v38 }
 0x4a3   : > { %vm4961_vm12 = vcmp.gt.f32.partialorder %v17426_v53, 0.0  ;;  %v5528_v18 = vadd.f32 %v5527_v50, %v5526_v29  ;;  %v5534_v61 = vrot.slane %v5533_v30, 4  ;;  %12421 = vpow2.f32 %v5297_v49  ;;  %v11618_v29 = vld [vmem:[%s17428_s3 + $0x244] sm:$0xf]  ;;  %v17429_v49 = vld [vmem:[#allocation50_spill] sm:$0xff] }
 0x4a4   : > { %v12420_v2 = vpop.eup %12419  ;;  %v5515_v35 = vrot.slane %v5514_v14, 2  ;;  %v5171_v33 = vmax.f32 %v5169_v21, %v5170_v55  ;;  %12423 = vtanh.f32 %v6170_v52  ;;  %v15432_v48 = vsel %vm4961_vm12, %v4693_v47, -1e+30 }
 0x4a5   : > { %v15435_v46 = vmul.f32 %v12420_v2, %v17427_v43  ;;  %v5162_v25 = vmax.f32 %v5160_v23, %v5161_v39  ;;  %v5177_v44 = vrot.slane %v5176_v26, 2  ;;  %v5522_v34 = vrot.slane %v5521_v16, 2  ;;  %v15446_v23 = vld [vmem:[%s17243_s1] ss:$0 sm:$0xff]  ;;  %s17438_s1 = sld [smem:[#allocation26_spill]] }
 0x4a6   : > { %v5529_v13 = vrot.slane %v5528_v18, 2  ;;  %v5535_v15 = vadd.f32 %v5534_v61, %v5533_v30  ;;  %v5181_v45 = vsel %vm1774_vm3, %v15432_v48, -inf  ;;  %v5516_v51 = vadd.f32 %v5515_v35, %v5514_v14  ;;  %v11924_v61 = vpop.permute.xlu2 %11923 }
 0x4a7   : > { %v5172_v6 = vrot.slane %v5171_v33, 1  ;;  %v5540_v10 = vsel %vm1774_vm3, %v15435_v46, 0.0  ;;  %v5163_v5 = vrot.slane %v5162_v25, 2  ;;  %v5178_v19 = vmax.f32 %v5176_v26, %v5177_v44  ;;  %v4694_v21 = vpop.f32.mrf.mxu3 }
 0x4a8   : > { %v5523_v0 = vadd.f32 %v5522_v34, %v5521_v16  ;;  %v5182_v58 = vrot.slane %v5181_v45, 4  ;;  %v5530_v20 = vadd.f32 %v5529_v13, %v5528_v18  ;;  %v5536_v7 = vrot.slane %v5535_v15, 2 }
 0x4a9   : > { %v12422_v62 = vpop.eup %12421  ;;  %v5517_v57 = vrot.slane %v5516_v51, 1  ;;  %v5541_v37 = vrot.slane %v5540_v10, 4  ;;  %v5173_v28 = vmax.f32 %v5171_v33, %v5172_v6  ;;  %v5164_v12 = vmax.f32 %v5162_v25, %v5163_v5 }
 0x4aa   : > { %v12424_v1 = vpop.eup %12423  ;;  %v5340_v36 = vmul.f32 %v12422_v62, %v17383_v24  ;;  %v5179_v8 = vrot.slane %v5178_v19, 1  ;;  %v5524_v60 = vrot.slane %v5523_v0, 1  ;;  %v5183_v22 = vmax.f32 %v5181_v45, %v5182_v58  ;;  %v17430_v45 = vld [vmem:[#allocation51_spill] sm:$0xff] }
 0x4ab   : > { %10312 = vmatmul.msk.f32.gmra.mxu0 %vm2100_vm4, %v12424_v1  ;;  %v5531_v42 = vrot.slane %v5530_v20, 1  ;;  %v5537_v31 = vadd.f32 %v5536_v7, %v5535_v15  ;;  %v10608_v17 = vor.u32 %v11618_v29, %v10605_v32  ;;  %v4695_v50 = vadd.f32 %v15446_v23, %v4694_v21  ;;  %v17431_v1 = vld [vmem:[#allocation73_spill] sm:$0xff]  ;;  %v12513_v32 = vld [vmem:[%s13744_s9] sm:$0xff] }
 0x4ac   : > { %vm4962_vm0 = vcmp.gt.f32.partialorder %v17429_v49, 0.0  ;;  %v5518_v14 = vadd.f32 %v5517_v57, %v5516_v51  ;;  %v5542_v30 = vadd.f32 %v5541_v37, %v5540_v10  ;;  %v5247_v24 = vsub.f32 %v15388_v3, %v5173_v28 }
 0x4ad   : > { %v5547_v55 = vsel %vm1774_vm3, %v5340_v36, 0.0  ;;  %v5165_v39 = vrot.slane %v5164_v12, 1  ;;  %v5180_v26 = vmax.f32 %v5178_v19, %v5179_v8  ;;  %6894 = vmatpush.bf16.msrb.mxu1 %v10608_v17  ;;  %v15452_v63 = vsel %vm4962_vm0, %v4695_v50, -1e+30 }
 0x4ae   : > { %v5525_v38 = vadd.f32 %v5524_v60, %v5523_v0  ;;  %v5184_v2 = vrot.slane %v5183_v22, 2  ;;  %v5188_v16 = vsel %vm1774_vm3, %v15452_v63, -inf  ;;  %v5532_v52 = vadd.f32 %v5531_v42, %v5530_v20  ;;  %v12514_v42 = vld [vmem:[%s13744_s9 + $0x8] sm:$0xff] }
 0x4af   : > { %v5538_v47 = vrot.slane %v5537_v31, 1  ;;  %v5189_v18 = vrot.slane %v5188_v16, 4  ;;  %v5543_v35 = vrot.slane %v5542_v30, 2  ;;  %v5548_v33 = vrot.slane %v5547_v55, 4  ;;  %v4697_v29 = vpop.f32.mrf.mxu3 }
 0x4b0   : > { %v5303_v43 = vmul.f32 1.442695, %v5247_v24  ;;  %v5640_v3 = vmax.f32 %v5518_v14, 1e-20  ;;  %v5166_v25 = vmax.f32 %v5164_v12, %v5165_v39  ;;  %v5248_v44 = vsub.f32 %v15404_v41, %v5180_v26  ;;  %v12515_v39 = vld [vmem:[%s17327_s8] ss:$0 sm:$0xff] }
 0x4b1   : > { %v5190_v34 = vmax.f32 %v5188_v16, %v5189_v18  ;;  %v5641_v13 = vmax.f32 %v5525_v38, 1e-20  ;;  %v5185_v15 = vmax.f32 %v5183_v22, %v5184_v2  ;;  %vm4963_vm15 = vcmp.gt.f32.partialorder %v17430_v45, 0.0  ;;  %v17432_v26 = vld [vmem:[#allocation79_spill] sm:$0xff]  ;;  %s17116_s8 = smov 96  }
 0x4b2   : > { %v5642_v51 = vmax.f32 %v5532_v52, 1e-20  ;;  %v11926_v6 = vunpack.i.h.bf16 %v11924_v61  ;;  %v5539_v62 = vadd.f32 %v5538_v47, %v5537_v31  ;;  %v5544_v5 = vadd.f32 %v5543_v35, %v5542_v30  ;;  %v17433_v35 = vld [vmem:[#allocation34_spill] sm:$0xff] }
 0x4b3   : > { %v5191_v10 = vrot.slane %v5190_v34, 2  ;;  %v5549_v19 = vadd.f32 %v5548_v33, %v5547_v55  ;;  %12425 = vpow2.f32 %v5303_v43  ;;  %v5672_v0 = vmul.f32 %v17431_v1, %v15391_v40 }
 0x4b4   : > { %12427 = vrcp.f32 %v5640_v3  ;;  %v11925_v58 = vunpack.i.l.bf16 %v11924_v61  ;;  %v5246_v41 = vsub.f32 %v15417_v4, %v5166_v25  ;;  %v5305_v20 = vmul.f32 1.442695, %v5248_v44 }
 0x4b5   : > { %12429 = vrcp.f32 %v5641_v13  ;;  %v5186_v7 = vrot.slane %v5185_v15, 1  ;;  %v5673_v57 = vmul.f32 %v17431_v1, %v15400_v27  ;;  %v5800_v37 = vsel %vm1774_vm3, %v5672_v0, 0.0 }
 0x4b6   : > { %v5643_v28 = vmax.f32 %v5539_v62, 1e-20  ;;  %v5677_v12 = vmul.f32 %v17431_v1, %v5340_v36  ;;  %v5192_v8 = vmax.f32 %v5190_v34, %v5191_v10  ;;  %v5801_v60 = vrot.slane %v5800_v37, 4 }
 0x4b7   : > { %12431 = vrcp.f32 %v5642_v51  ;;  %v5545_v40 = vrot.slane %v5544_v5, 1  ;;  %v5550_v22 = vrot.slane %v5549_v19, 2  ;;  %v5807_v4 = vsel %vm1774_vm3, %v5673_v57, 0.0 }
 0x4b8   : > { %v15468_v21 = vsel %vm1774_vm3, %v12513_v32, %v11925_v58  ;;  %v15472_v27 = vsel %vm1774_vm3, %v12514_v42, %v11926_v6  ;;  %v5301_v31 = vmul.f32 1.442695, %v5246_v41  ;;  %12433 = vpow2.f32 %v5305_v20 }
 0x4b9   : > { %v12426_v36 = vpop.eup %12425  ;;  %v5187_v17 = vmax.f32 %v5185_v15, %v5186_v7  ;;  %v4698_v50 = vadd.f32 %v15446_v23, %v4697_v29  ;;  %v5802_v14 = vadd.f32 %v5801_v60, %v5800_v37  ;;  %v5808_v30 = vrot.slane %v5807_v4, 4  ;;  %v17435_v7 = vld [vmem:[#allocation58_spill] sm:$0xff] }
 0x4ba   : > { %v12428_v24 = vpop.eup %12427  ;;  %12435 = vrcp.f32 %v5643_v28  ;;  %v5835_v55 = vsel %vm1774_vm3, %v5677_v12, 0.0  ;;  %v15478_v38 = vadd.f32 %v12515_v39, %v17432_v26  ;;  %v5193_v2 = vrot.slane %v5192_v8, 1 }
 0x4bb   : > { %v15480_v16 = vpop.eup %12429  ;;  %v15482_v52 = vadd.f32 %v5545_v40, %v5544_v5  ;;  %v5551_v47 = vadd.f32 %v5550_v22, %v5549_v19  ;;  %v15486_v18 = vsel %vm4963_vm15, %v4698_v50, -1e+30  ;;  %v5803_v61 = vrot.slane %v5802_v14, 2  ;;  %v17434_v19 = vld [vmem:[#allocation52_spill] sm:$0xff] }
 0x4bc   : > { %v5554_v33 = vsel %vm1774_vm3, %v17433_v35, 0.0  ;;  %v5343_v43 = vmul.f32 %v12426_v36, %v17419_v54  ;;  %v5195_v3 = vsel %vm1774_vm3, %v15486_v18, -inf  ;;  %v5809_v25 = vadd.f32 %v5808_v30, %v5807_v4 }
 0x4bd   : > { %v15493_v44 = vpop.eup %12431  ;;  %v5836_v34 = vrot.slane %v5835_v55, 4  ;;  %12437 = vpow2.f32 %v5301_v31  ;;  %v5249_v13 = vsub.f32 %v15432_v48, %v5187_v17  ;;  %v5196_v15 = vrot.slane %v5195_v3, 4 }
 0x4be   : > { %v12434_v51 = vpop.eup %12433  ;;  %v5194_v6 = vmax.f32 %v5192_v8, %v5193_v2  ;;  %v5674_v62 = vmul.f32 %v17431_v1, %v15409_v11  ;;  %v5804_v10 = vadd.f32 %v5803_v61, %v5802_v14  ;;  %v5810_v5 = vrot.slane %v5809_v25, 2 }
 0x4bf   : > { %vm4964_vm11 = vcmp.gt.f32.partialorder %v17434_v19, 0.0  ;;  %v5644_v54 = vmax.f32 %v15482_v52, 1e-20  ;;  %v5552_v0 = vrot.slane %v5551_v47, 1  ;;  %v5555_v58 = vrot.slane %v5554_v33, 4 }
 0x4c0   : > { %v5197_v41 = vmax.f32 %v5195_v3, %v5196_v15  ;;  %v15500_v20 = vpop.eup %12435  ;;  %v15504_v48 = vsel %vm1774_vm3, %v17435_v7, 0.0  ;;  %v5568_v57 = vsel %vm1774_vm3, %v5343_v43, 0.0  ;;  %v5805_v37 = vrot.slane %v5804_v10, 1 }
 0x4c1   : > { %v5814_v11 = vsel %vm1774_vm3, %v5674_v62, 0.0  ;;  %v5307_v28 = vmul.f32 1.442695, %v5249_v13  ;;  %v5811_v8 = vadd.f32 %v5810_v5, %v5809_v25  ;;  %v15508_v40 = vadd.f32 %v5836_v34, %v5835_v55  ;;  %v4699_v55 = vpop.f32.mrf.mxu3 }
 0x4c2   : > { %v5198_v12 = vrot.slane %v5197_v41, 2  ;;  %v5815_v60 = vrot.slane %v5814_v11, 4  ;;  %v5344_v22 = vmul.f32 %v12434_v51, %v17421_v59  ;;  %v5250_v29 = vsub.f32 %v15452_v63, %v5194_v6 }
 0x4c3   : > { %v5806_v4 = vadd.f32 %v5805_v37, %v5804_v10  ;;  %v12438_v32 = vpop.eup %12437  ;;  %v5556_v42 = vadd.f32 %v5555_v58, %v5554_v33  ;;  %v5843_v31 = vrot.slane %v15504_v48, 4  ;;  %v5553_v50 = vadd.f32 %v5552_v0, %v5551_v47  ;;  %v17436_v37 = vld [vmem:[#allocation56_spill] sm:$0xff] }
 0x4c4   : > { %v5199_v36 = vmax.f32 %v5197_v41, %v5198_v12  ;;  %v5816_v17 = vadd.f32 %v5815_v60, %v5814_v11  ;;  %v5569_v14 = vrot.slane %v5568_v57, 4  ;;  %v5680_v30 = vmul.f32 %v15478_v38, %v5343_v43 }
 0x4c5   : > { %v5960_v39 = vmul.f32 %v12428_v24, %v5806_v4  ;;  %12439 = vpow2.f32 %v5307_v28  ;;  %v5675_v59 = vmul.f32 %v17431_v1, %v15422_v56  ;;  %v5812_v2 = vrot.slane %v5811_v8, 1 }
 0x4c6   : > { %v5200_v26 = vrot.slane %v5199_v36, 1  ;;  %v5575_v63 = vsel %vm1774_vm3, %v5344_v22, 0.0  ;;  %v5309_v61 = vmul.f32 1.442695, %v5250_v29  ;;  %v4700_v35 = vadd.f32 %v15446_v23, %v4699_v55 }
 0x4c7   : > { %v5817_v33 = vrot.slane %v5816_v17, 2  ;;  %v5557_v3 = vrot.slane %v5556_v42, 2  ;;  %v15519_v47 = vmul.f32 %v12438_v32, %v17424_v9  ;;  %v5821_v24 = vsel %vm1774_vm3, %v5675_v59, 0.0 }
 0x4c8   : > { %v5201_v25 = vmax.f32 %v5199_v36, %v5200_v26  ;;  %v5570_v43 = vadd.f32 %v5569_v14, %v5568_v57  ;;  %v5856_v34 = vsel %vm1774_vm3, %v5680_v30, 0.0  ;;  %v5681_v13 = vmul.f32 %v15478_v38, %v5344_v22 }
 0x4c9   : > { %v15526_v56 = vsel %vm4964_vm11, %v4700_v35, -1e+30  ;;  %v5576_v15 = vrot.slane %v5575_v63, 4  ;;  %v5813_v6 = vadd.f32 %v5812_v2, %v5811_v8  ;;  %v5818_v62 = vadd.f32 %v5817_v33, %v5816_v17 }
 0x4ca   : > { %v5202_v51 = vsel %vm1774_vm3, %v15526_v56, -inf  ;;  %v5645_v9 = vmax.f32 %v5553_v50, 1e-20  ;;  %12441 = vpow2.f32 %v5309_v61  ;;  %v5822_v5 = vrot.slane %v5821_v24, 4 }
 0x4cb   : > { %v5203_v10 = vrot.slane %v5202_v51, 4  ;;  %v12440_v0 = vpop.eup %12439  ;;  %v5558_v58 = vadd.f32 %v5557_v3, %v5556_v42  ;;  %v5561_v41 = vsel %vm1774_vm3, %v15519_v47, 0.0  ;;  %v5251_v7 = vsub.f32 %v15486_v18, %v5201_v25 }
 0x4cc   : > { %v5961_v57 = vmul.f32 %v15480_v16, %v5813_v6  ;;  %vm4965_vm9 = vcmp.gt.f32.partialorder %v17436_v37, 0.0  ;;  %v5571_v11 = vrot.slane %v5570_v43, 2  ;;  %v5857_v28 = vrot.slane %v5856_v34, 4 }
 0x4cd   : > { %v5204_v12 = vmax.f32 %v5202_v51, %v5203_v10  ;;  %v5823_v8 = vadd.f32 %v5822_v5, %v5821_v24  ;;  %v5577_v60 = vadd.f32 %v5576_v15, %v5575_v63  ;;  %v5863_v22 = vsel %vm1774_vm3, %v5681_v13, 0.0  ;;  %v17437_v10 = vld [vmem:[#allocation57_spill] sm:$0xff] }
 0x4ce   : > { %v5676_v29 = vmul.f32 %v17431_v1, %v15435_v46  ;;  %v5819_v4 = vrot.slane %v5818_v62, 1  ;;  %v5345_v32 = vmul.f32 %v12440_v0, %v17426_v53  ;;  %v6101_v18 = vsel %vm6008_vm2, %v5961_v57, %v5960_v39 }
 0x4cf   : > { %v5205_v42 = vrot.slane %v5204_v12, 2  ;;  %v5824_v36 = vrot.slane %v5823_v8, 2  ;;  %12443 = vrcp.f32 %v5644_v54  ;;  %v5838_v16 = vrot.slane %v15508_v40, 2  ;;  %v4702_v54 = vpop.f32.mrf.mxu3 }
 0x4d0   : > { %v15544_v17 = vadd.f32 %v5843_v31, %v15504_v48  ;;  %v5311_v50 = vmul.f32 1.442695, %v5251_v7  ;;  %v12442_v14 = vpop.eup %12441  ;;  %v5559_v30 = vrot.slane %v5558_v58, 1  ;;  %v5562_v26 = vrot.slane %v5561_v41, 4 }
 0x4d1   : > { %v5572_v46 = vadd.f32 %v5571_v11, %v5570_v43  ;;  %v5206_v55 = vmax.f32 %v5204_v12, %v5205_v42  ;;  %12445 = vrcp.f32 %v5645_v9  ;;  %v5858_v53 = vadd.f32 %v5857_v28, %v5856_v34 }
 0x4d2   : > { %v5864_v59 = vrot.slane %v5863_v22, 4  ;;  %v5820_v2 = vadd.f32 %v5819_v4, %v5818_v62  ;;  %v5578_v63 = vrot.slane %v5577_v60, 2  ;;  %v5582_v39 = vsel %vm1774_vm3, %v5345_v32, 0.0 }
 0x4d3   : > { %v5207_v52 = vrot.slane %v5206_v55, 1  ;;  %v5825_v61 = vadd.f32 %v5824_v36, %v5823_v8  ;;  %v5346_v35 = vmul.f32 %v12442_v14, %v17429_v49  ;;  %12447 = vpow2.f32 %v5311_v50 }
 0x4d4   : > { %v4703_v48 = vadd.f32 %v15446_v23, %v4702_v54  ;;  %v5962_v31 = vmul.f32 %v15493_v44, %v5820_v2  ;;  %v15550_v33 = vadd.f32 %v5559_v30, %v5558_v58  ;;  %v5563_v3 = vadd.f32 %v5562_v26, %v5561_v41 }
 0x4d5   : > { %v5573_v25 = vrot.slane %v5572_v46, 1  ;;  %v5208_v24 = vmax.f32 %v5206_v55, %v5207_v52  ;;  %v15552_v43 = vpop.eup %12443  ;;  %v5583_v34 = vrot.slane %v5582_v39, 4  ;;  %v5828_v15 = vsel %vm1774_vm3, %v5676_v29, 0.0 }
 0x4d6   : > { %v15556_v13 = vsel %vm4965_vm9, %v4703_v48, -1e+30  ;;  %v6102_v49 = vsel %vm6010_vm5, %v5962_v31, %v6101_v18  ;;  %v5865_v51 = vadd.f32 %v5864_v59, %v5863_v22  ;;  %v5826_v62 = vrot.slane %v5825_v61, 1 }
 0x4d7   : > { %v5252_v6 = vsub.f32 %v15526_v56, %v5208_v24  ;;  %v5209_v44 = vsel %vm1774_vm3, %v15556_v13, -inf  ;;  %v15563_v9 = vpop.eup %12445  ;;  %vm4966_vm1 = vcmp.gt.f32.partialorder %v17437_v10, 0.0  ;;  %v5859_v5 = vrot.slane %v5858_v53, 2 }
 0x4d8   : > { %v5579_v0 = vadd.f32 %v5578_v63, %v5577_v60  ;;  %v5589_v58 = vsel %vm1774_vm3, %v5346_v35, 0.0  ;;  %v5210_v41 = vrot.slane %v5209_v44, 4  ;;  %v5646_v7 = vmax.f32 %v15550_v33, 1e-20 }
 0x4d9   : > { %v5682_v57 = vmul.f32 %v15478_v38, %v5345_v32  ;;  %v5313_v11 = vmul.f32 1.442695, %v5252_v6  ;;  %v5829_v28 = vrot.slane %v5828_v15, 4  ;;  %v12448_v56 = vpop.eup %12447  ;;  %v5564_v12 = vrot.slane %v5563_v3, 2 }
 0x4da   : > { %v5574_v8 = vadd.f32 %v5573_v25, %v5572_v46  ;;  %v5584_v22 = vadd.f32 %v5583_v34, %v5582_v39  ;;  %v5211_v29 = vmax.f32 %v5209_v44, %v5210_v41  ;;  %v5866_v4 = vrot.slane %v5865_v51, 2  ;;  %v4704_v39 = vpop.f32.mrf.mxu3 }
 0x4db   : > { %v5590_v42 = vrot.slane %v5589_v58, 4  ;;  %12449 = vpow2.f32 %v5313_v11  ;;  %v5827_v36 = vadd.f32 %v5826_v62, %v5825_v61  ;;  %v15571_v60 = vmul.f32 %v17431_v1, %v15519_v47  ;;  %v10603_v11 = vld [vmem:[%s17428_s3 + $0x240] sm:$0xf] }
 0x4dc   : > { %v15573_v18 = vadd.f32 %v5859_v5, %v5858_v53  ;;  %v5580_v50 = vrot.slane %v5579_v0, 1  ;;  %v5212_v14 = vrot.slane %v5211_v29, 2  ;;  %v5870_v32 = vsel %vm1774_vm3, %v5682_v57, 0.0  ;;  %v10509_v57 = vld [vmem:[%s17428_s3 + $0x1e0] sm:$0xf0] }
 0x4dd   : > { %v5347_v30 = vmul.f32 %v12448_v56, %v17430_v45  ;;  %v5830_v26 = vadd.f32 %v5829_v28, %v5828_v15  ;;  %v5963_v46 = vmul.f32 %v15500_v20, %v5827_v36  ;;  %v15578_v55 = vadd.f32 %v5564_v12, %v5563_v3 }
 0x4de   : > { %v5648_v59 = vmax.f32 %v5574_v8, 1e-20  ;;  %v5585_v2 = vrot.slane %v5584_v22, 2  ;;  %v5213_v63 = vmax.f32 %v5211_v29, %v5212_v14  ;;  %v15580_v52 = vadd.f32 %v5866_v4, %v5865_v51 }
 0x4df   : > { %v5591_v1 = vadd.f32 %v5590_v42, %v5589_v58  ;;  %v4705_v47 = vadd.f32 %v15446_v23, %v4704_v39  ;;  %v15584_v53 = vsel %vm6012_vm6, %v5963_v46, %v6102_v49  ;;  %v5861_v54 = vrot.slane %v15573_v18, 1 }
 0x4e0   : > { %v15587_v45 = vadd.f32 %v5580_v50, %v5579_v0  ;;  %v5871_v61 = vrot.slane %v5870_v32, 4  ;;  %v5214_v20 = vrot.slane %v5213_v63, 1  ;;  %v5683_v31 = vmul.f32 %v15478_v38, %v5346_v35 }
 0x4e1   : > { %v12450_v48 = vpop.eup %12449  ;;  %v5596_v3 = vsel %vm1774_vm3, %v5347_v30, 0.0  ;;  %v15593_v25 = vsel %vm4966_vm1, %v4705_v47, -1e+30  ;;  %v5831_v23 = vrot.slane %v5830_v26, 2  ;;  %v15595_v24 = vadd.f32 %v5585_v2, %v5584_v22 }
 0x4e2   : > { %v15598_v34 = vmul.f32 %v12450_v48, %v17434_v19  ;;  %v5215_v15 = vmax.f32 %v5213_v63, %v5214_v20  ;;  %v5216_v49 = vsel %vm1774_vm3, %v15593_v25, -inf  ;;  %12451 = vrcp.f32 %v5648_v59  ;;  %v11594_v19 = vld [vmem:[%s17428_s3 + $0x184] sm:$0xf] }
 0x4e3   : > { %v5868_v35 = vrot.slane %v15580_v52, 1  ;;  %v5592_v51 = vrot.slane %v5591_v1, 2  ;;  %v5217_v6 = vrot.slane %v5216_v49, 4  ;;  %v5649_v44 = vmax.f32 %v15587_v45, 1e-20 }
 0x4e4   : > { %v5597_v62 = vrot.slane %v5596_v3, 4  ;;  %v5603_v5 = vsel %vm1774_vm3, %v15598_v34, 0.0  ;;  %v5253_v0 = vsub.f32 %v15556_v13, %v5215_v15  ;;  %v15609_v58 = vsel %vm1774_vm3, %v5683_v31, 0.0  ;;  %v11630_v13 = vld [vmem:[%s17428_s3 + $0x29c] sm:$0xf0] }
 0x4e5   : > { %v5218_v41 = vmax.f32 %v5216_v49, %v5217_v6  ;;  %v5832_v28 = vadd.f32 %v5831_v23, %v5830_v26  ;;  %v5839_v56 = vadd.f32 %v5838_v16, %v15508_v40  ;;  %v5587_v12 = vrot.slane %v15595_v24, 1 }
 0x4e6   : > { %v15617_v8 = vadd.f32 %v5871_v61, %v5870_v32  ;;  %v5315_v22 = vmul.f32 1.442695, %v5253_v0  ;;  %v10512_v29 = vor.u32 %v11594_v19, %v10509_v57  ;;  %v15620_v42 = vadd.f32 %v5592_v51, %v5591_v1 }
 0x4e7   : > { %v5684_v36 = vmul.f32 %v15478_v38, %v5347_v30  ;;  %v5604_v50 = vrot.slane %v5603_v5, 4  ;;  %v5219_v14 = vrot.slane %v5218_v41, 2  ;;  %v5878_v26 = vrot.slane %v15609_v58, 4 }
 0x4e8   : > { %v5598_v46 = vadd.f32 %v5597_v62, %v5596_v3  ;;  %12453 = vpow2.f32 %v5315_v22  ;;  %6895 = vmatpush.bf16.msrb.mxu1 %v10512_v29  ;;  %v10604_v40 = vor.u32 %v11630_v13, %v10603_v11  ;;  %v15624_v16 = vpop.eup %12451  ;;  %v5833_v2 = vrot.slane %v5832_v28, 1 }
 0x4e9   : > { %v5220_v32 = vmax.f32 %v5218_v41, %v5219_v14  ;;  %v5840_v63 = vrot.slane %v5839_v56, 1  ;;  %v5566_v1 = vrot.slane %v15578_v55, 1  ;;  %v5845_v30 = vrot.slane %v15544_v17, 2 }
 0x4ea   : > { %6875 = vmatpush.bf16.msrb.mxu0 %v10604_v40  ;;  %v5849_v47 = vsel %vm1774_vm3, %v15571_v60, 0.0  ;;  %v5594_v61 = vrot.slane %v15620_v42, 1  ;;  %v15632_v20 = vsel %vm1774_vm3, %v5684_v36, 0.0  ;;  %v5605_v48 = vadd.f32 %v5604_v50, %v5603_v5 }
 0x4eb   : > { %v5221_v31 = vrot.slane %v5220_v32, 1  ;;  %v5599_v3 = vrot.slane %v5598_v46, 2  ;;  %v5567_v23 = vadd.f32 %v5566_v1, %v15578_v55  ;;  %v5846_v15 = vadd.f32 %v5845_v30, %v15544_v17 }
 0x4ec   : > { %v5850_v49 = vrot.slane %v5849_v47, 4  ;;  %v5834_v62 = vadd.f32 %v5833_v2, %v5832_v28  ;;  %v5841_v0 = vadd.f32 %v5840_v63, %v5839_v56  ;;  %12455 = vrcp.f32 %v5646_v7 }
 0x4ed   : > { %v5222_v51 = vmax.f32 %v5220_v32, %v5221_v31  ;;  %v5647_v41 = vmax.f32 %v5567_v23, 1e-20  ;;  %v5606_v5 = vrot.slane %v5605_v48, 2  ;;  %v5847_v11 = vrot.slane %v5846_v15, 1 }
 0x4ee   : > { %v12454_v60 = vpop.eup %12453  ;;  %v5851_v57 = vadd.f32 %v5850_v49, %v5849_v47  ;;  %v5600_v33 = vadd.f32 %v5599_v3, %v5598_v46  ;;  %vm17439_vm10 = vcmask 1046534   ;;  %vm17440_vm13 = vcmask 1047559  }
 0x4ef   : > { %v11929_v4 = vpop.permute.xlu0 %11928  ;;  %v5349_v55 = vmul.f32 %v12454_v60, %v17436_v37  ;;  %v5254_v17 = vsub.f32 %v15593_v25, %v5222_v51  ;;  %12457 = vrcp.f32 %v5647_v41  ;;  %v5964_v37 = vmul.f32 %v15552_v43, %v5834_v62  ;;  %v10507_v62 = vld [vmem:[%s17428_s3 + $0x180] sm:$0xf]  ;;  %v6217_v60 = vpop.f32.mrf.mxu0 }
 0x4f0   : > { %v11931_v59 = vunpack.i.h.bf16 %v11929_v4  ;;  %v11930_v39 = vunpack.i.l.bf16 %v11929_v4  ;;  %v5852_v56 = vrot.slane %v5851_v57, 2  ;;  %v5885_v25 = vrot.slane %v15632_v20, 4 }
 0x4f1   : > { %v5610_v22 = vsel %vm1774_vm3, %v5349_v55, 0.0  ;;  %v5317_v29 = vmul.f32 1.442695, %v5254_v17  ;;  %v5607_v36 = vadd.f32 %v5606_v5, %v5605_v48  ;;  %v5848_v50 = vadd.f32 %v5847_v11, %v5846_v15  ;;  %v15675_v11 = vld [vmem:[%s17438_s1] ss:$0 sm:$0xff]  ;;  %s17445_s1 = sld [smem:[#allocation28_spill]] }
 0x4f2   : > { %v6132_v6 = vsel %vm2100_vm4, %v15472_v27, %v11931_v59  ;;  %v6131_v19 = vsel %vm2100_vm4, %v15468_v21, %v11930_v39  ;;  %v5685_v27 = vmul.f32 %v15478_v38, %v15598_v34  ;;  %v5686_v21 = vmul.f32 %v15478_v38, %v5349_v55  ;;  %v12456_v14 = vpop.eup %12455 }
 0x4f3   : > { %v7479_v28 = vpack.c.bf16 %v6132_v6, %v6132_v6  ;;  %v7478_v4 = vpack.c.bf16 %v6131_v19, %v6131_v19  ;;  %v5611_v7 = vrot.slane %v5610_v22, 4  ;;  %v5853_v13 = vadd.f32 %v5852_v56, %v5851_v57 }
 0x4f4   : > { %v5965_v34 = vmul.f32 %v15563_v9, %v5841_v0  ;;  %v5891_v40 = vsel %vm1774_vm3, %v5685_v27, 0.0  ;;  %12459 = vpow2.f32 %v5317_v29  ;;  %v5898_v2 = vsel %vm1774_vm3, %v5686_v21, 0.0  ;;  %v11606_v0 = vld [vmem:[%s17428_s3 + $0x1dc] sm:$0xf0] }
 0x4f5   : > { %v5612_v32 = vadd.f32 %v5611_v7, %v5610_v22  ;;  %v5854_v59 = vrot.slane %v5853_v13, 1  ;;  %v7487_v63 = vunpack.c.l.b16 %v7479_v28  ;;  %v7486_v46 = vunpack.c.l.b16 %v7478_v4  ;;  %v12458_v43 = vpop.eup %12457 }
 0x4f6   : > { %v5966_v39 = vmul.f32 %v12456_v14, %v5848_v50  ;;  %v5601_v1 = vrot.slane %v5600_v33, 1  ;;  %v6104_v9 = vsel %vm6014_vm7, %v5964_v37, %v15584_v53  ;;  %v5588_v48 = vadd.f32 %v5587_v12, %v15595_v24  ;;  %v10411_v50 = vld [vmem:[%s17428_s3 + $0xc0] sm:$0xf] }
 0x4f7   : > { %v5613_v30 = vrot.slane %v5612_v32, 2  ;;  %v5855_v47 = vadd.f32 %v5854_v59, %v5853_v13  ;;  %v5608_v31 = vrot.slane %v5607_v36, 1  ;;  %v5892_v3 = vrot.slane %v5891_v40, 4 }
 0x4f8   : > { %v6105_v23 = vsel %vm6016_vm8, %v5965_v34, %v6104_v9  ;;  %v5899_v49 = vrot.slane %v5898_v2, 4  ;;  %v5595_v19 = vadd.f32 %v5594_v61, %v15620_v42  ;;  %v5879_v53 = vadd.f32 %v5878_v26, %v15609_v58  ;;  %v11582_v34 = vld [vmem:[%s17428_s3 + $0x11c] sm:$0xf0]  ;;  %v6220_v14 = vpop.f32.mrf.mxu0 }
 0x4f9   : > { %v5614_v15 = vadd.f32 %v5613_v30, %v5612_v32  ;;  %v5967_v51 = vmul.f32 %v12458_v43, %v5855_v47  ;;  %v6106_v6 = vsel %vm17439_vm10, %v5966_v39, %v6105_v23  ;;  %v15666_v24 = vpack.c.b16 %v7487_v63, %v7486_v46  ;;  %v11635_v63 = vld [vmem:[%s17428_s3 + $0x2c4] sm:$0xf0]  ;;  %v10315_v9 = vld [vmem:[%s17428_s3] sm:$0xf]  ;;  %v11570_v23 = vld [vmem:[%s17428_s3 + $0xc4] sm:$0xf] }
 0x4fa   : > { %v10508_v12 = vor.u32 %v11606_v0, %v10507_v62  ;;  %v12460_v41 = vpop.eup %12459  ;;  %v15668_v57 = vadd.f32 %v5601_v1, %v5600_v33  ;;  %v5886_v5 = vadd.f32 %v5885_v25, %v15632_v20  ;;  %12461 = vrcp.f32 %v5649_v44  ;;  %v10547_v39 = vld [vmem:[%s17428_s3 + $0x1a8] sm:$0xf] }
 0x4fb   : > { %v5615_v55 = vrot.slane %v5614_v15, 1  ;;  %v15672_v17 = vsel %vm17440_vm13, %v5967_v51, %v6106_v6  ;;  %v15679_v42 = vadd.f32 %v5608_v31, %v5607_v36  ;;  %v5893_v58 = vadd.f32 %v5892_v3, %v5891_v40  ;;  %7496 = vrot.lane.b32.xlu1 %v15666_v24, %s17441_s5  ;;  %7492 = vrot.lane.b32.xlu0 %v15666_v24, %s17116_s8  ;;  %v11611_v47 = vld [vmem:[%s17428_s3 + $0x204] sm:$0xf0]  ;;  %v11558_v3 = vld [vmem:[%s17428_s3 + $0x5c] sm:$0xf0] }
 0x4fc   : > { %v5350_v26 = vmul.f32 %v12460_v41, %v17437_v10  ;;  %v5650_v61 = vmax.f32 %v5588_v48, 1e-20  ;;  %v5873_v20 = vrot.slane %v15617_v8, 2  ;;  %v5900_v28 = vadd.f32 %v5899_v49, %v5898_v2  ;;  %6876 = vmatpush.bf16.msrb.mxu0 %v10508_v12  ;;  %v10643_v2 = vld [vmem:[%s17428_s3 + $0x268] sm:$0xf] }
 0x4fd   : > { %v15687_v27 = vadd.f32 %v5615_v55, %v5614_v15  ;;  %v5651_v45 = vmax.f32 %v5595_v19, 1e-20  ;;  %v5880_v44 = vrot.slane %v5879_v53, 2  ;;  %v5652_v22 = vmax.f32 %v15668_v57, 1e-20 }
 0x4fe   : > { %v5617_v10 = vsel %vm1774_vm3, %v5350_v26, 0.0  ;;  %v5687_v56 = vmul.f32 %v15478_v38, %v5350_v26  ;;  %v5887_v21 = vrot.slane %v5886_v5, 2  ;;  %v6218_v4 = vadd.f32 %v15675_v11, %v6217_v60  ;;  %v10413_v15 = vld [vmem:[%s17428_s3 + $0x120] sm:$0xf0]  ;;  %v10451_v0 = vld [vmem:[%s17428_s3 + $0xe8] sm:$0xf] }
 0x4ff   : > { %v5618_v29 = vrot.slane %v5617_v10, 4  ;;  %v5653_v33 = vmax.f32 %v15679_v42, 1e-20  ;;  %v5894_v7 = vrot.slane %v5893_v58, 2  ;;  %v5654_v13 = vmax.f32 %v15687_v27, 1e-20 }
 0x500   : > { %v5905_v37 = vsel %vm1774_vm3, %v5687_v56, 0.0  ;;  %12463 = vrcp.f32 %v5650_v61  ;;  %v5901_v36 = vrot.slane %v5900_v28, 2  ;;  %v15698_v40 = vpop.eup %12461  ;;  %v5874_v32 = vadd.f32 %v5873_v20, %v15617_v8  ;;  %v11546_v12 = vld [vmem:[%s17428_s3 + $0x4] sm:$0xf]  ;;  %v10611_v26 = vld [vmem:[%s17428_s3 + $0x248] sm:$0xf] }
 0x501   : > { %v5619_v25 = vadd.f32 %v5618_v29, %v5617_v10  ;;  %v5906_v38 = vrot.slane %v5905_v37, 4  ;;  %12465 = vrcp.f32 %v5651_v45  ;;  %v10412_v59 = vor.u32 %v11582_v34, %v10411_v50  ;;  %v10317_v41 = vld [vmem:[%s17428_s3 + $0x60] sm:$0xf0] }
 0x502   : > { %v6221_v46 = vadd.f32 %v15675_v11, %v6220_v14  ;;  %12467 = vtanh.f32 %v6218_v4  ;;  %v10644_v30 = vor.u32 %v11635_v63, %v10643_v2  ;;  %v5881_v48 = vadd.f32 %v5880_v44, %v5879_v53  ;;  %v11587_v53 = vld [vmem:[%s17428_s3 + $0x144] sm:$0xf0] }
 0x503   : > { %v5620_v43 = vrot.slane %v5619_v25, 2  ;;  %v5907_v1 = vadd.f32 %v5906_v38, %v5905_v37  ;;  %v5888_v31 = vadd.f32 %v5887_v21, %v5886_v5  ;;  %6877 = vmatpush.bf16.msrb.mxu0 %v10412_v59  ;;  %v10548_v8 = vor.u32 %v11611_v47, %v10547_v39  ;;  %v10355_v4 = vld [vmem:[%s17428_s3 + $0x28] sm:$0xf] }
 0x504   : > { %12469 = vtanh.f32 %v6221_v46  ;;  %7065 = vmatpush.bf16.msra.mxu2 %v10644_v30  ;;  %v10316_v6 = vor.u32 %v11558_v3, %v10315_v9  ;;  %v10416_v62 = vor.u32 %v11570_v23, %v10413_v15  ;;  %11834 = vmatpush.bf16.msra.mxu3 %v10644_v30  ;;  %v5895_v60 = vadd.f32 %v5894_v7, %v5893_v58  ;;  %v11631_v58 = vld [vmem:[%s17428_s3 + $0x2a4] sm:$0xf0]  ;;  %v11613_v30 = vld [vmem:[%s17428_s3 + $0x214] sm:$0xf0] }
 0x505   : > { %v5621_v49 = vadd.f32 %v5620_v43, %v5619_v25  ;;  %v5908_v51 = vrot.slane %v5907_v1, 2  ;;  %12471 = vrcp.f32 %v5652_v22  ;;  %v5902_v19 = vadd.f32 %v5901_v36, %v5900_v28  ;;  %v10659_v25 = vld [vmem:[%s17428_s3 + $0x278] sm:$0xf]  ;;  %v10515_v47 = vld [vmem:[%s17428_s3 + $0x188] sm:$0xf] }
 0x506   : > { %v12464_v57 = vpop.eup %12463  ;;  %v5875_v5 = vrot.slane %v5874_v32, 1  ;;  %12473 = vrcp.f32 %v5653_v33  ;;  %6896 = vmatpush.bf16.msrb.mxu1 %v10416_v62  ;;  %v10320_v42 = vor.u32 %v11546_v12, %v10317_v41  ;;  %v5862_v20 = vadd.f32 %v5861_v54, %v15573_v18  ;;  %v11563_v33 = vld [vmem:[%s17428_s3 + $0x84] sm:$0xf0]  ;;  %v11637_v36 = vld [vmem:[%s17428_s3 + $0x2d4] sm:$0xf0] }
 0x507   : > { %v5622_v55 = vrot.slane %v5621_v49, 1  ;;  %v12466_v61 = vpop.eup %12465  ;;  %v5882_v27 = vrot.slane %v5881_v48, 1  ;;  %12475 = vrcp.f32 %v5654_v13  ;;  %6878 = vmatpush.bf16.msrb.mxu0 %v10316_v6  ;;  %v5889_v44 = vrot.slane %v5888_v31, 1  ;;  %v10467_v15 = vld [vmem:[%s17428_s3 + $0xf8] sm:$0xf] }
 0x508   : > { %v12468_v28 = vpop.eup %12467  ;;  %7066 = vmatpush.bf16.msra.mxu2 %v10548_v8  ;;  %v10452_v10 = vor.u32 %v11587_v53, %v10451_v0  ;;  %v10612_v56 = vor.u32 %v11631_v58, %v10611_v26  ;;  %11835 = vmatpush.bf16.msra.mxu3 %v10548_v8  ;;  %v5869_v18 = vadd.f32 %v5868_v35, %v15580_v52  ;;  %v5896_v54 = vrot.slane %v5895_v60, 1  ;;  %v10613_v53 = vld [vmem:[%s17428_s3 + $0x2a8] sm:$0xf0] }
 0x509   : > { %v5623_v45 = vadd.f32 %v5622_v55, %v5621_v49  ;;  %v5903_v21 = vrot.slane %v5902_v19, 1  ;;  %v5909_v29 = vadd.f32 %v5908_v51, %v5907_v1  ;;  %v5876_v7 = vadd.f32 %v5875_v5, %v5874_v32  ;;  %v10563_v1 = vld [vmem:[%s17428_s3 + $0x1b8] sm:$0xf]  ;;  %v10419_v51 = vld [vmem:[%s17428_s3 + $0xc8] sm:$0xf] }
 0x50a   : > { %v12470_v22 = vpop.eup %12469  ;;  %6897 = vmatpush.bf16.msrb.mxu1 %v10320_v42  ;;  %v5968_v50 = vmul.f32 %v15624_v16, %v5862_v20  ;;  %v5883_v34 = vadd.f32 %v5882_v27, %v5881_v48  ;;  %v5969_v14 = vmul.f32 %v15698_v40, %v5869_v18  ;;  %v5890_v35 = vadd.f32 %v5889_v44, %v5888_v31  ;;  %v11607_v31 = vld [vmem:[%s17428_s3 + $0x1e4] sm:$0xf0]  ;;  %v11589_v49 = vld [vmem:[%s17428_s3 + $0x154] sm:$0xf0]  ;;  %v11623_v55 = vld [vmem:[%s17428_s3 + $0x26c] sm:$0xf] }
 0x50b   : > { %v5655_v13 = vmax.f32 %v5623_v45, 1e-20  ;;  %v15724_v37 = vpack.c.bf16 %v12470_v22, %v12468_v28  ;;  %6913 = vmatpush.bf16.msra.mxu0 %v10612_v56  ;;  %v12472_v38 = vpop.eup %12471  ;;  %v5970_v32 = vmul.f32 %v12464_v57, %v5876_v7  ;;  %v10356_v59 = vor.u32 %v11563_v33, %v10355_v4  ;;  %v10645_v42 = vld [vmem:[%s17428_s3 + $0x2c8] sm:$0xf0]  ;;  %v10323_v56 = vld [vmem:[%s17428_s3 + $0x8] sm:$0xf] }
 0x50c   : > { %v12474_v52 = vpop.eup %12473  ;;  %7067 = vmatpush.bf16.msra.mxu2 %v10452_v10  ;;  %v5897_v63 = vadd.f32 %v5896_v54, %v5895_v60  ;;  %v5910_v46 = vrot.slane %v5909_v29, 1  ;;  %v5971_v16 = vmul.f32 %v12466_v61, %v5883_v34  ;;  %v10660_v40 = vor.u32 %v11637_v36, %v10659_v25  ;;  %11836 = vmatpush.bf16.msra.mxu3 %v10452_v10  ;;  %v11583_v60 = vld [vmem:[%s17428_s3 + $0x124] sm:$0xf0]  ;;  %v11595_v26 = vld [vmem:[%s17428_s3 + $0x18c] sm:$0xf] }
 0x50d   : > { %12477 = vrcp.f32 %v5655_v13  ;;  %10697 = vmatmul.msk.bf16.vlgmr.msrb.gmra.mxu0 %vm2100_vm4, %v15724_v37  ;;  %v12476_v2 = vpop.eup %12475  ;;  %10699 = vmatmul.msk.bf16.vlgmr.msrb.gmra.mxu1 %vm2100_vm4, %v15724_v37  ;;  %v5904_v39 = vadd.f32 %v5903_v21, %v5902_v19  ;;  %v5972_v43 = vmul.f32 %v12472_v38, %v5890_v35  ;;  %v6108_v48 = vsel %vm6008_vm2, %v5969_v14, %v5968_v50  ;;  %v11619_v19 = vld [vmem:[%s17428_s3 + $0x24c] sm:$0xf]  ;;  %vm17442_vm2 = vmmov %vm17439_vm10  ;;  %v11559_v22 = vld [vmem:[%s17428_s3 + $0x64] sm:$0xf0] }
 0x50e   : > { %v5973_v9 = vmul.f32 %v12474_v52, %v5897_v63  ;;  %v6109_v3 = vsel %vm6010_vm5, %v5970_v32, %v6108_v48  ;;  %v10516_v23 = vor.u32 %v11607_v31, %v10515_v47  ;;  %v5911_v6 = vadd.f32 %v5910_v46, %v5909_v29  ;;  %v10517_v58 = vld [vmem:[%s17428_s3 + $0x1e8] sm:$0xf0]  ;;  %vm17443_vm5 = vmmov %vm17440_vm13  ;;  %v10371_v21 = vld [vmem:[%s17428_s3 + $0x38] sm:$0xf] }
 0x50f   : > { %v5974_v8 = vmul.f32 %v12476_v2, %v5904_v39  ;;  %v6110_v62 = vsel %vm6012_vm6, %v5971_v16, %v6109_v3  ;;  %v10564_v0 = vor.u32 %v11613_v30, %v10563_v1  ;;  %v10420_v57 = vor.u32 %v11583_v60, %v10419_v51  ;;  %v11599_v28 = vld [vmem:[%s17428_s3 + $0x1ac] sm:$0xf]  ;;  %v11565_v13 = vld [vmem:[%s17428_s3 + $0x94] sm:$0xf0]  ;;  %v10619_v46 = vld [vmem:[%s17428_s3 + $0x250] sm:$0xf] }
 0x510   : > { %7068 = vmatpush.bf16.msra.mxu2 %v10356_v59  ;;  %11837 = vmatpush.bf16.msra.mxu3 %v10356_v59  ;;  %v6111_v41 = vsel %vm6014_vm7, %v5972_v43, %v6110_v62  ;;  %v10616_v5 = vor.u32 %v11619_v19, %v10613_v53  ;;  %v10648_v27 = vor.u32 %v11623_v55, %v10645_v42  ;;  %v10549_v45 = vld [vmem:[%s17428_s3 + $0x208] sm:$0xf0]  ;;  %v11632_v16 = vld [vmem:[%s17428_s3 + $0x2ac] sm:$0xf0]  ;;  %v10675_v39 = vld [vmem:[%s17428_s3 + $0x288] sm:$0xf] }
 0x511   : > { %6914 = vmatpush.bf16.msra.mxu0 %v10516_v23  ;;  %v6112_v20 = vsel %vm6016_vm8, %v5973_v9, %v6111_v41  ;;  %v10520_v10 = vor.u32 %v11595_v26, %v10517_v58  ;;  %v10468_v54 = vor.u32 %v11589_v49, %v10467_v15  ;;  %v10552_v29 = vor.u32 %v11599_v28, %v10549_v45  ;;  %v11571_v4 = vld [vmem:[%s17428_s3 + $0xcc] sm:$0xf]  ;;  %v11639_v43 = vld [vmem:[%s17428_s3 + $0x2e4] sm:$0xf0]  ;;  %v10523_v48 = vld [vmem:[%s17428_s3 + $0x190] sm:$0xf] }
 0x512   : > { %v6113_v44 = vsel %vm17442_vm2, %v5974_v8, %v6112_v20  ;;  %6932 = vmatpush.bf16.msra.mxu1 %v10616_v5  ;;  %v10421_v33 = vld [vmem:[%s17428_s3 + $0x128] sm:$0xf0]  ;;  %v10324_v25 = vor.u32 %v11559_v22, %v10323_v56  ;;  %v10372_v34 = vor.u32 %v11565_v13, %v10371_v21  ;;  %v10579_v1 = vld [vmem:[%s17428_s3 + $0x1c8] sm:$0xf]  ;;  %v10676_v47 = vor.u32 %v11639_v43, %v10675_v39  ;;  %v11608_v31 = vld [vmem:[%s17428_s3 + $0x1ec] sm:$0xf0] }
 0x513   : > { %v12478_v12 = vpop.eup %12477  ;;  %10717 = vmatmul.msk.bf16.vlgmr.msra.gmra.mxu2 %vm2100_vm4, %v15724_v37  ;;  %v11575_v36 = vld [vmem:[%s17428_s3 + $0xec] sm:$0xf]  ;;  %v10424_v50 = vor.u32 %v11571_v4, %v10421_v33  ;;  %v11615_v9 = vld [vmem:[%s17428_s3 + $0x224] sm:$0xf0]  ;;  %v10524_v8 = vor.u32 %v11608_v31, %v10523_v48  ;;  %v11584_v41 = vld [vmem:[%s17428_s3 + $0x12c] sm:$0xf0] }
 0x514   : > { %7141 = vmatpush.bf16.msrb.mxu2 %v10660_v40  ;;  %v5975_v61 = vmul.f32 %v12478_v12, %v5911_v6  ;;  %7084 = vmatpush.bf16.msrb.mxu3 %v10648_v27  ;;  %v10453_v38 = vld [vmem:[%s17428_s3 + $0x148] sm:$0xf0]  ;;  %v10620_v40 = vor.u32 %v11632_v16, %v10619_v46  ;;  %v10580_v23 = vor.u32 %v11615_v9, %v10579_v1  ;;  %v10483_v49 = vld [vmem:[%s17428_s3 + $0x108] sm:$0xf]  ;;  %v10427_v12 = vld [vmem:[%s17428_s3 + $0xd0] sm:$0xf] }
 0x515   : > { %6915 = vmatpush.bf16.msra.mxu0 %v10420_v57  ;;  %v10456_v14 = vor.u32 %v11575_v36, %v10453_v38  ;;  %v11547_v52 = vld [vmem:[%s17428_s3 + $0xc] sm:$0xf]  ;;  %v11591_v51 = vld [vmem:[%s17428_s3 + $0x164] sm:$0xf0]  ;;  %v10428_v57 = vor.u32 %v11584_v41, %v10427_v12  ;;  %v11620_v5 = vld [vmem:[%s17428_s3 + $0x254] sm:$0xf] }
 0x516   : > { %v6114_v18 = vsel %vm17443_vm5, %v5975_v61, %v6113_v44  ;;  %6933 = vmatpush.bf16.msra.mxu1 %v10520_v10  ;;  %v10325_v35 = vld [vmem:[%s17428_s3 + $0x68] sm:$0xf0]  ;;  %v10484_v6 = vor.u32 %v11591_v51, %v10483_v49  ;;  %v10387_v62 = vld [vmem:[%s17428_s3 + $0x48] sm:$0xf]  ;;  %v10621_v55 = vld [vmem:[%s17428_s3 + $0x2b0] sm:$0xf0] }
 0x517   : > { %v11937_v7 = vpack.i.bf16 %v6114_v18, %v15672_v17  ;;  %v11551_v32 = vld [vmem:[%s17428_s3 + $0x2c] sm:$0xf]  ;;  %v10328_v2 = vor.u32 %v11547_v52, %v10325_v35  ;;  %v11625_v42 = vld [vmem:[%s17428_s3 + $0x27c] sm:$0xf]  ;;  %v10624_v26 = vor.u32 %v11620_v5, %v10621_v55  ;;  %v11596_v20 = vld [vmem:[%s17428_s3 + $0x194] sm:$0xf] }
 0x518   : > { %7142 = vmatpush.bf16.msrb.mxu2 %v10564_v0  ;;  %7085 = vmatpush.bf16.msrb.mxu3 %v10552_v29  ;;  %v10357_v59 = vld [vmem:[%s17428_s3 + $0x88] sm:$0xf0]  ;;  %v11567_v0 = vld [vmem:[%s17428_s3 + $0xa4] sm:$0xf0]  ;;  %v10661_v61 = vld [vmem:[%s17428_s3 + $0x2d8] sm:$0xf0] }
 0x519   : > { %11938 = vrot.lane.b32.xlu2 %v11937_v7, %s17441_s5  ;;  %6916 = vmatpush.bf16.msra.mxu0 %v10324_v25  ;;  %v10360_v63 = vor.u32 %v11551_v32, %v10357_v59  ;;  %v10525_v27 = vld [vmem:[%s17428_s3 + $0x1f0] sm:$0xf0]  ;;  %v10664_v58 = vor.u32 %v11625_v42, %v10661_v61  ;;  %v11601_v28 = vld [vmem:[%s17428_s3 + $0x1bc] sm:$0xf]  ;;  %v10331_v44 = vld [vmem:[%s17428_s3 + $0x10] sm:$0xf] }
 0x51a   : > { %6934 = vmatpush.bf16.msra.mxu1 %v10424_v50  ;;  %v10565_v45 = vld [vmem:[%s17428_s3 + $0x218] sm:$0xf0]  ;;  %v10528_v10 = vor.u32 %v11596_v20, %v10525_v27  ;;  %v11560_v56 = vld [vmem:[%s17428_s3 + $0x6c] sm:$0xf0]  ;;  %v10429_v21 = vld [vmem:[%s17428_s3 + $0x130] sm:$0xf0] }
 0x51b   : > { %v10568_v22 = vor.u32 %v11601_v28, %v10565_v45  ;;  %v10332_v18 = vor.u32 %v11560_v56, %v10331_v44  ;;  %v11577_v29 = vld [vmem:[%s17428_s3 + $0xfc] sm:$0xf]  ;;  %v11548_v13 = vld [vmem:[%s17428_s3 + $0x14] sm:$0xf]  ;;  %v11633_v52 = vld [vmem:[%s17428_s3 + $0x2b4] sm:$0xf0] }
 0x51c   : > { %7143 = vmatpush.bf16.msrb.mxu2 %v10468_v54  ;;  %7086 = vmatpush.bf16.msrb.mxu3 %v10456_v14  ;;  %v11572_v54 = vld [vmem:[%s17428_s3 + $0xd4] sm:$0xf]  ;;  %v10469_v4 = vld [vmem:[%s17428_s3 + $0x158] sm:$0xf0]  ;;  %v10627_v14 = vld [vmem:[%s17428_s3 + $0x258] sm:$0xf] }
 0x51d   : > { %6951 = vmatpush.bf16.msrb.mxu0 %v10620_v40  ;;  %v10432_v33 = vor.u32 %v11572_v54, %v10429_v21  ;;  %v10472_v7 = vor.u32 %v11577_v29, %v10469_v4  ;;  %v10333_v25 = vld [vmem:[%s17428_s3 + $0x70] sm:$0xf0]  ;;  %v11553_v36 = vld [vmem:[%s17428_s3 + $0x3c] sm:$0xf]  ;;  %v10691_v35 = vld [vmem:[%s17428_s3 + $0x298] sm:$0xf] }
 0x51e   : > { %6935 = vmatpush.bf16.msra.mxu1 %v10328_v2  ;;  %v10373_v38 = vld [vmem:[%s17428_s3 + $0x98] sm:$0xf0]  ;;  %v10336_v50 = vor.u32 %v11548_v13, %v10333_v25  ;;  %v11641_v32 = vld [vmem:[%s17428_s3 + $0x2f4] sm:$0xf0]  ;;  %v10485_v61 = vld [vmem:[%s17428_s3 + $0x168] sm:$0xf0] }
 0x51f   : > { %v6223_v17 = vpop.f32.mrf.mxu0  ;;  %v10595_v59 = vld [vmem:[%s17428_s3 + $0x1d8] sm:$0xf]  ;;  %v10692_v2 = vor.u32 %v11641_v32, %v10691_v35  ;;  %v11621_v9 = vld [vmem:[%s17428_s3 + $0x25c] sm:$0xf]  ;;  %v10635_v20 = vld [vmem:[%s17428_s3 + $0x260] sm:$0xf] }
 0x520   : > { %7144 = vmatpush.bf16.msrb.mxu2 %v10372_v34  ;;  %7087 = vmatpush.bf16.msrb.mxu3 %v10360_v63  ;;  %v6224_v30 = vadd.f32 %v15675_v11, %v6223_v17  ;;  %v10376_v34 = vor.u32 %v11553_v36, %v10373_v38  ;;  %v10628_v17 = vor.u32 %v11633_v52, %v10627_v14  ;;  %v11617_v63 = vld [vmem:[%s17428_s3 + $0x234] sm:$0xf0]  ;;  %v10629_v48 = vld [vmem:[%s17428_s3 + $0x2b8] sm:$0xf0]  ;;  %v10539_v28 = vld [vmem:[%s17428_s3 + $0x1a0] sm:$0xf] }
 0x521   : > { %7500 = vrot.lane.b32.xlu2 %v15666_v24, %s17418_s4  ;;  %6952 = vmatpush.bf16.msrb.mxu0 %v10524_v8  ;;  %v10531_v46 = vld [vmem:[%s17428_s3 + $0x198] sm:$0xf]  ;;  %v10596_v39 = vor.u32 %v11617_v63, %v10595_v59  ;;  %v10632_v8 = vor.u32 %v11621_v9, %v10629_v48  ;;  %v10533_v51 = vld [vmem:[%s17428_s3 + $0x1f8] sm:$0xf0]  ;;  %v11610_v45 = vld [vmem:[%s17428_s3 + $0x1fc] sm:$0xf0] }
 0x522   : > { %12479 = vtanh.f32 %v6224_v30  ;;  %6970 = vmatpush.bf16.msrb.mxu1 %v10624_v26  ;;  %v11609_v16 = vld [vmem:[%s17428_s3 + $0x1f4] sm:$0xf0]  ;;  %v11573_v5 = vld [vmem:[%s17428_s3 + $0xdc] sm:$0xf]  ;;  %v11579_v26 = vld [vmem:[%s17428_s3 + $0x10c] sm:$0xf]  ;;  %v10540_v29 = vor.u32 %v11610_v45, %v10539_v28 }
 0x523   : > { %10725 = vmatmul.msk.bf16.vlgmr.msrb.gmra.mxu2 %vm2100_vm4, %v15724_v37  ;;  %v10532_v40 = vor.u32 %v11609_v16, %v10531_v46  ;;  %v10499_v43 = vld [vmem:[%s17428_s3 + $0x118] sm:$0xf]  ;;  %v10437_v42 = vld [vmem:[%s17428_s3 + $0x138] sm:$0xf0]  ;;  %v11555_v54 = vld [vmem:[%s17428_s3 + $0x4c] sm:$0xf] }
 0x524   : > { %7217 = vmatpush.bf16.msra.mxu2 %v10676_v47  ;;  %v11593_v1 = vld [vmem:[%s17428_s3 + $0x174] sm:$0xf0]  ;;  %v10440_v44 = vor.u32 %v11573_v5, %v10437_v42  ;;  %v11549_v56 = vld [vmem:[%s17428_s3 + $0x1c] sm:$0xf]  ;;  %v10389_v21 = vld [vmem:[%s17428_s3 + $0xa8] sm:$0xf0] }
 0x525   : > { %6953 = vmatpush.bf16.msrb.mxu0 %v10428_v57  ;;  %v10435_v30 = vld [vmem:[%s17428_s3 + $0xd8] sm:$0xf]  ;;  %v10443_v36 = vld [vmem:[%s17428_s3 + $0xe0] sm:$0xf]  ;;  %v10637_v14 = vld [vmem:[%s17428_s3 + $0x2c0] sm:$0xf0] }
 0x526   : > { %6971 = vmatpush.bf16.msrb.mxu1 %v10528_v10  ;;  %v11585_v47 = vld [vmem:[%s17428_s3 + $0x134] sm:$0xf0]  ;;  %v10488_v10 = vor.u32 %v11579_v26, %v10485_v61  ;;  %v11586_v38 = vld [vmem:[%s17428_s3 + $0x13c] sm:$0xf0]  ;;  %v11629_v52 = vld [vmem:[%s17428_s3 + $0x29c] sm:$0xf] }
 0x527   : > { %v10436_v31 = vor.u32 %v11585_v47, %v10435_v30  ;;  %v11569_v12 = vld [vmem:[%s17428_s3 + $0xb4] sm:$0xf0]  ;;  %v10693_v32 = vld [vmem:[%s17428_s3 + $0x2f8] sm:$0xf0]  ;;  %v11598_v59 = vld [vmem:[%s17428_s3 + $0x1a4] sm:$0xf] }
 0x528   : > { %v6226_v3 = vpop.f32.mrf.mxu0  ;;  %7218 = vmatpush.bf16.msra.mxu2 %v10580_v23  ;;  %v12480_v60 = vpop.eup %12479  ;;  %v10677_v23 = vld [vmem:[%s17428_s3 + $0x2e8] sm:$0xf0]  ;;  %v10696_v16 = vor.u32 %v11629_v52, %v10693_v32  ;;  %v12517_v47 = vld [vmem:[%s13744_s9 + $0x18] sm:$0xff]  ;;  %v11550_v5 = vld [vmem:[%s17428_s3 + $0x24] sm:$0xf]  ;;  %vm7504_vm6 = vcmask 785408  }
 0x529   : > { %v6227_v15 = vadd.f32 %v15675_v11, %v6226_v3  ;;  %v10388_v11 = vor.u32 %v11567_v0, %v10387_v62  ;;  %6954 = vmatpush.bf16.msrb.mxu0 %v10332_v18  ;;  %v11627_v3 = vld [vmem:[%s17428_s3 + $0x28c] sm:$0xf]  ;;  %v10500_v0 = vor.u32 %v11593_v1, %v10499_v43  ;;  %v10341_v18 = vld [vmem:[%s17428_s3 + $0x78] sm:$0xf0]  ;;  %v10347_v43 = vld [vmem:[%s17428_s3 + $0x20] sm:$0xf] }
 0x52a   : > { %6972 = vmatpush.bf16.msrb.mxu1 %v10432_v33  ;;  %v10680_v49 = vor.u32 %v11627_v3, %v10677_v23  ;;  %v10581_v62 = vld [vmem:[%s17428_s3 + $0x228] sm:$0xf0]  ;;  %v10344_v4 = vor.u32 %v11549_v56, %v10341_v18  ;;  %v10392_v33 = vor.u32 %v11555_v54, %v10389_v21  ;;  %v12516_v1 = vld [vmem:[%s13744_s9 + $0x10] sm:$0xff]  ;;  %v11557_v42 = vld [vmem:[%s17428_s3 + $0x5c] sm:$0xf]  ;;  %s17444_s9 = sld [smem:[#allocation9_spill]] }
 0x52b   : > { %12481 = vtanh.f32 %v6227_v15  ;;  %v11597_v15 = vld [vmem:[%s17428_s3 + $0x19c] sm:$0xf]  ;;  %v15936_v18 = vld [vmem:[%s17445_s1] sm:$0xff]  ;;  %vm17455_vm7 = vcmask 1041408   ;;  %vm17473_vm8 = vcmask 15360  }
 0x52c   : > { %7219 = vmatpush.bf16.msra.mxu2 %v10484_v6  ;;  %v11603_v6 = vld [vmem:[%s17428_s3 + $0x1cc] sm:$0xf]  ;;  %v10536_v41 = vor.u32 %v11597_v15, %v10533_v51  ;;  %v10405_v26 = vld [vmem:[%s17428_s3 + $0xb8] sm:$0xf0]  ;;  %v15940_v21 = vperm.slane %v15936_v18, 0  ;;  %vm17475_vm14 = vmmov %vm17473_vm8 }
 0x52d   : > { %v10584_v57 = vor.u32 %v11603_v6, %v10581_v62  ;;  %v11574_v6 = vld [vmem:[%s17428_s3 + $0xe4] sm:$0xf]  ;;  %vm17476_vm12 = vmmov %vm17473_vm8 }
 0x52e   : > { %6973 = vmatpush.bf16.msrb.mxu1 %v10336_v50  ;;  %v10444_v50 = vor.u32 %v11586_v38, %v10443_v36  ;;  %v10445_v62 = vld [vmem:[%s17428_s3 + $0x140] sm:$0xf0]  ;;  %vm17478_vm0 = vmmov %vm17473_vm8 }
 0x530   : > { %7220 = vmatpush.bf16.msra.mxu2 %v10388_v11  ;;  %v10403_v11 = vld [vmem:[%s17428_s3 + $0x58] sm:$0xf]  ;;  %v11648_v56 = vld [vmem:[%s17444_s9 + $0x30] sm:$0xff]  ;;  %v11647_v54 = vld [vmem:[%s17444_s9 + $0x28] sm:$0xff] }
 0x531   : > { %v12482_v19 = vpop.eup %12481  ;;  %v10404_v27 = vor.u32 %v11569_v12, %v10403_v11  ;;  %v11649_v45 = vld [vmem:[%s17444_s9 + $0x38] sm:$0xff]  ;;  %v11646_v52 = vld [vmem:[%s17444_s9 + $0x20] sm:$0xff] }
 0x532   : > { %v15791_v53 = vpack.c.bf16 %v12482_v19, %v12480_v60  ;;  %v10339_v60 = vld [vmem:[%s17428_s3 + $0x18] sm:$0xf] }
 0x533   : > { %v11561_v19 = vld [vmem:[%s17428_s3 + $0x74] sm:$0xf0] }
 0x534   : > { %10698 = vmatmul.msk.bf16.gmra.mxu0 %vm2100_vm4, %v15791_v53  ;;  %10700 = vmatmul.msk.bf16.gmra.mxu1 %vm2100_vm4, %v15791_v53  ;;  %v10340_v55 = vor.u32 %v11561_v19, %v10339_v60  ;;  %v10501_v60 = vld [vmem:[%s17428_s3 + $0x178] sm:$0xf0] }
 0x535   : > { %10718 = vmatmul.msk.bf16.vlgmr.msra.gmra.mxu3 %vm2100_vm4, %v15791_v53  ;;  %10726 = vmatmul.msk.bf16.gmra.mxu2 %vm2100_vm4, %v15791_v53 }
 0x536   : > { %7160 = vmatpush.bf16.msra.mxu3 %v10664_v58  ;;  %7293 = vmatpush.bf16.msrb.mxu2 %v10692_v2  ;;  %v11634_v58 = vld [vmem:[%s17428_s3 + $0x2bc] sm:$0xf0]  ;;  %v10541_v2 = vld [vmem:[%s17428_s3 + $0x200] sm:$0xf0] }
 0x537   : > { %v10544_v48 = vor.u32 %v11598_v59, %v10541_v2  ;;  %v11624_v2 = vld [vmem:[%s17428_s3 + $0x274] sm:$0xf] }
 0x53a   : > { %7161 = vmatpush.bf16.msra.mxu3 %v10568_v22  ;;  %7294 = vmatpush.bf16.msrb.mxu2 %v10596_v39  ;;  %v10636_v22 = vor.u32 %v11634_v58, %v10635_v20  ;;  %v10597_v39 = vld [vmem:[%s17428_s3 + $0x238] sm:$0xf0]  ;;  %v10408_v20 = vor.u32 %v11557_v42, %v10405_v26  ;;  %v11636_v58 = vld [vmem:[%s17428_s3 + $0x2cc] sm:$0xf0]  ;;  %v11638_v42 = vld [vmem:[%s17428_s3 + $0x2dc] sm:$0xf0] }
 0x53e   : > { %7162 = vmatpush.bf16.msra.mxu3 %v10472_v7  ;;  %7295 = vmatpush.bf16.msrb.mxu2 %v10500_v0  ;;  %v11934_v7 = vpop.permute.xlu1 %11933  ;;  %v11581_v0 = vld [vmem:[%s17428_s3 + $0x11c] sm:$0xf] }
 0x53f   : > { %v11936_v13 = vunpack.i.h.bf16 %v11934_v7  ;;  %v11935_v25 = vunpack.i.l.bf16 %v11934_v7 }
 0x541   : > { %v6129_v30 = vsel %vm1774_vm3, %v12516_v1, %v11935_v25  ;;  %v6130_v9 = vsel %vm1774_vm3, %v12517_v47, %v11936_v13 }
 0x542   : > { %7163 = vmatpush.bf16.msra.mxu3 %v10376_v34  ;;  %7296 = vmatpush.bf16.msrb.mxu2 %v10404_v27  ;;  %v11622_v34 = vld [vmem:[%s17428_s3 + $0x264] sm:$0xf]  ;;  %v10651_v27 = vld [vmem:[%s17428_s3 + $0x270] sm:$0xf] }
 0x543   : > { %v10652_v28 = vor.u32 %v11636_v58, %v10651_v27 }
 0x544   : > { %10701 = vmatmul.msk.bf16.vlgmr.msra.gmra.mxu0 %vm2100_vm4, %v15724_v37  ;;  %10703 = vmatmul.msk.bf16.vlgmr.msra.gmra.mxu1 %vm2100_vm4, %v15724_v37 }
 0x545   : > { %10719 = vmatmul.msk.bf16.vlgmr.msrb.gmra.mxu3 %vm2100_vm4, %v15724_v37  ;;  %10733 = vmatmul.msk.bf16.vlgmr.msra.gmra.mxu2 %vm2100_vm4, %v15724_v37 }
 0x546   : > { %6989 = vmatpush.bf16.msra.mxu0 %v10628_v17  ;;  %7008 = vmatpush.bf16.msra.mxu1 %v10632_v8  ;;  %v10640_v17 = vor.u32 %v11622_v34, %v10637_v14 }
 0x547   : > { %7236 = vmatpush.bf16.msrb.mxu3 %v10680_v49 }
 0x54a   : > { %6990 = vmatpush.bf16.msra.mxu0 %v10532_v40  ;;  %7009 = vmatpush.bf16.msra.mxu1 %v10536_v41  ;;  %v11605_v40 = vld [vmem:[%s17428_s3 + $0x1dc] sm:$0xf]  ;;  %v10448_v41 = vor.u32 %v11574_v6, %v10445_v62  ;;  %v11576_v6 = vld [vmem:[%s17428_s3 + $0xf4] sm:$0xf] }
 0x54b   : > { %7237 = vmatpush.bf16.msrb.mxu3 %v10584_v57  ;;  %v10600_v23 = vor.u32 %v11605_v40, %v10597_v39  ;;  %v10504_v57 = vor.u32 %v11581_v0, %v10501_v60  ;;  %v11645_v40 = vld [vmem:[%s17444_s9 + $0x18] sm:$0xff]  ;;  %v10461_v0 = vld [vmem:[%s17428_s3 + $0x150] sm:$0xf0] }
 0x54c   : > { %v10464_v60 = vor.u32 %v11576_v6, %v10461_v0  ;;  %v16061_v0 = vld [vmem:[%s17445_s1 + $0x8] sm:$0xff] }
 0x54e   : > { %6991 = vmatpush.bf16.msra.mxu0 %v10436_v31  ;;  %7010 = vmatpush.bf16.msra.mxu1 %v10440_v44  ;;  %v11562_v31 = vld [vmem:[%s17428_s3 + $0x7c] sm:$0xf0]  ;;  %v10555_v44 = vld [vmem:[%s17428_s3 + $0x1b0] sm:$0xf] }
 0x54f   : > { %7238 = vmatpush.bf16.msrb.mxu3 %v10488_v10  ;;  %v10348_v15 = vor.u32 %v11562_v31, %v10347_v43  ;;  %v11612_v10 = vld [vmem:[%s17428_s3 + $0x20c] sm:$0xf0]  ;;  %v11600_v31 = vld [vmem:[%s17428_s3 + $0x1b4] sm:$0xf] }
 0x552   : > { %6992 = vmatpush.bf16.msra.mxu0 %v10340_v55  ;;  %7011 = vmatpush.bf16.msra.mxu1 %v10344_v4  ;;  %v10349_v55 = vld [vmem:[%s17428_s3 + $0x80] sm:$0xf0]  ;;  %v15943_v4 = vperm.slane %v15936_v18, 1 }
 0x553   : > { %7239 = vmatpush.bf16.msrb.mxu3 %v10392_v33  ;;  %v10352_v61 = vor.u32 %v11550_v5, %v10349_v55  ;;  %v10667_v55 = vld [vmem:[%s17428_s3 + $0x280] sm:$0xf] }
 0x554   : > { %10702 = vmatmul.msk.bf16.gmra.mxu0 %vm2100_vm4, %v15791_v53  ;;  %10704 = vmatmul.msk.bf16.gmra.mxu1 %vm2100_vm4, %v15791_v53  ;;  %v10668_v26 = vor.u32 %v11638_v42, %v10667_v55 }
 0x555   : > { %10720 = vmatmul.msk.bf16.gmra.mxu3 %vm2100_vm4, %v15791_v53  ;;  %10734 = vmatmul.msk.bf16.gmra.mxu2 %vm2100_vm4, %v15791_v53 }
 0x564   : > { %10705 = vmatmul.msk.bf16.vlgmr.msrb.gmra.mxu0 %vm2100_vm4, %v15724_v37  ;;  %10707 = vmatmul.msk.bf16.vlgmr.msrb.gmra.mxu1 %vm2100_vm4, %v15724_v37 }
 0x565   : > { %10727 = vmatmul.msk.bf16.vlgmr.msra.gmra.mxu3 %vm2100_vm4, %v15724_v37  ;;  %7027 = vmatpush.bf16.msrb.mxu0 %v10636_v22  ;;  %v10556_v22 = vor.u32 %v11612_v10, %v10555_v44  ;;  %v10571_v44 = vld [vmem:[%s17428_s3 + $0x1c0] sm:$0xf] }
 0x566   : > { %10741 = vmatmul.msk.bf16.vlgmr.msrb.gmra.mxu2 %vm2100_vm4, %v15724_v37  ;;  %7046 = vmatpush.bf16.msrb.mxu1 %v10640_v17  ;;  %v11588_v17 = vld [vmem:[%s17428_s3 + $0x14c] sm:$0xf0]  ;;  %v11614_v10 = vld [vmem:[%s17428_s3 + $0x21c] sm:$0xf0] }
 0x567   : > { %7312 = vmatpush.bf16.msra.mxu3 %v10696_v16 }
 0x569   : > { %7028 = vmatpush.bf16.msrb.mxu0 %v10540_v29 }
 0x56a   : > { %7047 = vmatpush.bf16.msrb.mxu1 %v10544_v48 }
 0x56b   : > { %7313 = vmatpush.bf16.msra.mxu3 %v10600_v23  ;;  %v16271_v23 = vld [vmem:[%s17445_s1 + $0x10] sm:$0xff] }
 0x56d   : > { %7029 = vmatpush.bf16.msrb.mxu0 %v10444_v50  ;;  %v15947_v25 = vpop.permute.xlu1 %7496  ;;  %v15953_v36 = vpop.permute.xlu0 %7492 }
 0x56e   : > { %7048 = vmatpush.bf16.msrb.mxu1 %v10448_v41  ;;  %v10365_v41 = vld [vmem:[%s17428_s3 + $0x90] sm:$0xf0] }
 0x56f   : > { %7314 = vmatpush.bf16.msra.mxu3 %v10504_v57  ;;  %v11642_v57 = vld [vmem:[%s17444_s9] sm:$0xff] }
 0x571   : > { %7030 = vmatpush.bf16.msrb.mxu0 %v10348_v15 }
 0x572   : > { %7049 = vmatpush.bf16.msrb.mxu1 %v10352_v61 }
 0x573   : > { %v11939_v35 = vpop.permute.xlu2 %11938  ;;  %7315 = vmatpush.bf16.msra.mxu3 %v10408_v20 }
 0x574   : > { %10706 = vmatmul.msk.bf16.gmra.mxu0 %vm2100_vm4, %v15791_v53  ;;  %10708 = vmatmul.msk.bf16.gmra.mxu1 %vm2100_vm4, %v15791_v53  ;;  %v11941_v63 = vunpack.i.h.bf16 %v11939_v35  ;;  %v11940_v46 = vunpack.i.l.bf16 %v11939_v35  ;;  %v10459_v35 = vld [vmem:[%s17428_s3 + $0xf0] sm:$0xf] }
 0x575   : > { %10728 = vmatmul.msk.bf16.gmra.mxu3 %vm2100_vm4, %v15791_v53  ;;  %v10460_v59 = vor.u32 %v11588_v17, %v10459_v35  ;;  %v11602_v35 = vld [vmem:[%s17428_s3 + $0x1c4] sm:$0xf] }
 0x576   : > { %v6134_v8 = vsel %vm2100_vm4, %v6130_v9, %v11941_v63  ;;  %v6133_v3 = vsel %vm2100_vm4, %v6129_v30, %v11940_v46  ;;  %10742 = vmatmul.msk.bf16.gmra.mxu2 %vm2100_vm4, %v15791_v53  ;;  %v10653_v63 = vld [vmem:[%s17428_s3 + $0x2d0] sm:$0xf0]  ;;  %v7514_v46 = vsel %vm2100_vm4, %v15953_v36, %v15947_v25  ;;  %v10573_v17 = vld [vmem:[%s17428_s3 + $0x220] sm:$0xf0] }
 0x577   : > { %v7481_v49 = vpack.c.bf16 %v6134_v8, %v6134_v8  ;;  %v7480_v51 = vpack.c.bf16 %v6133_v3, %v6133_v3  ;;  %v10656_v16 = vor.u32 %v11624_v2, %v10653_v63  ;;  %v15973_v1 = vunpack.c.l.bf16 %v7514_v46  ;;  %v10557_v8 = vld [vmem:[%s17428_s3 + $0x210] sm:$0xf0]  ;;  %v10379_v63 = vld [vmem:[%s17428_s3 + $0x40] sm:$0xf] }
 0x578   : > { %v15975_v30 = vunpack.c.h.bf16 %v7514_v46  ;;  %v11644_v3 = vld [vmem:[%s17444_s9 + $0x10] sm:$0xff]  ;;  %v10560_v15 = vor.u32 %v11600_v31, %v10557_v8  ;;  %v11566_v46 = vld [vmem:[%s17428_s3 + $0x9c] sm:$0xf0] }
 0x579   : > { %v7489_v19 = vunpack.c.l.b16 %v7481_v49  ;;  %v7488_v11 = vunpack.c.l.b16 %v7480_v51  ;;  %v10363_v49 = vld [vmem:[%s17428_s3 + $0x30] sm:$0xf] }
 0x57a   : > { %v11564_v51 = vld [vmem:[%s17428_s3 + $0x8c] sm:$0xf0] }
 0x57b   : > { %v15909_v12 = vpack.c.b16 %v7489_v19, %v7488_v11  ;;  %v10364_v62 = vor.u32 %v11564_v51, %v10363_v49  ;;  %v11643_v19 = vld [vmem:[%s17444_s9 + $0x8] sm:$0xff]  ;;  %v11552_v11 = vld [vmem:[%s17428_s3 + $0x34] sm:$0xf] }
 0x57c   : > { %v10368_v5 = vor.u32 %v11552_v11, %v10365_v41  ;;  %v16067_v11 = vperm.slane %v16061_v0, 2 }
 0x57d   : > { %7502 = vrot.lane.b32.xlu2 %v15909_v12, %s17418_s4  ;;  %7498 = vrot.lane.b32.xlu1 %v15909_v12, %s17441_s5 }
 0x57e   : > { %7494 = vrot.lane.b32.xlu0 %v15909_v12, %s17116_s8  ;;  %s17453_s8 = sld [smem:[#allocation29_spill]] }
 0x584   : > { %10709 = vmatmul.msk.bf16.vlgmr.msra.gmra.mxu0 %vm2100_vm4, %v15724_v37  ;;  %10711 = vmatmul.msk.bf16.vlgmr.msra.gmra.mxu1 %vm2100_vm4, %v15724_v37 }
 0x585   : > { %10735 = vmatmul.msk.bf16.vlgmr.msrb.gmra.mxu3 %vm2100_vm4, %v15724_v37  ;;  %7103 = vmatpush.bf16.msra.mxu0 %v10652_v28 }
 0x586   : > { %9361 = vmatpush.bf16.msrb.mxu3 %v11649_v45  ;;  %7122 = vmatpush.bf16.msra.mxu1 %v10656_v16  ;;  %v7507_v45 = vsel %vm7504_vm6, %v15666_v24, %v15953_v36  ;;  %v16035_v24 = vperm.slane %v15936_v18, 2  ;;  %v11578_v16 = vld [vmem:[%s17428_s3 + $0x104] sm:$0xf] }
 0x589   : > { %7104 = vmatpush.bf16.msra.mxu0 %v10556_v22 }
 0x58a   : > { %9362 = vmatpush.bf16.msrb.mxu3 %v11648_v56  ;;  %v6880_v29 = vpop.f32.mrf.mxu0  ;;  %v6899_v33 = vpop.f32.mrf.mxu1  ;;  %7123 = vmatpush.bf16.msra.mxu1 %v10560_v15  ;;  %v10475_v56 = vld [vmem:[%s17428_s3 + $0x100] sm:$0xf] }
 0x58b   : > { %v6881_v7 = vadd.f32 %v6880_v29, %v15940_v21  ;;  %v6900_v13 = vadd.f32 %v6899_v33, %v15943_v4  ;;  %v11590_v29 = vld [vmem:[%s17428_s3 + $0x15c] sm:$0xf0]  ;;  %v11626_v33 = vld [vmem:[%s17428_s3 + $0x284] sm:$0xf] }
 0x58c   : > { %v10476_v36 = vor.u32 %v11590_v29, %v10475_v56 }
 0x58d   : > { %v15957_v38 = vpack.c.bf16 %v6900_v13, %v6881_v7  ;;  %7105 = vmatpush.bf16.msra.mxu0 %v10460_v59  ;;  %v10669_v7 = vld [vmem:[%s17428_s3 + $0x2e0] sm:$0xf0]  ;;  %v16044_v59 = vunpack.c.l.bf16 %v7507_v45 }
 0x58e   : > { %9363 = vmatpush.bf16.msrb.mxu3 %v11647_v54  ;;  %7124 = vmatpush.bf16.msra.mxu1 %v10464_v60  ;;  %v10572_v54 = vor.u32 %v11614_v10, %v10571_v44  ;;  %v10672_v13 = vor.u32 %v11626_v33, %v10669_v7  ;;  %v16064_v60 = vperm.slane %v16061_v0, 3 }
 0x58f   : > { %v7574_v39 = vunpack.c.h.bf16 %v15957_v38 }
 0x591   : > { %v15979_v9 = vmul.f32 %v15973_v1, %v7574_v39  ;;  %7106 = vmatpush.bf16.msra.mxu0 %v10364_v62 }
 0x592   : > { %v6882_v50 = vpop.f32.mrf.mxu0  ;;  %v6901_v14 = vpop.f32.mrf.mxu1  ;;  %9364 = vmatpush.bf16.msrb.mxu3 %v11646_v52  ;;  %7125 = vmatpush.bf16.msra.mxu1 %v10368_v5  ;;  %v16039_v52 = vperm.slane %v15936_v18, 3 }
 0x593   : > { %v6883_v34 = vadd.f32 %v6882_v50, %v15940_v21  ;;  %v6902_v32 = vadd.f32 %v6901_v14, %v15943_v4  ;;  %v16031_v50 = vunpack.c.h.bf16 %v7507_v45  ;;  %v11681_v14 = vld [vmem:[%s17444_s9 + $0x138] sm:$0xff]  ;;  %v7501_v5 = vpop.permute.xlu2 %7500 }
 0x594   : > { %10710 = vmatmul.msk.bf16.gmra.mxu0 %vm2100_vm4, %v15791_v53  ;;  %10712 = vmatmul.msk.bf16.gmra.mxu1 %vm2100_vm4, %v15791_v53  ;;  %v7520_v45 = vsel %vm1774_vm3, %v15947_v25, %v7501_v5 }
 0x595   : > { %10736 = vmatmul.msk.bf16.gmra.mxu3 %vm2100_vm4, %v15791_v53  ;;  %v15971_v43 = vpack.c.bf16 %v6902_v32, %v6883_v34  ;;  %v7573_v34 = vunpack.c.l.bf16 %v15957_v38  ;;  %v11680_v32 = vld [vmem:[%s17444_s9 + $0x130] sm:$0xff]  ;;  %v10576_v38 = vor.u32 %v11602_v35, %v10573_v17  ;;  %v16075_v29 = vunpack.c.l.bf16 %v7520_v45 }
 0x596   : > { %9365 = vmatpush.bf16.msrb.mxu3 %v11645_v40  ;;  %v7070_v40 = vpop.f32.mrf.mxu2  ;;  %v16077_v33 = vunpack.c.h.bf16 %v7520_v45 }
 0x597   : > { %v7598_v47 = vunpack.c.h.bf16 %v15971_v43  ;;  %v7597_v22 = vunpack.c.l.bf16 %v15971_v43  ;;  %v10477_v43 = vld [vmem:[%s17428_s3 + $0x160] sm:$0xf0] }
 0x598   : > { %v10480_v51 = vor.u32 %v11578_v16, %v10477_v43 }
 0x599   : > { %v15982_v48 = vmul.f32 %v15975_v30, %v7598_v47  ;;  %v7705_v2 = vmul.f32 %v16031_v50, %v7597_v22  ;;  %v7681_v47 = vmul.f32 %v16044_v59, %v7573_v34 }
 0x59a   : > { %9366 = vmatpush.bf16.msrb.mxu3 %v11644_v3  ;;  %v10380_v3 = vor.u32 %v11566_v46, %v10379_v63 }
 0x59b   : > { %v7777_v6 = vpack.c.bf16 %v7705_v2, %v7681_v47 }
 0x59e   : > { %9367 = vmatpush.bf16.msrb.mxu3 %v11643_v19  ;;  %v7072_v55 = vpop.f32.mrf.mxu2 }
 0x5a2   : > { %9368 = vmatpush.bf16.msrb.mxu3 %v11642_v57 }
 0x5a4   : > { %10713 = vmatmul.msk.bf16.vlgmr.msrb.gmra.mxu0 %vm2100_vm4, %v15724_v37  ;;  %10715 = vmatmul.msk.bf16.vlgmr.msrb.gmra.mxu1 %vm2100_vm4, %v15724_v37 }
 0x5a5   : > { %10743 = vmatmul.msk.bf16.vlgmr.msra.gmra.mxu3 %vm2100_vm4, %v15724_v37  ;;  %7179 = vmatpush.bf16.msrb.mxu0 %v10668_v26 }
 0x5a6   : > { %7198 = vmatpush.bf16.msrb.mxu1 %v10672_v13  ;;  %9437 = vmatpush.bf16.msra.mxu3 %v11681_v14 }
 0x5a9   : > { %7180 = vmatpush.bf16.msrb.mxu0 %v10572_v54  ;;  %v7071_v54 = vadd.f32 %v7070_v40, %v16067_v11 }
 0x5aa   : > { %7199 = vmatpush.bf16.msrb.mxu1 %v10576_v38  ;;  %9438 = vmatpush.bf16.msra.mxu3 %v11680_v32  ;;  %v7073_v32 = vadd.f32 %v7072_v55, %v16067_v11 }
 0x5ad   : > { %7181 = vmatpush.bf16.msrb.mxu0 %v10476_v36 }
 0x5ae   : > { %7200 = vmatpush.bf16.msrb.mxu1 %v10480_v51  ;;  %v11554_v51 = vld [vmem:[%s17428_s3 + $0x44] sm:$0xf] }
 0x5b1   : > { %v16005_v61 = vpop.f32.mrf.mxu0  ;;  %v16007_v20 = vpop.f32.mrf.mxu1  ;;  %7182 = vmatpush.bf16.msrb.mxu0 %v10380_v3 }
 0x5b4   : > { %10714 = vmatmul.msk.bf16.gmra.mxu0 %vm2100_vm4, %v15791_v53  ;;  %10716 = vmatmul.msk.bf16.gmra.mxu1 %vm2100_vm4, %v15791_v53 }
 0x5b5   : > { %10744 = vmatmul.msk.bf16.gmra.mxu3 %vm2100_vm4, %v15791_v53 }
 0x5b8   : > { %v16015_v27 = vpop.f32.mrf.mxu3 }
 0x5b9   : > { %v16017_v58 = vpop.f32.mrf.mxu0  ;;  %v16019_v28 = vpop.f32.mrf.mxu1  ;;  %v7076_v45 = vadd.f32 %v16015_v27, %v16067_v11  ;;  %v11677_v27 = vld [vmem:[%s17444_s9 + $0x118] sm:$0xff] }
 0x5c0   : > { %v16050_v39 = vpop.f32.mrf.mxu3 }
 0x5c1   : > { %v6918_v31 = vpop.f32.mrf.mxu0  ;;  %v6937_v8 = vpop.f32.mrf.mxu1 }
 0x5c2   : > { %v6919_v15 = vadd.f32 %v6918_v31, %v16035_v24  ;;  %v6938_v49 = vadd.f32 %v6937_v8, %v16039_v52  ;;  %v16104_v8 = vpop.f32.mrf.mxu2 }
 0x5c4   : > { %v7526_v62 = vpack.c.bf16 %v6938_v49, %v6919_v15  ;;  %10721 = vmatmul.msk.bf16.vlgmr.msra.gmra.mxu0 %vm2100_vm4, %v15724_v37  ;;  %10723 = vmatmul.msk.bf16.vlgmr.msra.gmra.mxu1 %vm2100_vm4, %v15724_v37  ;;  %v11679_v49 = vld [vmem:[%s17444_s9 + $0x128] sm:$0xff] }
 0x5c5   : > { %9369 = vmatmul.bf16.vlgmr.msrb.gmra.mxu3 %v7777_v6  ;;  %v10381_v6 = vld [vmem:[%s17428_s3 + $0xa0] sm:$0xf0] }
 0x5c6   : > { %v7575_v10 = vunpack.c.l.bf16 %v7526_v62  ;;  %v7576_v56 = vunpack.c.h.bf16 %v7526_v62  ;;  %v10683_v62 = vld [vmem:[%s17428_s3 + $0x290] sm:$0xf]  ;;  %9439 = vmatpush.bf16.msra.mxu3 %v11679_v49  ;;  %v10384_v5 = vor.u32 %v11554_v51, %v10381_v6  ;;  %v16147_v6 = vperm.slane %v15936_v18, 4 }
 0x5c8   : > { %v7089_v19 = vpop.f32.mrf.mxu3  ;;  %v16082_v36 = vmul.f32 %v16075_v29, %v7575_v10  ;;  %v16085_v25 = vmul.f32 %v16044_v59, %v7576_v56  ;;  %7201 = vmatpush.bf16.msrb.mxu1 %v10384_v5 }
 0x5c9   : > { %v6920_v41 = vpop.f32.mrf.mxu0  ;;  %v6939_v57 = vpop.f32.mrf.mxu1  ;;  %v7090_v44 = vadd.f32 %v7089_v19, %v16064_v60  ;;  %v11640_v19 = vld [vmem:[%s17428_s3 + $0x2ec] sm:$0xf0] }
 0x5ca   : > { %v6921_v42 = vadd.f32 %v6920_v41, %v16035_v24  ;;  %v6940_v26 = vadd.f32 %v6939_v57, %v16039_v52  ;;  %17447 = vst [vmem:[#allocation36_spill] sm:$0xff] %v16085_v25  ;;  %v10684_v55 = vor.u32 %v11640_v19, %v10683_v62  ;;  %v16150_v62 = vperm.slane %v15936_v18, 5  ;;  %v11709_v25 = vld [vmem:[%s17444_s9 + $0x218] sm:$0xff] }
 0x5cb   : > { %v16079_v34 = vpack.c.bf16 %v7090_v44, %v7071_v54 }
 0x5cc   : > { %v7538_v22 = vpack.c.bf16 %v6940_v26, %v6921_v42  ;;  %v11678_v42 = vld [vmem:[%s17444_s9 + $0x120] sm:$0xff]  ;;  %7255 = vmatpush.bf16.msra.mxu0 %v10684_v55  ;;  %v11675_v55 = vld [vmem:[%s17444_s9 + $0x108] sm:$0xff] }
 0x5cd   : > { %17446 = vst [vmem:[#allocation39_spill] sm:$0xff] %v16079_v34  ;;  %v7584_v47 = vunpack.c.h.bf16 %v16079_v34  ;;  %9440 = vmatpush.bf16.msra.mxu3 %v11678_v42 }
 0x5ce   : > { %v7599_v7 = vunpack.c.l.bf16 %v7538_v22  ;;  %v7600_v13 = vunpack.c.h.bf16 %v7538_v22 }
 0x5cf   : > { %v16119_v41 = vmul.f32 %v16075_v29, %v7584_v47  ;;  %v7148_v47 = vpop.f32.mrf.mxu2 }
 0x5d0   : > { %v16088_v14 = vmul.f32 %v16077_v33, %v7599_v7  ;;  %v16091_v35 = vmul.f32 %v16031_v50, %v7600_v13  ;;  %v7091_v17 = vpop.f32.mrf.mxu3 }
 0x5d1   : > { %v7092_v2 = vadd.f32 %v7091_v17, %v16064_v60  ;;  %v6923_v38 = vpop.f32.mrf.mxu0  ;;  %v6942_v63 = vpop.f32.mrf.mxu1  ;;  %17450 = vst [vmem:[#allocation61_spill] sm:$0xff] %v16119_v41  ;;  %v10587_v17 = vld [vmem:[%s17428_s3 + $0x1d0] sm:$0xf]  ;;  %9441 = vmatpush.bf16.msra.mxu3 %v11677_v27 }
 0x5d2   : > { %17448 = vst [vmem:[#allocation37_spill] sm:$0xff] %v16091_v35  ;;  %v6924_v40 = vadd.f32 %v6923_v38, %v16035_v24  ;;  %v6943_v43 = vadd.f32 %v6942_v63, %v16039_v52  ;;  %v10491_v63 = vld [vmem:[%s17428_s3 + $0x110] sm:$0xf] }
 0x5d3   : > { %v16102_v31 = vpack.c.bf16 %v7092_v2, %v7073_v32  ;;  %v11616_v32 = vld [vmem:[%s17428_s3 + $0x22c] sm:$0xf0] }
 0x5d4   : > { %v16106_v3 = vpack.c.bf16 %v6943_v43, %v6924_v40  ;;  %10722 = vmatmul.msk.bf16.gmra.mxu0 %vm2100_vm4, %v15791_v53  ;;  %10724 = vmatmul.msk.bf16.gmra.mxu1 %vm2100_vm4, %v15791_v53  ;;  %v10588_v38 = vor.u32 %v11616_v32, %v10587_v17  ;;  %v11592_v40 = vld [vmem:[%s17428_s3 + $0x16c] sm:$0xf0]  ;;  %v11628_v43 = vld [vmem:[%s17428_s3 + $0x294] sm:$0xf]  ;;  %v16168_v17 = vperm.slane %v16061_v0, 6 }
 0x5d5   : > { %17449 = vst [vmem:[#allocation38_spill] sm:$0xff] %v16102_v31  ;;  %v7608_v15 = vunpack.c.h.bf16 %v16102_v31 }
 0x5d6   : > { %7256 = vmatpush.bf16.msra.mxu0 %v10588_v38 }
 0x5d7   : > { %v16122_v57 = vmul.f32 %v16077_v33, %v7608_v15  ;;  %v10492_v15 = vor.u32 %v11592_v40, %v10491_v63  ;;  %v6886_v63 = vadd.f32 %v16005_v61, %v15940_v21  ;;  %v11604_v40 = vld [vmem:[%s17428_s3 + $0x1d4] sm:$0xf]  ;;  %v6905_v61 = vadd.f32 %v16007_v20, %v15943_v4 }
 0x5d8   : > { %v7094_v26 = vpop.f32.mrf.mxu3 }
 0x5d9   : > { %17451 = vst [vmem:[#allocation64_spill] sm:$0xff] %v16122_v57  ;;  %v7095_v10 = vadd.f32 %v7094_v26, %v16064_v60  ;;  %v6925_v56 = vpop.f32.mrf.mxu0  ;;  %v6944_v22 = vpop.f32.mrf.mxu1 }
 0x5da   : > { %v6926_v54 = vadd.f32 %v6925_v56, %v16035_v24  ;;  %v6945_v7 = vadd.f32 %v6944_v22, %v16039_v52  ;;  %v10685_v24 = vld [vmem:[%s17428_s3 + $0x2f0] sm:$0xf0]  ;;  %7257 = vmatpush.bf16.msra.mxu0 %v10492_v15  ;;  %v16165_v22 = vperm.slane %v16061_v0, 7  ;;  %v10395_v15 = vld [vmem:[%s17428_s3 + $0x50] sm:$0xf] }
 0x5db   : > { %v16132_v13 = vpack.c.bf16 %v7095_v10, %v7076_v45  ;;  %v11676_v52 = vld [vmem:[%s17444_s9 + $0x110] sm:$0xff]  ;;  %v10688_v49 = vor.u32 %v11628_v43, %v10685_v24  ;;  %v11674_v45 = vld [vmem:[%s17444_s9 + $0x100] sm:$0xff]  ;;  %v16160_v10 = vpop.f32.mrf.mxu2 }
 0x5dc   : > { %v16137_v2 = vpack.c.bf16 %v6945_v7, %v6926_v54  ;;  %9442 = vmatpush.bf16.msra.mxu3 %v11676_v52  ;;  %v10589_v43 = vld [vmem:[%s17428_s3 + $0x230] sm:$0xf0] }
 0x5dd   : > { %17452 = vst [vmem:[#allocation33_spill] sm:$0xff] %v16132_v13  ;;  %7274 = vmatpush.bf16.msra.mxu1 %v10688_v49 }
 0x5e0   : > { %v16144_v51 = vpop.f32.mrf.mxu3  ;;  %9443 = vmatpush.bf16.msra.mxu3 %v11675_v55  ;;  %v11580_v55 = vld [vmem:[%s17428_s3 + $0x114] sm:$0xf] }
 0x5e1   : > { %v6956_v19 = vpop.f32.mrf.mxu0  ;;  %v6975_v5 = vpop.f32.mrf.mxu1 }
 0x5e2   : > { %v6957_v42 = vadd.f32 %v6956_v19, %v16147_v6  ;;  %v6976_v26 = vadd.f32 %v6975_v5, %v16150_v62  ;;  %v10592_v19 = vor.u32 %v11604_v40, %v10589_v43  ;;  %v11568_v5 = vld [vmem:[%s17428_s3 + $0xac] sm:$0xf0]  ;;  %v11556_v40 = vld [vmem:[%s17428_s3 + $0x54] sm:$0xf] }
 0x5e3   : > { %v10397_v43 = vld [vmem:[%s17428_s3 + $0xb0] sm:$0xf0] }
 0x5e4   : > { %10729 = vmatmul.msk.bf16.vlgmr.msrb.gmra.mxu0 %vm2100_vm4, %v15724_v37  ;;  %10731 = vmatmul.msk.bf16.vlgmr.msrb.gmra.mxu1 %vm2100_vm4, %v15724_v37  ;;  %v16162_v56 = vpack.c.bf16 %v6976_v26, %v6957_v42  ;;  %v10493_v42 = vld [vmem:[%s17428_s3 + $0x170] sm:$0xf0]  ;;  %v6888_v26 = vadd.f32 %v16017_v58, %v15940_v21  ;;  %v16205_v58 = vpack.c.bf16 %v6905_v61, %v6886_v63  ;;  %s11527_s3 = sshll.u32 %s12854_s0, 3 }
 0x5e5   : > { %9444 = vmatpush.bf16.msra.mxu3 %v11674_v45  ;;  %v6907_v45 = vadd.f32 %v16019_v28, %v15943_v4  ;;  %7275 = vmatpush.bf16.msra.mxu1 %v10592_v19 }
 0x5e6   : > { %v7578_v24 = vunpack.c.h.bf16 %v16162_v56 }
 0x5e7   : > { %v16207_v28 = vpack.c.bf16 %v6907_v45, %v6888_v26  ;;  %v7621_v26 = vunpack.c.l.bf16 %v16205_v58 }
 0x5e8   : > { %v7165_v54 = vpop.f32.mrf.mxu3  ;;  %v16197_v20 = vmul.f32 %v16075_v29, %v7578_v24 }
 0x5e9   : > { %v6958_v7 = vpop.f32.mrf.mxu0  ;;  %v6977_v27 = vpop.f32.mrf.mxu1  ;;  %v7166_v52 = vadd.f32 %v7165_v54, %v16165_v22  ;;  %v7147_v54 = vadd.f32 %v16104_v8, %v16168_v17  ;;  %v7149_v8 = vadd.f32 %v7148_v47, %v16168_v17  ;;  %v7645_v45 = vunpack.c.l.bf16 %v16207_v28 }
 0x5ea   : > { %v6959_v32 = vadd.f32 %v6958_v7, %v16147_v6  ;;  %v6978_v38 = vadd.f32 %v6977_v27, %v16150_v62  ;;  %v10396_v7 = vor.u32 %v11568_v5, %v10395_v15  ;;  %v7327_v27 = vld [vmem:[%s17453_s8] sm:$0x3]  ;;  %v7577_v5 = vunpack.c.l.bf16 %v16162_v56  ;;  %s17485_s8 = sld [smem:[#allocation30_spill]] }
 0x5eb   : > { %v16199_v44 = vpack.c.bf16 %v7166_v52, %v7147_v54  ;;  %v16215_v52 = vpop.f32.mrf.mxu2 }
 0x5ec   : > { %v16179_v49 = vpack.c.bf16 %v6978_v38, %v6959_v32  ;;  %v10496_v38 = vor.u32 %v11580_v55, %v10493_v42  ;;  %7258 = vmatpush.bf16.msra.mxu0 %v10396_v7  ;;  %v10400_v55 = vor.u32 %v11556_v40, %v10397_v43 }
 0x5ed   : > { %17454 = vst [vmem:[#allocation35_spill] sm:$0xff] %v16199_v44  ;;  %v7588_v61 = vunpack.c.h.bf16 %v16199_v44 }
 0x5ee   : > { %v7602_v32 = vunpack.c.h.bf16 %v16179_v49  ;;  %7276 = vmatpush.bf16.msra.mxu1 %v10496_v38 }
 0x5ef   : > { %v16241_v38 = vmul.f32 %v16044_v59, %v7588_v61  ;;  %v16255_v61 = vperm.slane %v15936_v18, 7 }
 0x5f0   : > { %v16202_v21 = vmul.f32 %v16077_v33, %v7602_v32  ;;  %v7167_v4 = vpop.f32.mrf.mxu3  ;;  %10745 = vmatpush.msk.msrb.mxu0 %vm17455_vm7, %v7327_v27  ;;  %v16219_v42 = vpop.permute.xlu0 %7494 }
 0x5f1   : > { %v7168_v15 = vadd.f32 %v7167_v4, %v16165_v22  ;;  %v16211_v19 = vpop.f32.mrf.mxu0  ;;  %v16213_v24 = vpop.f32.mrf.mxu1  ;;  %v7511_v47 = vsel %vm7504_vm6, %v15909_v12, %v16219_v42  ;;  %17457 = vst [vmem:[#allocation40_spill] sm:$0xff] %v16241_v38  ;;  %v16280_v38 = vperm.slane %v16271_v23, 2 }
 0x5f2   : > { %v16233_v7 = vunpack.c.l.bf16 %v7511_v47  ;;  %v16235_v27 = vunpack.c.h.bf16 %v7511_v47  ;;  %7277 = vmatpush.bf16.msra.mxu1 %v10400_v55  ;;  %v11713_v47 = vld [vmem:[%s17444_s9 + $0x238] sm:$0xff]  ;;  %v6962_v35 = vadd.f32 %v16211_v19, %v16147_v6  ;;  %v6981_v44 = vadd.f32 %v16213_v24, %v16150_v62 }
 0x5f3   : > { %v16221_v63 = vpack.c.bf16 %v7168_v15, %v7149_v8  ;;  %9513 = vmatpush.bf16.msrb.mxu3 %v11713_v47 }
 0x5f4   : > { %10730 = vmatmul.msk.bf16.gmra.mxu0 %vm2100_vm4, %v15791_v53  ;;  %10732 = vmatmul.msk.bf16.gmra.mxu1 %vm2100_vm4, %v15791_v53  ;;  %v7729_v12 = vmul.f32 %v16233_v7, %v7621_v26  ;;  %v7753_v32 = vmul.f32 %v16235_v27, %v7645_v45  ;;  %v7222_v26 = vpop.f32.mrf.mxu2  ;;  %v16252_v45 = vperm.slane %v15936_v18, 6  ;;  %v16297_v19 = vpack.c.bf16 %v6981_v44, %v6962_v35 }
 0x5f5   : > { %17456 = vst [vmem:[#allocation41_spill] sm:$0xff] %v16221_v63  ;;  %v7612_v54 = vunpack.c.h.bf16 %v16221_v63 }
 0x5f6   : > { %v7801_v4 = vpack.c.bf16 %v7753_v32, %v7729_v12  ;;  %v7601_v12 = vunpack.c.l.bf16 %v16179_v49 }
 0x5f7   : > { %v16244_v40 = vmul.f32 %v16031_v50, %v7612_v54  ;;  %v11712_v54 = vld [vmem:[%s17444_s9 + $0x230] sm:$0xff] }
 0x5f8   : > { %v16246_v43 = vpop.f32.mrf.mxu3  ;;  %9374 = vmatmul.bf16.gmra.mxu3 %v7801_v4  ;;  %v11711_v4 = vld [vmem:[%s17444_s9 + $0x228] sm:$0xff]  ;;  %v7709_v49 = vmul.f32 %v15975_v30, %v7601_v12 }
 0x5f9   : > { %17458 = vst [vmem:[#allocation60_spill] sm:$0xff] %v16244_v40  ;;  %v6963_v8 = vpop.f32.mrf.mxu0  ;;  %v6982_v15 = vpop.f32.mrf.mxu1  ;;  %9514 = vmatpush.bf16.msrb.mxu3 %v11712_v54 }
 0x5fa   : > { %v6983_v12 = vadd.f32 %v6982_v15, %v16150_v62 }
 0x5fc   : > { %v7224_v54 = vpop.f32.mrf.mxu2 }
 0x5fd   : > { %9515 = vmatpush.bf16.msrb.mxu3 %v11711_v4  ;;  %v7225_v44 = vadd.f32 %v7224_v54, %v16280_v38  ;;  %v11708_v54 = vld [vmem:[%s17444_s9 + $0x210] sm:$0xff] }
 0x600   : > { %v16258_v16 = vpop.f32.mrf.mxu3 }
 0x601   : > { %v6994_v32 = vpop.f32.mrf.mxu0  ;;  %v7013_v46 = vpop.f32.mrf.mxu1 }
 0x602   : > { %v6995_v47 = vadd.f32 %v6994_v32, %v16252_v45  ;;  %v7014_v55 = vadd.f32 %v7013_v46, %v16255_v61  ;;  %v7685_v32 = vmul.f32 %v15973_v1, %v7577_v5  ;;  %v16275_v46 = vperm.slane %v16271_v23, 3 }
 0x604   : > { %v7528_v18 = vpack.c.bf16 %v7014_v55, %v6995_v47  ;;  %10737 = vmatmul.msk.bf16.vlgmr.msra.gmra.mxu0 %vm2100_vm4, %v15724_v37  ;;  %10739 = vmatmul.msk.bf16.vlgmr.msra.gmra.mxu1 %vm2100_vm4, %v15724_v37  ;;  %v11710_v55 = vld [vmem:[%s17444_s9 + $0x220] sm:$0xff]  ;;  %v11657_v47 = vld [vmem:[%s17444_s9 + $0x78] sm:$0xff]  ;;  %v7781_v40 = vpack.c.bf16 %v7709_v49, %v7685_v32  ;;  %v6964_v37 = vadd.f32 %v6963_v8, %v16147_v6  ;;  %v7499_v49 = vpop.permute.xlu1 %7498  ;;  %v16301_v24 = vpop.f32.mrf.mxu2 }
 0x605   : > { %9516 = vmatpush.bf16.msrb.mxu3 %v11710_v55  ;;  %9380 = vmatpush.bf16.msra.mxu0 %v11657_v47  ;;  %v7517_v6 = vsel %vm2100_vm4, %v16219_v42, %v7499_v49 }
 0x606   : > { %v7579_v15 = vunpack.c.l.bf16 %v7528_v18  ;;  %v7580_v32 = vunpack.c.h.bf16 %v7528_v18  ;;  %v16293_v34 = vpack.c.bf16 %v6983_v12, %v6964_v37  ;;  %v11655_v37 = vld [vmem:[%s17444_s9 + $0x68] sm:$0xff] }
 0x608   : > { %v7241_v56 = vpop.f32.mrf.mxu3  ;;  %9445 = vmatmul.bf16.vlgmr.msra.gmra.mxu3 %v7781_v40  ;;  %v16307_v40 = vmul.f32 %v15973_v1, %v7580_v32  ;;  %v7649_v42 = vunpack.c.l.bf16 %v16293_v34  ;;  %v7625_v32 = vunpack.c.l.bf16 %v16297_v19 }
 0x609   : > { %v6996_v4 = vpop.f32.mrf.mxu0  ;;  %v7015_v41 = vpop.f32.mrf.mxu1  ;;  %v7242_v8 = vadd.f32 %v7241_v56, %v16275_v46  ;;  %9517 = vmatpush.bf16.msrb.mxu3 %v11709_v25 }
 0x60a   : > { %v6997_v57 = vadd.f32 %v6996_v4, %v16252_v45  ;;  %v7016_v5 = vadd.f32 %v7015_v41, %v16255_v61  ;;  %v7223_v4 = vadd.f32 %v7222_v26, %v16280_v38  ;;  %17461 = vst [vmem:[#allocation69_spill] sm:$0xff] %v16307_v40 }
 0x60c   : > { %v7540_v63 = vpack.c.bf16 %v7016_v5, %v6997_v57  ;;  %v16299_v62 = vpack.c.bf16 %v7242_v8, %v7223_v4  ;;  %v16304_v57 = vmul.f32 %v16044_v59, %v7579_v15  ;;  %v11656_v8 = vld [vmem:[%s17444_s9 + $0x70] sm:$0xff]  ;;  %v16326_v15 = vunpack.c.h.bf16 %v7517_v6 }
 0x60d   : > { %9381 = vmatpush.bf16.msra.mxu0 %v11656_v8  ;;  %9518 = vmatpush.bf16.msrb.mxu3 %v11708_v54 }
 0x60e   : > { %v7603_v41 = vunpack.c.l.bf16 %v7540_v63  ;;  %v7604_v55 = vunpack.c.h.bf16 %v7540_v63  ;;  %17459 = vst [vmem:[#allocation67_spill] sm:$0xff] %v16299_v62  ;;  %v7592_v4 = vunpack.c.h.bf16 %v16299_v62  ;;  %v7632_v62 = vunpack.c.h.bf16 %v16132_v13 }
 0x60f   : > { %17460 = vst [vmem:[#allocation68_spill] sm:$0xff] %v16304_v57 }
 0x610   : > { %v16310_v63 = vmul.f32 %v16031_v50, %v7603_v41  ;;  %v16313_v25 = vmul.f32 %v15975_v30, %v7604_v55  ;;  %v7243_v35 = vpop.f32.mrf.mxu3 }
 0x611   : > { %v7244_v26 = vadd.f32 %v7243_v35, %v16275_v46  ;;  %v6999_v18 = vpop.f32.mrf.mxu0  ;;  %v7018_v56 = vpop.f32.mrf.mxu1  ;;  %v16338_v35 = vunpack.c.l.bf16 %v7517_v6  ;;  %9382 = vmatpush.bf16.msra.mxu0 %v11655_v37  ;;  %v7623_v37 = vunpack.c.l.bf16 %v16106_v3 }
 0x612   : > { %17462 = vst [vmem:[#allocation62_spill] sm:$0xff] %v16310_v63  ;;  %v7000_v12 = vadd.f32 %v6999_v18, %v16252_v45  ;;  %v7019_v5 = vadd.f32 %v7018_v56, %v16255_v61  ;;  %v7757_v18 = vmul.f32 %v16326_v15, %v7649_v42  ;;  %v7078_v42 = vadd.f32 %v16050_v39, %v16067_v11  ;;  %v16368_v39 = vpop.f32.mrf.mxu2  ;;  %v11745_v11 = vld [vmem:[%s17444_s9 + $0x338] sm:$0xff]  ;;  %v12519_v63 = vld [vmem:[%s12894_s7 + $0x8] sm:$0xff] }
 0x613   : > { %17463 = vst [vmem:[#allocation70_spill] sm:$0xff] %v16313_v25  ;;  %v16330_v41 = vpack.c.bf16 %v7244_v26, %v7225_v44  ;;  %v11707_v44 = vld [vmem:[%s17444_s9 + $0x208] sm:$0xff]  ;;  %v7097_v26 = vadd.f32 %v16144_v51, %v16064_v60  ;;  %v7648_v60 = vunpack.c.h.bf16 %v16137_v2 }
 0x614   : > { %v16332_v55 = vpack.c.bf16 %v7019_v5, %v7000_v12  ;;  %10738 = vmatmul.msk.bf16.gmra.mxu0 %vm2100_vm4, %v15791_v53  ;;  %10740 = vmatmul.msk.bf16.gmra.mxu1 %vm2100_vm4, %v15791_v53  ;;  %v7503_v12 = vpop.permute.xlu2 %7502  ;;  %v16347_v5 = vmul.f32 %v15973_v1, %v7592_v4  ;;  %v7733_v53 = vmul.f32 %v16338_v35, %v7625_v32  ;;  %v11654_v32 = vld [vmem:[%s17444_s9 + $0x60] sm:$0xff] }
 0x615   : > { %17464 = vst [vmem:[#allocation53_spill] sm:$0xff] %v16330_v41  ;;  %v7616_v56 = vunpack.c.h.bf16 %v16330_v41  ;;  %v7523_v8 = vsel %vm1774_vm3, %v7499_v49, %v7503_v12  ;;  %9519 = vmatpush.bf16.msrb.mxu3 %v11707_v44  ;;  %v16366_v40 = vpack.c.bf16 %v7097_v26, %v7078_v42  ;;  %v7622_v12 = vunpack.c.h.bf16 %v16205_v58  ;;  %9383 = vmatpush.bf16.msra.mxu0 %v11654_v32  ;;  %v11653_v26 = vld [vmem:[%s17444_s9 + $0x58] sm:$0xff] }
 0x616   : > { %17465 = vst [vmem:[#allocation63_spill] sm:$0xff] %v16347_v5  ;;  %v7805_v47 = vpack.c.bf16 %v7757_v18, %v7733_v53  ;;  %v16371_v49 = vunpack.c.l.bf16 %v7523_v8  ;;  %v16373_v18 = vunpack.c.h.bf16 %v7523_v8  ;;  %v7646_v53 = vunpack.c.h.bf16 %v16207_v28 }
 0x617   : > { %v16351_v6 = vmul.f32 %v15975_v30, %v7616_v56  ;;  %v11706_v56 = vld [vmem:[%s17444_s9 + $0x200] sm:$0xff]  ;;  %17467 = vst [vmem:[#allocation54_spill] sm:$0xff] %v16366_v40  ;;  %v7647_v44 = vunpack.c.l.bf16 %v16137_v2  ;;  %v7624_v42 = vunpack.c.h.bf16 %v16106_v3  ;;  %v7656_v8 = vunpack.c.h.bf16 %v16366_v40 }
 0x618   : > { %v16356_v54 = vpop.f32.mrf.mxu3  ;;  %9450 = vmatmul.bf16.gmra.mxu3 %v7805_v47  ;;  %v11744_v47 = vld [vmem:[%s17444_s9 + $0x330] sm:$0xff]  ;;  %v16385_v58 = vmul.f32 %v16338_v35, %v7622_v12  ;;  %v16388_v28 = vmul.f32 %v16326_v15, %v7646_v53  ;;  %v16391_v32 = vmul.f32 %v16371_v49, %v7623_v37  ;;  %v16399_v2 = vperm.slane %v16061_v0, 0 }
 0x619   : > { %17466 = vst [vmem:[#allocation66_spill] sm:$0xff] %v16351_v6  ;;  %v16360_v51 = vpop.f32.mrf.mxu0  ;;  %v16362_v4 = vpop.f32.mrf.mxu1  ;;  %9520 = vmatpush.bf16.msrb.mxu3 %v11706_v56  ;;  %v16394_v56 = vmul.f32 %v16373_v18, %v7647_v44  ;;  %v16405_v12 = vmul.f32 %v16233_v7, %v7624_v42  ;;  %v16408_v53 = vmul.f32 %v16235_v27, %v7648_v60  ;;  %v11652_v44 = vld [vmem:[%s17444_s9 + $0x50] sm:$0xff]  ;;  %v11743_v42 = vld [vmem:[%s17444_s9 + $0x328] sm:$0xff]  ;;  %v12518_v6 = vld [vmem:[%s12894_s7] sm:$0xff]  ;;  %v16433_v60 = vperm.slane %v16271_v23, 7 }
 0x61a   : > { %17468 = vst [vmem:[#allocation59_spill] sm:$0xff] %v16391_v32  ;;  %9384 = vmatpush.bf16.msra.mxu0 %v11653_v26  ;;  %v16420_v41 = vmul.f32 %v16373_v18, %v7656_v8  ;;  %v7298_v26 = vpop.f32.mrf.mxu2  ;;  %v16427_v25 = vmul.f32 %v16371_v49, %v7632_v62  ;;  %v11689_v8 = vld [vmem:[%s17444_s9 + $0x178] sm:$0xff] }
 0x61b   : > { %17469 = vst [vmem:[#allocation77_spill] sm:$0xff] %v16394_v56 }
 0x61c   : > { %17470 = vst [vmem:[#allocation84_spill] sm:$0xff] %v16405_v12  ;;  %v11742_v12 = vld [vmem:[%s17444_s9 + $0x320] sm:$0xff] }
 0x61d   : > { %9589 = vmatpush.bf16.msra.mxu3 %v11745_v11  ;;  %v16402_v11 = vperm.slane %v16061_v0, 1  ;;  %17471 = vst [vmem:[#allocation72_spill] sm:$0xff] %v16408_v53 }
 0x61e   : > { %17472 = vst [vmem:[#allocation80_spill] sm:$0xff] %v16420_v41  ;;  %9385 = vmatpush.bf16.msra.mxu0 %v11652_v44  ;;  %v11650_v44 = vld [vmem:[%s17444_s9 + $0x40] sm:$0xff] }
 0x61f   : > { %17474 = vst [vmem:[#allocation74_spill] sm:$0xff] %v16427_v25  ;;  %v11741_v25 = vld [vmem:[%s17444_s9 + $0x318] sm:$0xff] }
 0x620   : > { %v16396_v3 = vpop.f32.mrf.mxu3 }
 0x621   : > { %v7032_v37 = vpop.f32.mrf.mxu0  ;;  %v7051_v5 = vpop.f32.mrf.mxu1  ;;  %9590 = vmatpush.bf16.msra.mxu3 %v11744_v47  ;;  %v11651_v47 = vld [vmem:[%s17444_s9 + $0x48] sm:$0xff] }
 0x622   : > { %v7033_v40 = vadd.f32 %v7032_v37, %v16399_v2  ;;  %v7052_v31 = vadd.f32 %v7051_v5, %v16402_v11  ;;  %9386 = vmatpush.bf16.msra.mxu0 %v11651_v47  ;;  %v7300_v47 = vpop.f32.mrf.mxu2 }
 0x624   : > { %10746 = vmatmul.msk.f32.vlgmr.msrb.gmra.mxu0 %vm17473_vm8, %v12518_v6  ;;  %v7529_v37 = vpack.c.bf16 %v7052_v31, %v7033_v40  ;;  %v16437_v6 = vperm.slane %v16271_v23, 6 }
 0x625   : > { %9591 = vmatpush.bf16.msra.mxu3 %v11743_v42 }
 0x626   : > { %v7581_v31 = vunpack.c.l.bf16 %v7529_v37  ;;  %v7582_v40 = vunpack.c.h.bf16 %v7529_v37  ;;  %v7299_v32 = vadd.f32 %v7298_v26, %v16437_v6  ;;  %9387 = vmatpush.bf16.msra.mxu0 %v11650_v44  ;;  %v11688_v44 = vld [vmem:[%s17444_s9 + $0x170] sm:$0xff] }
 0x628   : > { %v7317_v5 = vpop.f32.mrf.mxu3  ;;  %v16452_v37 = vmul.f32 %v16044_v59, %v7582_v40 }
 0x629   : > { %v7034_v62 = vpop.f32.mrf.mxu0  ;;  %v7053_v53 = vpop.f32.mrf.mxu1  ;;  %9592 = vmatpush.bf16.msra.mxu3 %v11742_v12  ;;  %v7318_v41 = vadd.f32 %v7317_v5, %v16433_v60  ;;  %v7301_v5 = vadd.f32 %v7300_v47, %v16437_v6 }
 0x62a   : > { %v7035_v13 = vadd.f32 %v7034_v62, %v16399_v2  ;;  %v7054_v42 = vadd.f32 %v7053_v53, %v16402_v11  ;;  %9456 = vmatpush.bf16.msrb.mxu0 %v11689_v8  ;;  %v7689_v53 = vmul.f32 %v16075_v29, %v7581_v31 }
 0x62b   : > { %v16448_v12 = vpack.c.bf16 %v7318_v41, %v7299_v32 }
 0x62c   : > { %v7541_v57 = vpack.c.bf16 %v7054_v42, %v7035_v13  ;;  %10747 = vmatmul.msk.f32.gmra.mxu0 %vm17475_vm14, %v12519_v63  ;;  %v11740_v42 = vld [vmem:[%s17444_s9 + $0x310] sm:$0xff] }
 0x62d   : > { %9593 = vmatpush.bf16.msra.mxu3 %v11741_v25 }
 0x62e   : > { %v7605_v56 = vunpack.c.l.bf16 %v7541_v57  ;;  %v7606_v62 = vunpack.c.h.bf16 %v7541_v57  ;;  %9457 = vmatpush.bf16.msrb.mxu0 %v11688_v44  ;;  %v7650_v44 = vunpack.c.h.bf16 %v16293_v34 }
 0x630   : > { %v7713_v13 = vmul.f32 %v16077_v33, %v7605_v56  ;;  %v16456_v63 = vmul.f32 %v16031_v50, %v7606_v62  ;;  %v7319_v26 = vpop.f32.mrf.mxu3  ;;  %v7596_v56 = vunpack.c.h.bf16 %v16448_v12  ;;  %v12520_v62 = vld [vmem:[%s12894_s7 + $0x10] sm:$0xff] }
 0x631   : > { %v7320_v57 = vadd.f32 %v7319_v26, %v16433_v60  ;;  %v7037_v8 = vpop.f32.mrf.mxu0  ;;  %v7056_v25 = vpop.f32.mrf.mxu1  ;;  %9594 = vmatpush.bf16.msra.mxu3 %v11740_v42 }
 0x632   : > { %v7785_v41 = vpack.c.bf16 %v7713_v13, %v7689_v53  ;;  %v7038_v40 = vadd.f32 %v7037_v8, %v16399_v2  ;;  %v7057_v47 = vadd.f32 %v7056_v25, %v16402_v11  ;;  %v11687_v53 = vld [vmem:[%s17444_s9 + $0x168] sm:$0xff]  ;;  %v16479_v8 = vmul.f32 %v16075_v29, %v7596_v56 }
 0x633   : > { %v16465_v31 = vpack.c.bf16 %v7320_v57, %v7301_v5  ;;  %v11739_v13 = vld [vmem:[%s17444_s9 + $0x308] sm:$0xff]  ;;  %v7171_v5 = vadd.f32 %v16246_v43, %v16165_v22  ;;  %v7173_v57 = vadd.f32 %v16258_v16, %v16165_v22  ;;  %v7154_v16 = vadd.f32 %v16215_v52, %v16168_v17  ;;  %9458 = vmatpush.bf16.msrb.mxu0 %v11687_v53  ;;  %v12521_v22 = vld [vmem:[%s12894_s7 + $0x18] sm:$0xff]  ;;  %s17483_s7 = sld [smem:[#allocation31_spill]] }
 0x634   : > { %10748 = vmatmul.msk.f32.gmra.mxu0 %vm17476_vm12, %v12520_v62  ;;  %9521 = vmatmul.bf16.vlgmr.msrb.gmra.mxu3 %v7785_v41  ;;  %17477 = vst [vmem:[#allocation76_spill] sm:$0xff] %v16479_v8  ;;  %v7626_v41 = vunpack.c.h.bf16 %v16297_v19  ;;  %v16486_v42 = vpack.c.bf16 %v7057_v47, %v7038_v40  ;;  %v7152_v62 = vadd.f32 %v16160_v10, %v16168_v17  ;;  %v11686_v19 = vld [vmem:[%s17444_s9 + $0x160] sm:$0xff]  ;;  %v11777_v10 = vld [vmem:[%s17444_s9 + $0x438] sm:$0xff] }
 0x635   : > { %v7620_v26 = vunpack.c.h.bf16 %v16465_v31  ;;  %9595 = vmatpush.bf16.msra.mxu3 %v11739_v13  ;;  %v16501_v32 = vpack.c.bf16 %v7173_v57, %v7154_v16  ;;  %v16522_v16 = vperm.slane %v16061_v0, 4 }
 0x636   : > { %v16499_v47 = vpack.c.bf16 %v7171_v5, %v7152_v62  ;;  %v7629_v17 = vunpack.c.l.bf16 %v16486_v42  ;;  %v16509_v53 = vmul.f32 %v16371_v49, %v7626_v41  ;;  %v11776_v5 = vld [vmem:[%s17444_s9 + $0x430] sm:$0xff] }
 0x637   : > { %v16482_v25 = vmul.f32 %v16077_v33, %v7620_v26  ;;  %v11738_v26 = vld [vmem:[%s17444_s9 + $0x300] sm:$0xff]  ;;  %9459 = vmatpush.bf16.msrb.mxu0 %v11686_v19  ;;  %v7660_v41 = vunpack.c.h.bf16 %v16501_v32 }
 0x638   : > { %v7636_v62 = vunpack.c.h.bf16 %v16499_v47 }
 0x639   : > { %v7039_v43 = vpop.f32.mrf.mxu0  ;;  %v7058_v56 = vpop.f32.mrf.mxu1  ;;  %9596 = vmatpush.bf16.msra.mxu3 %v11738_v26  ;;  %v11684_v26 = vld [vmem:[%s17444_s9 + $0x150] sm:$0xff] }
 0x63a   : > { %v7040_v34 = vadd.f32 %v7039_v43, %v16399_v2  ;;  %v7059_v40 = vadd.f32 %v7058_v56, %v16402_v11  ;;  %v16512_v2 = vmul.f32 %v16373_v18, %v7650_v44  ;;  %v11685_v11 = vld [vmem:[%s17444_s9 + $0x158] sm:$0xff]  ;;  %v16525_v44 = vperm.slane %v16061_v0, 5 }
 0x63b   : > { %9460 = vmatpush.bf16.msrb.mxu0 %v11685_v11  ;;  %v16535_v0 = vmul.f32 %v16235_v27, %v7660_v41  ;;  %v11683_v11 = vld [vmem:[%s17444_s9 + $0x148] sm:$0xff]  ;;  %v11774_v41 = vld [vmem:[%s17444_s9 + $0x420] sm:$0xff] }
 0x63c   : > { %v16504_v52 = vpack.c.bf16 %v7059_v40, %v7040_v34  ;;  %10749 = vmatmul.msk.f32.gmra.mxu0 %vm17478_vm0, %v12521_v22  ;;  %v7737_v22 = vmul.f32 %v16371_v49, %v7629_v17  ;;  %v11775_v40 = vld [vmem:[%s17444_s9 + $0x428] sm:$0xff] }
 0x63d   : > { %9665 = vmatpush.bf16.msrb.mxu3 %v11777_v10  ;;  %v16532_v10 = vmul.f32 %v16233_v7, %v7636_v62 }
 0x63e   : > { %v7653_v13 = vunpack.c.l.bf16 %v16504_v52 }
 0x63f   : > { %9461 = vmatpush.bf16.msrb.mxu0 %v11684_v26 }
 0x640   : > { %v7761_v43 = vmul.f32 %v16373_v18, %v7653_v13  ;;  %v17479_v13 = vpack.c.bf16 %v15982_v48, %v15979_v9  ;;  %v11721_v48 = vld [vmem:[%s17444_s9 + $0x278] sm:$0xff] }
 0x641   : > { %v7108_v56 = vpop.f32.mrf.mxu0  ;;  %v7127_v19 = vpop.f32.mrf.mxu1  ;;  %9666 = vmatpush.bf16.msrb.mxu3 %v11776_v5 }
 0x642   : > { %v7809_v34 = vpack.c.bf16 %v7761_v43, %v7737_v22  ;;  %v7109_v17 = vadd.f32 %v7108_v56, %v16522_v16  ;;  %v7128_v57 = vadd.f32 %v7127_v19, %v16525_v44  ;;  %v11682_v56 = vld [vmem:[%s17444_s9 + $0x140] sm:$0xff]  ;;  %v7322_v5 = vpop.f32.mrf.mxu3 }
 0x643   : > { %9462 = vmatpush.bf16.msrb.mxu0 %v11683_v11  ;;  %v7021_v11 = vadd.f32 %v16362_v4, %v16255_v61 }
 0x644   : > { %9388 = vmatmul.bf16.vlgmr.msra.gmra.mxu0 %v17479_v13  ;;  %9526 = vmatmul.bf16.gmra.mxu3 %v7809_v34  ;;  %v7531_v62 = vpack.c.bf16 %v7128_v57, %v7109_v17  ;;  %v11773_v13 = vld [vmem:[%s17444_s9 + $0x418] sm:$0xff]  ;;  %v7002_v17 = vadd.f32 %v16360_v51, %v16252_v45  ;;  %v11720_v45 = vld [vmem:[%s17444_s9 + $0x270] sm:$0xff] }
 0x645   : > { %9667 = vmatpush.bf16.msrb.mxu3 %v11775_v40  ;;  %v11772_v51 = vld [vmem:[%s17444_s9 + $0x410] sm:$0xff] }
 0x646   : > { %v7585_v34 = vunpack.c.l.bf16 %v7531_v62  ;;  %v7586_v26 = vunpack.c.h.bf16 %v7531_v62 }
 0x647   : > { %9463 = vmatpush.bf16.msrb.mxu0 %v11682_v56 }
 0x649   : > { %v7110_v22 = vpop.f32.mrf.mxu0  ;;  %v7129_v43 = vpop.f32.mrf.mxu1  ;;  %9668 = vmatpush.bf16.msrb.mxu3 %v11774_v41  ;;  %v7693_v41 = vmul.f32 %v16044_v59, %v7585_v34  ;;  %v7627_v34 = vunpack.c.l.bf16 %v16332_v55 }
 0x64a   : > { %v7111_v19 = vadd.f32 %v7110_v22, %v16522_v16  ;;  %v7130_v9 = vadd.f32 %v7129_v43, %v16525_v44  ;;  %v16557_v22 = vmul.f32 %v15973_v1, %v7586_v26  ;;  %v7628_v26 = vunpack.c.h.bf16 %v16332_v55 }
 0x64b   : > { %9532 = vmatpush.bf16.msra.mxu0 %v11721_v48  ;;  %v7564_v48 = vpack.c.bf16 %v7021_v11, %v7002_v17 }
 0x64c   : > { %v7543_v8 = vpack.c.bf16 %v7130_v9, %v7111_v19 }
 0x64d   : > { %9669 = vmatpush.bf16.msrb.mxu3 %v11773_v13  ;;  %v17480_v13 = vpack.c.bf16 %v16388_v28, %v16385_v58  ;;  %v7651_v17 = vunpack.c.l.bf16 %v7564_v48  ;;  %v7652_v11 = vunpack.c.h.bf16 %v7564_v48  ;;  %v7228_v58 = vadd.f32 %v16301_v24, %v16280_v38 }
 0x64e   : > { %v7609_v40 = vunpack.c.l.bf16 %v7543_v8  ;;  %v7610_v57 = vunpack.c.h.bf16 %v7543_v8  ;;  %v7230_v28 = vadd.f32 %v16368_v39, %v16280_v38 }
 0x64f   : > { %9533 = vmatpush.bf16.msra.mxu0 %v11720_v45  ;;  %v16600_v38 = vmul.f32 %v16235_v27, %v7651_v17  ;;  %v16603_v39 = vmul.f32 %v16326_v15, %v7652_v11 }
 0x650   : > { %v7717_v62 = vmul.f32 %v16031_v50, %v7609_v40  ;;  %v16561_v43 = vmul.f32 %v15975_v30, %v7610_v57  ;;  %v7247_v40 = vadd.f32 %v16356_v54, %v16275_v46  ;;  %v7249_v57 = vadd.f32 %v16396_v3, %v16275_v46 }
 0x651   : > { %v7113_v56 = vpop.f32.mrf.mxu0  ;;  %v7132_v8 = vpop.f32.mrf.mxu1  ;;  %9670 = vmatpush.bf16.msrb.mxu3 %v11772_v51  ;;  %v16591_v3 = vmul.f32 %v16233_v7, %v7627_v34  ;;  %v11771_v51 = vld [vmem:[%s17444_s9 + $0x408] sm:$0xff]  ;;  %v16615_v34 = vperm.slane %v16271_v23, 0 }
 0x652   : > { %v7789_v19 = vpack.c.bf16 %v7717_v62, %v7693_v41  ;;  %v7114_v61 = vadd.f32 %v7113_v56, %v16522_v16  ;;  %v7133_v4 = vadd.f32 %v7132_v8, %v16525_v44  ;;  %v16586_v8 = vpack.c.bf16 %v7247_v40, %v7228_v58  ;;  %v11718_v58 = vld [vmem:[%s17444_s9 + $0x260] sm:$0xff] }
 0x653   : > { %v16588_v46 = vpack.c.bf16 %v7249_v57, %v7230_v28  ;;  %v11770_v28 = vld [vmem:[%s17444_s9 + $0x400] sm:$0xff] }
 0x654   : > { %9393 = vmatmul.bf16.gmra.mxu0 %v17480_v13  ;;  %9597 = vmatmul.bf16.vlgmr.msra.gmra.mxu3 %v7789_v19  ;;  %v16578_v41 = vpack.c.bf16 %v7133_v4, %v7114_v61  ;;  %v16594_v19 = vmul.f32 %v16338_v35, %v7628_v26  ;;  %v7640_v4 = vunpack.c.h.bf16 %v16586_v8  ;;  %v16618_v26 = vperm.slane %v16271_v23, 1 }
 0x655   : > { %v7664_v13 = vunpack.c.h.bf16 %v16588_v46  ;;  %9671 = vmatpush.bf16.msrb.mxu3 %v11771_v51  ;;  %v11717_v51 = vld [vmem:[%s17444_s9 + $0x258] sm:$0xff] }
 0x656   : > { %v7633_v24 = vunpack.c.l.bf16 %v16578_v41  ;;  %v7634_v9 = vunpack.c.h.bf16 %v16578_v41 }
 0x658   : > { %v7741_v40 = vmul.f32 %v16233_v7, %v7633_v24 }
 0x659   : > { %v7115_v62 = vpop.f32.mrf.mxu0  ;;  %v7134_v55 = vpop.f32.mrf.mxu1  ;;  %9672 = vmatpush.bf16.msrb.mxu3 %v11770_v28 }
 0x65a   : > { %v7116_v56 = vadd.f32 %v7115_v62, %v16522_v16  ;;  %v7135_v54 = vadd.f32 %v7134_v55, %v16525_v44  ;;  %v11719_v44 = vld [vmem:[%s17444_s9 + $0x268] sm:$0xff]  ;;  %v16625_v55 = vmul.f32 %v16338_v35, %v7640_v4  ;;  %v11809_v4 = vld [vmem:[%s17444_s9 + $0x538] sm:$0xff] }
 0x65b   : > { %9534 = vmatpush.bf16.msra.mxu0 %v11719_v44  ;;  %v11807_v44 = vld [vmem:[%s17444_s9 + $0x528] sm:$0xff] }
 0x65c   : > { %v16597_v45 = vpack.c.bf16 %v7135_v54, %v7116_v56  ;;  %v16628_v56 = vmul.f32 %v16326_v15, %v7664_v13  ;;  %v11808_v13 = vld [vmem:[%s17444_s9 + $0x530] sm:$0xff] }
 0x65d   : > { %9741 = vmatpush.bf16.msra.mxu3 %v11809_v4  ;;  %v11715_v4 = vld [vmem:[%s17444_s9 + $0x248] sm:$0xff] }
 0x65e   : > { %v7657_v16 = vunpack.c.l.bf16 %v16597_v45 }
 0x65f   : > { %9535 = vmatpush.bf16.msra.mxu0 %v11718_v58  ;;  %v7303_v58 = vpop.f32.mrf.mxu2 }
 0x660   : > { %v7765_v57 = vmul.f32 %v16235_v27, %v7657_v16  ;;  %v17481_v16 = vpack.c.bf16 %v16202_v21, %v16197_v20 }
 0x661   : > { %v7184_v17 = vpop.f32.mrf.mxu0  ;;  %v7203_v11 = vpop.f32.mrf.mxu1  ;;  %9742 = vmatpush.bf16.msra.mxu3 %v11808_v13 }
 0x662   : > { %v7813_v62 = vpack.c.bf16 %v7765_v57, %v7741_v40  ;;  %v7185_v54 = vadd.f32 %v7184_v17, %v16615_v34  ;;  %v7204_v24 = vadd.f32 %v7203_v11, %v16618_v26  ;;  %v11716_v11 = vld [vmem:[%s17444_s9 + $0x250] sm:$0xff] }
 0x663   : > { %9536 = vmatpush.bf16.msra.mxu0 %v11717_v51 }
 0x664   : > { %9464 = vmatmul.bf16.vlgmr.msrb.gmra.mxu0 %v17481_v16  ;;  %9602 = vmatmul.bf16.gmra.mxu3 %v7813_v62  ;;  %v7533_v40 = vpack.c.bf16 %v7204_v24, %v7185_v54 }
 0x665   : > { %9743 = vmatpush.bf16.msra.mxu3 %v11807_v44  ;;  %v17482_v44 = vpack.c.bf16 %v16512_v2, %v16509_v53  ;;  %v11752_v53 = vld [vmem:[%s17444_s9 + $0x370] sm:$0xff]  ;;  %v7304_v2 = vadd.f32 %v7303_v58, %v16437_v6 }
 0x666   : > { %v7589_v28 = vunpack.c.l.bf16 %v7533_v40  ;;  %v7590_v62 = vunpack.c.h.bf16 %v7533_v40 }
 0x667   : > { %9537 = vmatpush.bf16.msra.mxu0 %v11716_v11  ;;  %v11714_v11 = vld [vmem:[%s17444_s9 + $0x240] sm:$0xff] }
 0x668   : > { %v7697_v51 = vmul.f32 %v15973_v1, %v7589_v28  ;;  %v16647_v61 = vmul.f32 %v16075_v29, %v7590_v62  ;;  %v7630_v28 = vunpack.c.h.bf16 %v16486_v42 }
 0x669   : > { %v7186_v57 = vpop.f32.mrf.mxu0  ;;  %v7205_v17 = vpop.f32.mrf.mxu1 }
 0x66a   : > { %v7187_v20 = vadd.f32 %v7186_v57, %v16615_v34  ;;  %v7206_v21 = vadd.f32 %v7205_v17, %v16618_v26 }
 0x66b   : > { %9538 = vmatpush.bf16.msra.mxu0 %v11715_v4  ;;  %v11753_v4 = vld [vmem:[%s17444_s9 + $0x378] sm:$0xff] }
 0x66c   : > { %v7545_v16 = vpack.c.bf16 %v7206_v21, %v7187_v20  ;;  %v11806_v20 = vld [vmem:[%s17444_s9 + $0x520] sm:$0xff] }
 0x66d   : > { %9744 = vmatpush.bf16.msra.mxu3 %v11806_v20 }
 0x66e   : > { %v7613_v54 = vunpack.c.l.bf16 %v7545_v16  ;;  %v7614_v24 = vunpack.c.h.bf16 %v7545_v16  ;;  %v7324_v16 = vpop.f32.mrf.mxu3 }
 0x66f   : > { %9539 = vmatpush.bf16.msra.mxu0 %v11714_v11  ;;  %v7325_v48 = vadd.f32 %v7324_v16, %v16433_v60 }
 0x670   : > { %v7721_v57 = vmul.f32 %v15975_v30, %v7613_v54  ;;  %v16651_v17 = vmul.f32 %v16077_v33, %v7614_v24  ;;  %v7305_v24 = vpop.f32.mrf.mxu2 }
 0x671   : > { %v7189_v40 = vpop.f32.mrf.mxu0  ;;  %v7208_v13 = vpop.f32.mrf.mxu1  ;;  %v7306_v11 = vadd.f32 %v7305_v24, %v16437_v6  ;;  %v16684_v6 = vmul.f32 %v16233_v7, %v7630_v28  ;;  %v11803_v24 = vld [vmem:[%s17444_s9 + $0x508] sm:$0xff]  ;;  %v7374_v28 = vld [vmem:[%s17483_s7 + $0x30] sm:$0xff] }
 0x672   : > { %v7793_v21 = vpack.c.bf16 %v7721_v57, %v7697_v51  ;;  %v7190_v62 = vadd.f32 %v7189_v40, %v16615_v34  ;;  %v7209_v54 = vadd.f32 %v7208_v13, %v16618_v26  ;;  %v11805_v51 = vld [vmem:[%s17444_s9 + $0x518] sm:$0xff]  ;;  %v7323_v57 = vadd.f32 %v7322_v5, %v16433_v60  ;;  %v11804_v5 = vld [vmem:[%s17444_s9 + $0x510] sm:$0xff] }
 0x673   : > { %v7654_v40 = vunpack.c.h.bf16 %v16504_v52  ;;  %9608 = vmatpush.bf16.msrb.mxu0 %v11753_v4  ;;  %9745 = vmatpush.bf16.msra.mxu3 %v11805_v51  ;;  %v16678_v16 = vpack.c.bf16 %v7325_v48, %v7306_v11 }
 0x674   : > { %9469 = vmatmul.bf16.gmra.mxu0 %v17482_v44  ;;  %9673 = vmatmul.bf16.vlgmr.msrb.gmra.mxu3 %v7793_v21  ;;  %v16668_v13 = vpack.c.bf16 %v7209_v54, %v7190_v62  ;;  %v16676_v52 = vpack.c.bf16 %v7323_v57, %v7304_v2  ;;  %v11751_v44 = vld [vmem:[%s17444_s9 + $0x368] sm:$0xff]  ;;  %v16699_v57 = vperm.slane %v16271_v23, 4 }
 0x675   : > { %v16687_v54 = vmul.f32 %v16235_v27, %v7654_v40  ;;  %v7668_v51 = vunpack.c.h.bf16 %v16678_v16  ;;  %v16702_v40 = vperm.slane %v16271_v23, 5 }
 0x676   : > { %v7637_v58 = vunpack.c.l.bf16 %v16668_v13  ;;  %v7644_v4 = vunpack.c.h.bf16 %v16676_v52 }
 0x677   : > { %9609 = vmatpush.bf16.msrb.mxu0 %v11752_v53  ;;  %9746 = vmatpush.bf16.msra.mxu3 %v11804_v5  ;;  %v7810_v48 = vpack.c.bf16 %v16687_v54, %v16684_v6  ;;  %v11802_v5 = vld [vmem:[%s17444_s9 + $0x500] sm:$0xff]  ;;  %v16712_v23 = vmul.f32 %v16373_v18, %v7668_v51 }
 0x678   : > { %v7745_v53 = vmul.f32 %v16338_v35, %v7637_v58  ;;  %v7372_v51 = vld [vmem:[%s17483_s7 + $0x20] sm:$0xff] }
 0x679   : > { %v7191_v20 = vpop.f32.mrf.mxu0  ;;  %v7210_v21 = vpop.f32.mrf.mxu1 }
 0x67a   : > { %v7192_v60 = vadd.f32 %v7191_v20, %v16615_v34  ;;  %v7211_v42 = vadd.f32 %v7210_v21, %v16618_v26  ;;  %v7375_v26 = vld [vmem:[%s17483_s7 + $0x38] sm:$0xff]  ;;  %v11750_v21 = vld [vmem:[%s17444_s9 + $0x360] sm:$0xff] }
 0x67b   : > { %7400 = vmatpush.msrb.mxu1 %v7375_v26  ;;  %9610 = vmatpush.bf16.msrb.mxu0 %v11751_v44  ;;  %v17484_v26 = vpack.c.bf16 %v16456_v63, %v16452_v37  ;;  %v11748_v37 = vld [vmem:[%s17444_s9 + $0x350] sm:$0xff]  ;;  %v7368_v44 = vld [vmem:[%s17483_s7] sm:$0xff] }
 0x67c   : > { %v16681_v62 = vpack.c.bf16 %v7211_v42, %v7192_v60  ;;  %9747 = vmatpush.bf16.msra.mxu3 %v11803_v24  ;;  %v16709_v42 = vmul.f32 %v16371_v49, %v7644_v4  ;;  %v7373_v24 = vld [vmem:[%s17483_s7 + $0x28] sm:$0xff]  ;;  %v11749_v4 = vld [vmem:[%s17444_s9 + $0x358] sm:$0xff] }
 0x67d   : > { %7401 = vmatpush.msrb.mxu1 %v7374_v28 }
 0x67e   : > { %v7661_v34 = vunpack.c.l.bf16 %v16681_v62 }
 0x67f   : > { %9611 = vmatpush.bf16.msrb.mxu0 %v11750_v21  ;;  %7402 = vmatpush.msrb.mxu1 %v7373_v24  ;;  %v7370_v21 = vld [vmem:[%s17483_s7 + $0x10] sm:$0xff]  ;;  %v7369_v24 = vld [vmem:[%s17483_s7 + $0x8] sm:$0xff] }
 0x680   : > { %v7769_v2 = vmul.f32 %v16326_v15, %v7661_v34  ;;  %9748 = vmatpush.bf16.msra.mxu3 %v11802_v5 }
 0x681   : > { %v7260_v11 = vpop.f32.mrf.mxu0  ;;  %v7279_v20 = vpop.f32.mrf.mxu1  ;;  %7403 = vmatpush.msrb.mxu1 %v7372_v51  ;;  %v11665_v51 = vld [vmem:[%s17444_s9 + $0xb8] sm:$0xff] }
 0x682   : > { %v7817_v60 = vpack.c.bf16 %v7769_v2, %v7745_v53  ;;  %v7261_v58 = vadd.f32 %v7260_v11, %v16699_v57  ;;  %v7280_v34 = vadd.f32 %v7279_v20, %v16702_v40  ;;  %v7371_v53 = vld [vmem:[%s17483_s7 + $0x18] sm:$0xff] }
 0x683   : > { %9612 = vmatpush.bf16.msrb.mxu0 %v11749_v4  ;;  %7404 = vmatpush.msrb.mxu1 %v7371_v53 }
 0x684   : > { %9540 = vmatmul.bf16.vlgmr.msra.gmra.mxu0 %v17484_v26  ;;  %9678 = vmatmul.bf16.gmra.mxu3 %v7817_v60  ;;  %v7535_v28 = vpack.c.bf16 %v7280_v34, %v7261_v58  ;;  %v11747_v58 = vld [vmem:[%s17444_s9 + $0x348] sm:$0xff] }
 0x685   : > { %7405 = vmatpush.msrb.mxu1 %v7370_v21  ;;  %v11746_v21 = vld [vmem:[%s17444_s9 + $0x340] sm:$0xff] }
 0x686   : > { %v7593_v5 = vunpack.c.l.bf16 %v7535_v28  ;;  %v7594_v60 = vunpack.c.h.bf16 %v7535_v28 }
 0x687   : > { %9613 = vmatpush.bf16.msrb.mxu0 %v11748_v37  ;;  %7406 = vmatpush.msrb.mxu1 %v7369_v24 }
 0x688   : > { %v7701_v53 = vmul.f32 %v16075_v29, %v7593_v5  ;;  %v16737_v28 = vmul.f32 %v16044_v59, %v7594_v60  ;;  %v11785_v5 = vld [vmem:[%s17444_s9 + $0x478] sm:$0xff]  ;;  %v11664_v60 = vld [vmem:[%s17444_s9 + $0xb0] sm:$0xff] }
 0x689   : > { %v7262_v2 = vpop.f32.mrf.mxu0  ;;  %v7281_v11 = vpop.f32.mrf.mxu1  ;;  %7407 = vmatpush.msrb.mxu1 %v7368_v44  ;;  %v16754_v44 = vmul.f32 %v16338_v35, %v7634_v9 }
 0x68a   : > { %v7263_v63 = vadd.f32 %v7262_v2, %v16699_v57  ;;  %v7282_v20 = vadd.f32 %v7281_v11, %v16702_v40  ;;  %v7658_v2 = vunpack.c.h.bf16 %v16597_v45 }
 0x68b   : > { %9614 = vmatpush.bf16.msrb.mxu0 %v11747_v58  ;;  %9399 = vmatpush.bf16.msra.mxu1 %v11665_v51 }
 0x68c   : > { %v7547_v26 = vpack.c.bf16 %v7282_v20, %v7263_v63  ;;  %v16757_v58 = vmul.f32 %v16326_v15, %v7658_v2 }
 0x68e   : > { %v7617_v34 = vunpack.c.l.bf16 %v7547_v26  ;;  %v7618_v4 = vunpack.c.h.bf16 %v7547_v26  ;;  %v7814_v6 = vpack.c.bf16 %v16757_v58, %v16754_v44  ;;  %v11781_v58 = vld [vmem:[%s17444_s9 + $0x458] sm:$0xff] }
 0x68f   : > { %9615 = vmatpush.bf16.msrb.mxu0 %v11746_v21  ;;  %9400 = vmatpush.bf16.msra.mxu1 %v11664_v60 }
 0x690   : > { %v7725_v11 = vmul.f32 %v16077_v33, %v7617_v34  ;;  %v16741_v37 = vmul.f32 %v16031_v50, %v7618_v4  ;;  %v11784_v34 = vld [vmem:[%s17444_s9 + $0x470] sm:$0xff]  ;;  %v11663_v4 = vld [vmem:[%s17444_s9 + $0xa8] sm:$0xff] }
 0x691   : > { %v7265_v63 = vpop.f32.mrf.mxu0  ;;  %v7284_v20 = vpop.f32.mrf.mxu1 }
 0x692   : > { %v7797_v41 = vpack.c.bf16 %v7725_v11, %v7701_v53  ;;  %v7798_v45 = vpack.c.bf16 %v16741_v37, %v16737_v28  ;;  %v7266_v26 = vadd.f32 %v7265_v63, %v16699_v57  ;;  %v7285_v24 = vadd.f32 %v7284_v20, %v16702_v40  ;;  %v11783_v53 = vld [vmem:[%s17444_s9 + $0x468] sm:$0xff]  ;;  %v11662_v11 = vld [vmem:[%s17444_s9 + $0xa0] sm:$0xff]  ;;  %v7431_v28 = vld [vmem:[%s12821_s12 + $0x30] sm:$0xff] }
 0x693   : > { %9684 = vmatpush.bf16.msra.mxu0 %v11785_v5  ;;  %9401 = vmatpush.bf16.msra.mxu1 %v11663_v4  ;;  %v11782_v5 = vld [vmem:[%s17444_s9 + $0x460] sm:$0xff]  ;;  %v17486_v4 = vpack.c.bf16 %v16561_v43, %v16557_v22  ;;  %v7638_v22 = vunpack.c.h.bf16 %v16668_v13  ;;  %v7662_v43 = vunpack.c.h.bf16 %v16681_v62  ;;  %v11816_v13 = vld [vmem:[%s17444_s9 + $0x570] sm:$0xff] }
 0x694   : > { %9545 = vmatmul.bf16.gmra.mxu0 %v7810_v48  ;;  %9749 = vmatmul.bf16.vlgmr.msra.gmra.mxu3 %v7797_v41  ;;  %v16763_v54 = vpack.c.bf16 %v7285_v24, %v7266_v26  ;;  %v11952_v41 = vld [vmem:[%s17485_s8] ss:$0 sm:$0xff]  ;;  %s17532_s8 = smov 96  }
 0x695   : > { %v11758_v37 = vld [vmem:[%s17444_s9 + $0x3a0] sm:$0xff] }
 0x696   : > { %v7641_v63 = vunpack.c.l.bf16 %v16763_v54 }
 0x697   : > { %9685 = vmatpush.bf16.msra.mxu0 %v11784_v34  ;;  %9402 = vmatpush.bf16.msra.mxu1 %v11662_v11  ;;  %v11660_v34 = vld [vmem:[%s17444_s9 + $0x90] sm:$0xff]  ;;  %v11779_v11 = vld [vmem:[%s17444_s9 + $0x448] sm:$0xff] }
 0x699   : > { %v7267_v48 = vpop.f32.mrf.mxu0  ;;  %v7286_v9 = vpop.f32.mrf.mxu1 }
 0x69a   : > { %v7268_v51 = vadd.f32 %v7267_v48, %v16699_v57  ;;  %v7287_v2 = vadd.f32 %v7286_v9, %v16702_v40  ;;  %v11661_v57 = vld [vmem:[%s17444_s9 + $0x98] sm:$0xff]  ;;  %v7749_v40 = vmul.f32 %v16371_v49, %v7641_v63  ;;  %v11780_v48 = vld [vmem:[%s17444_s9 + $0x450] sm:$0xff]  ;;  %v11659_v9 = vld [vmem:[%s17444_s9 + $0x88] sm:$0xff] }
 0x69b   : > { %9686 = vmatpush.bf16.msra.mxu0 %v11783_v53  ;;  %9403 = vmatpush.bf16.msra.mxu1 %v11661_v57  ;;  %v11658_v63 = vld [vmem:[%s17444_s9 + $0x80] sm:$0xff]  ;;  %v11817_v57 = vld [vmem:[%s17444_s9 + $0x578] sm:$0xff] }
 0x69c   : > { %v16770_v20 = vpack.c.bf16 %v7287_v2, %v7268_v51 }
 0x69e   : > { %v7665_v21 = vunpack.c.l.bf16 %v16770_v20 }
 0x69f   : > { %9687 = vmatpush.bf16.msra.mxu0 %v11782_v5  ;;  %9404 = vmatpush.bf16.msra.mxu1 %v11660_v34  ;;  %v11778_v5 = vld [vmem:[%s17444_s9 + $0x440] sm:$0xff]  ;;  %v11695_v34 = vld [vmem:[%s17444_s9 + $0x1a8] sm:$0xff] }
 0x6a0   : > { %v7773_v60 = vmul.f32 %v16373_v18, %v7665_v21  ;;  %v11697_v21 = vld [vmem:[%s17444_s9 + $0x1b8] sm:$0xff] }
 0x6a1   : > { %v7352_v26 = vpop.f32.mrf.mxu0 }
 0x6a2   : > { %v7353_v24 = vadd.f32 %v11952_v41, %v7352_v26  ;;  %v7821_v44 = vpack.c.bf16 %v7773_v60, %v7749_v40  ;;  %v11696_v40 = vld [vmem:[%s17444_s9 + $0x1b0] sm:$0xff]  ;;  %v7746_v26 = vmul.f32 %v16371_v49, %v7638_v22  ;;  %v17487_v22 = vpack.c.bf16 %v16651_v17, %v16647_v61 }
 0x6a3   : > { %9688 = vmatpush.bf16.msra.mxu0 %v11781_v58  ;;  %9405 = vmatpush.bf16.msra.mxu1 %v11659_v9  ;;  %v7642_v61 = vunpack.c.h.bf16 %v16763_v54  ;;  %v7666_v17 = vunpack.c.h.bf16 %v16770_v20  ;;  %v11726_v54 = vld [vmem:[%s17444_s9 + $0x2a0] sm:$0xff]  ;;  %v17489_v20 = vld [vmem:[#allocation77_spill] sm:$0xff] }
 0x6a4   : > { %12483 = vtanh.f32 %v7353_v24  ;;  %9616 = vmatmul.bf16.vlgmr.msrb.gmra.mxu0 %v17486_v4  ;;  %9754 = vmatmul.bf16.gmra.mxu3 %v7821_v44  ;;  %v7770_v24 = vmul.f32 %v16373_v18, %v7662_v43  ;;  %v11815_v4 = vld [vmem:[%s17444_s9 + $0x568] sm:$0xff] }
 0x6a5   : > { %v11691_v43 = vld [vmem:[%s17444_s9 + $0x188] sm:$0xff] }
 0x6a6   : > { %v7818_v62 = vpack.c.bf16 %v7770_v24, %v7746_v26  ;;  %v11729_v26 = vld [vmem:[%s17444_s9 + $0x2b8] sm:$0xff]  ;;  %v11728_v24 = vld [vmem:[%s17444_s9 + $0x2b0] sm:$0xff] }
 0x6a7   : > { %9689 = vmatpush.bf16.msra.mxu0 %v11780_v48  ;;  %9406 = vmatpush.bf16.msra.mxu1 %v11658_v63  ;;  %v11694_v48 = vld [vmem:[%s17444_s9 + $0x1a0] sm:$0xff]  ;;  %v11692_v63 = vld [vmem:[%s17444_s9 + $0x190] sm:$0xff] }
 0x6a9   : > { %v7355_v51 = vpop.f32.mrf.mxu0 }
 0x6aa   : > { %v12484_v2 = vpop.eup %12483  ;;  %v7356_v53 = vadd.f32 %v11952_v41, %v7355_v51 }
 0x6ab   : > { %10750 = vmatmul.msk.f32.vlgmr.msrb.gmra.mxu1 %vm2100_vm4, %v12484_v2  ;;  %9690 = vmatpush.bf16.msra.mxu0 %v11779_v11  ;;  %v11813_v11 = vld [vmem:[%s17444_s9 + $0x558] sm:$0xff] }
 0x6ac   : > { %12485 = vtanh.f32 %v7356_v53  ;;  %9475 = vmatpush.bf16.msrb.mxu1 %v11697_v21  ;;  %v11814_v53 = vld [vmem:[%s17444_s9 + $0x560] sm:$0xff] }
 0x6af   : > { %9691 = vmatpush.bf16.msra.mxu0 %v11778_v5  ;;  %v11811_v5 = vld [vmem:[%s17444_s9 + $0x548] sm:$0xff] }
 0x6b0   : > { %9476 = vmatpush.bf16.msrb.mxu1 %v11696_v40  ;;  %v17488_v40 = vpack.c.bf16 %v16088_v14, %v16082_v36  ;;  %v7750_v36 = vmul.f32 %v16233_v7, %v7642_v61  ;;  %v7774_v14 = vmul.f32 %v16235_v27, %v7666_v17  ;;  %v7427_v61 = vld [vmem:[%s12821_s12 + $0x10] sm:$0xff]  ;;  %v17497_v17 = vld [vmem:[#allocation39_spill] sm:$0xff] }
 0x6b1   : > { %v7358_v60 = vpop.f32.mrf.mxu0 }
 0x6b2   : > { %v12486_v44 = vpop.eup %12485  ;;  %v7359_v58 = vadd.f32 %v11952_v41, %v7358_v60  ;;  %v11810_v60 = vld [vmem:[%s17444_s9 + $0x540] sm:$0xff] }
 0x6b3   : > { %10751 = vmatmul.msk.f32.gmra.mxu1 %vm2100_vm4, %v12486_v44  ;;  %9760 = vmatpush.bf16.msrb.mxu0 %v11817_v57  ;;  %v11690_v57 = vld [vmem:[%s17444_s9 + $0x180] sm:$0xff]  ;;  %v11727_v44 = vld [vmem:[%s17444_s9 + $0x2a8] sm:$0xff] }
 0x6b4   : > { %12487 = vtanh.f32 %v7359_v58  ;;  %9621 = vmatmul.bf16.gmra.mxu0 %v7814_v6  ;;  %9477 = vmatpush.bf16.msrb.mxu1 %v11695_v34  ;;  %v11693_v6 = vld [vmem:[%s17444_s9 + $0x198] sm:$0xff]  ;;  %v7822_v58 = vpack.c.bf16 %v7774_v14, %v7750_v36  ;;  %v11754_v36 = vld [vmem:[%s17444_s9 + $0x380] sm:$0xff]  ;;  %v7426_v14 = vld [vmem:[%s12821_s12 + $0x8] sm:$0xff] }
 0x6b7   : > { %9761 = vmatpush.bf16.msrb.mxu0 %v11816_v13  ;;  %v17490_v13 = vld [vmem:[#allocation59_spill] sm:$0xff] }
 0x6b8   : > { %9478 = vmatpush.bf16.msrb.mxu1 %v11694_v48  ;;  %v17491_v34 = vpack.c.bf16 %v17489_v20, %v17490_v13  ;;  %v11724_v48 = vld [vmem:[%s17444_s9 + $0x290] sm:$0xff]  ;;  %v17498_v20 = vld [vmem:[#allocation54_spill] sm:$0xff] }
 0x6b9   : > { %v7361_v9 = vpop.f32.mrf.mxu0  ;;  %v7655_v13 = vunpack.c.l.bf16 %v17498_v20 }
 0x6ba   : > { %v12488_v51 = vpop.eup %12487  ;;  %v7362_v2 = vadd.f32 %v11952_v41, %v7361_v9  ;;  %v11812_v41 = vld [vmem:[%s17444_s9 + $0x550] sm:$0xff]  ;;  %v11723_v9 = vld [vmem:[%s17444_s9 + $0x288] sm:$0xff] }
 0x6bb   : > { %10752 = vmatmul.msk.f32.gmra.mxu1 %vm2100_vm4, %v12488_v51  ;;  %9762 = vmatpush.bf16.msrb.mxu0 %v11815_v4  ;;  %v11725_v4 = vld [vmem:[%s17444_s9 + $0x298] sm:$0xff] }
 0x6bc   : > { %12489 = vtanh.f32 %v7362_v2  ;;  %9479 = vmatpush.bf16.msrb.mxu1 %v11693_v6  ;;  %v17492_v51 = vld [vmem:[#allocation62_spill] sm:$0xff]  ;;  %v17493_v2 = vld [vmem:[#allocation68_spill] sm:$0xff] }
 0x6bd   : > { %v11761_v6 = vld [vmem:[%s17444_s9 + $0x3b8] sm:$0xff] }
 0x6bf   : > { %9763 = vmatpush.bf16.msrb.mxu0 %v11814_v53  ;;  %v17494_v53 = vpack.c.bf16 %v17492_v51, %v17493_v2  ;;  %v11791_v51 = vld [vmem:[%s17444_s9 + $0x4a8] sm:$0xff]  ;;  %v11672_v2 = vld [vmem:[%s17444_s9 + $0xf0] sm:$0xff] }
 0x6c0   : > { %9480 = vmatpush.bf16.msrb.mxu1 %v11692_v63  ;;  %v7432_v63 = vld [vmem:[%s12821_s12 + $0x38] sm:$0xff] }
 0x6c1   : > { %7457 = vmatpush.msra.mxu2 %v7432_v63  ;;  %v11671_v63 = vld [vmem:[%s17444_s9 + $0xe8] sm:$0xff] }
 0x6c2   : > { %v12490_v21 = vpop.eup %12489 }
 0x6c3   : > { %10753 = vmatmul.msk.f32.gmra.mxu1 %vm2100_vm4, %v12490_v21  ;;  %9764 = vmatpush.bf16.msrb.mxu0 %v11813_v11  ;;  %v11760_v11 = vld [vmem:[%s17444_s9 + $0x3b0] sm:$0xff]  ;;  %v11759_v21 = vld [vmem:[%s17444_s9 + $0x3a8] sm:$0xff] }
 0x6c4   : > { %9692 = vmatmul.bf16.vlgmr.msra.gmra.mxu0 %v17487_v22  ;;  %9481 = vmatpush.bf16.msrb.mxu1 %v11691_v43  ;;  %v11757_v22 = vld [vmem:[%s17444_s9 + $0x398] sm:$0xff]  ;;  %v7429_v43 = vld [vmem:[%s12821_s12 + $0x20] sm:$0xff] }
 0x6c5   : > { %7458 = vmatpush.msra.mxu2 %v7431_v28  ;;  %v11670_v28 = vld [vmem:[%s17444_s9 + $0xe0] sm:$0xff] }
 0x6c7   : > { %9765 = vmatpush.bf16.msrb.mxu0 %v11812_v41  ;;  %v17495_v41 = vpack.c.bf16 %v16600_v38, %v16591_v3 }
 0x6c8   : > { %9482 = vmatpush.bf16.msrb.mxu1 %v11690_v57  ;;  %v17496_v57 = vld [vmem:[#allocation38_spill] sm:$0xff] }
 0x6cb   : > { %9407 = vmatmul.bf16.vlgmr.msra.gmra.mxu1 %v17488_v40  ;;  %9766 = vmatpush.bf16.msrb.mxu0 %v11811_v5  ;;  %v11756_v5 = vld [vmem:[%s17444_s9 + $0x390] sm:$0xff]  ;;  %v7607_v40 = vunpack.c.l.bf16 %v17496_v57 }
 0x6cc   : > { %9551 = vmatpush.bf16.msra.mxu1 %v11729_v26  ;;  %v11755_v26 = vld [vmem:[%s17444_s9 + $0x388] sm:$0xff] }
 0x6cd   : > { %v7715_v3 = vmul.f32 %v15975_v30, %v7607_v40  ;;  %v11953_v40 = vld [vmem:[%s17500_s6] ss:$0 sm:$0xff]  ;;  %s9844_s6 = scalar_lea.hbm %s12831_s20, %s11527_s3 }
 0x6ce   : > { %s9848_s10 = sshll.u32 %s9844_s6, 4  ;;  %s12542_s6 = scalar_lea.hbm %s12831_s20, 16  ;;  %s9849_s10 = int_to_ptr.hbm [resolvable:$true] %s9848_s10 }
 0x6cf   : > { %9767 = vmatpush.bf16.msrb.mxu0 %v11810_v60  ;;  %v7428_v60 = vld [vmem:[%s12821_s12 + $0x18] sm:$0xff]  ;;  %s12536_s3 = sshra.s32 %s9849_s10, 4  ;;  %s12537_s3 = int_to_ptr.hbm [resolvable:$true] %s12536_s3 }
 0x6d0   : > { %9552 = vmatpush.bf16.msra.mxu1 %v11728_v24  ;;  %v7583_v24 = vunpack.c.l.bf16 %v17497_v17  ;;  %s12538_s0 = scalar_lea.hbm %s12537_s3, 8  ;;  %p12543_p0 = scmp.lt.s32.totalorder %s12537_s3, %s12831_s20 }
 0x6d1   : > { %p12539_p11 = scmp.ne.s32.totalorder %s12537_s3, %s12538_s0  ;;  %p12544_p1 = scmp.lt.s32.totalorder %s12542_s6, %s12538_s0 }
 0x6d2   : > { %v7691_v38 = vmul.f32 %v15973_v1, %v7583_v24 }
 0x6d3   : > { %p12540_p12 = pnand %p12539_p11, %p12871_p5  ;;  %p12545_p2 = por %p12544_p1, %p12543_p0 }
 0x6d4   : > { %9697 = vmatmul.bf16.gmra.mxu0 %v7818_v62  ;;  %9553 = vmatpush.bf16.msra.mxu1 %v11727_v44  ;;  %v11722_v62 = vld [vmem:[%s17444_s9 + $0x280] sm:$0xff]  ;;  %v7787_v44 = vpack.c.bf16 %v7715_v3, %v7691_v38 }
 0x6d5   : > { %v11786_v38 = vld [vmem:[%s17444_s9 + $0x480] sm:$0xff]  ;;  %p12541_p13 = pneg %p12540_p12 }
 0x6d7   : > { %p12546_p3 = pnand %p12545_p2, %p12541_p13 }
 0x6d8   : > { %9554 = vmatpush.bf16.msra.mxu1 %v11726_v54  ;;  %v7425_v54 = vld [vmem:[%s12821_s12] sm:$0xff] }
 0x6db   : > { %9412 = vmatmul.bf16.gmra.mxu1 %v17491_v34  ;;  %v11792_v34 = vld [vmem:[%s17444_s9 + $0x4b0] sm:$0xff] }
 0x6dc   : > { %9555 = vmatpush.bf16.msra.mxu1 %v11725_v4  ;;  %v11673_v4 = vld [vmem:[%s17444_s9 + $0xf8] sm:$0xff] }
 0x6e0   : > { %9556 = vmatpush.bf16.msra.mxu1 %v11724_v48  ;;  %v17499_v48 = vld [vmem:[#allocation33_spill] sm:$0xff] }
 0x6e4   : > { %9768 = vmatmul.bf16.vlgmr.msrb.gmra.mxu0 %v7798_v45  ;;  %9557 = vmatpush.bf16.msra.mxu1 %v11723_v9  ;;  %v7430_v45 = vld [vmem:[%s12821_s12 + $0x28] sm:$0xff]  ;;  %v7631_v9 = vunpack.c.l.bf16 %v17499_v48  ;;  %v11704_v48 = vld [vmem:[%s17444_s9 + $0x1f0] sm:$0xff] }
 0x6e5   : > { %7459 = vmatpush.msra.mxu2 %v7430_v45 }
 0x6e7   : > { %7460 = vmatpush.msra.mxu2 %v7429_v43  ;;  %v11788_v43 = vld [vmem:[%s17444_s9 + $0x490] sm:$0xff] }
 0x6e8   : > { %9558 = vmatpush.bf16.msra.mxu1 %v11722_v62  ;;  %v7763_v62 = vmul.f32 %v16326_v15, %v7655_v13  ;;  %v11705_v13 = vld [vmem:[%s17444_s9 + $0x1f8] sm:$0xff] }
 0x6e9   : > { %7461 = vmatpush.msra.mxu2 %v7428_v60  ;;  %v11787_v60 = vld [vmem:[%s17444_s9 + $0x488] sm:$0xff] }
 0x6eb   : > { %9483 = vmatmul.bf16.vlgmr.msrb.gmra.mxu1 %v17494_v53  ;;  %7462 = vmatpush.msra.mxu2 %v7427_v61  ;;  %v7739_v53 = vmul.f32 %v16338_v35, %v7631_v9 }
 0x6ec   : > { %9627 = vmatpush.bf16.msrb.mxu1 %v11761_v6 }
 0x6ed   : > { %7463 = vmatpush.msra.mxu2 %v7426_v14  ;;  %v7811_v6 = vpack.c.bf16 %v7763_v62, %v7739_v53 }
 0x6ef   : > { %7464 = vmatpush.msra.mxu2 %v7425_v54  ;;  %v7659_v54 = vunpack.c.l.bf16 %v16501_v32 }
 0x6f0   : > { %9628 = vmatpush.bf16.msrb.mxu1 %v11760_v11  ;;  %v11790_v11 = vld [vmem:[%s17444_s9 + $0x4a0] sm:$0xff] }
 0x6f1   : > { %9418 = vmatpush.bf16.msrb.mxu2 %v11673_v4  ;;  %v7635_v4 = vunpack.c.l.bf16 %v16499_v47  ;;  %v7767_v9 = vmul.f32 %v16373_v18, %v7659_v54  ;;  %v11821_v18 = vld [vmem:[%s17444_s9 + $0x598] sm:$0xff]  ;;  %v11702_v47 = vld [vmem:[%s17444_s9 + $0x1e0] sm:$0xff] }
 0x6f3   : > { %v7743_v32 = vmul.f32 %v16371_v49, %v7635_v4 }
 0x6f4   : > { %9773 = vmatmul.bf16.gmra.mxu0 %v7822_v58  ;;  %9629 = vmatpush.bf16.msrb.mxu1 %v11759_v21  ;;  %v11793_v58 = vld [vmem:[%s17444_s9 + $0x4b8] sm:$0xff] }
 0x6f5   : > { %9419 = vmatpush.bf16.msrb.mxu2 %v11672_v2  ;;  %v11789_v21 = vld [vmem:[%s17444_s9 + $0x498] sm:$0xff] }
 0x6f8   : > { %9630 = vmatpush.bf16.msrb.mxu1 %v11758_v37  ;;  %v17501_v37 = vld [vmem:[#allocation41_spill] sm:$0xff] }
 0x6f9   : > { %9420 = vmatpush.bf16.msrb.mxu2 %v11671_v63  ;;  %v7611_v45 = vunpack.c.l.bf16 %v17501_v37  ;;  %v11820_v63 = vld [vmem:[%s17444_s9 + $0x590] sm:$0xff] }
 0x6fb   : > { %9488 = vmatmul.bf16.gmra.mxu1 %v17495_v41  ;;  %v17502_v41 = vld [vmem:[#allocation35_spill] sm:$0xff]  ;;  %v7719_v57 = vmul.f32 %v16077_v33, %v7611_v45  ;;  %v11825_v33 = vld [vmem:[%s17444_s9 + $0x5b8] sm:$0xff] }
 0x6fc   : > { %9631 = vmatpush.bf16.msrb.mxu1 %v11757_v22  ;;  %v7587_v22 = vunpack.c.l.bf16 %v17502_v41  ;;  %v11701_v41 = vld [vmem:[%s17444_s9 + $0x1d8] sm:$0xff] }
 0x6fd   : > { %9421 = vmatpush.bf16.msrb.mxu2 %v11670_v28  ;;  %v17503_v28 = vld [vmem:[#allocation53_spill] sm:$0xff] }
 0x6fe   : > { %v7695_v61 = vmul.f32 %v16075_v29, %v7587_v22  ;;  %v11824_v29 = vld [vmem:[%s17444_s9 + $0x5b0] sm:$0xff]  ;;  %v7615_v37 = vunpack.c.l.bf16 %v17503_v28  ;;  %v11819_v22 = vld [vmem:[%s17444_s9 + $0x588] sm:$0xff]  ;;  %v11762_v28 = vld [vmem:[%s17444_s9 + $0x3c0] sm:$0xff] }
 0x700   : > { %9632 = vmatpush.bf16.msrb.mxu1 %v11756_v5  ;;  %v11669_v5 = vld [vmem:[%s17444_s9 + $0xd8] sm:$0xff]  ;;  %v7791_v24 = vpack.c.bf16 %v7719_v57, %v7695_v61  ;;  %v11700_v57 = vld [vmem:[%s17444_s9 + $0x1d0] sm:$0xff] }
 0x701   : > { %9422 = vmatpush.bf16.msrb.mxu2 %v11669_v5 }
 0x704   : > { %9633 = vmatpush.bf16.msrb.mxu1 %v11755_v26  ;;  %v11668_v26 = vld [vmem:[%s17444_s9 + $0xd0] sm:$0xff] }
 0x705   : > { %9423 = vmatpush.bf16.msrb.mxu2 %v11668_v26 }
 0x708   : > { %9634 = vmatpush.bf16.msrb.mxu1 %v11754_v36  ;;  %v11666_v36 = vld [vmem:[%s17444_s9 + $0xc0] sm:$0xff] }
 0x70b   : > { %9559 = vmatmul.bf16.vlgmr.msra.gmra.mxu1 %v7787_v44  ;;  %v11667_v44 = vld [vmem:[%s17444_s9 + $0xc8] sm:$0xff] }
 0x70c   : > { %9703 = vmatpush.bf16.msra.mxu1 %v11793_v58  ;;  %9424 = vmatpush.bf16.msrb.mxu2 %v11667_v44  ;;  %v17506_v44 = vld [vmem:[#allocation36_spill] sm:$0xff] }
 0x710   : > { %9704 = vmatpush.bf16.msra.mxu1 %v11792_v34  ;;  %9425 = vmatpush.bf16.msrb.mxu2 %v11666_v36  ;;  %v11823_v34 = vld [vmem:[%s17444_s9 + $0x5a8] sm:$0xff]  ;;  %v7639_v36 = vunpack.c.l.bf16 %v16586_v8 }
 0x711   : > { %v17509_v8 = vld [vmem:[#allocation84_spill] sm:$0xff] }
 0x714   : > { %9705 = vmatpush.bf16.msra.mxu1 %v11791_v51  ;;  %v11822_v51 = vld [vmem:[%s17444_s9 + $0x5a0] sm:$0xff] }
 0x718   : > { %9706 = vmatpush.bf16.msra.mxu1 %v11790_v11  ;;  %v11703_v11 = vld [vmem:[%s17444_s9 + $0x1e8] sm:$0xff] }
 0x71b   : > { %9564 = vmatmul.bf16.gmra.mxu1 %v7811_v6  ;;  %v7815_v6 = vpack.c.bf16 %v7767_v9, %v7743_v32 }
 0x71c   : > { %9707 = vmatpush.bf16.msra.mxu1 %v11789_v21 }
 0x720   : > { %9708 = vmatpush.bf16.msra.mxu1 %v11788_v43  ;;  %v17504_v43 = vld [vmem:[#allocation67_spill] sm:$0xff] }
 0x721   : > { %v7591_v5 = vunpack.c.l.bf16 %v17504_v43  ;;  %v11800_v43 = vld [vmem:[%s17444_s9 + $0x4f0] sm:$0xff] }
 0x723   : > { %v7699_v26 = vmul.f32 %v16044_v59, %v7591_v5  ;;  %v9370_v5 = vpop.f32.mrf.mxu3 }
 0x724   : > { %9709 = vmatpush.bf16.msra.mxu1 %v11787_v60  ;;  %v7723_v60 = vmul.f32 %v16031_v50, %v7615_v37  ;;  %v7663_v50 = vunpack.c.l.bf16 %v16588_v46  ;;  %v11734_v46 = vld [vmem:[%s17444_s9 + $0x2e0] sm:$0xff]  ;;  %v17515_v37 = vld [vmem:[#allocation64_spill] sm:$0xff] }
 0x728   : > { %v7409_v17 = vpop.f32.mrf.mxu1  ;;  %9710 = vmatpush.bf16.msra.mxu1 %v11786_v38  ;;  %v17505_v38 = vld [vmem:[#allocation37_spill] sm:$0xff] }
 0x729   : > { %v7410_v3 = vadd.f32 %v11953_v40, %v7409_v17  ;;  %v7795_v17 = vpack.c.bf16 %v7723_v60, %v7699_v26  ;;  %v17507_v59 = vpack.c.bf16 %v17505_v38, %v17506_v44  ;;  %v17518_v60 = vld [vmem:[#allocation80_spill] sm:$0xff]  ;;  %v17519_v26 = vld [vmem:[#allocation74_spill] sm:$0xff] }
 0x72a   : > { %v11795_v38 = vld [vmem:[%s17444_s9 + $0x4c8] sm:$0xff] }
 0x72b   : > { %12491 = vtanh.f32 %v7410_v3  ;;  %9635 = vmatmul.bf16.vlgmr.msrb.gmra.mxu1 %v7791_v24  ;;  %v11699_v24 = vld [vmem:[%s17444_s9 + $0x1c8] sm:$0xff]  ;;  %v11698_v3 = vld [vmem:[%s17444_s9 + $0x1c0] sm:$0xff] }
 0x72c   : > { %9779 = vmatpush.bf16.msrb.mxu1 %v11825_v33  ;;  %v11737_v33 = vld [vmem:[%s17444_s9 + $0x2f8] sm:$0xff] }
 0x730   : > { %v7412_v14 = vpop.f32.mrf.mxu1  ;;  %9780 = vmatpush.bf16.msrb.mxu1 %v11824_v29  ;;  %v7771_v29 = vmul.f32 %v16235_v27, %v7663_v50  ;;  %v7595_v27 = vunpack.c.l.bf16 %v16448_v12  ;;  %v17512_v12 = vld [vmem:[#allocation69_spill] sm:$0xff] }
 0x731   : > { %v12492_v58 = vpop.eup %12491  ;;  %v7413_v20 = vadd.f32 %v11953_v40, %v7412_v14  ;;  %v11736_v14 = vld [vmem:[%s17444_s9 + $0x2f0] sm:$0xff] }
 0x732   : > { %10754 = vmatmul.msk.f32.vlgmr.msra.gmra.mxu2 %vm2100_vm4, %v12492_v58  ;;  %v7747_v58 = vmul.f32 %v16233_v7, %v7639_v36  ;;  %v11732_v7 = vld [vmem:[%s17444_s9 + $0x2d0] sm:$0xff]  ;;  %v7703_v32 = vmul.f32 %v15973_v1, %v7595_v27  ;;  %v7643_v1 = vunpack.c.l.bf16 %v16676_v52  ;;  %v17514_v52 = vpack.c.bf16 %v16603_v39, %v16594_v19  ;;  %v11799_v19 = vld [vmem:[%s17444_s9 + $0x4e8] sm:$0xff]  ;;  %v11798_v39 = vld [vmem:[%s17444_s9 + $0x4e0] sm:$0xff] }
 0x733   : > { %12493 = vtanh.f32 %v7413_v20  ;;  %9494 = vmatpush.bf16.msra.mxu2 %v11705_v13  ;;  %v11735_v20 = vld [vmem:[%s17444_s9 + $0x2e8] sm:$0xff]  ;;  %v7619_v13 = vunpack.c.l.bf16 %v16465_v31  ;;  %v11730_v31 = vld [vmem:[%s17444_s9 + $0x2c0] sm:$0xff] }
 0x734   : > { %9781 = vmatpush.bf16.msrb.mxu1 %v11823_v34  ;;  %v7819_v54 = vpack.c.bf16 %v7771_v29, %v7747_v58  ;;  %v17508_v34 = vld [vmem:[#allocation72_spill] sm:$0xff]  ;;  %v11954_v29 = vld [vmem:[%s12826_s19] ss:$0 sm:$0xff]  ;;  %v11833_v58 = vld [vmem:[%s17444_s9 + $0x5f8] sm:$0xff] }
 0x735   : > { %v17510_v4 = vpack.c.bf16 %v17508_v34, %v17509_v8  ;;  %v7727_v9 = vmul.f32 %v15975_v30, %v7619_v13  ;;  %v11768_v30 = vld [vmem:[%s17444_s9 + $0x3f0] sm:$0xff]  ;;  %v17522_v36 = vld [vmem:[#allocation40_spill] sm:$0xff] }
 0x736   : > { %v11832_v34 = vld [vmem:[%s17444_s9 + $0x5f0] sm:$0xff] }
 0x737   : > { %9495 = vmatpush.bf16.msra.mxu2 %v11704_v48  ;;  %v11733_v48 = vld [vmem:[%s17444_s9 + $0x2d8] sm:$0xff] }
 0x738   : > { %v7415_v62 = vpop.f32.mrf.mxu1  ;;  %9782 = vmatpush.bf16.msrb.mxu1 %v11822_v51  ;;  %v7799_v51 = vpack.c.bf16 %v7727_v9, %v7703_v32  ;;  %v11830_v9 = vld [vmem:[%s17444_s9 + $0x5e0] sm:$0xff]  ;;  %v17524_v32 = vpack.c.bf16 %v16535_v0, %v16532_v10  ;;  %v17525_v0 = vld [vmem:[#allocation66_spill] sm:$0xff] }
 0x739   : > { %v12494_v2 = vpop.eup %12493  ;;  %v7416_v53 = vadd.f32 %v11953_v40, %v7415_v62  ;;  %v11731_v62 = vld [vmem:[%s17444_s9 + $0x2c8] sm:$0xff] }
 0x73a   : > { %10755 = vmatmul.msk.f32.gmra.mxu2 %vm2100_vm4, %v12494_v2  ;;  %v7667_v2 = vunpack.c.l.bf16 %v16678_v16 }
 0x73b   : > { %12495 = vtanh.f32 %v7416_v53  ;;  %9640 = vmatmul.bf16.gmra.mxu1 %v7815_v6  ;;  %9496 = vmatpush.bf16.msra.mxu2 %v11703_v11  ;;  %v17511_v53 = vld [vmem:[#allocation70_spill] sm:$0xff] }
 0x73c   : > { %9783 = vmatpush.bf16.msrb.mxu1 %v11821_v18  ;;  %v17513_v6 = vpack.c.bf16 %v17511_v53, %v17512_v12  ;;  %v11769_v11 = vld [vmem:[%s17444_s9 + $0x3f8] sm:$0xff]  ;;  %v7775_v18 = vmul.f32 %v16326_v15, %v7667_v2  ;;  %v11764_v15 = vld [vmem:[%s17444_s9 + $0x3d0] sm:$0xff] }
 0x73d   : > { %v11828_v53 = vld [vmem:[%s17444_s9 + $0x5d0] sm:$0xff] }
 0x73f   : > { %9497 = vmatpush.bf16.msra.mxu2 %v11702_v47  ;;  %v7751_v47 = vmul.f32 %v16338_v35, %v7643_v1  ;;  %v11763_v35 = vld [vmem:[%s17444_s9 + $0x3c8] sm:$0xff] }
 0x740   : > { %v7418_v49 = vpop.f32.mrf.mxu1  ;;  %9784 = vmatpush.bf16.msrb.mxu1 %v11820_v63  ;;  %v11766_v63 = vld [vmem:[%s17444_s9 + $0x3e0] sm:$0xff] }
 0x741   : > { %v12496_v21 = vpop.eup %12495  ;;  %v7419_v45 = vadd.f32 %v11953_v40, %v7418_v49  ;;  %v11818_v40 = vld [vmem:[%s17444_s9 + $0x580] sm:$0xff]  ;;  %v11767_v49 = vld [vmem:[%s17444_s9 + $0x3e8] sm:$0xff]  ;;  %v7823_v16 = vpack.c.bf16 %v7775_v18, %v7751_v47 }
 0x742   : > { %10756 = vmatmul.msk.f32.gmra.mxu2 %vm2100_vm4, %v12496_v21  ;;  %v11765_v21 = vld [vmem:[%s17444_s9 + $0x3d8] sm:$0xff] }
 0x743   : > { %12497 = vtanh.f32 %v7419_v45  ;;  %9498 = vmatpush.bf16.msra.mxu2 %v11701_v41  ;;  %v17516_v45 = vld [vmem:[#allocation61_spill] sm:$0xff] }
 0x744   : > { %9785 = vmatpush.bf16.msrb.mxu1 %v11819_v22  ;;  %v17517_v41 = vpack.c.bf16 %v17515_v37, %v17516_v45  ;;  %v11801_v22 = vld [vmem:[%s17444_s9 + $0x4f8] sm:$0xff] }
 0x747   : > { %9499 = vmatpush.bf16.msra.mxu2 %v11700_v57  ;;  %v9389_v57 = vpop.f32.mrf.mxu0 }
 0x748   : > { %9786 = vmatpush.bf16.msrb.mxu1 %v11818_v40  ;;  %v17520_v40 = vpack.c.bf16 %v17518_v60, %v17519_v26 }
 0x749   : > { %v12498_v61 = vpop.eup %12497 }
 0x74a   : > { %10757 = vmatmul.msk.f32.gmra.mxu2 %vm2100_vm4, %v12498_v61  ;;  %v11797_v61 = vld [vmem:[%s17444_s9 + $0x4d8] sm:$0xff] }
 0x74b   : > { %9711 = vmatmul.bf16.vlgmr.msra.gmra.mxu1 %v7795_v17  ;;  %9500 = vmatpush.bf16.msra.mxu2 %v11699_v24  ;;  %v9408_v17 = vpop.f32.mrf.mxu1  ;;  %v11796_v24 = vld [vmem:[%s17444_s9 + $0x4d0] sm:$0xff] }
 0x74f   : > { %9501 = vmatpush.bf16.msra.mxu2 %v11698_v3  ;;  %v9372_v3 = vpop.f32.mrf.mxu3  ;;  %v9391_v50 = vpop.f32.mrf.mxu0 }
 0x752   : > { %9426 = vmatmul.bf16.vlgmr.msrb.gmra.mxu2 %v17507_v59  ;;  %v11794_v59 = vld [vmem:[%s17444_s9 + $0x4c0] sm:$0xff] }
 0x753   : > { %9570 = vmatpush.bf16.msrb.mxu2 %v11737_v33  ;;  %v9410_v44 = vpop.f32.mrf.mxu1  ;;  %v17521_v33 = vld [vmem:[#allocation60_spill] sm:$0xff] }
 0x757   : > { %9571 = vmatpush.bf16.msrb.mxu2 %v11736_v14  ;;  %v17523_v14 = vpack.c.bf16 %v17521_v33, %v17522_v36 }
 0x75b   : > { %9716 = vmatmul.bf16.gmra.mxu1 %v7819_v54  ;;  %9572 = vmatpush.bf16.msrb.mxu2 %v11735_v20  ;;  %v9375_v54 = vpop.f32.mrf.mxu3  ;;  %v9394_v20 = vpop.f32.mrf.mxu0 }
 0x75c   : > { %v9413_v8 = vpop.f32.mrf.mxu1 }
 0x75f   : > { %9573 = vmatpush.bf16.msrb.mxu2 %v11734_v46 }
 0x762   : > { %9431 = vmatmul.bf16.gmra.mxu2 %v17510_v4  ;;  %v11831_v4 = vld [vmem:[%s17444_s9 + $0x5e8] sm:$0xff] }
 0x763   : > { %9574 = vmatpush.bf16.msrb.mxu2 %v11733_v48  ;;  %v9377_v48 = vpop.f32.mrf.mxu3 }
 0x767   : > { %9575 = vmatpush.bf16.msrb.mxu2 %v11732_v7  ;;  %v9396_v7 = vpop.f32.mrf.mxu0 }
 0x76b   : > { %9787 = vmatmul.bf16.vlgmr.msrb.gmra.mxu1 %v7799_v51  ;;  %9576 = vmatpush.bf16.msrb.mxu2 %v11731_v62  ;;  %v9415_v62 = vpop.f32.mrf.mxu1  ;;  %v11829_v51 = vld [vmem:[%s17444_s9 + $0x5d8] sm:$0xff]  ;;  %v9446_v2 = vpop.f32.mrf.mxu3 }
 0x76f   : > { %9577 = vmatpush.bf16.msrb.mxu2 %v11730_v31  ;;  %v9465_v12 = vpop.f32.mrf.mxu0 }
 0x772   : > { %9502 = vmatmul.bf16.vlgmr.msra.gmra.mxu2 %v17513_v6  ;;  %v11827_v6 = vld [vmem:[%s17444_s9 + $0x5c8] sm:$0xff] }
 0x773   : > { %9646 = vmatpush.bf16.msra.mxu2 %v11769_v11  ;;  %v9484_v1 = vpop.f32.mrf.mxu1  ;;  %v9448_v10 = vpop.f32.mrf.mxu3 }
 0x777   : > { %9647 = vmatpush.bf16.msra.mxu2 %v11768_v30 }
 0x77b   : > { %9792 = vmatmul.bf16.gmra.mxu1 %v7823_v16  ;;  %9648 = vmatpush.bf16.msra.mxu2 %v11767_v49  ;;  %v11826_v49 = vld [vmem:[%s17444_s9 + $0x5c0] sm:$0xff]  ;;  %v9486_v37 = vpop.f32.mrf.mxu1 }
 0x77c   : > { %v17526_v16 = vld [vmem:[#allocation63_spill] sm:$0xff] }
 0x77f   : > { %9649 = vmatpush.bf16.msra.mxu2 %v11766_v63  ;;  %v17527_v63 = vpack.c.bf16 %v17525_v0, %v17526_v16 }
 0x782   : > { %9507 = vmatmul.bf16.gmra.mxu2 %v17514_v52  ;;  %v9467_v52 = vpop.f32.mrf.mxu0 }
 0x783   : > { %9650 = vmatpush.bf16.msra.mxu2 %v11765_v21 }
 0x787   : > { %9651 = vmatpush.bf16.msra.mxu2 %v11764_v15 }
 0x78b   : > { %9652 = vmatpush.bf16.msra.mxu2 %v11763_v35 }
 0x78f   : > { %9653 = vmatpush.bf16.msra.mxu2 %v11762_v28 }
 0x792   : > { %9578 = vmatmul.bf16.vlgmr.msrb.gmra.mxu2 %v17517_v41 }
 0x793   : > { %9722 = vmatpush.bf16.msrb.mxu2 %v11801_v22  ;;  %v9451_v22 = vpop.f32.mrf.mxu3 }
 0x797   : > { %9723 = vmatpush.bf16.msrb.mxu2 %v11800_v43 }
 0x79b   : > { %9724 = vmatpush.bf16.msrb.mxu2 %v11799_v19 }
 0x79f   : > { %9725 = vmatpush.bf16.msrb.mxu2 %v11798_v39  ;;  %v9470_v39 = vpop.f32.mrf.mxu0 }
 0x7a2   : > { %9583 = vmatmul.bf16.gmra.mxu2 %v17520_v40  ;;  %v9489_v40 = vpop.f32.mrf.mxu1 }
 0x7a3   : > { %9726 = vmatpush.bf16.msrb.mxu2 %v11797_v61  ;;  %v17528_v61 = vpack.c.bf16 %v16628_v56, %v16625_v55 }
 0x7a7   : > { %9727 = vmatpush.bf16.msrb.mxu2 %v11796_v24  ;;  %v9472_v33 = vpop.f32.mrf.mxu0 }
 0x7aa   : > { %v9491_v36 = vpop.f32.mrf.mxu1 }
 0x7ab   : > { %9728 = vmatpush.bf16.msrb.mxu2 %v11795_v38 }
 0x7af   : > { %9729 = vmatpush.bf16.msrb.mxu2 %v11794_v59 }
 0x7b2   : > { %9654 = vmatmul.bf16.vlgmr.msra.gmra.mxu2 %v17523_v14 }
 0x7b3   : > { %9798 = vmatpush.bf16.msra.mxu2 %v11833_v58 }
 0x7b5   : > { %v7466_v46 = vpop.f32.mrf.mxu2 }
 0x7b6   : > { %v7467_v13 = vadd.f32 %v11954_v29, %v7466_v46 }
 0x7b7   : > { %9799 = vmatpush.bf16.msra.mxu2 %v11832_v34 }
 0x7b8   : > { %v9371_v11 = vadd.f32 %v9370_v5, %v7467_v13  ;;  %v17529_v13 = vld [vmem:[#allocation76_spill] sm:$0xff] }
 0x7b9   : > { %v17530_v34 = vpack.c.bf16 %v16482_v25, %v17529_v13 }
 0x7ba   : > { %v9390_v47 = vadd.f32 %v9389_v57, %v9371_v11 }
 0x7bb   : > { %9800 = vmatpush.bf16.msra.mxu2 %v11831_v4 }
 0x7bc   : > { %v9409_v15 = vadd.f32 %v9408_v17, %v9390_v47 }
 0x7bd   : > { %v7469_v27 = vpop.f32.mrf.mxu2 }
 0x7be   : > { %v7470_v18 = vadd.f32 %v11954_v29, %v7469_v27 }
 0x7bf   : > { %9801 = vmatpush.bf16.msra.mxu2 %v11830_v9 }
 0x7c0   : > { %v9373_v21 = vadd.f32 %v9372_v3, %v7470_v18  ;;  %v9453_v3 = vpop.f32.mrf.mxu3 }
 0x7c2   : > { %9659 = vmatmul.bf16.gmra.mxu2 %v17524_v32  ;;  %v9392_v41 = vadd.f32 %v9391_v50, %v9373_v21 }
 0x7c3   : > { %9802 = vmatpush.bf16.msra.mxu2 %v11829_v51 }
 0x7c4   : > { %v9411_v19 = vadd.f32 %v9410_v44, %v9392_v41 }
 0x7c5   : > { %v7472_v31 = vpop.f32.mrf.mxu2 }
 0x7c6   : > { %v7473_v45 = vadd.f32 %v11954_v29, %v7472_v31 }
 0x7c7   : > { %9803 = vmatpush.bf16.msra.mxu2 %v11828_v53 }
 0x7c8   : > { %v9376_v43 = vadd.f32 %v9375_v54, %v7473_v45  ;;  %v9522_v58 = vpop.f32.mrf.mxu3 }
 0x7ca   : > { %v9395_v26 = vadd.f32 %v9394_v20, %v9376_v43  ;;  %v9541_v20 = vpop.f32.mrf.mxu0 }
 0x7cb   : > { %9804 = vmatpush.bf16.msra.mxu2 %v11827_v6  ;;  %v17531_v6 = vpack.c.bf16 %v16712_v23, %v16709_v42 }
 0x7cc   : > { %v9414_v17 = vadd.f32 %v9413_v8, %v9395_v26  ;;  %v9560_v8 = vpop.f32.mrf.mxu1 }
 0x7cd   : > { %v7475_v30 = vpop.f32.mrf.mxu2 }
 0x7ce   : > { %v7476_v60 = vadd.f32 %v11954_v29, %v7475_v30 }
 0x7cf   : > { %9805 = vmatpush.bf16.msra.mxu2 %v11826_v49 }
 0x7d0   : > { %v9378_v24 = vadd.f32 %v9377_v48, %v7476_v60  ;;  %v9524_v27 = vpop.f32.mrf.mxu3 }
 0x7d2   : > { %9730 = vmatmul.bf16.vlgmr.msrb.gmra.mxu2 %v17527_v63  ;;  %v9397_v50 = vadd.f32 %v9396_v7, %v9378_v24  ;;  %v9543_v7 = vpop.f32.mrf.mxu0 }
 0x7d4   : > { %v9416_v44 = vadd.f32 %v9415_v62, %v9397_v50 }
 0x7d5   : > { %v9427_v35 = vpop.f32.mrf.mxu2 }
 0x7d6   : > { %v9428_v28 = vadd.f32 %v9427_v35, %v9409_v15 }
 0x7d8   : > { %v9447_v14 = vadd.f32 %v9446_v2, %v9428_v28  ;;  %v9562_v2 = vpop.f32.mrf.mxu1 }
 0x7da   : > { %v9466_v29 = vadd.f32 %v9465_v12, %v9447_v14  ;;  %v9527_v12 = vpop.f32.mrf.mxu3 }
 0x7dc   : > { %v9485_v56 = vadd.f32 %v9484_v1, %v9466_v29  ;;  %v9546_v1 = vpop.f32.mrf.mxu0 }
 0x7dd   : > { %v9429_v5 = vpop.f32.mrf.mxu2 }
 0x7de   : > { %v9430_v57 = vadd.f32 %v9429_v5, %v9411_v19 }
 0x7e0   : > { %v9449_v55 = vadd.f32 %v9448_v10, %v9430_v57  ;;  %v9565_v49 = vpop.f32.mrf.mxu1 }
 0x7e2   : > { %9735 = vmatmul.bf16.gmra.mxu2 %v17528_v61  ;;  %v9468_v9 = vadd.f32 %v9467_v52, %v9449_v55  ;;  %v9529_v10 = vpop.f32.mrf.mxu3 }
 0x7e4   : > { %v9487_v51 = vadd.f32 %v9486_v37, %v9468_v9  ;;  %v9548_v21 = vpop.f32.mrf.mxu0 }
 0x7e5   : > { %v9432_v38 = vpop.f32.mrf.mxu2 }
 0x7e6   : > { %v9433_v59 = vadd.f32 %v9432_v38, %v9414_v17 }
 0x7e8   : > { %v9452_v32 = vadd.f32 %v9451_v22, %v9433_v59  ;;  %v9567_v35 = vpop.f32.mrf.mxu1 }
 0x7ea   : > { %v9471_v53 = vadd.f32 %v9470_v39, %v9452_v32  ;;  %v9598_v45 = vpop.f32.mrf.mxu3 }
 0x7ec   : > { %v9490_v11 = vadd.f32 %v9489_v40, %v9471_v53  ;;  %v9617_v22 = vpop.f32.mrf.mxu0 }
 0x7ed   : > { %v9434_v54 = vpop.f32.mrf.mxu2 }
 0x7ee   : > { %v9435_v46 = vadd.f32 %v9434_v54, %v9416_v44 }
 0x7f0   : > { %v9454_v25 = vadd.f32 %v9453_v3, %v9435_v46  ;;  %v9636_v39 = vpop.f32.mrf.mxu1 }
 0x7f2   : > { %9806 = vmatmul.bf16.vlgmr.msra.gmra.mxu2 %v17530_v34  ;;  %v9473_v47 = vadd.f32 %v9472_v33, %v9454_v25  ;;  %v9600_v60 = vpop.f32.mrf.mxu3 }
 0x7f4   : > { %v9492_v16 = vadd.f32 %v9491_v36, %v9473_v47  ;;  %v9619_v40 = vpop.f32.mrf.mxu0 }
 0x7f5   : > { %v9503_v4 = vpop.f32.mrf.mxu2 }
 0x7f6   : > { %v9504_v48 = vadd.f32 %v9503_v4, %v9485_v56 }
 0x7f8   : > { %v9523_v0 = vadd.f32 %v9522_v58, %v9504_v48  ;;  %v9638_v38 = vpop.f32.mrf.mxu1 }
 0x7fa   : > { %v9542_v15 = vadd.f32 %v9541_v20, %v9523_v0  ;;  %v9603_v33 = vpop.f32.mrf.mxu3 }
 0x7fc   : > { %v9561_v37 = vadd.f32 %v9560_v8, %v9542_v15  ;;  %v9622_v14 = vpop.f32.mrf.mxu0 }
 0x7fd   : > { %v9505_v62 = vpop.f32.mrf.mxu2 }
 0x7fe   : > { %v9506_v31 = vadd.f32 %v9505_v62, %v9487_v51 }
 0x800   : > { %v9525_v28 = vadd.f32 %v9524_v27, %v9506_v31  ;;  %v9641_v46 = vpop.f32.mrf.mxu1 }
 0x802   : > { %9811 = vmatmul.bf16.gmra.mxu2 %v17531_v6  ;;  %v9544_v41 = vadd.f32 %v9543_v7, %v9525_v28  ;;  %v9605_v29 = vpop.f32.mrf.mxu3 }
 0x804   : > { %v9563_v19 = vadd.f32 %v9562_v2, %v9544_v41  ;;  %v9624_v55 = vpop.f32.mrf.mxu0 }
 0x805   : > { %v9508_v30 = vpop.f32.mrf.mxu2 }
 0x806   : > { %v9509_v18 = vadd.f32 %v9508_v30, %v9490_v11 }
 0x808   : > { %v9528_v43 = vadd.f32 %v9527_v12, %v9509_v18  ;;  %v9643_v56 = vpop.f32.mrf.mxu1 }
 0x80a   : > { %v9547_v26 = vadd.f32 %v9546_v1, %v9528_v43  ;;  %v9674_v8 = vpop.f32.mrf.mxu3 }
 0x80c   : > { %v9566_v24 = vadd.f32 %v9565_v49, %v9547_v26  ;;  %v9693_v48 = vpop.f32.mrf.mxu0 }
 0x80d   : > { %v9510_v63 = vpop.f32.mrf.mxu2 }
 0x80e   : > { %v9511_v52 = vadd.f32 %v9510_v63, %v9492_v16 }
 0x810   : > { %v9530_v61 = vadd.f32 %v9529_v10, %v9511_v52  ;;  %v9712_v27 = vpop.f32.mrf.mxu1 }
 0x812   : > { %v9549_v59 = vadd.f32 %v9548_v21, %v9530_v61  ;;  %v9676_v7 = vpop.f32.mrf.mxu3 }
 0x814   : > { %v9568_v36 = vadd.f32 %v9567_v35, %v9549_v59  ;;  %v9695_v32 = vpop.f32.mrf.mxu0 }
 0x815   : > { %v9579_v42 = vpop.f32.mrf.mxu2 }
 0x816   : > { %v9580_v23 = vadd.f32 %v9579_v42, %v9561_v37 }
 0x818   : > { %v9599_v50 = vadd.f32 %v9598_v45, %v9580_v23  ;;  %v9714_v31 = vpop.f32.mrf.mxu1 }
 0x81a   : > { %v9618_v54 = vadd.f32 %v9617_v22, %v9599_v50  ;;  %v9679_v53 = vpop.f32.mrf.mxu3 }
 0x81c   : > { %v9637_v20 = vadd.f32 %v9636_v39, %v9618_v54  ;;  %v9698_v6 = vpop.f32.mrf.mxu0 }
 0x81d   : > { %v9581_v5 = vpop.f32.mrf.mxu2 }
 0x81e   : > { %v9582_v57 = vadd.f32 %v9581_v5, %v9563_v19 }
 0x820   : > { %v9601_v1 = vadd.f32 %v9600_v60, %v9582_v57  ;;  %v9717_v30 = vpop.f32.mrf.mxu1 }
 0x822   : > { %v9681_v18 = vpop.f32.mrf.mxu3  ;;  %v9620_v47 = vadd.f32 %v9619_v40, %v9601_v1 }
 0x824   : > { %v9700_v10 = vpop.f32.mrf.mxu0  ;;  %v9639_v16 = vadd.f32 %v9638_v38, %v9620_v47 }
 0x825   : > { %v9584_v17 = vpop.f32.mrf.mxu2 }
 0x826   : > { %v9585_v3 = vadd.f32 %v9584_v17, %v9566_v24 }
 0x828   : > { %v9604_v0 = vadd.f32 %v9603_v33, %v9585_v3  ;;  %v9719_v52 = vpop.f32.mrf.mxu1 }
 0x82a   : > { %v9623_v21 = vadd.f32 %v9622_v14, %v9604_v0  ;;  %v9750_v15 = vpop.f32.mrf.mxu3 }
 0x82c   : > { %v9642_v45 = vadd.f32 %v9641_v46, %v9623_v21  ;;  %v9769_v42 = vpop.f32.mrf.mxu0 }
 0x82d   : > { %v9586_v44 = vpop.f32.mrf.mxu2 }
 0x82e   : > { %v9587_v58 = vadd.f32 %v9586_v44, %v9568_v36 }
 0x830   : > { %v9606_v37 = vadd.f32 %v9605_v29, %v9587_v58  ;;  %v9788_v19 = vpop.f32.mrf.mxu1 }
 0x832   : > { %v9625_v22 = vadd.f32 %v9624_v55, %v9606_v37  ;;  %v9752_v60 = vpop.f32.mrf.mxu3 }
 0x834   : > { %v9644_v26 = vadd.f32 %v9643_v56, %v9625_v22  ;;  %v9771_v3 = vpop.f32.mrf.mxu0 }
 0x835   : > { %v9655_v13 = vpop.f32.mrf.mxu2 }
 0x836   : > { %v9656_v34 = vadd.f32 %v9655_v13, %v9637_v20 }
 0x838   : > { %v9675_v51 = vadd.f32 %v9674_v8, %v9656_v34  ;;  %v9790_v44 = vpop.f32.mrf.mxu1 }
 0x83a   : > { %v9694_v2 = vadd.f32 %v9693_v48, %v9675_v51  ;;  %v9755_v46 = vpop.f32.mrf.mxu3 }
 0x83c   : > { %v9713_v12 = vadd.f32 %v9712_v27, %v9694_v2  ;;  %v9774_v34 = vpop.f32.mrf.mxu0 }
 0x83d   : > { %v9657_v4 = vpop.f32.mrf.mxu2 }
 0x83e   : > { %v9658_v63 = vadd.f32 %v9657_v4, %v9639_v16 }
 0x840   : > { %v9677_v28 = vadd.f32 %v9676_v7, %v9658_v63  ;;  %v9793_v27 = vpop.f32.mrf.mxu1 }
 0x842   : > { %v9696_v41 = vadd.f32 %v9695_v32, %v9677_v28 }
 0x844   : > { %v9715_v57 = vadd.f32 %v9714_v31, %v9696_v41  ;;  %v9776_v31 = vpop.f32.mrf.mxu0 }
 0x845   : > { %v9660_v9 = vpop.f32.mrf.mxu2 }
 0x846   : > { %v9661_v23 = vadd.f32 %v9660_v9, %v9642_v45  ;;  %v9757_v9 = vpop.f32.mrf.mxu3 }
 0x848   : > { %v9680_v5 = vadd.f32 %v9679_v53, %v9661_v23  ;;  %v9795_v53 = vpop.f32.mrf.mxu1 }
 0x84a   : > { %v9699_v17 = vadd.f32 %v9698_v6, %v9680_v5 }
 0x84c   : > { %v9718_v36 = vadd.f32 %v9717_v30, %v9699_v17 }
 0x84d   : > { %v9662_v62 = vpop.f32.mrf.mxu2 }
 0x84e   : > { %v9663_v24 = vadd.f32 %v9662_v62, %v9644_v26 }
 0x850   : > { %v9682_v50 = vadd.f32 %v9681_v18, %v9663_v24 }
 0x852   : > { %v9701_v29 = vadd.f32 %v9700_v10, %v9682_v50 }
 0x854   : > { %v9720_v56 = vadd.f32 %v9719_v52, %v9701_v29 }
 0x855   : > { %v9731_v25 = vpop.f32.mrf.mxu2 }
 0x856   : > { %v9732_v11 = vadd.f32 %v9731_v25, %v9713_v12 }
 0x858   : > { %v9751_v43 = vadd.f32 %v9750_v15, %v9732_v11 }
 0x85a   : > { %v9770_v61 = vadd.f32 %v9769_v42, %v9751_v43 }
 0x85c   : > { %v9789_v59 = vadd.f32 %v9788_v19, %v9770_v61 }
 0x85d   : > { %v9733_v49 = vpop.f32.mrf.mxu2 }
 0x85e   : > { %v9734_v40 = vadd.f32 %v9733_v49, %v9715_v57 }
 0x860   : > { %v9753_v38 = vadd.f32 %v9752_v60, %v9734_v40 }
 0x862   : > { %v9772_v54 = vadd.f32 %v9771_v3, %v9753_v38 }
 0x864   : > { %v9791_v13 = vadd.f32 %v9790_v44, %v9772_v54 }
 0x865   : > { %v9736_v35 = vpop.f32.mrf.mxu2 }
 0x866   : > { %v9737_v58 = vadd.f32 %v9736_v35, %v9718_v36 }
 0x868   : > { %v9756_v20 = vadd.f32 %v9755_v46, %v9737_v58 }
 0x86a   : > { %v9775_v48 = vadd.f32 %v9774_v34, %v9756_v20 }
 0x86c   : > { %v9794_v32 = vadd.f32 %v9793_v27, %v9775_v48 }
 0x86d   : > { %v9738_v39 = vpop.f32.mrf.mxu2 }
 0x86e   : > { %v9739_v4 = vadd.f32 %v9738_v39, %v9720_v56 }
 0x870   : > { %v9758_v7 = vadd.f32 %v9757_v9, %v9739_v4 }
 0x872   : > { %v9777_v2 = vadd.f32 %v9776_v31, %v9758_v7 }
 0x874   : > { %v9796_v12 = vadd.f32 %v9795_v53, %v9777_v2 }
 0x875   : > { %v9807_v33 = vpop.f32.mrf.mxu2 }
 0x876   : > { %v9808_v14 = vadd.f32 %v9807_v33, %v9789_v59 }
 0x87d   : > { %v9809_v55 = vpop.f32.mrf.mxu2 }
 0x87e   : > { %v9810_v8 = vadd.f32 %v9809_v55, %v9791_v13 }
 0x880   : > { %9818 = vrot.lane.b32.xlu0 %v9810_v8, %s17418_s4  ;;  %s1286_s4 = sand.u32 1, %s12576_s23  }
 0x881   : > { %s10035_s1 = sshll.u32 %s1286_s4, 3 }
 0x882   : > { %s1288_s7 = scalar_lea.vmem [#allocation2], %s10035_s1 }
 0x883   : > { %s9846_s9 = sshll.u32 %s1288_s7, 4  ;;  %s9847_s9 = int_to_ptr.vmem [resolvable:$true] %s9846_s9 }
 0x885   : > { %v9812_v51 = vpop.f32.mrf.mxu2 }
 0x886   : > { %v9813_v62 = vadd.f32 %v9812_v51, %v9794_v32 }
 0x888   : > { %9822 = vrot.lane.b32.xlu1 %v9813_v62, %s17441_s5  ;;  %s9834_s5 = scalar_lea.sflag [#allocation3], %s1286_s4 }
 0x88d   : > { %v9814_v6 = vpop.f32.mrf.mxu2 }
 0x88e   : > { %v9815_v25 = vadd.f32 %v9814_v6, %v9796_v12 }
 0x890   : > { %9826 = vrot.lane.b32.xlu2 %v9815_v25, %s17532_s8 }
 0x8ea   : > { %v9827_v18 = vpop.permute.xlu2 %9826 }
 0x8f2   : > { %v9819_v11 = vpop.permute.xlu0 %9818 }
 0x8f3   : > { %v9829_v1 = vsel %vm1774_vm3, %v9808_v14, %v9819_v11 }
 0x8fa   : > { %v9823_v30 = vpop.permute.xlu1 %9822 }
 0x8fb   : > { %v9830_v47 = vsel %vm2100_vm4, %v9829_v1, %v9823_v30 }
 0x8fc   : > { %v9831_v49 = vsel %vm7504_vm6, %v9830_v47, %v9827_v18 }
 0x8fd   : > { %9832 = vst [vmem:[%s1288_s7] sm:$0xff] %v9831_v49 }
 0x8fe   : > { %12549 = shalt.err (!%p12546_p3)
}
 0x8ff   : > { %11838 = dma.vmem_to_hbm [thread:$0]  (%p12871_p5), %s9847_s9, 128, %s9849_s10, %s9834_s5  }
 0x900 PF: > { %p11844_p4 = scmp.ge.s32.totalorder %s12584_s28, 2  ;;  %s9860_s1 = sand.u32 1, %s12572_s22  }
 0x901   : > { %s9861_s7 = scalar_lea.sflag [#allocation3], %s9860_s1 }
 0x902   : > { %p11841_p7 = pnand %p11844_p4, %p12875_p6 }
 0x904   : > { %p11842_p8 = pneg %p11841_p7 }
 0x906   : > { %12567 = dma.done.wait (%p11842_p8), %s9861_s7, 128  }
 0x907   : > { %12569 = vsyncadd (%p11842_p8), %s9861_s7, 4294967168  ;;  %p89_p9 = scmp.ge.s32.totalorder %s12858_s2, 4   ;;  %s17533_s22 = smov %s12576_s23 }
 0x908   : > { %s17534_s23 = smov %s12580_s26  ;;  %s17535_s26 = smov %s12869_s11 }
 0x909   : > { %s17536_s28 = smov %s12858_s2  ;;  %91 = sbr.rel (!%p89_p9) target bundleno = 76 (0x4c), region = 271 }
 0x90e   :  { %9867 = vsyncpa [#allocation3], 1 }
 0x90f   :  { %9869 = vsyncpa [#allocation3 + $0x1], 1 }

</bundles_post_ra>
